<compile_context>
chip_gen: v5e
topology: v5e:2x2
jax: 0.10.0
libtpu: 0.0.40
codegen_flags: <defaults>
</compile_context>

<pallas_src>
import functools

import jax
import jax.numpy as jnp
from jax import lax
from jax.experimental import pallas as pl
from jax.experimental.pallas import tpu as pltpu

BN_EPS = 1e-5
_VMEM_LIMIT = 32 * 1024 * 1024

# Sub-pixel taps for stride-2, k=4, pad=1 ConvTranspose2d.  For output parity
# p, output row 2*j+p reads padded-input row j+dy with weight tap ky:
#   _TAPS[p] = ((dy0, ky0), (dy1, ky1))
_TAPS = {0: ((0, 3), (1, 1)), 1: ((1, 2), (2, 0))}


# ------------------------------ small helpers ------------------------------ #

def _round_up(x, m):
    return ((x + m - 1) // m) * m


def _cpad(c):
    return _round_up(c, 128)


def _pick_tm(m):
    return 512 if m >= 512 else _round_up(m, 8)


def _pick_tn(c):
    return 256 if c % 256 == 0 else 128


def _pad_vec(v, n):
    return jnp.zeros((n,), jnp.float32).at[: v.shape[0]].set(v.astype(jnp.float32))


# ----------------------------- Pallas kernels ------------------------------ #

def _gemm_stats_kernel(p_ref, w_ref, z_ref, s_ref):
    """(TM, K) @ (K, TN) on the MXU + per-block per-channel sum / sum-of-squares.

    Statistics are reduced in f32 before the pre-activation is downcast to bf16
    for the HBM round-trip to the BN/ReLU pass.
    """
    y = jnp.dot(p_ref[...], w_ref[...], preferred_element_type=jnp.float32)
    z_ref[...] = y.astype(z_ref.dtype)
    s_ref[...] = jnp.concatenate(
        [jnp.sum(y, axis=0, keepdims=True),
         jnp.sum(y * y, axis=0, keepdims=True)], axis=0)


def _gemm_bias_tanh_kernel(p_ref, w_ref, b_ref, o_ref):
    """Fully fused final layer: GEMM + bias + tanh (no BN, no intermediate)."""
    y = jnp.dot(p_ref[...], w_ref[...], preferred_element_type=jnp.float32)
    o_ref[...] = jnp.tanh(y + b_ref[...])


def _bn_relu_kernel(z_ref, sc_ref, sh_ref, o_ref):
    """y = z * scale + shift ; ReLU ; store bf16 for the next layer's GEMM."""
    y = z_ref[...].astype(jnp.float32) * sc_ref[...] + sh_ref[...]
    o_ref[...] = jnp.maximum(y, 0.0).astype(o_ref.dtype)


# --------------------------- pallas_call wrappers --------------------------- #

def _matmul_stats(p, w):
    """p: (G, M, K) bf16, w: (G, K, C) bf16 (K, C multiples of 128).

    Returns z: (G, Mp, C) bf16 pre-activations (Mp = M rounded up to the tile)
    and stats: (G, Mp//TM, 2, C) per-block (sum, sum_sq) per output channel.
    Zero-padded rows contribute nothing to the partial statistics.
    """
    g, m, k = p.shape
    c = w.shape[2]
    tm = _pick_tm(m)
    mp = _round_up(m, tm)
    if mp != m:
        p = jnp.pad(p, ((0, 0), (0, mp - m), (0, 0)))
    tn = _pick_tn(c)
    nmb = mp // tm
    grid = (g, nmb, c // tn)
    return pl.pallas_call(
        _gemm_stats_kernel,
        out_shape=(jax.ShapeDtypeStruct((g, mp, c), jnp.bfloat16),
                   jax.ShapeDtypeStruct((g, nmb, 2, c), jnp.float32)),
        grid=grid,
        in_specs=[pl.BlockSpec((None, tm, k), lambda gi, i, j: (gi, i, 0)),
                  pl.BlockSpec((None, k, tn), lambda gi, i, j: (gi, 0, j))],
        out_specs=(pl.BlockSpec((None, tm, tn), lambda gi, i, j: (gi, i, j)),
                   pl.BlockSpec((None, None, 2, tn),
                                lambda gi, i, j: (gi, i, 0, j))),
        compiler_params=pltpu.CompilerParams(
            dimension_semantics=("parallel", "parallel", "parallel"),
            vmem_limit_bytes=_VMEM_LIMIT),
    )(p.astype(jnp.bfloat16), w)


def _matmul_bias_tanh(p, w, bias):
    """Final layer: p (1, M, K) bf16 @ w (1, K, C) bf16, + bias, tanh -> f32."""
    g, m, k = p.shape
    c = w.shape[2]
    tm = _pick_tm(m)
    mp = _round_up(m, tm)
    if mp != m:
        p = jnp.pad(p, ((0, 0), (0, mp - m), (0, 0)))
    tn = _pick_tn(c)
    grid = (g, mp // tm, c // tn)
    return pl.pallas_call(
        _gemm_bias_tanh_kernel,
        out_shape=jax.ShapeDtypeStruct((g, mp, c), jnp.float32),
        grid=grid,
        in_specs=[pl.BlockSpec((None, tm, k), lambda gi, i, j: (gi, i, 0)),
                  pl.BlockSpec((None, k, tn), lambda gi, i, j: (gi, 0, j)),
                  pl.BlockSpec((1, tn), lambda gi, i, j: (0, j))],
        out_specs=pl.BlockSpec((None, tm, tn), lambda gi, i, j: (gi, i, j)),
        compiler_params=pltpu.CompilerParams(
            dimension_semantics=("parallel", "parallel", "parallel"),
            vmem_limit_bytes=_VMEM_LIMIT),
    )(p.astype(jnp.bfloat16), w, bias)


def _bn_relu_apply(z, scale, shift):
    g, m, c = z.shape
    tm = _pick_tm(m)
    tn = _pick_tn(c)
    grid = (g, m // tm, c // tn)
    return pl.pallas_call(
        _bn_relu_kernel,
        out_shape=jax.ShapeDtypeStruct((g, m, c), jnp.bfloat16),
        grid=grid,
        in_specs=[pl.BlockSpec((None, tm, tn), lambda gi, i, j: (gi, i, j)),
                  pl.BlockSpec((1, tn), lambda gi, i, j: (0, j)),
                  pl.BlockSpec((1, tn), lambda gi, i, j: (0, j))],
        out_specs=pl.BlockSpec((None, tm, tn), lambda gi, i, j: (gi, i, j)),
        compiler_params=pltpu.CompilerParams(
            dimension_semantics=("parallel", "parallel", "parallel"),
            vmem_limit_bytes=_VMEM_LIMIT),
    )(z, scale, shift)


def _finalize_bn(sums, count, gamma, beta):
    """Turn global (sum, sum_sq) into per-channel scale/shift (train-mode BN)."""
    mean = sums[0] / count
    var = jnp.maximum(sums[1] / count - mean * mean, 0.0)   # biased variance
    inv = lax.rsqrt(var + BN_EPS)
    scale = gamma * inv
    shift = beta - mean * scale
    return scale.reshape(1, -1), shift.reshape(1, -1)


# --------------------------------- layers ---------------------------------- #

def _layer1(x, lp):
    """ConvTranspose2d(nz, ngf*8, 4, 1, 0) + BN + ReLU on a 1x1 input."""
    n = x.shape[0]
    wg = lp["wg"]                                  # (1, Kp, 16*C1p) bf16
    kp = wg.shape[1]
    c1p = wg.shape[2] // 16
    x2 = x.reshape(n, -1)
    nz = x2.shape[1]
    p = jnp.zeros((1, n, kp), jnp.bfloat16).at[0, :, :nz].set(
        x2.astype(jnp.bfloat16))
    z, st = _matmul_stats(p, wg)                   # (1, Mp, 16*C1p)
    s = st.sum(axis=(0, 1)).reshape(2, 16, c1p).sum(axis=1)   # per-channel
    scale, shift = _finalize_bn(s, float(n * 16), lp["gamma"], lp["beta"])
    a = _bn_relu_apply(z, jnp.tile(scale, (1, 16)), jnp.tile(shift, (1, 16)))
    return a[0, :n].reshape(n, 4, 4, c1p)


def _layer_stride2(act, lp):
    """ConvTranspose2d(Cin, Cout, 4, 2, 1) + BN + ReLU via sub-pixel GEMMs."""
    n, h, w, cinp = act.shape
    wg = lp["wg"]                                  # (4, 4*Cinp, Coutp) bf16
    coutp = wg.shape[2]
    xp = jnp.pad(act, ((0, 0), (1, 1), (1, 1), (0, 0)))
    m = n * h * w
    pats = []
    for py in (0, 1):
        for px in (0, 1):
            taps = [xp[:, dy:dy + h, dx:dx + w, :]
                    for (dy, _) in _TAPS[py] for (dx, _) in _TAPS[px]]
            pats.append(jnp.concatenate(taps, axis=-1).reshape(m, 4 * cinp))
    p = jnp.stack(pats, axis=0)                    # (4, M, 4*Cinp) bf16
    z, st = _matmul_stats(p, wg)                   # (4, Mp, Coutp)
    s = st.sum(axis=(0, 1))                        # stats over all 4 parities
    scale, shift = _finalize_bn(s, float(4 * m), lp["gamma"], lp["beta"])
    a = _bn_relu_apply(z, scale, shift)[:, :m]     # (4, M, Coutp) bf16
    a = a.reshape(2, 2, n, h, w, coutp)
    return a.transpose(2, 3, 0, 4, 1, 5).reshape(n, 2 * h, 2 * w, coutp)


def _layer_final(act, lp, nc):
    """ConvTranspose2d(ngf, nc, 3, 1, 1) + bias + Tanh, fully fused GEMM."""
    n, h, w, cinp = act.shape
    wg = lp["wg"]                                  # (1, 9*Cinp, NCp) bf16
    xp = jnp.pad(act, ((0, 0), (1, 1), (1, 1), (0, 0)))
    m = n * h * w
    taps = [xp[:, dy:dy + h, dx:dx + w, :] for dy in range(3) for dx in range(3)]
    p = jnp.concatenate(taps, axis=-1).reshape(1, m, 9 * cinp)
    y = _matmul_bias_tanh(p, wg, lp["bias"])[0, :m]
    y = y.reshape(n, h, w, -1)[:, :, :, :nc]
    return jnp.transpose(y, (0, 3, 1, 2))          # NCHW, f32


# --------------------- parameter prep (hoisted, one-time) ------------------- #

def prepare_params(params, nz, nc, ngf):
    """Convert PyTorch-shaped parameters to padded bf16 GEMM layout (once)."""
    l1, l2, l3, l4, l5 = params
    c1, c2, c3, c4 = ngf * 8, ngf * 4, ngf * 2, ngf
    c1p, c2p, c3p, c4p, ncp = map(_cpad, (c1, c2, c3, c4, nc))
    kp = _cpad(nz)
    prep = {}

    # Layer 1: out[n, ky, kx, co] = sum_ci x[n, ci] * W[ci, co, ky, kx]
    w = jnp.zeros((kp, c1p, 4, 4), jnp.float32).at[:nz, :c1].set(l1["w"])
    prep["l1"] = {
        "wg": jnp.transpose(w, (0, 2, 3, 1)).reshape(1, kp, 16 * c1p
                                                     ).astype(jnp.bfloat16),
        "gamma": _pad_vec(l1["gamma"], c1p),
        "beta": _pad_vec(l1["beta"], c1p),
    }

    # Layers 2-4: one (4*Cinp, Coutp) weight per output parity (sub-pixel).
    for name, lp_, cin, cinp, cout, coutp in (
            ("l2", l2, c1, c1p, c2, c2p),
            ("l3", l3, c2, c2p, c3, c3p),
            ("l4", l4, c3, c3p, c4, c4p)):
        w = jnp.zeros((cinp, coutp, 4, 4), jnp.float32
                      ).at[:cin, :cout].set(lp_["w"])
        mats = []
        for py in (0, 1):
            for px in (0, 1):
                blocks = [w[:, :, ky, kx]
                          for (_, ky) in _TAPS[py] for (_, kx) in _TAPS[px]]
                mats.append(jnp.concatenate(blocks, axis=0))
        prep[name] = {
            "wg": jnp.stack(mats, axis=0).astype(jnp.bfloat16),
            "gamma": _pad_vec(lp_["gamma"], coutp),
            "beta": _pad_vec(lp_["beta"], coutp),
        }
    # Conv biases of layers 1-4 are intentionally dropped: they are exactly
    # cancelled by the train-mode BatchNorm mean subtraction.

    # Layer 5: stride-1 k=3 conv with flipped taps; Cout padded to 128 so the
    # output stores are lane-dense; real channels are sliced off afterwards.
    w = jnp.zeros((c4p, ncp, 3, 3), jnp.float32).at[:c4, :nc].set(l5["w"])
    blocks = [w[:, :, 2 - dy, 2 - dx] for dy in range(3) for dx in range(3)]
    prep["l5"] = {
        "wg": jnp.concatenate(blocks, axis=0).reshape(1, 9 * c4p, ncp
                                                      ).astype(jnp.bfloat16),
        "bias": _pad_vec(l5["b"], ncp).reshape(1, -1),
    }
    return prep


# ------------------------------- _netG forward ------------------------------ #

def netG_forward(x_nchw, prep, nc):
    """x_nchw: (N, nz, 1, 1) f32 (NCHW like PyTorch). Returns (N, nc, 32, 32)."""
    x = x_nchw.astype(jnp.float32)
    a = _layer1(x, prep["l1"])                 # (N,  4,  4, C1p) bf16
    a = _layer_stride2(a, prep["l2"])          # (N,  8,  8, C2p)
    a = _layer_stride2(a, prep["l3"])          # (N, 16, 16, C3p)
    a = _layer_stride2(a, prep["l4"])          # (N, 32, 32, C4p)
    return _layer_final(a, prep["l5"], nc)     # (N, nc, 32, 32) f32


def init_params(key, nz, nc, ngf):
    """Deterministic synthetic parameters with PyTorch-shaped tensors."""
    def bn_layer(k, cin, cout, ksz):
        kw_, kb_, kg_, kbe_ = jax.random.split(k, 4)
        return {
            "w": jax.random.normal(kw_, (cin, cout, ksz, ksz), jnp.float32) * 0.05,
            "b": jax.random.normal(kb_, (cout,), jnp.float32) * 0.05,
            "gamma": 1.0 + jax.random.normal(kg_, (cout,), jnp.float32) * 0.05,
            "beta": jax.random.normal(kbe_, (cout,), jnp.float32) * 0.05,
        }

    def plain_layer(k, cin, cout, ksz):
        kw_, kb_ = jax.random.split(k, 2)
        return {
            "w": jax.random.normal(kw_, (cin, cout, ksz, ksz), jnp.float32) * 0.05,
            "b": jax.random.normal(kb_, (cout,), jnp.float32) * 0.05,
        }

    k1, k2, k3, k4, k5 = jax.random.split(key, 5)
    return (
        bn_layer(k1, nz, ngf * 8, 4),
        bn_layer(k2, ngf * 8, ngf * 4, 4),
        bn_layer(k3, ngf * 4, ngf * 2, 4),
        bn_layer(k4, ngf * 2, ngf, 4),
        plain_layer(k5, ngf, nc, 3),
    )


if __name__ == "__main__":
    nz, nc, ngf, batch = 8, 3, 8, 2
    key = jax.random.PRNGKey(0)
    kx, kparam = jax.random.split(key)
    x = jax.random.normal(kx, (batch, nz, 1, 1), jnp.float32)
    params = init_params(kparam, nz, nc, ngf)

    prep = prepare_params(params, nz, nc, ngf)     # hoisted out of forward
    fwd = jax.jit(functools.partial(netG_forward, nc=nc))
    out = fwd(x, prep)
    jax.block_until_ready(out)

    assert out.shape == (batch, nc, 32, 32), out.shape
    assert bool(jnp.all(jnp.isfinite(out)))
    print("KERNEL_OK")
</pallas_src>

<mosaic_0001>
module attributes {stable_mosaic.version = 11 : i64} {
  func.func @_gemm_stats_kernel(%arg0: i32, %arg1: i32, %arg2: i32, %arg3: memref<1x8x128xbf16, #tpu.memory_space<vmem>>, %arg4: memref<1x128x256xbf16, #tpu.memory_space<vmem>>, %arg5: memref<1x8x256xbf16, #tpu.memory_space<vmem>>, %arg6: memref<1x1x2x256xf32, #tpu.memory_space<vmem>>) attributes {dimension_semantics = [#tpu.dimension_semantics<parallel>, #tpu.dimension_semantics<parallel>, #tpu.dimension_semantics<parallel>], iteration_bounds = array<i64: 1, 1, 8>, scalar_prefetch = 0 : i64, scratch_operands = 0 : i64, tpu.core_type = #tpu.core_type<tc>, window_params = [{transform_indices = @transform_0, window_bounds = array<i64: 1, 8, 128>}, {transform_indices = @transform_1, window_bounds = array<i64: 1, 128, 256>}, {transform_indices = @transform_2, window_bounds = array<i64: 1, 8, 256>}, {transform_indices = @transform_3, window_bounds = array<i64: 1, 1, 2, 256>}]} {
    %c0 = arith.constant 0 : index
    %c0_0 = arith.constant 0 : index
    %c0_1 = arith.constant 0 : index
    %0 = vector.load %arg3[%c0, %c0_0, %c0_1] : memref<1x8x128xbf16, #tpu.memory_space<vmem>>, vector<1x8x128xbf16>
    %1 = vector.shape_cast %0 : vector<1x8x128xbf16> to vector<8x128xbf16>
    %c0_2 = arith.constant 0 : index
    %c0_3 = arith.constant 0 : index
    %c0_4 = arith.constant 0 : index
    %2 = vector.load %arg4[%c0_2, %c0_3, %c0_4] : memref<1x128x256xbf16, #tpu.memory_space<vmem>>, vector<1x128x256xbf16>
    %3 = vector.shape_cast %2 : vector<1x128x256xbf16> to vector<128x256xbf16>
    %cst = arith.constant dense<0.000000e+00> : vector<8x256xf32>
    %4 = tpu.matmul %1, %3, %cst {dimension_numbers = #tpu.dot_dimension_numbers<[1], [0], [0], [1], [0, 0, 1, 1], [], []>} : vector<8x128xbf16>, vector<128x256xbf16>, vector<8x256xf32> -> vector<8x256xf32>
    %5 = arith.truncf %4 : vector<8x256xf32> to vector<8x256xbf16>
    %c0_5 = arith.constant 0 : index
    %c0_6 = arith.constant 0 : index
    %c0_7 = arith.constant 0 : index
    %6 = vector.load %arg5[%c0_5, %c0_6, %c0_7] : memref<1x8x256xbf16, #tpu.memory_space<vmem>>, vector<1x8x256xbf16>
    %7 = vector.shape_cast %6 : vector<1x8x256xbf16> to vector<8x256xbf16>
    %8 = vector.shape_cast %5 : vector<8x256xbf16> to vector<1x8x256xbf16>
    tpu.vector_store %arg5[%c0_5, %c0_6, %c0_7], %8 {strides = array<i32>} : memref<1x8x256xbf16, #tpu.memory_space<vmem>>, vector<1x8x256xbf16>,
    %cst_8 = arith.constant dense<0.000000e+00> : vector<256xf32>
    %9 = vector.multi_reduction <add>, %4, %cst_8 [0] : vector<8x256xf32> to vector<256xf32>
    %10 = vector.shape_cast %9 : vector<256xf32> to vector<1x256xf32>
    %11 = arith.mulf %4, %4 : vector<8x256xf32>
    %cst_9 = arith.constant dense<0.000000e+00> : vector<256xf32>
    %12 = vector.multi_reduction <add>, %11, %cst_9 [0] : vector<8x256xf32> to vector<256xf32>
    %13 = vector.shape_cast %12 : vector<256xf32> to vector<1x256xf32>
    %14 = tpu.concatenate %10, %13 in 0 : vector<1x256xf32>, vector<1x256xf32> -> vector<2x256xf32>
    %c0_10 = arith.constant 0 : index
    %c0_11 = arith.constant 0 : index
    %c0_12 = arith.constant 0 : index
    %c0_13 = arith.constant 0 : index
    %15 = vector.load %arg6[%c0_10, %c0_11, %c0_12, %c0_13] : memref<1x1x2x256xf32, #tpu.memory_space<vmem>>, vector<1x1x2x256xf32>
    %16 = vector.shape_cast %15 : vector<1x1x2x256xf32> to vector<2x256xf32>
    %17 = vector.shape_cast %14 : vector<2x256xf32> to vector<1x1x2x256xf32>
    tpu.vector_store %arg6[%c0_10, %c0_11, %c0_12, %c0_13], %17 {strides = array<i32>} : memref<1x1x2x256xf32, #tpu.memory_space<vmem>>, vector<1x1x2x256xf32>,
    return
  }
  func.func @transform_0(%arg0: i32, %arg1: i32, %arg2: i32) -> (i32, i32, i32) {
    %c0_i32 = arith.constant 0 : i32
    %c0_i32_0 = arith.constant 0 : i32
    return %arg0, %arg1, %c0_i32 : i32, i32, i32
  }
  func.func @transform_1(%arg0: i32, %arg1: i32, %arg2: i32) -> (i32, i32, i32) {
    %c0_i32 = arith.constant 0 : i32
    %c0_i32_0 = arith.constant 0 : i32
    return %arg0, %c0_i32, %arg2 : i32, i32, i32
  }
  func.func @transform_2(%arg0: i32, %arg1: i32, %arg2: i32) -> (i32, i32, i32) {
    %c0_i32 = arith.constant 0 : i32
    return %arg0, %arg1, %arg2 : i32, i32, i32
  }
  func.func @transform_3(%arg0: i32, %arg1: i32, %arg2: i32) -> (i32, i32, i32, i32) {
    %c0_i32 = arith.constant 0 : i32
    %c0_i32_0 = arith.constant 0 : i32
    return %arg0, %arg1, %c0_i32, %arg2 : i32, i32, i32, i32
  }
}

module attributes {stable_mosaic.version = 11 : i64} {
  func.func @_bn_relu_kernel(%arg0: i32, %arg1: i32, %arg2: i32, %arg3: memref<1x8x256xbf16, #tpu.memory_space<vmem>>, %arg4: memref<1x256xf32, #tpu.memory_space<vmem>>, %arg5: memref<1x256xf32, #tpu.memory_space<vmem>>, %arg6: memref<1x8x256xbf16, #tpu.memory_space<vmem>>) attributes {dimension_semantics = [#tpu.dimension_semantics<parallel>, #tpu.dimension_semantics<parallel>, #tpu.dimension_semantics<parallel>], iteration_bounds = array<i64: 1, 1, 8>, scalar_prefetch = 0 : i64, scratch_operands = 0 : i64, tpu.core_type = #tpu.core_type<tc>, window_params = [{transform_indices = @transform_0, window_bounds = array<i64: 1, 8, 256>}, {transform_indices = @transform_1, window_bounds = array<i64: 1, 256>}, {transform_indices = @transform_2, window_bounds = array<i64: 1, 256>}, {transform_indices = @transform_3, window_bounds = array<i64: 1, 8, 256>}]} {
    %c0 = arith.constant 0 : index
    %c0_0 = arith.constant 0 : index
    %c0_1 = arith.constant 0 : index
    %0 = vector.load %arg3[%c0, %c0_0, %c0_1] : memref<1x8x256xbf16, #tpu.memory_space<vmem>>, vector<1x8x256xbf16>
    %1 = vector.shape_cast %0 : vector<1x8x256xbf16> to vector<8x256xbf16>
    %2 = arith.extf %1 : vector<8x256xbf16> to vector<8x256xf32>
    %c0_2 = arith.constant 0 : index
    %c0_3 = arith.constant 0 : index
    %3 = vector.load %arg4[%c0_2, %c0_3] : memref<1x256xf32, #tpu.memory_space<vmem>>, vector<1x256xf32>
    %4 = vector.broadcast %3 : vector<1x256xf32> to vector<8x256xf32>
    %5 = arith.mulf %2, %4 : vector<8x256xf32>
    %c0_4 = arith.constant 0 : index
    %c0_5 = arith.constant 0 : index
    %6 = vector.load %arg5[%c0_4, %c0_5] : memref<1x256xf32, #tpu.memory_space<vmem>>, vector<1x256xf32>
    %7 = vector.broadcast %6 : vector<1x256xf32> to vector<8x256xf32>
    %8 = arith.addf %5, %7 : vector<8x256xf32>
    %cst = arith.constant 0.000000e+00 : f32
    %9 = vector.broadcast %cst : f32 to vector<8x256xf32>
    %10 = arith.maximumf %8, %9 : vector<8x256xf32>
    %11 = arith.truncf %10 : vector<8x256xf32> to vector<8x256xbf16>
    %c0_6 = arith.constant 0 : index
    %c0_7 = arith.constant 0 : index
    %c0_8 = arith.constant 0 : index
    %12 = vector.load %arg6[%c0_6, %c0_7, %c0_8] : memref<1x8x256xbf16, #tpu.memory_space<vmem>>, vector<1x8x256xbf16>
    %13 = vector.shape_cast %12 : vector<1x8x256xbf16> to vector<8x256xbf16>
    %14 = vector.shape_cast %11 : vector<8x256xbf16> to vector<1x8x256xbf16>
    tpu.vector_store %arg6[%c0_6, %c0_7, %c0_8], %14 {strides = array<i32>} : memref<1x8x256xbf16, #tpu.memory_space<vmem>>, vector<1x8x256xbf16>,
    return
  }
  func.func @transform_0(%arg0: i32, %arg1: i32, %arg2: i32) -> (i32, i32, i32) {
    %c0_i32 = arith.constant 0 : i32
    return %arg0, %arg1, %arg2 : i32, i32, i32
  }
  func.func @transform_1(%arg0: i32, %arg1: i32, %arg2: i32) -> (i32, i32) {
    %c0_i32 = arith.constant 0 : i32
    %c0_i32_0 = arith.constant 0 : i32
    return %c0_i32, %arg2 : i32, i32
  }
  func.func @transform_2(%arg0: i32, %arg1: i32, %arg2: i32) -> (i32, i32) {
    %c0_i32 = arith.constant 0 : i32
    %c0_i32_0 = arith.constant 0 : i32
    return %c0_i32, %arg2 : i32, i32
  }
  func.func @transform_3(%arg0: i32, %arg1: i32, %arg2: i32) -> (i32, i32, i32) {
    %c0_i32 = arith.constant 0 : i32
    return %arg0, %arg1, %arg2 : i32, i32, i32
  }
}

module attributes {stable_mosaic.version = 11 : i64} {
  func.func @_gemm_stats_kernel(%arg0: i32, %arg1: i32, %arg2: i32, %arg3: memref<1x32x512xbf16, #tpu.memory_space<vmem>>, %arg4: memref<1x512x128xbf16, #tpu.memory_space<vmem>>, %arg5: memref<1x32x128xbf16, #tpu.memory_space<vmem>>, %arg6: memref<1x1x2x128xf32, #tpu.memory_space<vmem>>) attributes {dimension_semantics = [#tpu.dimension_semantics<parallel>, #tpu.dimension_semantics<parallel>, #tpu.dimension_semantics<parallel>], iteration_bounds = array<i64: 4, 1, 1>, scalar_prefetch = 0 : i64, scratch_operands = 0 : i64, tpu.core_type = #tpu.core_type<tc>, window_params = [{transform_indices = @transform_0, window_bounds = array<i64: 1, 32, 512>}, {transform_indices = @transform_1, window_bounds = array<i64: 1, 512, 128>}, {transform_indices = @transform_2, window_bounds = array<i64: 1, 32, 128>}, {transform_indices = @transform_3, window_bounds = array<i64: 1, 1, 2, 128>}]} {
    %c0 = arith.constant 0 : index
    %c0_0 = arith.constant 0 : index
    %c0_1 = arith.constant 0 : index
    %0 = vector.load %arg3[%c0, %c0_0, %c0_1] : memref<1x32x512xbf16, #tpu.memory_space<vmem>>, vector<1x32x512xbf16>
    %1 = vector.shape_cast %0 : vector<1x32x512xbf16> to vector<32x512xbf16>
    %c0_2 = arith.constant 0 : index
    %c0_3 = arith.constant 0 : index
    %c0_4 = arith.constant 0 : index
    %2 = vector.load %arg4[%c0_2, %c0_3, %c0_4] : memref<1x512x128xbf16, #tpu.memory_space<vmem>>, vector<1x512x128xbf16>
    %3 = vector.shape_cast %2 : vector<1x512x128xbf16> to vector<512x128xbf16>
    %cst = arith.constant dense<0.000000e+00> : vector<32x128xf32>
    %4 = tpu.matmul %1, %3, %cst {dimension_numbers = #tpu.dot_dimension_numbers<[1], [0], [0], [1], [0, 0, 1, 1], [], []>} : vector<32x512xbf16>, vector<512x128xbf16>, vector<32x128xf32> -> vector<32x128xf32>
    %5 = arith.truncf %4 : vector<32x128xf32> to vector<32x128xbf16>
    %c0_5 = arith.constant 0 : index
    %c0_6 = arith.constant 0 : index
    %c0_7 = arith.constant 0 : index
    %6 = vector.load %arg5[%c0_5, %c0_6, %c0_7] : memref<1x32x128xbf16, #tpu.memory_space<vmem>>, vector<1x32x128xbf16>
    %7 = vector.shape_cast %6 : vector<1x32x128xbf16> to vector<32x128xbf16>
    %8 = vector.shape_cast %5 : vector<32x128xbf16> to vector<1x32x128xbf16>
    tpu.vector_store %arg5[%c0_5, %c0_6, %c0_7], %8 {strides = array<i32>} : memref<1x32x128xbf16, #tpu.memory_space<vmem>>, vector<1x32x128xbf16>,
    %cst_8 = arith.constant dense<0.000000e+00> : vector<128xf32>
    %9 = vector.multi_reduction <add>, %4, %cst_8 [0] : vector<32x128xf32> to vector<128xf32>
    %10 = vector.shape_cast %9 : vector<128xf32> to vector<1x128xf32>
    %11 = arith.mulf %4, %4 : vector<32x128xf32>
    %cst_9 = arith.constant dense<0.000000e+00> : vector<128xf32>
    %12 = vector.multi_reduction <add>, %11, %cst_9 [0] : vector<32x128xf32> to vector<128xf32>
    %13 = vector.shape_cast %12 : vector<128xf32> to vector<1x128xf32>
    %14 = tpu.concatenate %10, %13 in 0 : vector<1x128xf32>, vector<1x128xf32> -> vector<2x128xf32>
    %c0_10 = arith.constant 0 : index
    %c0_11 = arith.constant 0 : index
    %c0_12 = arith.constant 0 : index
    %c0_13 = arith.constant 0 : index
    %15 = vector.load %arg6[%c0_10, %c0_11, %c0_12, %c0_13] : memref<1x1x2x128xf32, #tpu.memory_space<vmem>>, vector<1x1x2x128xf32>
    %16 = vector.shape_cast %15 : vector<1x1x2x128xf32> to vector<2x128xf32>
    %17 = vector.shape_cast %14 : vector<2x128xf32> to vector<1x1x2x128xf32>
    tpu.vector_store %arg6[%c0_10, %c0_11, %c0_12, %c0_13], %17 {strides = array<i32>} : memref<1x1x2x128xf32, #tpu.memory_space<vmem>>, vector<1x1x2x128xf32>,
    return
  }
  func.func @transform_0(%arg0: i32, %arg1: i32, %arg2: i32) -> (i32, i32, i32) {
    %c0_i32 = arith.constant 0 : i32
    %c0_i32_0 = arith.constant 0 : i32
    return %arg0, %arg1, %c0_i32 : i32, i32, i32
  }
  func.func @transform_1(%arg0: i32, %arg1: i32, %arg2: i32) -> (i32, i32, i32) {
    %c0_i32 = arith.constant 0 : i32
    %c0_i32_0 = arith.constant 0 : i32
    return %arg0, %c0_i32, %arg2 : i32, i32, i32
  }
  func.func @transform_2(%arg0: i32, %arg1: i32, %arg2: i32) -> (i32, i32, i32) {
    %c0_i32 = arith.constant 0 : i32
    return %arg0, %arg1, %arg2 : i32, i32, i32
  }
  func.func @transform_3(%arg0: i32, %arg1: i32, %arg2: i32) -> (i32, i32, i32, i32) {
    %c0_i32 = arith.constant 0 : i32
    %c0_i32_0 = arith.constant 0 : i32
    return %arg0, %arg1, %c0_i32, %arg2 : i32, i32, i32, i32
  }
}

module attributes {stable_mosaic.version = 11 : i64} {
  func.func @_bn_relu_kernel(%arg0: i32, %arg1: i32, %arg2: i32, %arg3: memref<1x32x128xbf16, #tpu.memory_space<vmem>>, %arg4: memref<1x128xf32, #tpu.memory_space<vmem>>, %arg5: memref<1x128xf32, #tpu.memory_space<vmem>>, %arg6: memref<1x32x128xbf16, #tpu.memory_space<vmem>>) attributes {dimension_semantics = [#tpu.dimension_semantics<parallel>, #tpu.dimension_semantics<parallel>, #tpu.dimension_semantics<parallel>], iteration_bounds = array<i64: 4, 1, 1>, scalar_prefetch = 0 : i64, scratch_operands = 0 : i64, tpu.core_type = #tpu.core_type<tc>, window_params = [{transform_indices = @transform_0, window_bounds = array<i64: 1, 32, 128>}, {transform_indices = @transform_1, window_bounds = array<i64: 1, 128>}, {transform_indices = @transform_2, window_bounds = array<i64: 1, 128>}, {transform_indices = @transform_3, window_bounds = array<i64: 1, 32, 128>}]} {
    %c0 = arith.constant 0 : index
    %c0_0 = arith.constant 0 : index
    %c0_1 = arith.constant 0 : index
    %0 = vector.load %arg3[%c0, %c0_0, %c0_1] : memref<1x32x128xbf16, #tpu.memory_space<vmem>>, vector<1x32x128xbf16>
    %1 = vector.shape_cast %0 : vector<1x32x128xbf16> to vector<32x128xbf16>
    %2 = arith.extf %1 : vector<32x128xbf16> to vector<32x128xf32>
    %c0_2 = arith.constant 0 : index
    %c0_3 = arith.constant 0 : index
    %3 = vector.load %arg4[%c0_2, %c0_3] : memref<1x128xf32, #tpu.memory_space<vmem>>, vector<1x128xf32>
    %4 = vector.broadcast %3 : vector<1x128xf32> to vector<32x128xf32>
    %5 = arith.mulf %2, %4 : vector<32x128xf32>
    %c0_4 = arith.constant 0 : index
    %c0_5 = arith.constant 0 : index
    %6 = vector.load %arg5[%c0_4, %c0_5] : memref<1x128xf32, #tpu.memory_space<vmem>>, vector<1x128xf32>
    %7 = vector.broadcast %6 : vector<1x128xf32> to vector<32x128xf32>
    %8 = arith.addf %5, %7 : vector<32x128xf32>
    %cst = arith.constant 0.000000e+00 : f32
    %9 = vector.broadcast %cst : f32 to vector<32x128xf32>
    %10 = arith.maximumf %8, %9 : vector<32x128xf32>
    %11 = arith.truncf %10 : vector<32x128xf32> to vector<32x128xbf16>
    %c0_6 = arith.constant 0 : index
    %c0_7 = arith.constant 0 : index
    %c0_8 = arith.constant 0 : index
    %12 = vector.load %arg6[%c0_6, %c0_7, %c0_8] : memref<1x32x128xbf16, #tpu.memory_space<vmem>>, vector<1x32x128xbf16>
    %13 = vector.shape_cast %12 : vector<1x32x128xbf16> to vector<32x128xbf16>
    %14 = vector.shape_cast %11 : vector<32x128xbf16> to vector<1x32x128xbf16>
    tpu.vector_store %arg6[%c0_6, %c0_7, %c0_8], %14 {strides = array<i32>} : memref<1x32x128xbf16, #tpu.memory_space<vmem>>, vector<1x32x128xbf16>,
    return
  }
  func.func @transform_0(%arg0: i32, %arg1: i32, %arg2: i32) -> (i32, i32, i32) {
    %c0_i32 = arith.constant 0 : i32
    return %arg0, %arg1, %arg2 : i32, i32, i32
  }
  func.func @transform_1(%arg0: i32, %arg1: i32, %arg2: i32) -> (i32, i32) {
    %c0_i32 = arith.constant 0 : i32
    %c0_i32_0 = arith.constant 0 : i32
    return %c0_i32, %arg2 : i32, i32
  }
  func.func @transform_2(%arg0: i32, %arg1: i32, %arg2: i32) -> (i32, i32) {
    %c0_i32 = arith.constant 0 : i32
    %c0_i32_0 = arith.constant 0 : i32
    return %c0_i32, %arg2 : i32, i32
  }
  func.func @transform_3(%arg0: i32, %arg1: i32, %arg2: i32) -> (i32, i32, i32) {
    %c0_i32 = arith.constant 0 : i32
    return %arg0, %arg1, %arg2 : i32, i32, i32
  }
}

module attributes {stable_mosaic.version = 11 : i64} {
  func.func @_gemm_stats_kernel(%arg0: i32, %arg1: i32, %arg2: i32, %arg3: memref<1x128x512xbf16, #tpu.memory_space<vmem>>, %arg4: memref<1x512x128xbf16, #tpu.memory_space<vmem>>, %arg5: memref<1x128x128xbf16, #tpu.memory_space<vmem>>, %arg6: memref<1x1x2x128xf32, #tpu.memory_space<vmem>>) attributes {dimension_semantics = [#tpu.dimension_semantics<parallel>, #tpu.dimension_semantics<parallel>, #tpu.dimension_semantics<parallel>], iteration_bounds = array<i64: 4, 1, 1>, scalar_prefetch = 0 : i64, scratch_operands = 0 : i64, tpu.core_type = #tpu.core_type<tc>, window_params = [{transform_indices = @transform_0, window_bounds = array<i64: 1, 128, 512>}, {transform_indices = @transform_1, window_bounds = array<i64: 1, 512, 128>}, {transform_indices = @transform_2, window_bounds = array<i64: 1, 128, 128>}, {transform_indices = @transform_3, window_bounds = array<i64: 1, 1, 2, 128>}]} {
    %c0 = arith.constant 0 : index
    %c0_0 = arith.constant 0 : index
    %c0_1 = arith.constant 0 : index
    %0 = vector.load %arg3[%c0, %c0_0, %c0_1] : memref<1x128x512xbf16, #tpu.memory_space<vmem>>, vector<1x128x512xbf16>
    %1 = vector.shape_cast %0 : vector<1x128x512xbf16> to vector<128x512xbf16>
    %c0_2 = arith.constant 0 : index
    %c0_3 = arith.constant 0 : index
    %c0_4 = arith.constant 0 : index
    %2 = vector.load %arg4[%c0_2, %c0_3, %c0_4] : memref<1x512x128xbf16, #tpu.memory_space<vmem>>, vector<1x512x128xbf16>
    %3 = vector.shape_cast %2 : vector<1x512x128xbf16> to vector<512x128xbf16>
    %cst = arith.constant dense<0.000000e+00> : vector<128x128xf32>
    %4 = tpu.matmul %1, %3, %cst {dimension_numbers = #tpu.dot_dimension_numbers<[1], [0], [0], [1], [0, 0, 1, 1], [], []>} : vector<128x512xbf16>, vector<512x128xbf16>, vector<128x128xf32> -> vector<128x128xf32>
    %5 = arith.truncf %4 : vector<128x128xf32> to vector<128x128xbf16>
    %c0_5 = arith.constant 0 : index
    %c0_6 = arith.constant 0 : index
    %c0_7 = arith.constant 0 : index
    %6 = vector.load %arg5[%c0_5, %c0_6, %c0_7] : memref<1x128x128xbf16, #tpu.memory_space<vmem>>, vector<1x128x128xbf16>
    %7 = vector.shape_cast %6 : vector<1x128x128xbf16> to vector<128x128xbf16>
    %8 = vector.shape_cast %5 : vector<128x128xbf16> to vector<1x128x128xbf16>
    tpu.vector_store %arg5[%c0_5, %c0_6, %c0_7], %8 {strides = array<i32>} : memref<1x128x128xbf16, #tpu.memory_space<vmem>>, vector<1x128x128xbf16>,
    %cst_8 = arith.constant dense<0.000000e+00> : vector<128xf32>
    %9 = vector.multi_reduction <add>, %4, %cst_8 [0] : vector<128x128xf32> to vector<128xf32>
    %10 = vector.shape_cast %9 : vector<128xf32> to vector<1x128xf32>
    %11 = arith.mulf %4, %4 : vector<128x128xf32>
    %cst_9 = arith.constant dense<0.000000e+00> : vector<128xf32>
    %12 = vector.multi_reduction <add>, %11, %cst_9 [0] : vector<128x128xf32> to vector<128xf32>
    %13 = vector.shape_cast %12 : vector<128xf32> to vector<1x128xf32>
    %14 = tpu.concatenate %10, %13 in 0 : vector<1x128xf32>, vector<1x128xf32> -> vector<2x128xf32>
    %c0_10 = arith.constant 0 : index
    %c0_11 = arith.constant 0 : index
    %c0_12 = arith.constant 0 : index
    %c0_13 = arith.constant 0 : index
    %15 = vector.load %arg6[%c0_10, %c0_11, %c0_12, %c0_13] : memref<1x1x2x128xf32, #tpu.memory_space<vmem>>, vector<1x1x2x128xf32>
    %16 = vector.shape_cast %15 : vector<1x1x2x128xf32> to vector<2x128xf32>
    %17 = vector.shape_cast %14 : vector<2x128xf32> to vector<1x1x2x128xf32>
    tpu.vector_store %arg6[%c0_10, %c0_11, %c0_12, %c0_13], %17 {strides = array<i32>} : memref<1x1x2x128xf32, #tpu.memory_space<vmem>>, vector<1x1x2x128xf32>,
    return
  }
  func.func @transform_0(%arg0: i32, %arg1: i32, %arg2: i32) -> (i32, i32, i32) {
    %c0_i32 = arith.constant 0 : i32
    %c0_i32_0 = arith.constant 0 : i32
    return %arg0, %arg1, %c0_i32 : i32, i32, i32
  }
  func.func @transform_1(%arg0: i32, %arg1: i32, %arg2: i32) -> (i32, i32, i32) {
    %c0_i32 = arith.constant 0 : i32
    %c0_i32_0 = arith.constant 0 : i32
    return %arg0, %c0_i32, %arg2 : i32, i32, i32
  }
  func.func @transform_2(%arg0: i32, %arg1: i32, %arg2: i32) -> (i32, i32, i32) {
    %c0_i32 = arith.constant 0 : i32
    return %arg0, %arg1, %arg2 : i32, i32, i32
  }
  func.func @transform_3(%arg0: i32, %arg1: i32, %arg2: i32) -> (i32, i32, i32, i32) {
    %c0_i32 = arith.constant 0 : i32
    %c0_i32_0 = arith.constant 0 : i32
    return %arg0, %arg1, %c0_i32, %arg2 : i32, i32, i32, i32
  }
}

module attributes {stable_mosaic.version = 11 : i64} {
  func.func @_bn_relu_kernel(%arg0: i32, %arg1: i32, %arg2: i32, %arg3: memref<1x128x128xbf16, #tpu.memory_space<vmem>>, %arg4: memref<1x128xf32, #tpu.memory_space<vmem>>, %arg5: memref<1x128xf32, #tpu.memory_space<vmem>>, %arg6: memref<1x128x128xbf16, #tpu.memory_space<vmem>>) attributes {dimension_semantics = [#tpu.dimension_semantics<parallel>, #tpu.dimension_semantics<parallel>, #tpu.dimension_semantics<parallel>], iteration_bounds = array<i64: 4, 1, 1>, scalar_prefetch = 0 : i64, scratch_operands = 0 : i64, tpu.core_type = #tpu.core_type<tc>, window_params = [{transform_indices = @transform_0, window_bounds = array<i64: 1, 128, 128>}, {transform_indices = @transform_1, window_bounds = array<i64: 1, 128>}, {transform_indices = @transform_2, window_bounds = array<i64: 1, 128>}, {transform_indices = @transform_3, window_bounds = array<i64: 1, 128, 128>}]} {
    %c0 = arith.constant 0 : index
    %c0_0 = arith.constant 0 : index
    %c0_1 = arith.constant 0 : index
    %0 = vector.load %arg3[%c0, %c0_0, %c0_1] : memref<1x128x128xbf16, #tpu.memory_space<vmem>>, vector<1x128x128xbf16>
    %1 = vector.shape_cast %0 : vector<1x128x128xbf16> to vector<128x128xbf16>
    %2 = arith.extf %1 : vector<128x128xbf16> to vector<128x128xf32>
    %c0_2 = arith.constant 0 : index
    %c0_3 = arith.constant 0 : index
    %3 = vector.load %arg4[%c0_2, %c0_3] : memref<1x128xf32, #tpu.memory_space<vmem>>, vector<1x128xf32>
    %4 = vector.broadcast %3 : vector<1x128xf32> to vector<128x128xf32>
    %5 = arith.mulf %2, %4 : vector<128x128xf32>
    %c0_4 = arith.constant 0 : index
    %c0_5 = arith.constant 0 : index
    %6 = vector.load %arg5[%c0_4, %c0_5] : memref<1x128xf32, #tpu.memory_space<vmem>>, vector<1x128xf32>
    %7 = vector.broadcast %6 : vector<1x128xf32> to vector<128x128xf32>
    %8 = arith.addf %5, %7 : vector<128x128xf32>
    %cst = arith.constant 0.000000e+00 : f32
    %9 = vector.broadcast %cst : f32 to vector<128x128xf32>
    %10 = arith.maximumf %8, %9 : vector<128x128xf32>
    %11 = arith.truncf %10 : vector<128x128xf32> to vector<128x128xbf16>
    %c0_6 = arith.constant 0 : index
    %c0_7 = arith.constant 0 : index
    %c0_8 = arith.constant 0 : index
    %12 = vector.load %arg6[%c0_6, %c0_7, %c0_8] : memref<1x128x128xbf16, #tpu.memory_space<vmem>>, vector<1x128x128xbf16>
    %13 = vector.shape_cast %12 : vector<1x128x128xbf16> to vector<128x128xbf16>
    %14 = vector.shape_cast %11 : vector<128x128xbf16> to vector<1x128x128xbf16>
    tpu.vector_store %arg6[%c0_6, %c0_7, %c0_8], %14 {strides = array<i32>} : memref<1x128x128xbf16, #tpu.memory_space<vmem>>, vector<1x128x128xbf16>,
    return
  }
  func.func @transform_0(%arg0: i32, %arg1: i32, %arg2: i32) -> (i32, i32, i32) {
    %c0_i32 = arith.constant 0 : i32
    return %arg0, %arg1, %arg2 : i32, i32, i32
  }
  func.func @transform_1(%arg0: i32, %arg1: i32, %arg2: i32) -> (i32, i32) {
    %c0_i32 = arith.constant 0 : i32
    %c0_i32_0 = arith.constant 0 : i32
    return %c0_i32, %arg2 : i32, i32
  }
  func.func @transform_2(%arg0: i32, %arg1: i32, %arg2: i32) -> (i32, i32) {
    %c0_i32 = arith.constant 0 : i32
    %c0_i32_0 = arith.constant 0 : i32
    return %c0_i32, %arg2 : i32, i32
  }
  func.func @transform_3(%arg0: i32, %arg1: i32, %arg2: i32) -> (i32, i32, i32) {
    %c0_i32 = arith.constant 0 : i32
    return %arg0, %arg1, %arg2 : i32, i32, i32
  }
}

module attributes {stable_mosaic.version = 11 : i64} {
  func.func @_gemm_stats_kernel(%arg0: i32, %arg1: i32, %arg2: i32, %arg3: memref<1x512x512xbf16, #tpu.memory_space<vmem>>, %arg4: memref<1x512x128xbf16, #tpu.memory_space<vmem>>, %arg5: memref<1x512x128xbf16, #tpu.memory_space<vmem>>, %arg6: memref<1x1x2x128xf32, #tpu.memory_space<vmem>>) attributes {dimension_semantics = [#tpu.dimension_semantics<parallel>, #tpu.dimension_semantics<parallel>, #tpu.dimension_semantics<parallel>], iteration_bounds = array<i64: 4, 1, 1>, scalar_prefetch = 0 : i64, scratch_operands = 0 : i64, tpu.core_type = #tpu.core_type<tc>, window_params = [{transform_indices = @transform_0, window_bounds = array<i64: 1, 512, 512>}, {transform_indices = @transform_1, window_bounds = array<i64: 1, 512, 128>}, {transform_indices = @transform_2, window_bounds = array<i64: 1, 512, 128>}, {transform_indices = @transform_3, window_bounds = array<i64: 1, 1, 2, 128>}]} {
    %c0 = arith.constant 0 : index
    %c0_0 = arith.constant 0 : index
    %c0_1 = arith.constant 0 : index
    %0 = vector.load %arg3[%c0, %c0_0, %c0_1] : memref<1x512x512xbf16, #tpu.memory_space<vmem>>, vector<1x512x512xbf16>
    %1 = vector.shape_cast %0 : vector<1x512x512xbf16> to vector<512x512xbf16>
    %c0_2 = arith.constant 0 : index
    %c0_3 = arith.constant 0 : index
    %c0_4 = arith.constant 0 : index
    %2 = vector.load %arg4[%c0_2, %c0_3, %c0_4] : memref<1x512x128xbf16, #tpu.memory_space<vmem>>, vector<1x512x128xbf16>
    %3 = vector.shape_cast %2 : vector<1x512x128xbf16> to vector<512x128xbf16>
    %cst = arith.constant dense<0.000000e+00> : vector<512x128xf32>
    %4 = tpu.matmul %1, %3, %cst {dimension_numbers = #tpu.dot_dimension_numbers<[1], [0], [0], [1], [0, 0, 1, 1], [], []>} : vector<512x512xbf16>, vector<512x128xbf16>, vector<512x128xf32> -> vector<512x128xf32>
    %5 = arith.truncf %4 : vector<512x128xf32> to vector<512x128xbf16>
    %c0_5 = arith.constant 0 : index
    %c0_6 = arith.constant 0 : index
    %c0_7 = arith.constant 0 : index
    %6 = vector.load %arg5[%c0_5, %c0_6, %c0_7] : memref<1x512x128xbf16, #tpu.memory_space<vmem>>, vector<1x512x128xbf16>
    %7 = vector.shape_cast %6 : vector<1x512x128xbf16> to vector<512x128xbf16>
    %8 = vector.shape_cast %5 : vector<512x128xbf16> to vector<1x512x128xbf16>
    tpu.vector_store %arg5[%c0_5, %c0_6, %c0_7], %8 {strides = array<i32>} : memref<1x512x128xbf16, #tpu.memory_space<vmem>>, vector<1x512x128xbf16>,
    %cst_8 = arith.constant dense<0.000000e+00> : vector<128xf32>
    %9 = vector.multi_reduction <add>, %4, %cst_8 [0] : vector<512x128xf32> to vector<128xf32>
    %10 = vector.shape_cast %9 : vector<128xf32> to vector<1x128xf32>
    %11 = arith.mulf %4, %4 : vector<512x128xf32>
    %cst_9 = arith.constant dense<0.000000e+00> : vector<128xf32>
    %12 = vector.multi_reduction <add>, %11, %cst_9 [0] : vector<512x128xf32> to vector<128xf32>
    %13 = vector.shape_cast %12 : vector<128xf32> to vector<1x128xf32>
    %14 = tpu.concatenate %10, %13 in 0 : vector<1x128xf32>, vector<1x128xf32> -> vector<2x128xf32>
    %c0_10 = arith.constant 0 : index
    %c0_11 = arith.constant 0 : index
    %c0_12 = arith.constant 0 : index
    %c0_13 = arith.constant 0 : index
    %15 = vector.load %arg6[%c0_10, %c0_11, %c0_12, %c0_13] : memref<1x1x2x128xf32, #tpu.memory_space<vmem>>, vector<1x1x2x128xf32>
    %16 = vector.shape_cast %15 : vector<1x1x2x128xf32> to vector<2x128xf32>
    %17 = vector.shape_cast %14 : vector<2x128xf32> to vector<1x1x2x128xf32>
    tpu.vector_store %arg6[%c0_10, %c0_11, %c0_12, %c0_13], %17 {strides = array<i32>} : memref<1x1x2x128xf32, #tpu.memory_space<vmem>>, vector<1x1x2x128xf32>,
    return
  }
  func.func @transform_0(%arg0: i32, %arg1: i32, %arg2: i32) -> (i32, i32, i32) {
    %c0_i32 = arith.constant 0 : i32
    %c0_i32_0 = arith.constant 0 : i32
    return %arg0, %arg1, %c0_i32 : i32, i32, i32
  }
  func.func @transform_1(%arg0: i32, %arg1: i32, %arg2: i32) -> (i32, i32, i32) {
    %c0_i32 = arith.constant 0 : i32
    %c0_i32_0 = arith.constant 0 : i32
    return %arg0, %c0_i32, %arg2 : i32, i32, i32
  }
  func.func @transform_2(%arg0: i32, %arg1: i32, %arg2: i32) -> (i32, i32, i32) {
    %c0_i32 = arith.constant 0 : i32
    return %arg0, %arg1, %arg2 : i32, i32, i32
  }
  func.func @transform_3(%arg0: i32, %arg1: i32, %arg2: i32) -> (i32, i32, i32, i32) {
    %c0_i32 = arith.constant 0 : i32
    %c0_i32_0 = arith.constant 0 : i32
    return %arg0, %arg1, %c0_i32, %arg2 : i32, i32, i32, i32
  }
}

module attributes {stable_mosaic.version = 11 : i64} {
  func.func @_bn_relu_kernel(%arg0: i32, %arg1: i32, %arg2: i32, %arg3: memref<1x512x128xbf16, #tpu.memory_space<vmem>>, %arg4: memref<1x128xf32, #tpu.memory_space<vmem>>, %arg5: memref<1x128xf32, #tpu.memory_space<vmem>>, %arg6: memref<1x512x128xbf16, #tpu.memory_space<vmem>>) attributes {dimension_semantics = [#tpu.dimension_semantics<parallel>, #tpu.dimension_semantics<parallel>, #tpu.dimension_semantics<parallel>], iteration_bounds = array<i64: 4, 1, 1>, scalar_prefetch = 0 : i64, scratch_operands = 0 : i64, tpu.core_type = #tpu.core_type<tc>, window_params = [{transform_indices = @transform_0, window_bounds = array<i64: 1, 512, 128>}, {transform_indices = @transform_1, window_bounds = array<i64: 1, 128>}, {transform_indices = @transform_2, window_bounds = array<i64: 1, 128>}, {transform_indices = @transform_3, window_bounds = array<i64: 1, 512, 128>}]} {
    %c0 = arith.constant 0 : index
    %c0_0 = arith.constant 0 : index
    %c0_1 = arith.constant 0 : index
    %0 = vector.load %arg3[%c0, %c0_0, %c0_1] : memref<1x512x128xbf16, #tpu.memory_space<vmem>>, vector<1x512x128xbf16>
    %1 = vector.shape_cast %0 : vector<1x512x128xbf16> to vector<512x128xbf16>
    %2 = arith.extf %1 : vector<512x128xbf16> to vector<512x128xf32>
    %c0_2 = arith.constant 0 : index
    %c0_3 = arith.constant 0 : index
    %3 = vector.load %arg4[%c0_2, %c0_3] : memref<1x128xf32, #tpu.memory_space<vmem>>, vector<1x128xf32>
    %4 = vector.broadcast %3 : vector<1x128xf32> to vector<512x128xf32>
    %5 = arith.mulf %2, %4 : vector<512x128xf32>
    %c0_4 = arith.constant 0 : index
    %c0_5 = arith.constant 0 : index
    %6 = vector.load %arg5[%c0_4, %c0_5] : memref<1x128xf32, #tpu.memory_space<vmem>>, vector<1x128xf32>
    %7 = vector.broadcast %6 : vector<1x128xf32> to vector<512x128xf32>
    %8 = arith.addf %5, %7 : vector<512x128xf32>
    %cst = arith.constant 0.000000e+00 : f32
    %9 = vector.broadcast %cst : f32 to vector<512x128xf32>
    %10 = arith.maximumf %8, %9 : vector<512x128xf32>
    %11 = arith.truncf %10 : vector<512x128xf32> to vector<512x128xbf16>
    %c0_6 = arith.constant 0 : index
    %c0_7 = arith.constant 0 : index
    %c0_8 = arith.constant 0 : index
    %12 = vector.load %arg6[%c0_6, %c0_7, %c0_8] : memref<1x512x128xbf16, #tpu.memory_space<vmem>>, vector<1x512x128xbf16>
    %13 = vector.shape_cast %12 : vector<1x512x128xbf16> to vector<512x128xbf16>
    %14 = vector.shape_cast %11 : vector<512x128xbf16> to vector<1x512x128xbf16>
    tpu.vector_store %arg6[%c0_6, %c0_7, %c0_8], %14 {strides = array<i32>} : memref<1x512x128xbf16, #tpu.memory_space<vmem>>, vector<1x512x128xbf16>,
    return
  }
  func.func @transform_0(%arg0: i32, %arg1: i32, %arg2: i32) -> (i32, i32, i32) {
    %c0_i32 = arith.constant 0 : i32
    return %arg0, %arg1, %arg2 : i32, i32, i32
  }
  func.func @transform_1(%arg0: i32, %arg1: i32, %arg2: i32) -> (i32, i32) {
    %c0_i32 = arith.constant 0 : i32
    %c0_i32_0 = arith.constant 0 : i32
    return %c0_i32, %arg2 : i32, i32
  }
  func.func @transform_2(%arg0: i32, %arg1: i32, %arg2: i32) -> (i32, i32) {
    %c0_i32 = arith.constant 0 : i32
    %c0_i32_0 = arith.constant 0 : i32
    return %c0_i32, %arg2 : i32, i32
  }
  func.func @transform_3(%arg0: i32, %arg1: i32, %arg2: i32) -> (i32, i32, i32) {
    %c0_i32 = arith.constant 0 : i32
    return %arg0, %arg1, %arg2 : i32, i32, i32
  }
}

module attributes {stable_mosaic.version = 11 : i64} {
  func.func @_gemm_bias_tanh_kernel(%arg0: i32, %arg1: i32, %arg2: i32, %arg3: memref<1x512x1152xbf16, #tpu.memory_space<vmem>>, %arg4: memref<1x1152x128xbf16, #tpu.memory_space<vmem>>, %arg5: memref<1x128xf32, #tpu.memory_space<vmem>>, %arg6: memref<1x512x128xf32, #tpu.memory_space<vmem>>) attributes {dimension_semantics = [#tpu.dimension_semantics<parallel>, #tpu.dimension_semantics<parallel>, #tpu.dimension_semantics<parallel>], iteration_bounds = array<i64: 1, 4, 1>, scalar_prefetch = 0 : i64, scratch_operands = 0 : i64, tpu.core_type = #tpu.core_type<tc>, window_params = [{transform_indices = @transform_0, window_bounds = array<i64: 1, 512, 1152>}, {transform_indices = @transform_1, window_bounds = array<i64: 1, 1152, 128>}, {transform_indices = @transform_2, window_bounds = array<i64: 1, 128>}, {transform_indices = @transform_3, window_bounds = array<i64: 1, 512, 128>}]} {
    %c0 = arith.constant 0 : index
    %c0_0 = arith.constant 0 : index
    %c0_1 = arith.constant 0 : index
    %0 = vector.load %arg3[%c0, %c0_0, %c0_1] : memref<1x512x1152xbf16, #tpu.memory_space<vmem>>, vector<1x512x1152xbf16>
    %1 = vector.shape_cast %0 : vector<1x512x1152xbf16> to vector<512x1152xbf16>
    %c0_2 = arith.constant 0 : index
    %c0_3 = arith.constant 0 : index
    %c0_4 = arith.constant 0 : index
    %2 = vector.load %arg4[%c0_2, %c0_3, %c0_4] : memref<1x1152x128xbf16, #tpu.memory_space<vmem>>, vector<1x1152x128xbf16>
    %3 = vector.shape_cast %2 : vector<1x1152x128xbf16> to vector<1152x128xbf16>
    %cst = arith.constant dense<0.000000e+00> : vector<512x128xf32>
    %4 = tpu.matmul %1, %3, %cst {dimension_numbers = #tpu.dot_dimension_numbers<[1], [0], [0], [1], [0, 0, 1, 1], [], []>} : vector<512x1152xbf16>, vector<1152x128xbf16>, vector<512x128xf32> -> vector<512x128xf32>
    %c0_5 = arith.constant 0 : index
    %c0_6 = arith.constant 0 : index
    %5 = vector.load %arg5[%c0_5, %c0_6] : memref<1x128xf32, #tpu.memory_space<vmem>>, vector<1x128xf32>
    %6 = vector.broadcast %5 : vector<1x128xf32> to vector<512x128xf32>
    %7 = arith.addf %4, %6 : vector<512x128xf32>
    %8 = math.tanh %7 : vector<512x128xf32>
    %c0_7 = arith.constant 0 : index
    %c0_8 = arith.constant 0 : index
    %c0_9 = arith.constant 0 : index
    %9 = vector.load %arg6[%c0_7, %c0_8, %c0_9] : memref<1x512x128xf32, #tpu.memory_space<vmem>>, vector<1x512x128xf32>
    %10 = vector.shape_cast %9 : vector<1x512x128xf32> to vector<512x128xf32>
    %11 = vector.shape_cast %8 : vector<512x128xf32> to vector<1x512x128xf32>
    tpu.vector_store %arg6[%c0_7, %c0_8, %c0_9], %11 {strides = array<i32>} : memref<1x512x128xf32, #tpu.memory_space<vmem>>, vector<1x512x128xf32>,
    return
  }
  func.func @transform_0(%arg0: i32, %arg1: i32, %arg2: i32) -> (i32, i32, i32) {
    %c0_i32 = arith.constant 0 : i32
    %c0_i32_0 = arith.constant 0 : i32
    return %arg0, %arg1, %c0_i32 : i32, i32, i32
  }
  func.func @transform_1(%arg0: i32, %arg1: i32, %arg2: i32) -> (i32, i32, i32) {
    %c0_i32 = arith.constant 0 : i32
    %c0_i32_0 = arith.constant 0 : i32
    return %arg0, %c0_i32, %arg2 : i32, i32, i32
  }
  func.func @transform_2(%arg0: i32, %arg1: i32, %arg2: i32) -> (i32, i32) {
    %c0_i32 = arith.constant 0 : i32
    %c0_i32_0 = arith.constant 0 : i32
    return %c0_i32, %arg2 : i32, i32
  }
  func.func @transform_3(%arg0: i32, %arg1: i32, %arg2: i32) -> (i32, i32, i32) {
    %c0_i32 = arith.constant 0 : i32
    return %arg0, %arg1, %arg2 : i32, i32, i32
  }
}

</mosaic_0001>

<bundles_post_ra>
// kernel: squeeze.12
= control target key start
LH: loop header
LB: loop body
LE: loop exit
PB: predicated region body
PF: predicated region fallthrough
CT: control target
= control target key end

     0   :  { %s496_s0 = inlined_call_operand.vmem [shape: bf16[1,2,2048], index: 0, kind: input, shape index: {}]   ;;  %s497_s1 = inlined_call_operand.vmem [shape: bf16[2,4,4,128], index: 1, kind: output, shape index: {}]  }
   0x1   :  { %v392_v0 = vld [vmem:[%s496_s0 + $0xf] sm:$0x1]  ;;  %v393_v1 = vld [vmem:[%s496_s0 + $0xe] sm:$0x1]  ;;  %v394_v2 = vld [vmem:[%s496_s0 + $0xd] sm:$0x1] }
   0x2   :  { %v15_v3 = vunpack.c.l.bf16 %v392_v0  ;;  %v30_v4 = vunpack.c.l.bf16 %v393_v1  ;;  %v45_v5 = vunpack.c.l.bf16 %v394_v2  ;;  %v395_v6 = vld [vmem:[%s496_s0 + $0xc] sm:$0x1]  ;;  %v396_v7 = vld [vmem:[%s496_s0 + $0xb] sm:$0x1]  ;;  %v397_v8 = vld [vmem:[%s496_s0 + $0xa] sm:$0x1] }
   0x3   :  { %v60_v9 = vunpack.c.l.bf16 %v395_v6  ;;  %v398_v10 = vld [vmem:[%s496_s0 + $0x9] sm:$0x1]  ;;  %v75_v11 = vunpack.c.l.bf16 %v396_v7  ;;  %v399_v12 = vld [vmem:[%s496_s0 + $0x8] sm:$0x1]  ;;  %v90_v13 = vunpack.c.l.bf16 %v397_v8  ;;  %v400_v14 = vld [vmem:[%s496_s0 + $0x7] sm:$0x1] }
   0x4   :  { %18 = vst [vmem:[#allocation1 + $0x48] sm:$0x3] %v15_v3  ;;  %v105_v15 = vunpack.c.l.bf16 %v398_v10  ;;  %v401_v16 = vld [vmem:[%s496_s0 + $0x6] sm:$0x1]  ;;  %v120_v17 = vunpack.c.l.bf16 %v399_v12  ;;  %v402_v18 = vld [vmem:[%s496_s0 + $0x5] sm:$0x1]  ;;  %v135_v19 = vunpack.c.l.bf16 %v400_v14 }
   0x5   :  { %33 = vst [vmem:[#allocation1 + $0x78] sm:$0x3] %v30_v4  ;;  %v403_v20 = vld [vmem:[%s496_s0 + $0x4] sm:$0x1]  ;;  %v150_v21 = vunpack.c.l.bf16 %v401_v16  ;;  %v404_v22 = vld [vmem:[%s496_s0 + $0x3] sm:$0x1]  ;;  %v165_v23 = vunpack.c.l.bf16 %v402_v18 }
   0x6   :  { %48 = vst [vmem:[#allocation1 + $0x20] sm:$0x3] %v45_v5  ;;  %v405_v24 = vld [vmem:[%s496_s0 + $0x2] sm:$0x1]  ;;  %v180_v25 = vunpack.c.l.bf16 %v403_v20  ;;  %v406_v26 = vld [vmem:[%s496_s0 + $0x1] sm:$0x1]  ;;  %v195_v27 = vunpack.c.l.bf16 %v404_v22 }
   0x7   :  { %63 = vst [vmem:[#allocation1 + $0x60] sm:$0x3] %v60_v9  ;;  %v238_v28 = vld [vmem:[%s496_s0] sm:$0x1]  ;;  %v210_v29 = vunpack.c.l.bf16 %v405_v24  ;;  %v225_v30 = vunpack.c.l.bf16 %v406_v26 }
   0x8   :  { %78 = vst [vmem:[#allocation1 + $0x28] sm:$0x3] %v75_v11  ;;  %v239_v31 = vunpack.c.l.bf16 %v238_v28 }
   0x9   :  { %93 = vst [vmem:[#allocation1 + $0x10] sm:$0x3] %v90_v13 }
   0xa   :  { %108 = vst [vmem:[#allocation1 + $0x70] sm:$0x3] %v105_v15 }
   0xb   :  { %123 = vst [vmem:[#allocation1 + $0x30] sm:$0x3] %v120_v17  ;;  %v331_v49 = vld [vmem:[#allocation1 + $0x48] sm:$0x3]  }
   0xc   :  { %138 = vst [vmem:[#allocation1 + $0x38] sm:$0x3] %v135_v19  ;;  %v325_v46 = vld [vmem:[#allocation1 + $0x78] sm:$0x3]  }
   0xd   :  { %153 = vst [vmem:[#allocation1 + $0x58] sm:$0x3] %v150_v21  ;;  %v319_v45 = vld [vmem:[#allocation1 + $0x20] sm:$0x3]  }
   0xe   :  { %168 = vst [vmem:[#allocation1 + $0x68] sm:$0x3] %v165_v23  ;;  %v313_v44 = vld [vmem:[#allocation1 + $0x60] sm:$0x3]  }
   0xf   :  { %183 = vst [vmem:[#allocation1 + $0x40] sm:$0x3] %v180_v25  ;;  %v307_v43 = vld [vmem:[#allocation1 + $0x28] sm:$0x3]  }
  0x10   :  { %198 = vst [vmem:[#allocation1 + $0x18] sm:$0x3] %v195_v27  ;;  %v301_v42 = vld [vmem:[#allocation1 + $0x10] sm:$0x3]  }
  0x11   :  { %213 = vst [vmem:[#allocation1 + $0x8] sm:$0x3] %v210_v29  ;;  %v295_v41 = vld [vmem:[#allocation1 + $0x70] sm:$0x3]  }
  0x12   :  { %228 = vst [vmem:[#allocation1] sm:$0x3] %v225_v30  ;;  %v289_v40 = vld [vmem:[#allocation1 + $0x30] sm:$0x3]  }
  0x13   :  { %241 = vst [vmem:[#allocation1 + $0x50] sm:$0x3] %v239_v31  ;;  %v283_v32 = vld [vmem:[#allocation1 + $0x38] sm:$0x3]  }
  0x14   :  { %v277_v33 = vld [vmem:[#allocation1 + $0x58] sm:$0x3]   ;;  %285 = vst [vmem:[#allocation0 + $0xb] sm:$0x1] %v283_v32  }
  0x15   :  { %v271_v34 = vld [vmem:[#allocation1 + $0x68] sm:$0x3]   ;;  %279 = vst [vmem:[#allocation0 + $0xa] sm:$0x1] %v277_v33  }
  0x16   :  { %v265_v35 = vld [vmem:[#allocation1 + $0x40] sm:$0x3]   ;;  %273 = vst [vmem:[#allocation0 + $0x9] sm:$0x1] %v271_v34  }
  0x17   :  { %v259_v36 = vld [vmem:[#allocation1 + $0x18] sm:$0x3]   ;;  %267 = vst [vmem:[#allocation0 + $0x8] sm:$0x1] %v265_v35  }
  0x18   :  { %v253_v37 = vld [vmem:[#allocation1 + $0x8] sm:$0x3]   ;;  %261 = vst [vmem:[#allocation0 + $0x3] sm:$0x1] %v259_v36  }
  0x19   :  { %v247_v38 = vld [vmem:[#allocation1] sm:$0x3]   ;;  %255 = vst [vmem:[#allocation0 + $0x2] sm:$0x1] %v253_v37  }
  0x1a   :  { %v242_v39 = vld [vmem:[#allocation1 + $0x50] sm:$0x3]   ;;  %249 = vst [vmem:[#allocation0 + $0x1] sm:$0x1] %v247_v38  }
  0x1b   :  { %243 = vst [vmem:[#allocation0] sm:$0x1] %v242_v39  }
  0x1c   :  { %245 = vst [vmem:[#allocation0 + $0x1f] sm:$0x2] %v242_v39  }
  0x1d   :  { %251 = vst [vmem:[#allocation0 + $0x20] sm:$0x2] %v247_v38  }
  0x1e   :  { %257 = vst [vmem:[#allocation0 + $0x21] sm:$0x2] %v253_v37   ;;  %v344_v48 = vld [vmem:[#allocation0 + $0x8] sm:$0xf] }
  0x1f   :  { %263 = vst [vmem:[#allocation0 + $0x22] sm:$0x2] %v259_v36   ;;  %v345_v51 = vpack.c.bf16 0.0, %v344_v48 }
  0x20   :  { %269 = vst [vmem:[#allocation0 + $0x27] sm:$0x2] %v265_v35  }
  0x21   :  { %275 = vst [vmem:[#allocation0 + $0x28] sm:$0x2] %v271_v34  }
  0x22   :  { %281 = vst [vmem:[#allocation0 + $0x29] sm:$0x2] %v277_v33   ;;  %v338_v47 = vld [vmem:[#allocation0] sm:$0xf] }
  0x23   :  { %287 = vst [vmem:[#allocation0 + $0x2a] sm:$0x2] %v283_v32   ;;  %v339_v50 = vpack.c.bf16 0.0, %v338_v47 }
  0x24   :  { %291 = vst [vmem:[#allocation0 + $0x10] sm:$0x1] %v289_v40  }
  0x25   :  { %293 = vst [vmem:[#allocation0 + $0x2f] sm:$0x2] %v289_v40  }
  0x26   :  { %297 = vst [vmem:[#allocation0 + $0x11] sm:$0x1] %v295_v41   ;;  %v365_v52 = vld [vmem:[#allocation0 + $0x20] sm:$0xf] }
  0x27   :  { %299 = vst [vmem:[#allocation0 + $0x30] sm:$0x2] %v295_v41   ;;  %v366_v57 = vpack.c.bf16 0.0, %v365_v52 }
  0x28   :  { %303 = vst [vmem:[#allocation0 + $0x12] sm:$0x1] %v301_v42  }
  0x29   :  { %305 = vst [vmem:[#allocation0 + $0x31] sm:$0x2] %v301_v42  }
  0x2a   :  { %309 = vst [vmem:[#allocation0 + $0x13] sm:$0x1] %v307_v43   ;;  %v372_v54 = vld [vmem:[#allocation0 + $0x28] sm:$0xf] }
  0x2b   :  { %311 = vst [vmem:[#allocation0 + $0x32] sm:$0x2] %v307_v43   ;;  %v373_v58 = vpack.c.bf16 0.0, %v372_v54 }
  0x2c   :  { %315 = vst [vmem:[#allocation0 + $0x18] sm:$0x1] %v313_v44  }
  0x2d   :  { %317 = vst [vmem:[#allocation0 + $0x37] sm:$0x2] %v313_v44  }
  0x2e   :  { %321 = vst [vmem:[#allocation0 + $0x19] sm:$0x1] %v319_v45  }
  0x2f   :  { %323 = vst [vmem:[#allocation0 + $0x38] sm:$0x2] %v319_v45  }
  0x30   :  { %327 = vst [vmem:[#allocation0 + $0x1a] sm:$0x1] %v325_v46  }
  0x31   :  { %329 = vst [vmem:[#allocation0 + $0x39] sm:$0x2] %v325_v46   ;;  %v351_v53 = vld [vmem:[#allocation0 + $0x10] sm:$0xf] }
  0x32   :  { %333 = vst [vmem:[#allocation0 + $0x1b] sm:$0x1] %v331_v49   ;;  %v352_v55 = vpack.c.bf16 0.0, %v351_v53  ;;  %v379_v56 = vld [vmem:[#allocation0 + $0x30] sm:$0xf] }
  0x33   :  { %335 = vst [vmem:[#allocation0 + $0x3a] sm:$0x2] %v331_v49   ;;  %v380_v59 = vpack.c.bf16 0.0, %v379_v56 }
  0x34   :  { %342 = vst [vmem:[%s497_s1] sm:$0x3] %v339_v50 }
  0x35   :  { %407 = vst [vmem:[%s497_s1 + $0x2] sm:$0x3] %v345_v51 }
  0x36   :  { %408 = vst [vmem:[%s497_s1 + $0x4] sm:$0x3] %v352_v55 }
  0x37   :  { %410 = vst [vmem:[%s497_s1 + $0x8] sm:$0x3] %v366_v57 }
  0x38   :  { %411 = vst [vmem:[%s497_s1 + $0xa] sm:$0x3] %v373_v58 }
  0x39   :  { %v358_v60 = vld [vmem:[#allocation0 + $0x18] sm:$0xf]  ;;  %412 = vst [vmem:[%s497_s1 + $0xc] sm:$0x3] %v380_v59 }
  0x3a   :  { %v359_v61 = vpack.c.bf16 0.0, %v358_v60  ;;  %v386_v62 = vld [vmem:[#allocation0 + $0x38] sm:$0xf] }
  0x3b   :  { %v387_v63 = vpack.c.bf16 0.0, %v386_v62 }
  0x3c   :  { %409 = vst [vmem:[%s497_s1 + $0x6] sm:$0x3] %v359_v61 }
  0x3d   :  { %413 = vst [vmem:[%s497_s1 + $0xe] sm:$0x3] %v387_v63 }

// kernel: netG_forward.9
= control target key start
LH: loop header
LB: loop body
LE: loop exit
PB: predicated region body
PF: predicated region fallthrough
CT: control target
= control target key end

     0   :  { %9 = vsyncpa [#allocation3], 0  ;;  %s1050_s0 = inlined_call_operand.vmem [shape: bf16[1,8,128], index: 0, kind: input, shape index: {}]   ;;  %s1051_s1 = inlined_call_operand.hbm [shape: bf16[1,128,2048], index: 1, kind: input, shape index: {}]   ;;  %s1052_s2 = inlined_call_operand.vmem [shape: bf16[1,8,2048], index: 2, kind: output, shape index: {0}]   ;;  %s1053_s3 = inlined_call_operand.vmem [shape: f32[1,1,2,2048], index: 3, kind: output, shape index: {1}]  }
   0x1   :  { %11 = vsyncpa [#allocation3 + $0x1], 0  ;;  %s919_s12 = smov 0   ;;  %s921_s13 = smov 0  }
   0x2   :  { %s923_s14 = smov 0   ;;  %s925_s15 = smov 0  }
   0x3   :  { %s927_s16 = smov 0   ;;  %s929_s17 = smov 0  }
   0x4 LB: > { %s659_s18 = sadd.s32 4294967295, %s894_s17   ;;  %s29_s19 = sadd.s32 1, %s890_s16  ;;  %s894_s17 = sphi %s929_s17, %s17_s17   ;;  %s890_s16 = sphi %s927_s16, %s1060_s16   ;;  %s886_s15 = sphi %s925_s15, %s1059_s15   ;;  %s882_s14 = sphi %s923_s14, %s1058_s14   ;;  %s878_s13 = sphi %s921_s13, %s1057_s13   ;;  %s874_s12 = sphi %s919_s12, %s1056_s12  }
   0x5   : > { %p30_p0 = scmp.ge.s32.totalorder %s29_s19, 8  ;;  %s73_s20 = sadd.s32 1, %s882_s14 }
   0x6   : > { %p80_p1 = scmp.ne.s32.totalorder %s882_s14, %s878_s13  ;;  %p81_p2 = scmp.eq.s32.totalorder %s894_s17, 0 }
   0x7   : > { %s1062_s19 = smov (%p30_p0, %s29_s19), 0  ;;  %p86_p4 = scmp.ne.s32.totalorder %s878_s13, %s874_s12 }
   0x8   : > { %p955_p3 = por %p81_p2, %p80_p1  ;;  %s69_s22 = ssub.s32 %s890_s16, %s1062_s19 }
   0x9   : > { %p87_p5 = scmp.eq.s32.totalorder %s659_s18, 0  ;;  %p71_p6 = scmp.eq.s32.totalorder %s69_s22, 0 }
   0xa   : > { %p762_p8 = scmp.lt.s32.totalorder %s894_s17, 8  ;;  %s180_s25 = sand.u32 1, %s882_s14  }
   0xb   : > { %p962_p7 = por %p87_p5, %p86_p4  ;;  %s739_s26 = sshll.u32 %s890_s16, 3 }
   0xc   : > { %s968_s24 = scalar_select %p71_p6, %s882_s14, %s73_s20  }
   0xd   : > { %s664_s27 = sshll.u32 %s180_s25, 7  ;;  %s191_s30 = scalar_lea.hbm %s1051_s1, %s739_s26 }
   0xe   : > { %s192_s4 = sshll.u32 %s191_s30, 4  ;;  %s184_s5 = scalar_lea.vmem [#allocation2], %s664_s27  ;;  %s193_s4 = int_to_ptr.hbm [resolvable:$true] %s192_s4 }
   0xf   : > { %s194_s6 = sshll.u32 %s184_s5, 4  ;;  %p759_p9 = pnand %p762_p8, %p955_p3  ;;  %s195_s6 = int_to_ptr.vmem [resolvable:$true] %s194_s6 }
  0x10   : > { %p667_p10 = scmp.ge.s32.totalorder %s894_s17, 1  ;;  %s181_s7 = scalar_lea.sflag [#allocation3], %s180_s25 }
  0x11   : > { %s896_s8 = smov 1024   ;;  %s897_s9 = smov 128  }
  0x12   : > { %s898_s10 = smov 8   ;;  %p202_p11 = scmp.lt.s32.totalorder %s894_s17, 9 }
  0x13   : > { %761 = dma.hbm_to_vmem [thread:$0]  (!%p759_p9), %s193_s4, 2048, %s195_s6, %s181_s7, %s896_s8, %s897_s9, %s898_s10  }
  0x14   : > { %p203_p12 = pnand %p667_p10, %p202_p11 }
  0x15   : > { %s208_s11 = sand.u32 (!%p203_p12), 1, %s878_s13  }
  0x16   : > { %206 = sbr.rel (%p203_p12) target bundleno = 208 (0xd0), region = 28  ;;  %s668_s12 = sshll.u32 (!%p203_p12), %s208_s11, 7 }
  0x17   : > { %s209_s18 = scalar_lea.sflag (!%p203_p12), [#allocation3], %s208_s11  ;;  %s980_s20 = scalar_lea.vmem (!%p203_p12), [#allocation2], %s668_s12 }
  0x1b   : > { %869 = dma.done.wait (%p962_p7), %s209_s18, 2048  }
  0x1c   : > { %871 = vsyncadd (%p962_p7), %s209_s18, 4294965248  ;;  %v731_v0 = vld [vmem:[%s980_s20 + $0x70] sm:$0xf]  ;;  %v755_v1 = vld [vmem:[%s980_s20 + $0x74] sm:$0xf0]  ;;  %s669_s23 = sshll.u32 %s886_s15, 1 }
  0x1d   : > { %v754_v2 = vld [vmem:[%s980_s20 + $0x74] sm:$0xf]  ;;  %v732_v3 = vor.u32 %v755_v1, %v731_v0  ;;  %v733_v4 = vld [vmem:[%s980_s20 + $0x78] sm:$0xf0]  ;;  %v723_v5 = vld [vmem:[%s980_s20 + $0x60] sm:$0xf] }
  0x1e   : > { %v753_v6 = vld [vmem:[%s980_s20 + $0x64] sm:$0xf0]  ;;  %v736_v7 = vor.u32 %v754_v2, %v733_v4  ;;  %v752_v8 = vld [vmem:[%s980_s20 + $0x64] sm:$0xf]  ;;  %v725_v9 = vld [vmem:[%s980_s20 + $0x68] sm:$0xf0] }
  0x1f   : > { %397 = vmatpush.bf16.msra.mxu0 %v732_v3  ;;  %v724_v10 = vor.u32 %v753_v6, %v723_v5  ;;  %v728_v11 = vor.u32 %v752_v8, %v725_v9  ;;  %v715_v12 = vld [vmem:[%s980_s20 + $0x50] sm:$0xf]  ;;  %v751_v13 = vld [vmem:[%s980_s20 + $0x54] sm:$0xf0]  ;;  %v750_v14 = vld [vmem:[%s980_s20 + $0x54] sm:$0xf] }
  0x20   : > { %410 = vmatpush.bf16.msra.mxu1 %v736_v7  ;;  %v717_v15 = vld [vmem:[%s980_s20 + $0x58] sm:$0xf0]  ;;  %v716_v16 = vor.u32 %v751_v13, %v715_v12  ;;  %v707_v18 = vld [vmem:[%s980_s20 + $0x40] sm:$0xf]  ;;  %v749_v19 = vld [vmem:[%s980_s20 + $0x44] sm:$0xf0] }
  0x21   : > { %v720_v17 = vor.u32 %v750_v14, %v717_v15  ;;  %v748_v20 = vld [vmem:[%s980_s20 + $0x44] sm:$0xf]  ;;  %v709_v21 = vld [vmem:[%s980_s20 + $0x48] sm:$0xf0]  ;;  %v708_v22 = vor.u32 %v749_v19, %v707_v18  ;;  %v699_v24 = vld [vmem:[%s980_s20 + $0x30] sm:$0xf] }
  0x22   : > { %v712_v23 = vor.u32 %v748_v20, %v709_v21  ;;  %v747_v25 = vld [vmem:[%s980_s20 + $0x34] sm:$0xf0]  ;;  %v746_v26 = vld [vmem:[%s980_s20 + $0x34] sm:$0xf]  ;;  %v701_v27 = vld [vmem:[%s980_s20 + $0x38] sm:$0xf0] }
  0x23   : > { %398 = vmatpush.bf16.msra.mxu0 %v724_v10  ;;  %v700_v28 = vor.u32 %v747_v25, %v699_v24  ;;  %v704_v29 = vor.u32 %v746_v26, %v701_v27  ;;  %v691_v30 = vld [vmem:[%s980_s20 + $0x20] sm:$0xf]  ;;  %v745_v31 = vld [vmem:[%s980_s20 + $0x24] sm:$0xf0]  ;;  %v744_v32 = vld [vmem:[%s980_s20 + $0x24] sm:$0xf] }
  0x24   : > { %411 = vmatpush.bf16.msra.mxu1 %v728_v11  ;;  %v693_v33 = vld [vmem:[%s980_s20 + $0x28] sm:$0xf0]  ;;  %v692_v34 = vor.u32 %v745_v31, %v691_v30  ;;  %v683_v36 = vld [vmem:[%s980_s20 + $0x10] sm:$0xf]  ;;  %v743_v37 = vld [vmem:[%s980_s20 + $0x14] sm:$0xf0] }
  0x25   : > { %v696_v35 = vor.u32 %v744_v32, %v693_v33  ;;  %v742_v38 = vld [vmem:[%s980_s20 + $0x14] sm:$0xf]  ;;  %v685_v39 = vld [vmem:[%s980_s20 + $0x18] sm:$0xf0]  ;;  %v684_v40 = vor.u32 %v743_v37, %v683_v36  ;;  %v675_v42 = vld [vmem:[%s980_s20] sm:$0xf] }
  0x26   : > { %v688_v41 = vor.u32 %v742_v38, %v685_v39  ;;  %v741_v43 = vld [vmem:[%s980_s20 + $0x4] sm:$0xf0]  ;;  %v740_v44 = vld [vmem:[%s980_s20 + $0x4] sm:$0xf]  ;;  %v677_v45 = vld [vmem:[%s980_s20 + $0x8] sm:$0xf0] }
  0x27   : > { %399 = vmatpush.bf16.msra.mxu0 %v716_v16  ;;  %v676_v46 = vor.u32 %v741_v43, %v675_v42  ;;  %v680_v47 = vor.u32 %v740_v44, %v677_v45  ;;  %v300_v48 = vld [vmem:[%s1050_s0] sm:$0xf]  ;;  %p277_p13 = scmp.lt.s32.totalorder %s669_s23, 15  ;;  %vm451_vm0 = vcmask 1040384   ;;  %vm457_vm1 = vcmask 1041408  }
  0x28   : > { %412 = vmatpush.bf16.msra.mxu1 %v720_v17 }
  0x29   : > { %s1064_s23 = smov (!%p277_p13, %s669_s23), 15 }
  0x2a   : > { %s670_s25 = sshll.u32 %s1064_s23, 2  ;;  %s672_s15 = sshll.u32 %s1064_s23, 1 }
  0x2b   : > { %400 = vmatpush.bf16.msra.mxu0 %v708_v22  ;;  %s284_s28 = scalar_lea.vmem %s1052_s2, %s670_s25  ;;  %s298_s4 = scalar_lea.vmem %s1053_s3, %s672_s15 }
  0x2c   : > { %413 = vmatpush.bf16.msra.mxu1 %v712_v23 }
  0x2f   : > { %401 = vmatpush.bf16.msra.mxu0 %v700_v28 }
  0x30   : > { %414 = vmatpush.bf16.msra.mxu1 %v704_v29 }
  0x33   : > { %402 = vmatpush.bf16.msra.mxu0 %v692_v34 }
  0x34   : > { %415 = vmatpush.bf16.msra.mxu1 %v696_v35 }
  0x37   : > { %403 = vmatpush.bf16.msra.mxu0 %v684_v40 }
  0x38   : > { %416 = vmatpush.bf16.msra.mxu1 %v688_v41 }
  0x3b   : > { %404 = vmatpush.bf16.msra.mxu0 %v676_v46 }
  0x3c   : > { %417 = vmatpush.bf16.msra.mxu1 %v680_v47 }
  0x3e   : > { %405 = vmatmul.bf16.vlgmr.msra.gmra.mxu0 %v300_v48 }
  0x3f   : > { %418 = vmatmul.bf16.vlgmr.msra.gmra.mxu1 %v300_v48 }
  0xbb   : > { %v406_v49 = vpop.f32.mrf.mxu0 }
  0xbc   : > { %v425_v50 = vrot.slane %v406_v49, 4  ;;  %v437_v51 = vmul.f32 %v406_v49, %v406_v49  ;;  %v419_v52 = vpop.f32.mrf.mxu1 }
  0xbd   : > { %v423_v53 = vpack.c.bf16 %v419_v52, %v406_v49  ;;  %v431_v54 = vrot.slane %v419_v52, 4  ;;  %v438_v55 = vmul.f32 %v419_v52, %v419_v52 }
  0xbe   : > { %v426_v56 = vadd.f32 %v425_v50, %v406_v49  ;;  %v439_v57 = vrot.slane %v437_v51, 4 }
  0xbf   : > { %424 = vst [vmem:[%s284_s28] sm:$0xff] %v423_v53  ;;  %v432_v58 = vadd.f32 %v431_v54, %v419_v52  ;;  %v445_v59 = vrot.slane %v438_v55, 4 }
  0xc0   : > { %v427_v60 = vrot.slane %v426_v56, 2  ;;  %v440_v61 = vadd.f32 %v439_v57, %v437_v51 }
  0xc1   : > { %v433_v62 = vrot.slane %v432_v58, 2  ;;  %v446_v63 = vadd.f32 %v445_v59, %v438_v55 }
  0xc2   : > { %v441_v0 = vrot.slane %v440_v61, 2  ;;  %v428_v1 = vadd.f32 %v427_v60, %v426_v56 }
  0xc3   : > { %v434_v2 = vadd.f32 %v433_v62, %v432_v58  ;;  %v447_v3 = vrot.slane %v446_v63, 2  ;;  %v408_v4 = vpop.f32.mrf.mxu0 }
  0xc4   : > { %v442_v5 = vadd.f32 %v441_v0, %v440_v61  ;;  %v421_v6 = vpop.f32.mrf.mxu1  ;;  %v429_v10 = vrot.slane %v428_v1, 1 }
  0xc5   : > { %v435_v7 = vrot.slane %v434_v2, 1  ;;  %v448_v8 = vadd.f32 %v447_v3, %v446_v63 }
  0xc6   : > { %v443_v9 = vrot.slane %v442_v5, 1  ;;  %v430_v15 = vadd.f32 %v429_v10, %v428_v1 }
  0xc7   : > { %v449_v11 = vrot.slane %v448_v8, 1  ;;  %v436_v13 = vadd.f32 %v435_v7, %v434_v2 }
  0xc8   : > { %v444_v12 = vadd.f32 %v443_v9, %v442_v5 }
  0xc9   : > { %v450_v14 = vadd.f32 %v449_v11, %v448_v8 }
  0xca   : > { %v452_v18 = vsel %vm451_vm0, %v430_v15, %v444_v12 }
  0xcb   : > { %v453_v16 = vsel %vm451_vm0, %v436_v13, %v450_v14 }
  0xcc   : > { %v456_v17 = vrot.slane %v453_v16, 6 }
  0xce   : > { %v458_v19 = vsel %vm457_vm1, %v452_v18, %v456_v17 }
  0xcf   : > { %460 = vst [vmem:[%s298_s4] sm:$0xf] %v458_v19 }
  0xd0 PF: > { %s17_s17 = sadd.s32 1, %s894_s17   ;;  %s1056_s12 = smov %s878_s13 }
  0xd1   : > { %p14_p0 = scmp.ge.s32.totalorder %s17_s17, 10   ;;  %s1057_s13 = smov %s882_s14 }
  0xd2   : > { %s1058_s14 = smov %s968_s24  ;;  %s1059_s15 = smov %s890_s16 }
  0xd3   : > { %s1060_s16 = smov %s1062_s19  ;;  %16 = sbr.rel (!%p14_p0) target bundleno = 4 (0x4), region = 83 }
  0xd8   :  { %532 = vsyncpa [#allocation3], 1 }
  0xd9   :  { %534 = vsyncpa [#allocation3 + $0x1], 1 }

// kernel: netG_forward.10
= control target key start
LH: loop header
LB: loop body
LE: loop exit
PB: predicated region body
PF: predicated region fallthrough
CT: control target
= control target key end

     0   :  { %s513_s12 = smov 0   ;;  %s515_s13 = smov 0   ;;  %s552_s0 = inlined_call_operand.vmem [shape: bf16[1,8,2048], index: 0, kind: input, shape index: {}]   ;;  %s553_s1 = inlined_call_operand.vmem [shape: f32[1,2048], index: 1, kind: input, shape index: {}]   ;;  %s554_s2 = inlined_call_operand.vmem [shape: f32[1,2048], index: 2, kind: input, shape index: {}]   ;;  %s555_s3 = inlined_call_operand.vmem [shape: bf16[1,8,2048], index: 3, kind: output, shape index: {}]  }
   0x1   :  { %s517_s14 = smov 0  }
   0x2 LB: > { %s25_s15 = sadd.s32 1, %s487_s13  ;;  %p436_p0 = scmp.ge.s32.totalorder %s491_s14, 1  ;;  %s491_s14 = sphi %s517_s14, %s13_s14   ;;  %s487_s13 = sphi %s515_s13, %s557_s13   ;;  %s483_s12 = sphi %s513_s12, %s556_s12  }
   0x3   : > { %p26_p1 = scmp.ge.s32.totalorder %s25_s15, 8  ;;  %p193_p2 = scmp.lt.s32.totalorder %s491_s14, 9 }
   0x5   : > { %s559_s15 = smov (%p26_p1, %s25_s15), 0  ;;  %p194_p3 = pnand %p436_p0, %p193_p2 }
   0x6   : > { %s437_s16 = sshll.u32 (!%p194_p3), %s483_s12, 1 }
   0x7   : > { %197 = sbr.rel (%p194_p3) target bundleno = 27 (0x1b), region = 32  ;;  %p246_p4 = scmp.lt.s32.totalorder (!%p194_p3), %s437_s16, 15 }
   0xc   : > { %s561_s16 = smov (!%p246_p4, %s437_s16), 15 }
   0xd   : > { %s438_s17 = sshll.u32 %s561_s16, 2  ;;  %s258_s20 = scalar_lea.vmem %s553_s1, %s561_s16 }
   0xe   : > { %s253_s23 = scalar_lea.vmem %s552_s0, %s438_s17  ;;  %s263_s26 = scalar_lea.vmem %s554_s2, %s561_s16  ;;  %v282_v0 = vld [vmem:[%s258_s20] sm:$0x3] }
   0xf   : > { %v279_v1 = vld [vmem:[%s253_s23] sm:$0xff]  ;;  %v284_v2 = vperm.slane %v282_v0, 0  ;;  %v285_v3 = vperm.slane %v282_v0, 1  ;;  %s277_s29 = scalar_lea.vmem %s555_s3, %s438_s17 }
  0x10   : > { %v290_v4 = vld [vmem:[%s263_s26] sm:$0x3]  ;;  %v280_v5 = vunpack.c.l.bf16 %v279_v1  ;;  %v281_v6 = vunpack.c.h.bf16 %v279_v1 }
  0x11   : > { %v292_v7 = vperm.slane %v290_v4, 0  ;;  %v293_v8 = vperm.slane %v290_v4, 1 }
  0x12   : > { %v288_v9 = vmul.f32 %v284_v2, %v280_v5  ;;  %v289_v10 = vmul.f32 %v285_v3, %v281_v6 }
  0x14   : > { %v296_v11 = vadd.f32 %v292_v7, %v288_v9  ;;  %v297_v12 = vadd.f32 %v293_v8, %v289_v10 }
  0x16   : > { %v298_v13 = vmax.f32 %v296_v11, 0.0  ;;  %v299_v14 = vmax.f32 %v297_v12, 0.0 }
  0x18   : > { %v300_v15 = vpack.c.bf16 %v299_v14, %v298_v13 }
  0x1a   : > { %301 = vst [vmem:[%s277_s29] sm:$0xff] %v300_v15 }
  0x1b PF: > { %s13_s14 = sadd.s32 1, %s491_s14   ;;  %s556_s12 = smov %s487_s13 }
  0x1c   : > { %p10_p5 = scmp.ge.s32.totalorder %s13_s14, 10   ;;  %s557_s13 = smov %s559_s15 }
  0x1e   :  { %12 = sbr.rel (!%p10_p5) target bundleno = 2 (0x2), region = 68 }

// kernel: netG_forward.12
= control target key start
LH: loop header
LB: loop body
LE: loop exit
PB: predicated region body
PF: predicated region fallthrough
CT: control target
= control target key end

     0   :  { %s532_s12 = smov 0   ;;  %s534_s13 = smov 0   ;;  %s571_s0 = inlined_call_operand.vmem [shape: bf16[4,32,128], index: 0, kind: input, shape index: {}]   ;;  %s572_s1 = inlined_call_operand.vmem [shape: f32[1,128], index: 1, kind: input, shape index: {}]   ;;  %s573_s2 = inlined_call_operand.vmem [shape: f32[1,128], index: 2, kind: input, shape index: {}]   ;;  %s574_s3 = inlined_call_operand.vmem [shape: bf16[4,32,128], index: 3, kind: output, shape index: {}]  }
   0x1   :  { %s536_s14 = smov 0  }
   0x2 LB: > { %s32_s15 = sadd.s32 1, %s506_s13  ;;  %p433_p0 = scmp.ge.s32.totalorder %s510_s14, 1  ;;  %s510_s14 = sphi %s536_s14, %s13_s14   ;;  %s506_s13 = sphi %s534_s13, %s576_s13   ;;  %s502_s12 = sphi %s532_s12, %s575_s12  }
   0x3   : > { %p34_p1 = scmp.ge.s32.totalorder %s32_s15, 4  ;;  %p188_p2 = scmp.lt.s32.totalorder %s510_s14, 5 }
   0x5   : > { %s578_s15 = smov (%p34_p1, %s32_s15), 0  ;;  %p189_p3 = pnand %p433_p0, %p188_p2 }
   0x6   : > { %p233_p4 = scmp.lt.s32.totalorder (!%p189_p3), %s502_s12, 3 }
   0x7   : > { %192 = sbr.rel (%p189_p3) target bundleno = 28 (0x1c), region = 32 }
   0xc   : > { %s580_s12 = smov (!%p233_p4, %s502_s12), 3  ;;  %v486_v0 = vld [vmem:[%s572_s1] ss:$0 sm:$0xff] }
   0xd   : > { %s440_s16 = sshll.u32 %s580_s12, 4  ;;  %v487_v7 = vld [vmem:[%s573_s2] ss:$0 sm:$0xff] }
   0xe   : > { %s243_s19 = scalar_lea.vmem %s571_s0, %s440_s16  ;;  %s262_s26 = scalar_lea.vmem %s574_s3, %s440_s16 }
   0xf   : > { %v443_v1 = vld [vmem:[%s243_s19] sm:$0xff]   ;;  %v460_v2 = vld [vmem:[%s243_s19 + $0x8] sm:$0xff]  }
  0x10   : > { %v444_v3 = vunpack.c.l.bf16 %v443_v1  ;;  %v445_v4 = vunpack.c.h.bf16 %v443_v1  ;;  %v448_v5 = vunpack.c.l.bf16 %v460_v2  ;;  %v449_v6 = vunpack.c.h.bf16 %v460_v2 }
  0x12   : > { %v276_v8 = vmul.f32 %v486_v0, %v444_v3  ;;  %v277_v9 = vmul.f32 %v486_v0, %v445_v4  ;;  %v278_v10 = vmul.f32 %v486_v0, %v448_v5  ;;  %v279_v11 = vmul.f32 %v486_v0, %v449_v6 }
  0x14   : > { %v284_v12 = vadd.f32 %v487_v7, %v276_v8  ;;  %v285_v13 = vadd.f32 %v487_v7, %v277_v9  ;;  %v286_v14 = vadd.f32 %v487_v7, %v278_v10  ;;  %v287_v15 = vadd.f32 %v487_v7, %v279_v11 }
  0x16   : > { %v288_v16 = vmax.f32 %v284_v12, 0.0  ;;  %v289_v17 = vmax.f32 %v285_v13, 0.0  ;;  %v290_v18 = vmax.f32 %v286_v14, 0.0  ;;  %v291_v19 = vmax.f32 %v287_v15, 0.0 }
  0x18   : > { %v453_v20 = vpack.c.bf16 %v289_v17, %v288_v16  ;;  %v458_v21 = vpack.c.bf16 %v291_v19, %v290_v18 }
  0x1a   : > { %454 = vst [vmem:[%s262_s26] sm:$0xff] %v453_v20  }
  0x1b   : > { %461 = vst [vmem:[%s262_s26 + $0x8] sm:$0xff] %v458_v21  }
  0x1c PF: > { %s13_s14 = sadd.s32 1, %s510_s14   ;;  %s575_s12 = smov %s506_s13 }
  0x1d   : > { %p10_p5 = scmp.ge.s32.totalorder %s13_s14, 6   ;;  %s576_s13 = smov %s578_s15 }
  0x1f   :  { %12 = sbr.rel (!%p10_p5) target bundleno = 2 (0x2), region = 68 }

// kernel: netG_forward.11
= control target key start
LH: loop header
LB: loop body
LE: loop exit
PB: predicated region body
PF: predicated region fallthrough
CT: control target
= control target key end

     0   :  { %9 = vsyncpa [#allocation3], 0  ;;  %s1434_s0 = inlined_call_operand.vmem [shape: bf16[4,32,512], index: 0, kind: input, shape index: {}]   ;;  %s1435_s1 = inlined_call_operand.hbm [shape: bf16[4,512,128], index: 1, kind: input, shape index: {}]   ;;  %s1436_s2 = inlined_call_operand.vmem [shape: bf16[4,32,128], index: 2, kind: output, shape index: {0}]   ;;  %s1437_s3 = inlined_call_operand.vmem [shape: f32[4,1,2,128], index: 3, kind: output, shape index: {1}]  }
   0x1   :  { %11 = vsyncpa [#allocation3 + $0x1], 0  ;;  %s1283_s12 = smov 0   ;;  %s1285_s13 = smov 0  }
   0x2   :  { %s1287_s14 = smov 0   ;;  %s1289_s15 = smov 0  }
   0x3   :  { %s1291_s16 = smov 0   ;;  %s1293_s17 = smov 0  }
   0x4 LB: > { %s892_s18 = sadd.s32 4294967295, %s1259_s17   ;;  %s36_s19 = sadd.s32 1, %s1255_s16  ;;  %s1259_s17 = sphi %s1293_s17, %s17_s17   ;;  %s1255_s16 = sphi %s1291_s16, %s1444_s16   ;;  %s1251_s15 = sphi %s1289_s15, %s1443_s15   ;;  %s1247_s14 = sphi %s1287_s14, %s1442_s14   ;;  %s1243_s13 = sphi %s1285_s13, %s1441_s13   ;;  %s1239_s12 = sphi %s1283_s12, %s1440_s12  }
   0x5   : > { %p38_p0 = scmp.ge.s32.totalorder %s36_s19, 4  ;;  %s73_s20 = sadd.s32 1, %s1247_s14 }
   0x6   : > { %p80_p1 = scmp.ne.s32.totalorder %s1247_s14, %s1243_s13  ;;  %p81_p2 = scmp.eq.s32.totalorder %s1259_s17, 0 }
   0x7   : > { %s1446_s19 = smov (%p38_p0, %s36_s19), 0  ;;  %p86_p4 = scmp.ne.s32.totalorder %s1243_s13, %s1239_s12 }
   0x8   : > { %p1319_p3 = por %p81_p2, %p80_p1  ;;  %s68_s22 = ssub.s32 %s1255_s16, %s1446_s19 }
   0x9   : > { %p87_p5 = scmp.eq.s32.totalorder %s892_s18, 0  ;;  %p71_p6 = scmp.eq.s32.totalorder %s68_s22, 0 }
   0xa   : > { %p1128_p8 = scmp.lt.s32.totalorder %s1259_s17, 4  ;;  %s184_s25 = sand.u32 1, %s1247_s14  }
   0xb   : > { %p1326_p7 = por %p87_p5, %p86_p4  ;;  %s1068_s26 = sshll.u32 %s1255_s16, 8 }
   0xc   : > { %s1332_s24 = scalar_select %p71_p6, %s1247_s14, %s73_s20  }
   0xd   : > { %s896_s27 = sshll.u32 %s184_s25, 8  ;;  %s194_s30 = scalar_lea.hbm %s1435_s1, %s1068_s26 }
   0xe   : > { %s195_s4 = sshll.u32 %s194_s30, 4  ;;  %s188_s5 = scalar_lea.vmem [#allocation2], %s896_s27  ;;  %s196_s4 = int_to_ptr.hbm [resolvable:$true] %s195_s4 }
   0xf   : > { %s197_s6 = sshll.u32 %s188_s5, 4  ;;  %p1125_p9 = pnand %p1128_p8, %p1319_p3  ;;  %s198_s6 = int_to_ptr.vmem [resolvable:$true] %s197_s6 }
  0x10   : > { %p899_p10 = scmp.ge.s32.totalorder %s1259_s17, 1  ;;  %p205_p11 = scmp.lt.s32.totalorder %s1259_s17, 5 }
  0x11   : > { %s185_s7 = scalar_lea.sflag [#allocation3], %s184_s25  ;;  %s1261_s8 = smov 64  }
  0x12   : > { %s1262_s9 = smov 4   ;;  %p206_p12 = pnand %p899_p10, %p205_p11 }
  0x13   : > { %1127 = dma.hbm_to_vmem [thread:$0]  (!%p1125_p9), %s196_s4, 4096, %s198_s6, %s185_s7, %s1261_s8, %s1261_s8, %s1262_s9  }
  0x14   : > { %209 = sbr.rel (%p206_p12) target bundleno = 238 (0xee), region = 28  ;;  %s211_s10 = sand.u32 (!%p206_p12), 1, %s1243_s13  }
  0x15   : > { %s900_s11 = sshll.u32 (!%p206_p12), %s211_s10, 8  ;;  %s212_s12 = scalar_lea.sflag (!%p206_p12), [#allocation3], %s211_s10 }
  0x16   : > { %s1344_s18 = scalar_lea.vmem (!%p206_p12), [#allocation2], %s900_s11 }
  0x19   : > { %1234 = dma.done.wait (%p1326_p7), %s212_s12, 4096  }
  0x1a   : > { %1236 = vsyncadd (%p1326_p7), %s212_s12, 4294963200  ;;  %v1086_v0 = vld [vmem:[%s1344_s18 + $0x38] sm:$0xff]  ;;  %v1085_v4 = vld [vmem:[%s1344_s18 + $0x30] sm:$0xff]  ;;  %p267_p13 = scmp.lt.s32.totalorder %s1251_s15, 3  ;;  %vm710_vm0 = vcmask 1040384  }
  0x1b   : > { %v1094_v1 = vld [vmem:[%s1344_s18 + $0x78] sm:$0xff]  ;;  %604 = vmatpush.bf16.msra.mxu0 %v1086_v0  ;;  %v1093_v5 = vld [vmem:[%s1344_s18 + $0x70] sm:$0xff]  ;;  %v1084_v8 = vld [vmem:[%s1344_s18 + $0x28] sm:$0xff] }
  0x1c   : > { %v1102_v2 = vld [vmem:[%s1344_s18 + $0xb8] sm:$0xff]  ;;  %623 = vmatpush.bf16.msra.mxu1 %v1094_v1  ;;  %v1101_v6 = vld [vmem:[%s1344_s18 + $0xb0] sm:$0xff]  ;;  %v1092_v9 = vld [vmem:[%s1344_s18 + $0x68] sm:$0xff]  ;;  %s1448_s15 = smov (!%p267_p13, %s1251_s15), 3 }
  0x1d   : > { %v1110_v3 = vld [vmem:[%s1344_s18 + $0xf8] sm:$0xff]  ;;  %642 = vmatpush.bf16.msra.mxu2 %v1102_v2  ;;  %v1109_v7 = vld [vmem:[%s1344_s18 + $0xf0] sm:$0xff]  ;;  %v1100_v10 = vld [vmem:[%s1344_s18 + $0xa8] sm:$0xff]  ;;  %s1069_s20 = sshll.u32 %s1448_s15, 6  ;;  %s1070_s25 = sshll.u32 %s1448_s15, 4 }
  0x1e   : > { %661 = vmatpush.bf16.msra.mxu3 %v1110_v3  ;;  %v1108_v11 = vld [vmem:[%s1344_s18 + $0xe8] sm:$0xff]  ;;  %v1083_v12 = vld [vmem:[%s1344_s18 + $0x20] sm:$0xff]  ;;  %v1082_v16 = vld [vmem:[%s1344_s18 + $0x18] sm:$0xff]  ;;  %s1384_s23 = scalar_lea.vmem %s1434_s0, %s1069_s20  ;;  %s288_s28 = scalar_lea.vmem %s1436_s2, %s1070_s25 }
  0x1f   : > { %605 = vmatpush.bf16.msra.mxu0 %v1085_v4  ;;  %v1091_v13 = vld [vmem:[%s1344_s18 + $0x60] sm:$0xff]  ;;  %v1090_v17 = vld [vmem:[%s1344_s18 + $0x58] sm:$0xff]  ;;  %v1081_v20 = vld [vmem:[%s1344_s18 + $0x10] sm:$0xff]  ;;  %s905_s29 = sshll.u32 %s1448_s15, 1 }
  0x20   : > { %624 = vmatpush.bf16.msra.mxu1 %v1093_v5  ;;  %v1099_v14 = vld [vmem:[%s1344_s18 + $0xa0] sm:$0xff]  ;;  %v1098_v18 = vld [vmem:[%s1344_s18 + $0x98] sm:$0xff]  ;;  %v1089_v21 = vld [vmem:[%s1344_s18 + $0x50] sm:$0xff]  ;;  %s299_s5 = scalar_lea.vmem %s1437_s3, %s905_s29 }
  0x21   : > { %643 = vmatpush.bf16.msra.mxu2 %v1101_v6  ;;  %v1107_v15 = vld [vmem:[%s1344_s18 + $0xe0] sm:$0xff]  ;;  %v1106_v19 = vld [vmem:[%s1344_s18 + $0xd8] sm:$0xff]  ;;  %v1097_v22 = vld [vmem:[%s1344_s18 + $0x90] sm:$0xff] }
  0x22   : > { %662 = vmatpush.bf16.msra.mxu3 %v1109_v7  ;;  %v1105_v23 = vld [vmem:[%s1344_s18 + $0xd0] sm:$0xff]  ;;  %v1080_v24 = vld [vmem:[%s1344_s18 + $0x8] sm:$0xff]  ;;  %v1079_v28 = vld [vmem:[%s1344_s18] sm:$0xff] }
  0x23   : > { %606 = vmatpush.bf16.msra.mxu0 %v1084_v8  ;;  %v1088_v25 = vld [vmem:[%s1344_s18 + $0x48] sm:$0xff]  ;;  %v1087_v29 = vld [vmem:[%s1344_s18 + $0x40] sm:$0xff]  ;;  %v1073_v33 = vld [vmem:[%s1384_s23 + $0xc] sm:$0xf0] }
  0x24   : > { %625 = vmatpush.bf16.msra.mxu1 %v1092_v9  ;;  %v1096_v26 = vld [vmem:[%s1344_s18 + $0x88] sm:$0xff]  ;;  %v1095_v30 = vld [vmem:[%s1344_s18 + $0x80] sm:$0xff]  ;;  %v910_v35 = vld [vmem:[%s1384_s23 + $0x10] sm:$0xf0] }
  0x25   : > { %644 = vmatpush.bf16.msra.mxu2 %v1100_v10  ;;  %v1104_v27 = vld [vmem:[%s1344_s18 + $0xc8] sm:$0xff]  ;;  %v1103_v31 = vld [vmem:[%s1344_s18 + $0xc0] sm:$0xff]  ;;  %v1074_v37 = vld [vmem:[%s1384_s23 + $0x14] sm:$0xf0] }
  0x26   : > { %663 = vmatpush.bf16.msra.mxu3 %v1108_v11  ;;  %v908_v32 = vld [vmem:[%s1384_s23] sm:$0xf]  ;;  %v1071_v34 = vld [vmem:[%s1384_s23 + $0x4] sm:$0xf]  ;;  %v916_v36 = vld [vmem:[%s1384_s23 + $0x8] sm:$0xf] }
  0x27   : > { %607 = vmatpush.bf16.msra.mxu0 %v1083_v12  ;;  %v1072_v38 = vld [vmem:[%s1384_s23 + $0xc] sm:$0xf]  ;;  %v918_v39 = vld [vmem:[%s1384_s23 + $0x18] sm:$0xf0]  ;;  %v909_v40 = vor.u32 %v1073_v33, %v908_v32  ;;  %v913_v41 = vor.u32 %v1071_v34, %v910_v35  ;;  %v917_v42 = vor.u32 %v1074_v37, %v916_v36  ;;  %v924_v44 = vld [vmem:[%s1384_s23 + $0x20] sm:$0xf] }
  0x28   : > { %626 = vmatpush.bf16.msra.mxu1 %v1091_v13  ;;  %v921_v43 = vor.u32 %v1072_v38, %v918_v39  ;;  %v1077_v45 = vld [vmem:[%s1384_s23 + $0x2c] sm:$0xf0]  ;;  %v1075_v46 = vld [vmem:[%s1384_s23 + $0x24] sm:$0xf]  ;;  %v926_v47 = vld [vmem:[%s1384_s23 + $0x30] sm:$0xf0] }
  0x29   : > { %645 = vmatpush.bf16.msra.mxu2 %v1099_v14  ;;  %v932_v48 = vld [vmem:[%s1384_s23 + $0x28] sm:$0xf]  ;;  %v1078_v49 = vld [vmem:[%s1384_s23 + $0x34] sm:$0xf0]  ;;  %v1076_v50 = vld [vmem:[%s1384_s23 + $0x2c] sm:$0xf]  ;;  %v925_v52 = vor.u32 %v1077_v45, %v924_v44  ;;  %v929_v53 = vor.u32 %v1075_v46, %v926_v47 }
  0x2a   : > { %664 = vmatpush.bf16.msra.mxu3 %v1107_v15  ;;  %v934_v51 = vld [vmem:[%s1384_s23 + $0x38] sm:$0xf0]  ;;  %v933_v54 = vor.u32 %v1078_v49, %v932_v48 }
  0x2b   : > { %608 = vmatpush.bf16.msra.mxu0 %v1082_v16  ;;  %v937_v55 = vor.u32 %v1076_v50, %v934_v51 }
  0x2c   : > { %627 = vmatpush.bf16.msra.mxu1 %v1090_v17 }
  0x2d   : > { %646 = vmatpush.bf16.msra.mxu2 %v1098_v18 }
  0x2e   : > { %665 = vmatpush.bf16.msra.mxu3 %v1106_v19 }
  0x2f   : > { %609 = vmatpush.bf16.msra.mxu0 %v1081_v20 }
  0x30   : > { %628 = vmatpush.bf16.msra.mxu1 %v1089_v21 }
  0x31   : > { %647 = vmatpush.bf16.msra.mxu2 %v1097_v22 }
  0x32   : > { %666 = vmatpush.bf16.msra.mxu3 %v1105_v23 }
  0x33   : > { %610 = vmatpush.bf16.msra.mxu0 %v1080_v24 }
  0x34   : > { %629 = vmatpush.bf16.msra.mxu1 %v1088_v25 }
  0x35   : > { %648 = vmatpush.bf16.msra.mxu2 %v1096_v26 }
  0x36   : > { %667 = vmatpush.bf16.msra.mxu3 %v1104_v27 }
  0x37   : > { %611 = vmatpush.bf16.msra.mxu0 %v1079_v28 }
  0x38   : > { %630 = vmatpush.bf16.msra.mxu1 %v1087_v29 }
  0x39   : > { %649 = vmatpush.bf16.msra.mxu2 %v1095_v30 }
  0x3a   : > { %668 = vmatpush.bf16.msra.mxu3 %v1103_v31  ;;  %612 = vmatmul.bf16.vlgmr.msra.gmra.mxu0 %v909_v40 }
  0x3b   : > { %631 = vmatmul.bf16.vlgmr.msra.gmra.mxu1 %v913_v41 }
  0x3c   : > { %650 = vmatmul.bf16.vlgmr.msra.gmra.mxu2 %v917_v42 }
  0x3d   : > { %669 = vmatmul.bf16.vlgmr.msra.gmra.mxu3 %v921_v43 }
  0x4a   : > { %617 = vmatmul.bf16.gmra.mxu0 %v925_v52 }
  0x4b   : > { %636 = vmatmul.bf16.gmra.mxu1 %v929_v53 }
  0x4c   : > { %655 = vmatmul.bf16.gmra.mxu2 %v933_v54 }
  0x4d   : > { %674 = vmatmul.bf16.gmra.mxu3 %v937_v55 }
  0xb7   : > { %v613_v56 = vpop.f32.mrf.mxu0 }
  0xb8   : > { %v632_v57 = vpop.f32.mrf.mxu1 }
  0xb9   : > { %v633_v62 = vadd.f32 %v632_v57, %v613_v56 }
  0xbf   : > { %v651_v58 = vpop.f32.mrf.mxu2  ;;  %v615_v60 = vpop.f32.mrf.mxu0 }
  0xc0   : > { %v670_v59 = vpop.f32.mrf.mxu3  ;;  %v634_v61 = vpop.f32.mrf.mxu1  ;;  %v652_v63 = vadd.f32 %v651_v58, %v633_v62 }
  0xc1   : > { %v635_v0 = vadd.f32 %v634_v61, %v615_v60 }
  0xc2   : > { %v671_v6 = vadd.f32 %v670_v59, %v652_v63 }
  0xc4   : > { %v697_v19 = vmul.f32 %v671_v6, %v671_v6 }
  0xc7   : > { %v653_v1 = vpop.f32.mrf.mxu2  ;;  %v618_v4 = vpop.f32.mrf.mxu0 }
  0xc8   : > { %v672_v2 = vpop.f32.mrf.mxu3  ;;  %v654_v3 = vadd.f32 %v653_v1, %v635_v0  ;;  %v637_v5 = vpop.f32.mrf.mxu1 }
  0xc9   : > { %v638_v9 = vadd.f32 %v637_v5, %v618_v4 }
  0xca   : > { %v673_v7 = vadd.f32 %v672_v2, %v654_v3 }
  0xcc   : > { %v1114_v8 = vpack.c.bf16 %v673_v7, %v671_v6  ;;  %v698_v16 = vmul.f32 %v673_v7, %v673_v7  ;;  %v688_v20 = vadd.f32 %v673_v7, %v671_v6 }
  0xce   : > { %1115 = vst [vmem:[%s288_s28] sm:$0xff] %v1114_v8   ;;  %v701_v24 = vadd.f32 %v698_v16, %v697_v19 }
  0xcf   : > { %v656_v10 = vpop.f32.mrf.mxu2  ;;  %v620_v13 = vpop.f32.mrf.mxu0 }
  0xd0   : > { %v675_v11 = vpop.f32.mrf.mxu3  ;;  %v657_v12 = vadd.f32 %v656_v10, %v638_v9  ;;  %v639_v14 = vpop.f32.mrf.mxu1 }
  0xd1   : > { %v640_v17 = vadd.f32 %v639_v14, %v620_v13 }
  0xd2   : > { %v676_v15 = vadd.f32 %v675_v11, %v657_v12 }
  0xd4   : > { %v699_v21 = vmul.f32 %v676_v15, %v676_v15  ;;  %v689_v25 = vadd.f32 %v688_v20, %v676_v15 }
  0xd6   : > { %v702_v27 = vadd.f32 %v701_v24, %v699_v21 }
  0xd7   : > { %v658_v18 = vpop.f32.mrf.mxu2 }
  0xd8   : > { %v659_v22 = vadd.f32 %v658_v18, %v640_v17  ;;  %v677_v23 = vpop.f32.mrf.mxu3 }
  0xda   : > { %v678_v26 = vadd.f32 %v677_v23, %v659_v22 }
  0xdc   : > { %v1119_v28 = vpack.c.bf16 %v678_v26, %v676_v15  ;;  %v690_v29 = vadd.f32 %v689_v25, %v678_v26  ;;  %v700_v30 = vmul.f32 %v678_v26, %v678_v26 }
  0xde   : > { %1121 = vst [vmem:[%s288_s28 + $0x8] sm:$0xff] %v1119_v28   ;;  %v691_v31 = vrot.slane %v690_v29, 4  ;;  %v703_v32 = vadd.f32 %v702_v27, %v700_v30 }
  0xe0   : > { %v692_v33 = vadd.f32 %v691_v31, %v690_v29  ;;  %v704_v34 = vrot.slane %v703_v32, 4 }
  0xe2   : > { %v693_v35 = vrot.slane %v692_v33, 2  ;;  %v705_v36 = vadd.f32 %v704_v34, %v703_v32 }
  0xe4   : > { %v694_v37 = vadd.f32 %v693_v35, %v692_v33  ;;  %v706_v38 = vrot.slane %v705_v36, 2 }
  0xe6   : > { %v695_v39 = vrot.slane %v694_v37, 1  ;;  %v707_v40 = vadd.f32 %v706_v38, %v705_v36 }
  0xe8   : > { %v708_v41 = vrot.slane %v707_v40, 1  ;;  %v696_v42 = vadd.f32 %v695_v39, %v694_v37 }
  0xea   : > { %v709_v43 = vadd.f32 %v708_v41, %v707_v40 }
  0xec   : > { %v711_v44 = vsel %vm710_vm0, %v696_v42, %v709_v43 }
  0xed   : > { %712 = vst [vmem:[%s299_s5] sm:$0x3] %v711_v44 }
  0xee PF: > { %s17_s17 = sadd.s32 1, %s1259_s17   ;;  %s1440_s12 = smov %s1243_s13 }
  0xef   : > { %p14_p0 = scmp.ge.s32.totalorder %s17_s17, 6   ;;  %s1441_s13 = smov %s1247_s14 }
  0xf0   : > { %s1442_s14 = smov %s1332_s24  ;;  %s1443_s15 = smov %s1255_s16 }
  0xf1   : > { %s1444_s16 = smov %s1446_s19  ;;  %16 = sbr.rel (!%p14_p0) target bundleno = 4 (0x4), region = 83 }
  0xf6   :  { %775 = vsyncpa [#allocation3], 1 }
  0xf7   :  { %777 = vsyncpa [#allocation3 + $0x1], 1 }

// kernel: netG_forward.14
= control target key start
LH: loop header
LB: loop body
LE: loop exit
PB: predicated region body
PF: predicated region fallthrough
CT: control target
= control target key end

     0   :  { %s682_s12 = smov 0   ;;  %s684_s13 = smov 0   ;;  %s784_s0 = inlined_call_operand.vmem [shape: bf16[4,128,128], index: 0, kind: input, shape index: {}]   ;;  %s785_s1 = inlined_call_operand.vmem [shape: f32[1,128], index: 1, kind: input, shape index: {}]   ;;  %s786_s2 = inlined_call_operand.vmem [shape: f32[1,128], index: 2, kind: input, shape index: {}]   ;;  %s787_s3 = inlined_call_operand.vmem [shape: bf16[4,128,128], index: 3, kind: output, shape index: {}]  }
   0x1   :  { %s686_s14 = smov 0  }
   0x2 LB: > { %s32_s15 = sadd.s32 1, %s656_s13  ;;  %p517_p0 = scmp.ge.s32.totalorder %s660_s14, 1  ;;  %s660_s14 = sphi %s686_s14, %s13_s14   ;;  %s656_s13 = sphi %s684_s13, %s789_s13   ;;  %s652_s12 = sphi %s682_s12, %s788_s12  }
   0x3   : > { %p34_p1 = scmp.ge.s32.totalorder %s32_s15, 4  ;;  %p188_p2 = scmp.lt.s32.totalorder %s660_s14, 5 }
   0x5   : > { %s791_s15 = smov (%p34_p1, %s32_s15), 0  ;;  %p189_p3 = pnand %p517_p0, %p188_p2 }
   0x6   : > { %p233_p4 = scmp.lt.s32.totalorder (!%p189_p3), %s652_s12, 3 }
   0x7   : > { %192 = sbr.rel (%p189_p3) target bundleno = 38 (0x26), region = 32 }
   0xc   : > { %s793_s12 = smov (!%p233_p4, %s652_s12), 3  ;;  %v713_v0 = vld [vmem:[%s785_s1] ss:$0 sm:$0xff] }
   0xd   : > { %s524_s16 = sshll.u32 %s793_s12, 6  ;;  %v721_v6 = vld [vmem:[%s786_s2] ss:$0 sm:$0xff] }
   0xe   : > { %s708_s19 = scalar_lea.vmem %s784_s0, %s524_s16  ;;  %s747_s26 = scalar_lea.vmem %s787_s3, %s524_s16 }
   0xf   : > { %v527_v1 = vld [vmem:[%s708_s19] sm:$0xff]   ;;  %v598_v2 = vld [vmem:[%s708_s19 + $0x8] sm:$0xff]   ;;  %v599_v3 = vld [vmem:[%s708_s19 + $0x10] sm:$0xff]  }
  0x10   : > { %v528_v4 = vunpack.c.l.bf16 %v527_v1  ;;  %v529_v5 = vunpack.c.h.bf16 %v527_v1  ;;  %v532_v7 = vunpack.c.l.bf16 %v598_v2  ;;  %v533_v8 = vunpack.c.h.bf16 %v598_v2  ;;  %v600_v9 = vld [vmem:[%s708_s19 + $0x18] sm:$0xff]   ;;  %v601_v30 = vld [vmem:[%s708_s19 + $0x20] sm:$0xff]   ;;  %v602_v35 = vld [vmem:[%s708_s19 + $0x28] sm:$0xff]  }
  0x11   : > { %v536_v10 = vunpack.c.l.bf16 %v599_v3  ;;  %v537_v11 = vunpack.c.h.bf16 %v599_v3  ;;  %v540_v12 = vunpack.c.l.bf16 %v600_v9  ;;  %v541_v13 = vunpack.c.h.bf16 %v600_v9  ;;  %v603_v40 = vld [vmem:[%s708_s19 + $0x30] sm:$0xff]   ;;  %v604_v45 = vld [vmem:[%s708_s19 + $0x38] sm:$0xff]  }
  0x12   : > { %v300_v14 = vmul.f32 %v713_v0, %v528_v4  ;;  %v301_v15 = vmul.f32 %v713_v0, %v529_v5  ;;  %v302_v16 = vmul.f32 %v713_v0, %v532_v7  ;;  %v303_v17 = vmul.f32 %v713_v0, %v533_v8 }
  0x13   : > { %v304_v18 = vmul.f32 %v713_v0, %v536_v10  ;;  %v305_v19 = vmul.f32 %v713_v0, %v537_v11  ;;  %v306_v20 = vmul.f32 %v713_v0, %v540_v12  ;;  %v307_v21 = vmul.f32 %v713_v0, %v541_v13 }
  0x14   : > { %v320_v22 = vadd.f32 %v721_v6, %v300_v14  ;;  %v321_v23 = vadd.f32 %v721_v6, %v301_v15  ;;  %v322_v24 = vadd.f32 %v721_v6, %v302_v16  ;;  %v323_v25 = vadd.f32 %v721_v6, %v303_v17 }
  0x15   : > { %v324_v26 = vadd.f32 %v721_v6, %v304_v18  ;;  %v325_v27 = vadd.f32 %v721_v6, %v305_v19  ;;  %v326_v28 = vadd.f32 %v721_v6, %v306_v20  ;;  %v327_v29 = vadd.f32 %v721_v6, %v307_v21 }
  0x16   : > { %v336_v31 = vmax.f32 %v320_v22, 0.0  ;;  %v337_v32 = vmax.f32 %v321_v23, 0.0  ;;  %v338_v33 = vmax.f32 %v322_v24, 0.0  ;;  %v339_v34 = vmax.f32 %v323_v25, 0.0 }
  0x17   : > { %v340_v36 = vmax.f32 %v324_v26, 0.0  ;;  %v341_v37 = vmax.f32 %v325_v27, 0.0  ;;  %v342_v38 = vmax.f32 %v326_v28, 0.0  ;;  %v343_v39 = vmax.f32 %v327_v29, 0.0 }
  0x18   : > { %v561_v41 = vpack.c.bf16 %v337_v32, %v336_v31  ;;  %v566_v42 = vpack.c.bf16 %v339_v34, %v338_v33  ;;  %v544_v43 = vunpack.c.l.bf16 %v601_v30  ;;  %v545_v44 = vunpack.c.h.bf16 %v601_v30 }
  0x19   : > { %v571_v46 = vpack.c.bf16 %v341_v37, %v340_v36  ;;  %v576_v47 = vpack.c.bf16 %v343_v39, %v342_v38  ;;  %v548_v48 = vunpack.c.l.bf16 %v602_v35  ;;  %v549_v49 = vunpack.c.h.bf16 %v602_v35 }
  0x1a   : > { %562 = vst [vmem:[%s747_s26] sm:$0xff] %v561_v41   ;;  %v308_v50 = vmul.f32 %v713_v0, %v544_v43  ;;  %v309_v51 = vmul.f32 %v713_v0, %v545_v44  ;;  %v552_v52 = vunpack.c.l.bf16 %v603_v40  ;;  %v553_v53 = vunpack.c.h.bf16 %v603_v40 }
  0x1b   : > { %605 = vst [vmem:[%s747_s26 + $0x8] sm:$0xff] %v566_v42   ;;  %v310_v54 = vmul.f32 %v713_v0, %v548_v48  ;;  %v311_v55 = vmul.f32 %v713_v0, %v549_v49  ;;  %v556_v56 = vunpack.c.l.bf16 %v604_v45  ;;  %v557_v57 = vunpack.c.h.bf16 %v604_v45 }
  0x1c   : > { %606 = vst [vmem:[%s747_s26 + $0x10] sm:$0xff] %v571_v46   ;;  %v328_v58 = vadd.f32 %v721_v6, %v308_v50  ;;  %v329_v59 = vadd.f32 %v721_v6, %v309_v51  ;;  %v312_v60 = vmul.f32 %v713_v0, %v552_v52  ;;  %v313_v61 = vmul.f32 %v713_v0, %v553_v53 }
  0x1d   : > { %607 = vst [vmem:[%s747_s26 + $0x18] sm:$0xff] %v576_v47   ;;  %v330_v62 = vadd.f32 %v721_v6, %v310_v54  ;;  %v331_v63 = vadd.f32 %v721_v6, %v311_v55  ;;  %v314_v1 = vmul.f32 %v713_v0, %v556_v56  ;;  %v315_v2 = vmul.f32 %v713_v0, %v557_v57 }
  0x1e   : > { %v344_v3 = vmax.f32 %v328_v58, 0.0  ;;  %v345_v4 = vmax.f32 %v329_v59, 0.0  ;;  %v332_v5 = vadd.f32 %v721_v6, %v312_v60  ;;  %v333_v7 = vadd.f32 %v721_v6, %v313_v61 }
  0x1f   : > { %v346_v8 = vmax.f32 %v330_v62, 0.0  ;;  %v347_v9 = vmax.f32 %v331_v63, 0.0  ;;  %v334_v10 = vadd.f32 %v721_v6, %v314_v1  ;;  %v335_v11 = vadd.f32 %v721_v6, %v315_v2 }
  0x20   : > { %v581_v12 = vpack.c.bf16 %v345_v4, %v344_v3  ;;  %v348_v13 = vmax.f32 %v332_v5, 0.0  ;;  %v349_v14 = vmax.f32 %v333_v7, 0.0 }
  0x21   : > { %v586_v15 = vpack.c.bf16 %v347_v9, %v346_v8  ;;  %v350_v0 = vmax.f32 %v334_v10, 0.0  ;;  %v351_v16 = vmax.f32 %v335_v11, 0.0 }
  0x22   : > { %608 = vst [vmem:[%s747_s26 + $0x20] sm:$0xff] %v581_v12   ;;  %v591_v17 = vpack.c.bf16 %v349_v14, %v348_v13 }
  0x23   : > { %609 = vst [vmem:[%s747_s26 + $0x28] sm:$0xff] %v586_v15   ;;  %v596_v18 = vpack.c.bf16 %v351_v16, %v350_v0 }
  0x24   : > { %610 = vst [vmem:[%s747_s26 + $0x30] sm:$0xff] %v591_v17  }
  0x25   : > { %611 = vst [vmem:[%s747_s26 + $0x38] sm:$0xff] %v596_v18  }
  0x26 PF: > { %s13_s14 = sadd.s32 1, %s660_s14   ;;  %s788_s12 = smov %s656_s13 }
  0x27   : > { %p10_p5 = scmp.ge.s32.totalorder %s13_s14, 6   ;;  %s789_s13 = smov %s791_s15 }
  0x29   :  { %12 = sbr.rel (!%p10_p5) target bundleno = 2 (0x2), region = 68 }

// kernel: netG_forward.13
= control target key start
LH: loop header
LB: loop body
LE: loop exit
PB: predicated region body
PF: predicated region fallthrough
CT: control target
= control target key end

     0   :  { %9 = vsyncpa [#allocation3], 0  ;;  %s1984_s0 = inlined_call_operand.vmem [shape: bf16[4,128,512], index: 0, kind: input, shape index: {}]   ;;  %s1985_s1 = inlined_call_operand.hbm [shape: bf16[4,512,128], index: 1, kind: input, shape index: {}]   ;;  %s1986_s2 = inlined_call_operand.vmem [shape: bf16[4,128,128], index: 2, kind: output, shape index: {0}]   ;;  %s1987_s3 = inlined_call_operand.vmem [shape: f32[4,1,2,128], index: 3, kind: output, shape index: {1}]  }
   0x1   :  { %11 = vsyncpa [#allocation3 + $0x1], 0  ;;  %s1763_s12 = smov 0   ;;  %s1765_s13 = smov 0  }
   0x2   :  { %s1767_s14 = smov 0   ;;  %s1769_s15 = smov 0  }
   0x3   :  { %s1771_s16 = smov 0   ;;  %s1773_s17 = smov 0  }
   0x4 LB: > { %s1216_s18 = sadd.s32 4294967295, %s1739_s17   ;;  %s36_s19 = sadd.s32 1, %s1735_s16  ;;  %s1739_s17 = sphi %s1773_s17, %s17_s17   ;;  %s1735_s16 = sphi %s1771_s16, %s1994_s16   ;;  %s1731_s15 = sphi %s1769_s15, %s1993_s15   ;;  %s1727_s14 = sphi %s1767_s14, %s1992_s14   ;;  %s1723_s13 = sphi %s1765_s13, %s1991_s13   ;;  %s1719_s12 = sphi %s1763_s12, %s1990_s12  }
   0x5   : > { %p38_p0 = scmp.ge.s32.totalorder %s36_s19, 4  ;;  %s73_s20 = sadd.s32 1, %s1727_s14 }
   0x6   : > { %p80_p1 = scmp.ne.s32.totalorder %s1727_s14, %s1723_s13  ;;  %p81_p2 = scmp.eq.s32.totalorder %s1739_s17, 0 }
   0x7   : > { %s1996_s19 = smov (%p38_p0, %s36_s19), 0  ;;  %p86_p4 = scmp.ne.s32.totalorder %s1723_s13, %s1719_s12 }
   0x8   : > { %p1799_p3 = por %p81_p2, %p80_p1  ;;  %s68_s22 = ssub.s32 %s1735_s16, %s1996_s19 }
   0x9   : > { %p87_p5 = scmp.eq.s32.totalorder %s1216_s18, 0  ;;  %p71_p6 = scmp.eq.s32.totalorder %s68_s22, 0 }
   0xa   : > { %p1608_p8 = scmp.lt.s32.totalorder %s1739_s17, 4  ;;  %s184_s25 = sand.u32 1, %s1727_s14  }
   0xb   : > { %p1806_p7 = por %p87_p5, %p86_p4  ;;  %s1488_s26 = sshll.u32 %s1735_s16, 8 }
   0xc   : > { %s1812_s24 = scalar_select %p71_p6, %s1727_s14, %s73_s20  }
   0xd   : > { %s1220_s27 = sshll.u32 %s184_s25, 8  ;;  %s194_s30 = scalar_lea.hbm %s1985_s1, %s1488_s26 }
   0xe   : > { %s195_s4 = sshll.u32 %s194_s30, 4  ;;  %s188_s5 = scalar_lea.vmem [#allocation2], %s1220_s27  ;;  %s196_s4 = int_to_ptr.hbm [resolvable:$true] %s195_s4 }
   0xf   : > { %s197_s6 = sshll.u32 %s188_s5, 4  ;;  %p1605_p9 = pnand %p1608_p8, %p1799_p3  ;;  %s198_s6 = int_to_ptr.vmem [resolvable:$true] %s197_s6 }
  0x10   : > { %p1223_p10 = scmp.ge.s32.totalorder %s1739_s17, 1  ;;  %p205_p11 = scmp.lt.s32.totalorder %s1739_s17, 5 }
  0x11   : > { %s185_s7 = scalar_lea.sflag [#allocation3], %s184_s25  ;;  %s1741_s8 = smov 64  }
  0x12   : > { %s1742_s9 = smov 4   ;;  %p206_p12 = pnand %p1223_p10, %p205_p11 }
  0x13   : > { %1607 = dma.hbm_to_vmem [thread:$0]  (!%p1605_p9), %s196_s4, 4096, %s198_s6, %s185_s7, %s1741_s8, %s1741_s8, %s1742_s9  }
  0x14   : > { %209 = sbr.rel (%p206_p12) target bundleno = 334 (0x14e), region = 28  ;;  %s211_s10 = sand.u32 (!%p206_p12), 1, %s1723_s13  }
  0x15   : > { %s1224_s11 = sshll.u32 (!%p206_p12), %s211_s10, 8  ;;  %s212_s12 = scalar_lea.sflag (!%p206_p12), [#allocation3], %s211_s10 }
  0x16   : > { %s1824_s18 = scalar_lea.vmem (!%p206_p12), [#allocation2], %s1224_s11 }
  0x19   : > { %1714 = dma.done.wait (%p1806_p7), %s212_s12, 4096  }
  0x1a   : > { %1716 = vsyncadd (%p1806_p7), %s212_s12, 4294963200  ;;  %v1530_v0 = vld [vmem:[%s1824_s18 + $0x38] sm:$0xff]  ;;  %v1529_v4 = vld [vmem:[%s1824_s18 + $0x30] sm:$0xff]  ;;  %p267_p13 = scmp.lt.s32.totalorder %s1731_s15, 3  ;;  %vm1034_vm0 = vcmask 1040384  }
  0x1b   : > { %v1538_v1 = vld [vmem:[%s1824_s18 + $0x78] sm:$0xff]  ;;  %748 = vmatpush.bf16.msra.mxu0 %v1530_v0  ;;  %v1537_v5 = vld [vmem:[%s1824_s18 + $0x70] sm:$0xff]  ;;  %v1528_v8 = vld [vmem:[%s1824_s18 + $0x28] sm:$0xff] }
  0x1c   : > { %v1546_v2 = vld [vmem:[%s1824_s18 + $0xb8] sm:$0xff]  ;;  %797 = vmatpush.bf16.msra.mxu1 %v1538_v1  ;;  %v1545_v6 = vld [vmem:[%s1824_s18 + $0xb0] sm:$0xff]  ;;  %v1536_v9 = vld [vmem:[%s1824_s18 + $0x68] sm:$0xff]  ;;  %s1998_s15 = smov (!%p267_p13, %s1731_s15), 3 }
  0x1d   : > { %v1554_v3 = vld [vmem:[%s1824_s18 + $0xf8] sm:$0xff]  ;;  %846 = vmatpush.bf16.msra.mxu2 %v1546_v2  ;;  %v1553_v7 = vld [vmem:[%s1824_s18 + $0xf0] sm:$0xff]  ;;  %v1544_v10 = vld [vmem:[%s1824_s18 + $0xa8] sm:$0xff]  ;;  %s1489_s20 = sshll.u32 %s1998_s15, 8  ;;  %s1490_s25 = sshll.u32 %s1998_s15, 6 }
  0x1e   : > { %895 = vmatpush.bf16.msra.mxu3 %v1554_v3  ;;  %v1552_v11 = vld [vmem:[%s1824_s18 + $0xe8] sm:$0xff]  ;;  %v1527_v12 = vld [vmem:[%s1824_s18 + $0x20] sm:$0xff]  ;;  %v1526_v16 = vld [vmem:[%s1824_s18 + $0x18] sm:$0xff]  ;;  %s1864_s23 = scalar_lea.vmem %s1984_s0, %s1489_s20  ;;  %s1940_s28 = scalar_lea.vmem %s1986_s2, %s1490_s25 }
  0x1f   : > { %749 = vmatpush.bf16.msra.mxu0 %v1529_v4  ;;  %v1535_v13 = vld [vmem:[%s1824_s18 + $0x60] sm:$0xff]  ;;  %v1534_v17 = vld [vmem:[%s1824_s18 + $0x58] sm:$0xff]  ;;  %v1525_v20 = vld [vmem:[%s1824_s18 + $0x10] sm:$0xff]  ;;  %s1229_s29 = sshll.u32 %s1998_s15, 1 }
  0x20   : > { %798 = vmatpush.bf16.msra.mxu1 %v1537_v5  ;;  %v1543_v14 = vld [vmem:[%s1824_s18 + $0xa0] sm:$0xff]  ;;  %v1542_v18 = vld [vmem:[%s1824_s18 + $0x98] sm:$0xff]  ;;  %v1533_v21 = vld [vmem:[%s1824_s18 + $0x50] sm:$0xff]  ;;  %s299_s5 = scalar_lea.vmem %s1987_s3, %s1229_s29 }
  0x21   : > { %847 = vmatpush.bf16.msra.mxu2 %v1545_v6  ;;  %v1551_v15 = vld [vmem:[%s1824_s18 + $0xe0] sm:$0xff]  ;;  %v1550_v19 = vld [vmem:[%s1824_s18 + $0xd8] sm:$0xff]  ;;  %v1541_v22 = vld [vmem:[%s1824_s18 + $0x90] sm:$0xff] }
  0x22   : > { %896 = vmatpush.bf16.msra.mxu3 %v1553_v7  ;;  %v1549_v23 = vld [vmem:[%s1824_s18 + $0xd0] sm:$0xff]  ;;  %v1524_v24 = vld [vmem:[%s1824_s18 + $0x8] sm:$0xff]  ;;  %v1523_v28 = vld [vmem:[%s1824_s18] sm:$0xff] }
  0x23   : > { %750 = vmatpush.bf16.msra.mxu0 %v1528_v8  ;;  %v1532_v25 = vld [vmem:[%s1824_s18 + $0x48] sm:$0xff]  ;;  %v1531_v29 = vld [vmem:[%s1824_s18 + $0x40] sm:$0xff]  ;;  %v1493_v33 = vld [vmem:[%s1864_s23 + $0xc] sm:$0xf0] }
  0x24   : > { %799 = vmatpush.bf16.msra.mxu1 %v1536_v9  ;;  %v1540_v26 = vld [vmem:[%s1824_s18 + $0x88] sm:$0xff]  ;;  %v1539_v30 = vld [vmem:[%s1824_s18 + $0x80] sm:$0xff]  ;;  %v1234_v35 = vld [vmem:[%s1864_s23 + $0x10] sm:$0xf0] }
  0x25   : > { %848 = vmatpush.bf16.msra.mxu2 %v1544_v10  ;;  %v1548_v27 = vld [vmem:[%s1824_s18 + $0xc8] sm:$0xff]  ;;  %v1547_v31 = vld [vmem:[%s1824_s18 + $0xc0] sm:$0xff]  ;;  %v1494_v37 = vld [vmem:[%s1864_s23 + $0x14] sm:$0xf0] }
  0x26   : > { %897 = vmatpush.bf16.msra.mxu3 %v1552_v11  ;;  %v1232_v32 = vld [vmem:[%s1864_s23] sm:$0xf]  ;;  %v1491_v34 = vld [vmem:[%s1864_s23 + $0x4] sm:$0xf]  ;;  %v1240_v36 = vld [vmem:[%s1864_s23 + $0x8] sm:$0xf] }
  0x27   : > { %751 = vmatpush.bf16.msra.mxu0 %v1527_v12  ;;  %v1492_v38 = vld [vmem:[%s1864_s23 + $0xc] sm:$0xf]  ;;  %v1242_v39 = vld [vmem:[%s1864_s23 + $0x18] sm:$0xf0]  ;;  %v1233_v40 = vor.u32 %v1493_v33, %v1232_v32  ;;  %v1237_v41 = vor.u32 %v1491_v34, %v1234_v35  ;;  %v1241_v42 = vor.u32 %v1494_v37, %v1240_v36  ;;  %v1248_v44 = vld [vmem:[%s1864_s23 + $0x20] sm:$0xf] }
  0x28   : > { %800 = vmatpush.bf16.msra.mxu1 %v1535_v13  ;;  %v1245_v43 = vor.u32 %v1492_v38, %v1242_v39  ;;  %v1497_v45 = vld [vmem:[%s1864_s23 + $0x2c] sm:$0xf0]  ;;  %v1495_v46 = vld [vmem:[%s1864_s23 + $0x24] sm:$0xf]  ;;  %v1250_v47 = vld [vmem:[%s1864_s23 + $0x30] sm:$0xf0] }
  0x29   : > { %849 = vmatpush.bf16.msra.mxu2 %v1543_v14  ;;  %v1256_v48 = vld [vmem:[%s1864_s23 + $0x28] sm:$0xf]  ;;  %v1498_v49 = vld [vmem:[%s1864_s23 + $0x34] sm:$0xf0]  ;;  %v1496_v50 = vld [vmem:[%s1864_s23 + $0x2c] sm:$0xf]  ;;  %v1249_v52 = vor.u32 %v1497_v45, %v1248_v44  ;;  %v1253_v53 = vor.u32 %v1495_v46, %v1250_v47 }
  0x2a   : > { %898 = vmatpush.bf16.msra.mxu3 %v1551_v15  ;;  %v1258_v51 = vld [vmem:[%s1864_s23 + $0x38] sm:$0xf0]  ;;  %v1257_v54 = vor.u32 %v1498_v49, %v1256_v48  ;;  %v1264_v56 = vld [vmem:[%s1864_s23 + $0x40] sm:$0xf]  ;;  %v1501_v57 = vld [vmem:[%s1864_s23 + $0x4c] sm:$0xf0] }
  0x2b   : > { %752 = vmatpush.bf16.msra.mxu0 %v1526_v16  ;;  %v1261_v55 = vor.u32 %v1496_v50, %v1258_v51  ;;  %v1499_v58 = vld [vmem:[%s1864_s23 + $0x44] sm:$0xf]  ;;  %v1266_v59 = vld [vmem:[%s1864_s23 + $0x50] sm:$0xf0]  ;;  %v1272_v60 = vld [vmem:[%s1864_s23 + $0x48] sm:$0xf]  ;;  %v1265_v0 = vor.u32 %v1501_v57, %v1264_v56 }
  0x2c   : > { %801 = vmatpush.bf16.msra.mxu1 %v1534_v17  ;;  %v1502_v61 = vld [vmem:[%s1864_s23 + $0x54] sm:$0xf0]  ;;  %v1500_v62 = vld [vmem:[%s1864_s23 + $0x4c] sm:$0xf]  ;;  %v1274_v63 = vld [vmem:[%s1864_s23 + $0x58] sm:$0xf0]  ;;  %v1269_v1 = vor.u32 %v1499_v58, %v1266_v59 }
  0x2d   : > { %850 = vmatpush.bf16.msra.mxu2 %v1542_v18  ;;  %v1273_v2 = vor.u32 %v1502_v61, %v1272_v60  ;;  %v1277_v3 = vor.u32 %v1500_v62, %v1274_v63  ;;  %v1280_v4 = vld [vmem:[%s1864_s23 + $0x60] sm:$0xf]  ;;  %v1505_v5 = vld [vmem:[%s1864_s23 + $0x6c] sm:$0xf0]  ;;  %v1503_v6 = vld [vmem:[%s1864_s23 + $0x64] sm:$0xf] }
  0x2e   : > { %899 = vmatpush.bf16.msra.mxu3 %v1550_v19  ;;  %v1282_v7 = vld [vmem:[%s1864_s23 + $0x70] sm:$0xf0]  ;;  %v1288_v8 = vld [vmem:[%s1864_s23 + $0x68] sm:$0xf]  ;;  %v1506_v9 = vld [vmem:[%s1864_s23 + $0x74] sm:$0xf0]  ;;  %v1281_v12 = vor.u32 %v1505_v5, %v1280_v4 }
  0x2f   : > { %753 = vmatpush.bf16.msra.mxu0 %v1525_v20  ;;  %v1504_v10 = vld [vmem:[%s1864_s23 + $0x6c] sm:$0xf]  ;;  %v1290_v11 = vld [vmem:[%s1864_s23 + $0x78] sm:$0xf0]  ;;  %v1285_v13 = vor.u32 %v1503_v6, %v1282_v7  ;;  %v1289_v14 = vor.u32 %v1506_v9, %v1288_v8  ;;  %v1296_v16 = vld [vmem:[%s1864_s23 + $0x80] sm:$0xf] }
  0x30   : > { %802 = vmatpush.bf16.msra.mxu1 %v1533_v21  ;;  %v1293_v15 = vor.u32 %v1504_v10, %v1290_v11  ;;  %v1509_v17 = vld [vmem:[%s1864_s23 + $0x8c] sm:$0xf0]  ;;  %v1507_v18 = vld [vmem:[%s1864_s23 + $0x84] sm:$0xf]  ;;  %v1298_v19 = vld [vmem:[%s1864_s23 + $0x90] sm:$0xf0] }
  0x31   : > { %851 = vmatpush.bf16.msra.mxu2 %v1541_v22  ;;  %v1304_v20 = vld [vmem:[%s1864_s23 + $0x88] sm:$0xf]  ;;  %v1510_v21 = vld [vmem:[%s1864_s23 + $0x94] sm:$0xf0]  ;;  %v1508_v22 = vld [vmem:[%s1864_s23 + $0x8c] sm:$0xf] }
  0x32   : > { %900 = vmatpush.bf16.msra.mxu3 %v1549_v23  ;;  %v1306_v23 = vld [vmem:[%s1864_s23 + $0x98] sm:$0xf0]  ;;  %v1320_v32 = vld [vmem:[%s1864_s23 + $0xa8] sm:$0xf]  ;;  %v1514_v33 = vld [vmem:[%s1864_s23 + $0xb4] sm:$0xf0] }
  0x33   : > { %754 = vmatpush.bf16.msra.mxu0 %v1524_v24  ;;  %v1297_v24 = vor.u32 %v1509_v17, %v1296_v16  ;;  %v1512_v34 = vld [vmem:[%s1864_s23 + $0xac] sm:$0xf]  ;;  %v1322_v35 = vld [vmem:[%s1864_s23 + $0xb8] sm:$0xf0]  ;;  %v1321_v38 = vor.u32 %v1514_v33, %v1320_v32  ;;  %v1336_v44 = vld [vmem:[%s1864_s23 + $0xc8] sm:$0xf] }
  0x34   : > { %803 = vmatpush.bf16.msra.mxu1 %v1532_v25  ;;  %v1301_v25 = vor.u32 %v1507_v18, %v1298_v19  ;;  %v1325_v39 = vor.u32 %v1512_v34, %v1322_v35  ;;  %v1518_v45 = vld [vmem:[%s1864_s23 + $0xd4] sm:$0xf0]  ;;  %v1516_v46 = vld [vmem:[%s1864_s23 + $0xcc] sm:$0xf]  ;;  %v1338_v47 = vld [vmem:[%s1864_s23 + $0xd8] sm:$0xf0] }
  0x35   : > { %852 = vmatpush.bf16.msra.mxu2 %v1540_v26  ;;  %v1305_v26 = vor.u32 %v1510_v21, %v1304_v20  ;;  %v1337_v50 = vor.u32 %v1518_v45, %v1336_v44  ;;  %v1341_v51 = vor.u32 %v1516_v46, %v1338_v47  ;;  %v1352_v56 = vld [vmem:[%s1864_s23 + $0xe8] sm:$0xf]  ;;  %v1522_v57 = vld [vmem:[%s1864_s23 + $0xf4] sm:$0xf0]  ;;  %v1520_v58 = vld [vmem:[%s1864_s23 + $0xec] sm:$0xf] }
  0x36   : > { %901 = vmatpush.bf16.msra.mxu3 %v1548_v27  ;;  %v1309_v27 = vor.u32 %v1508_v22, %v1306_v23  ;;  %v1354_v59 = vld [vmem:[%s1864_s23 + $0xf8] sm:$0xf0]  ;;  %v1353_v62 = vor.u32 %v1522_v57, %v1352_v56 }
  0x37   : > { %755 = vmatpush.bf16.msra.mxu0 %v1523_v28  ;;  %v1312_v28 = vld [vmem:[%s1864_s23 + $0xa0] sm:$0xf]  ;;  %v1357_v63 = vor.u32 %v1520_v58, %v1354_v59 }
  0x38   : > { %804 = vmatpush.bf16.msra.mxu1 %v1531_v29  ;;  %v1513_v29 = vld [vmem:[%s1864_s23 + $0xac] sm:$0xf0] }
  0x39   : > { %853 = vmatpush.bf16.msra.mxu2 %v1539_v30  ;;  %v1511_v30 = vld [vmem:[%s1864_s23 + $0xa4] sm:$0xf]  ;;  %v1313_v36 = vor.u32 %v1513_v29, %v1312_v28 }
  0x3a   : > { %902 = vmatpush.bf16.msra.mxu3 %v1547_v31  ;;  %756 = vmatmul.bf16.vlgmr.msra.gmra.mxu0 %v1233_v40  ;;  %v1314_v31 = vld [vmem:[%s1864_s23 + $0xb0] sm:$0xf0]  ;;  %v1328_v40 = vld [vmem:[%s1864_s23 + $0xc0] sm:$0xf] }
  0x3b   : > { %805 = vmatmul.bf16.vlgmr.msra.gmra.mxu1 %v1237_v41  ;;  %v1317_v37 = vor.u32 %v1511_v30, %v1314_v31  ;;  %v1517_v41 = vld [vmem:[%s1864_s23 + $0xcc] sm:$0xf0] }
  0x3c   : > { %854 = vmatmul.bf16.vlgmr.msra.gmra.mxu2 %v1241_v42  ;;  %v1515_v42 = vld [vmem:[%s1864_s23 + $0xc4] sm:$0xf]  ;;  %v1329_v48 = vor.u32 %v1517_v41, %v1328_v40 }
  0x3d   : > { %903 = vmatmul.bf16.vlgmr.msra.gmra.mxu3 %v1245_v43  ;;  %v1330_v43 = vld [vmem:[%s1864_s23 + $0xd0] sm:$0xf0] }
  0x3e   : > { %v1333_v49 = vor.u32 %v1515_v42, %v1330_v43 }
  0x4a   : > { %761 = vmatmul.bf16.gmra.mxu0 %v1249_v52  ;;  %v1344_v52 = vld [vmem:[%s1864_s23 + $0xe0] sm:$0xf] }
  0x4b   : > { %810 = vmatmul.bf16.gmra.mxu1 %v1253_v53  ;;  %v1521_v53 = vld [vmem:[%s1864_s23 + $0xec] sm:$0xf0] }
  0x4c   : > { %859 = vmatmul.bf16.gmra.mxu2 %v1257_v54  ;;  %v1519_v54 = vld [vmem:[%s1864_s23 + $0xe4] sm:$0xf]  ;;  %v1345_v60 = vor.u32 %v1521_v53, %v1344_v52 }
  0x4d   : > { %908 = vmatmul.bf16.gmra.mxu3 %v1261_v55  ;;  %v1346_v55 = vld [vmem:[%s1864_s23 + $0xf0] sm:$0xf0] }
  0x4e   : > { %v1349_v61 = vor.u32 %v1519_v54, %v1346_v55 }
  0x5a   : > { %766 = vmatmul.bf16.gmra.mxu0 %v1265_v0 }
  0x5b   : > { %815 = vmatmul.bf16.gmra.mxu1 %v1269_v1 }
  0x5c   : > { %864 = vmatmul.bf16.gmra.mxu2 %v1273_v2 }
  0x5d   : > { %913 = vmatmul.bf16.gmra.mxu3 %v1277_v3 }
  0x6a   : > { %771 = vmatmul.bf16.gmra.mxu0 %v1281_v12 }
  0x6b   : > { %820 = vmatmul.bf16.gmra.mxu1 %v1285_v13 }
  0x6c   : > { %869 = vmatmul.bf16.gmra.mxu2 %v1289_v14 }
  0x6d   : > { %918 = vmatmul.bf16.gmra.mxu3 %v1293_v15 }
  0x7a   : > { %776 = vmatmul.bf16.gmra.mxu0 %v1297_v24 }
  0x7b   : > { %825 = vmatmul.bf16.gmra.mxu1 %v1301_v25 }
  0x7c   : > { %874 = vmatmul.bf16.gmra.mxu2 %v1305_v26 }
  0x7d   : > { %923 = vmatmul.bf16.gmra.mxu3 %v1309_v27 }
  0x8a   : > { %781 = vmatmul.bf16.gmra.mxu0 %v1313_v36 }
  0x8b   : > { %830 = vmatmul.bf16.gmra.mxu1 %v1317_v37 }
  0x8c   : > { %879 = vmatmul.bf16.gmra.mxu2 %v1321_v38 }
  0x8d   : > { %928 = vmatmul.bf16.gmra.mxu3 %v1325_v39 }
  0x9a   : > { %786 = vmatmul.bf16.gmra.mxu0 %v1329_v48 }
  0x9b   : > { %835 = vmatmul.bf16.gmra.mxu1 %v1333_v49 }
  0x9c   : > { %884 = vmatmul.bf16.gmra.mxu2 %v1337_v50 }
  0x9d   : > { %933 = vmatmul.bf16.gmra.mxu3 %v1341_v51 }
  0xaa   : > { %791 = vmatmul.bf16.gmra.mxu0 %v1345_v60 }
  0xab   : > { %840 = vmatmul.bf16.gmra.mxu1 %v1349_v61 }
  0xac   : > { %889 = vmatmul.bf16.gmra.mxu2 %v1353_v62 }
  0xad   : > { %938 = vmatmul.bf16.gmra.mxu3 %v1357_v63 }
  0xb7   : > { %v757_v0 = vpop.f32.mrf.mxu0 }
  0xb8   : > { %v806_v1 = vpop.f32.mrf.mxu1 }
  0xb9   : > { %v807_v2 = vadd.f32 %v806_v1, %v757_v0 }
  0xbf   : > { %v855_v3 = vpop.f32.mrf.mxu2  ;;  %v759_v5 = vpop.f32.mrf.mxu0 }
  0xc0   : > { %v904_v4 = vpop.f32.mrf.mxu3  ;;  %v808_v6 = vpop.f32.mrf.mxu1  ;;  %v856_v7 = vadd.f32 %v855_v3, %v807_v2 }
  0xc1   : > { %v809_v8 = vadd.f32 %v808_v6, %v759_v5 }
  0xc2   : > { %v905_v9 = vadd.f32 %v904_v4, %v856_v7 }
  0xc4   : > { %v997_v16 = vmul.f32 %v905_v9, %v905_v9 }
  0xc7   : > { %v857_v10 = vpop.f32.mrf.mxu2  ;;  %v762_v13 = vpop.f32.mrf.mxu0 }
  0xc8   : > { %v906_v11 = vpop.f32.mrf.mxu3  ;;  %v858_v12 = vadd.f32 %v857_v10, %v809_v8  ;;  %v811_v14 = vpop.f32.mrf.mxu1 }
  0xc9   : > { %v812_v20 = vadd.f32 %v811_v14, %v762_v13 }
  0xca   : > { %v907_v15 = vadd.f32 %v906_v11, %v858_v12 }
  0xcc   : > { %v1558_v17 = vpack.c.bf16 %v907_v15, %v905_v9  ;;  %v976_v18 = vadd.f32 %v907_v15, %v905_v9  ;;  %v998_v19 = vmul.f32 %v907_v15, %v907_v15 }
  0xce   : > { %1559 = vst [vmem:[%s1940_s28] sm:$0xff] %v1558_v17   ;;  %v1013_v21 = vadd.f32 %v998_v19, %v997_v16 }
  0xcf   : > { %v860_v22 = vpop.f32.mrf.mxu2  ;;  %v764_v25 = vpop.f32.mrf.mxu0 }
  0xd0   : > { %v909_v23 = vpop.f32.mrf.mxu3  ;;  %v861_v24 = vadd.f32 %v860_v22, %v812_v20  ;;  %v813_v26 = vpop.f32.mrf.mxu1 }
  0xd1   : > { %v814_v31 = vadd.f32 %v813_v26, %v764_v25 }
  0xd2   : > { %v910_v27 = vadd.f32 %v909_v23, %v861_v24 }
  0xd4   : > { %v977_v28 = vadd.f32 %v976_v18, %v910_v27  ;;  %v999_v29 = vmul.f32 %v910_v27, %v910_v27 }
  0xd6   : > { %v1014_v30 = vadd.f32 %v1013_v21, %v999_v29 }
  0xd7   : > { %v862_v32 = vpop.f32.mrf.mxu2  ;;  %v767_v35 = vpop.f32.mrf.mxu0 }
  0xd8   : > { %v911_v33 = vpop.f32.mrf.mxu3  ;;  %v863_v34 = vadd.f32 %v862_v32, %v814_v31  ;;  %v816_v36 = vpop.f32.mrf.mxu1 }
  0xd9   : > { %v817_v46 = vadd.f32 %v816_v36, %v767_v35 }
  0xda   : > { %v912_v37 = vadd.f32 %v911_v33, %v863_v34 }
  0xdc   : > { %v1563_v38 = vpack.c.bf16 %v912_v37, %v910_v27  ;;  %v1943_v39 = vadd.f32 %v977_v28, %v912_v37  ;;  %v1000_v40 = vmul.f32 %v912_v37, %v912_v37 }
  0xde   : > { %1595 = vst [vmem:[%s1940_s28 + $0x8] sm:$0xff] %v1563_v38   ;;  %v1946_v41 = vadd.f32 %v1014_v30, %v1000_v40 }
  0xdf   : > { %v865_v42 = vpop.f32.mrf.mxu2  ;;  %v769_v44 = vpop.f32.mrf.mxu0 }
  0xe0   : > { %v914_v43 = vpop.f32.mrf.mxu3  ;;  %v818_v45 = vpop.f32.mrf.mxu1  ;;  %v866_v47 = vadd.f32 %v865_v42, %v817_v46 }
  0xe1   : > { %v819_v48 = vadd.f32 %v818_v45, %v769_v44 }
  0xe2   : > { %v915_v54 = vadd.f32 %v914_v43, %v866_v47 }
  0xe4   : > { %v1001_v45 = vmul.f32 %v915_v54, %v915_v54  ;;  %v979_v47 = vadd.f32 %v1943_v39, %v915_v54 }
  0xe7   : > { %v867_v49 = vpop.f32.mrf.mxu2  ;;  %v772_v52 = vpop.f32.mrf.mxu0 }
  0xe8   : > { %v916_v50 = vpop.f32.mrf.mxu3  ;;  %v868_v51 = vadd.f32 %v867_v49, %v819_v48  ;;  %v821_v53 = vpop.f32.mrf.mxu1 }
  0xe9   : > { %v822_v61 = vadd.f32 %v821_v53, %v772_v52 }
  0xea   : > { %v1948_v55 = vadd.f32 %v916_v50, %v868_v51  ;;  %v1016_v50 = vadd.f32 %v1946_v41, %v1001_v45 }
  0xec   : > { %v1568_v56 = vpack.c.bf16 %v1948_v55, %v915_v54  ;;  %v1002_v46 = vmul.f32 %v1948_v55, %v1948_v55 }
  0xee   : > { %1596 = vst [vmem:[%s1940_s28 + $0x10] sm:$0xff] %v1568_v56   ;;  %v980_v56 = vadd.f32 %v979_v47, %v1948_v55 }
  0xef   : > { %v870_v57 = vpop.f32.mrf.mxu2  ;;  %v774_v59 = vpop.f32.mrf.mxu0 }
  0xf0   : > { %v919_v58 = vpop.f32.mrf.mxu3  ;;  %v823_v60 = vpop.f32.mrf.mxu1  ;;  %v871_v62 = vadd.f32 %v870_v57, %v822_v61 }
  0xf1   : > { %v824_v63 = vadd.f32 %v823_v60, %v774_v59 }
  0xf2   : > { %v920_v5 = vadd.f32 %v919_v58, %v871_v62  ;;  %v1017_v58 = vadd.f32 %v1016_v50, %v1002_v46 }
  0xf4   : > { %v1003_v51 = vmul.f32 %v920_v5, %v920_v5  ;;  %v981_v61 = vadd.f32 %v980_v56, %v920_v5 }
  0xf7   : > { %v872_v0 = vpop.f32.mrf.mxu2  ;;  %v777_v3 = vpop.f32.mrf.mxu0 }
  0xf8   : > { %v921_v1 = vpop.f32.mrf.mxu3  ;;  %v873_v2 = vadd.f32 %v872_v0, %v824_v63  ;;  %v826_v4 = vpop.f32.mrf.mxu1 }
  0xf9   : > { %v827_v12 = vadd.f32 %v826_v4, %v777_v3 }
  0xfa   : > { %v922_v6 = vadd.f32 %v921_v1, %v873_v2  ;;  %v1018_v1 = vadd.f32 %v1017_v58, %v1003_v51 }
  0xfc   : > { %v1573_v7 = vpack.c.bf16 %v922_v6, %v920_v5  ;;  %v1004_v62 = vmul.f32 %v922_v6, %v922_v6  ;;  %v982_v39 = vadd.f32 %v981_v61, %v922_v6 }
  0xfe   : > { %1597 = vst [vmem:[%s1940_s28 + $0x18] sm:$0xff] %v1573_v7   ;;  %v1019_v41 = vadd.f32 %v1018_v1, %v1004_v62 }
  0xff   : > { %v875_v8 = vpop.f32.mrf.mxu2  ;;  %v779_v10 = vpop.f32.mrf.mxu0 }
 0x100   : > { %v924_v9 = vpop.f32.mrf.mxu3  ;;  %v828_v11 = vpop.f32.mrf.mxu1  ;;  %v876_v13 = vadd.f32 %v875_v8, %v827_v12 }
 0x101   : > { %v829_v14 = vadd.f32 %v828_v11, %v779_v10 }
 0x102   : > { %v925_v20 = vadd.f32 %v924_v9, %v876_v13 }
 0x104   : > { %v1005_v54 = vmul.f32 %v925_v20, %v925_v20  ;;  %v983_v4 = vadd.f32 %v982_v39, %v925_v20 }
 0x106   : > { %v1020_v9 = vadd.f32 %v1019_v41, %v1005_v54 }
 0x107   : > { %v877_v15 = vpop.f32.mrf.mxu2  ;;  %v782_v18 = vpop.f32.mrf.mxu0 }
 0x108   : > { %v926_v16 = vpop.f32.mrf.mxu3  ;;  %v878_v17 = vadd.f32 %v877_v15, %v829_v14  ;;  %v831_v19 = vpop.f32.mrf.mxu1 }
 0x109   : > { %v832_v27 = vadd.f32 %v831_v19, %v782_v18 }
 0x10a   : > { %v927_v21 = vadd.f32 %v926_v16, %v878_v17 }
 0x10c   : > { %v1578_v22 = vpack.c.bf16 %v927_v21, %v925_v20  ;;  %v1006_v7 = vmul.f32 %v927_v21, %v927_v21  ;;  %v984_v10 = vadd.f32 %v983_v4, %v927_v21 }
 0x10e   : > { %1598 = vst [vmem:[%s1940_s28 + $0x20] sm:$0xff] %v1578_v22   ;;  %v1021_v13 = vadd.f32 %v1020_v9, %v1006_v7 }
 0x10f   : > { %v880_v23 = vpop.f32.mrf.mxu2  ;;  %v784_v25 = vpop.f32.mrf.mxu0 }
 0x110   : > { %v929_v24 = vpop.f32.mrf.mxu3  ;;  %v833_v26 = vpop.f32.mrf.mxu1  ;;  %v881_v28 = vadd.f32 %v880_v23, %v832_v27 }
 0x111   : > { %v834_v29 = vadd.f32 %v833_v26, %v784_v25 }
 0x112   : > { %v930_v35 = vadd.f32 %v929_v24, %v881_v28 }
 0x114   : > { %v1007_v11 = vmul.f32 %v930_v35, %v930_v35  ;;  %v985_v5 = vadd.f32 %v984_v10, %v930_v35 }
 0x116   : > { %v1022_v17 = vadd.f32 %v1021_v13, %v1007_v11 }
 0x117   : > { %v882_v30 = vpop.f32.mrf.mxu2  ;;  %v787_v33 = vpop.f32.mrf.mxu0 }
 0x118   : > { %v931_v31 = vpop.f32.mrf.mxu3  ;;  %v883_v32 = vadd.f32 %v882_v30, %v834_v29  ;;  %v836_v34 = vpop.f32.mrf.mxu1 }
 0x119   : > { %v837_v44 = vadd.f32 %v836_v34, %v787_v33 }
 0x11a   : > { %v932_v36 = vadd.f32 %v931_v31, %v883_v32 }
 0x11c   : > { %v1583_v37 = vpack.c.bf16 %v932_v36, %v930_v35  ;;  %v1008_v14 = vmul.f32 %v932_v36, %v932_v36  ;;  %v986_v6 = vadd.f32 %v985_v5, %v932_v36 }
 0x11e   : > { %1599 = vst [vmem:[%s1940_s28 + $0x28] sm:$0xff] %v1583_v37   ;;  %v1023_v22 = vadd.f32 %v1022_v17, %v1008_v14 }
 0x11f   : > { %v885_v38 = vpop.f32.mrf.mxu2  ;;  %v789_v42 = vpop.f32.mrf.mxu0 }
 0x120   : > { %v934_v40 = vpop.f32.mrf.mxu3  ;;  %v838_v43 = vpop.f32.mrf.mxu1  ;;  %v886_v48 = vadd.f32 %v885_v38, %v837_v44 }
 0x121   : > { %v839_v49 = vadd.f32 %v838_v43, %v789_v42 }
 0x122   : > { %v935_v63 = vadd.f32 %v934_v40, %v886_v48 }
 0x124   : > { %v1009_v18 = vmul.f32 %v935_v63, %v935_v63  ;;  %v987_v23 = vadd.f32 %v986_v6, %v935_v63 }
 0x126   : > { %v1024_v26 = vadd.f32 %v1023_v22, %v1009_v18 }
 0x127   : > { %v887_v52 = vpop.f32.mrf.mxu2  ;;  %v792_v59 = vpop.f32.mrf.mxu0 }
 0x128   : > { %v936_v53 = vpop.f32.mrf.mxu3  ;;  %v888_v57 = vadd.f32 %v887_v52, %v839_v49  ;;  %v841_v60 = vpop.f32.mrf.mxu1 }
 0x129   : > { %v842_v3 = vadd.f32 %v841_v60, %v792_v59 }
 0x12a   : > { %v937_v0 = vadd.f32 %v936_v53, %v888_v57 }
 0x12c   : > { %v1588_v2 = vpack.c.bf16 %v937_v0, %v935_v63  ;;  %v1010_v20 = vmul.f32 %v937_v0, %v937_v0  ;;  %v988_v27 = vadd.f32 %v987_v23, %v937_v0 }
 0x12e   : > { %1600 = vst [vmem:[%s1940_s28 + $0x30] sm:$0xff] %v1588_v2   ;;  %v1025_v30 = vadd.f32 %v1024_v26, %v1010_v20 }
 0x12f   : > { %v890_v8 = vpop.f32.mrf.mxu2  ;;  %v794_v15 = vpop.f32.mrf.mxu0 }
 0x130   : > { %v939_v55 = vpop.f32.mrf.mxu3  ;;  %v891_v12 = vadd.f32 %v890_v8, %v842_v3  ;;  %v843_v16 = vpop.f32.mrf.mxu1 }
 0x131   : > { %v844_v24 = vadd.f32 %v843_v16, %v794_v15 }
 0x132   : > { %v940_v19 = vadd.f32 %v939_v55, %v891_v12 }
 0x134   : > { %v1011_v21 = vmul.f32 %v940_v19, %v940_v19  ;;  %v989_v31 = vadd.f32 %v988_v27, %v940_v19 }
 0x136   : > { %v1026_v33 = vadd.f32 %v1025_v30, %v1011_v21 }
 0x137   : > { %v892_v25 = vpop.f32.mrf.mxu2 }
 0x138   : > { %v893_v28 = vadd.f32 %v892_v25, %v844_v24  ;;  %v941_v29 = vpop.f32.mrf.mxu3 }
 0x13a   : > { %v942_v32 = vadd.f32 %v941_v29, %v893_v28 }
 0x13c   : > { %v1593_v34 = vpack.c.bf16 %v942_v32, %v940_v19  ;;  %v990_v35 = vadd.f32 %v989_v31, %v942_v32  ;;  %v1012_v36 = vmul.f32 %v942_v32, %v942_v32 }
 0x13e   : > { %1601 = vst [vmem:[%s1940_s28 + $0x38] sm:$0xff] %v1593_v34   ;;  %v991_v37 = vrot.slane %v990_v35, 4  ;;  %v1027_v38 = vadd.f32 %v1026_v33, %v1012_v36 }
 0x140   : > { %v992_v40 = vadd.f32 %v991_v37, %v990_v35  ;;  %v1028_v42 = vrot.slane %v1027_v38, 4 }
 0x142   : > { %v993_v43 = vrot.slane %v992_v40, 2  ;;  %v1029_v44 = vadd.f32 %v1028_v42, %v1027_v38 }
 0x144   : > { %v994_v45 = vadd.f32 %v993_v43, %v992_v40  ;;  %v1030_v46 = vrot.slane %v1029_v44, 2 }
 0x146   : > { %v995_v47 = vrot.slane %v994_v45, 1  ;;  %v1031_v48 = vadd.f32 %v1030_v46, %v1029_v44 }
 0x148   : > { %v1032_v49 = vrot.slane %v1031_v48, 1  ;;  %v996_v50 = vadd.f32 %v995_v47, %v994_v45 }
 0x14a   : > { %v1033_v51 = vadd.f32 %v1032_v49, %v1031_v48 }
 0x14c   : > { %v1035_v52 = vsel %vm1034_vm0, %v996_v50, %v1033_v51 }
 0x14d   : > { %1036 = vst [vmem:[%s299_s5] sm:$0x3] %v1035_v52 }
 0x14e PF: > { %s17_s17 = sadd.s32 1, %s1739_s17   ;;  %s1990_s12 = smov %s1723_s13 }
 0x14f   : > { %p14_p0 = scmp.ge.s32.totalorder %s17_s17, 6   ;;  %s1991_s13 = smov %s1727_s14 }
 0x150   : > { %s1992_s14 = smov %s1812_s24  ;;  %s1993_s15 = smov %s1735_s16 }
 0x151   : > { %s1994_s16 = smov %s1996_s19  ;;  %16 = sbr.rel (!%p14_p0) target bundleno = 4 (0x4), region = 83 }
 0x156   :  { %1099 = vsyncpa [#allocation3], 1 }
 0x157   :  { %1101 = vsyncpa [#allocation3 + $0x1], 1 }

// kernel: netG_forward.16
= control target key start
LH: loop header
LB: loop body
LE: loop exit
PB: predicated region body
PF: predicated region fallthrough
CT: control target
= control target key end

     0   :  { %s1282_s12 = smov 0   ;;  %s1284_s13 = smov 0   ;;  %s1528_s0 = inlined_call_operand.vmem [shape: bf16[4,512,128], index: 0, kind: input, shape index: {}]   ;;  %s1529_s1 = inlined_call_operand.vmem [shape: f32[1,128], index: 1, kind: input, shape index: {}]   ;;  %s1530_s2 = inlined_call_operand.vmem [shape: f32[1,128], index: 2, kind: input, shape index: {}]   ;;  %s1531_s3 = inlined_call_operand.vmem [shape: bf16[4,512,128], index: 3, kind: output, shape index: {}]  }
   0x1   :  { %s1286_s14 = smov 0  }
   0x2 LB: > { %s32_s15 = sadd.s32 1, %s1256_s13  ;;  %p853_p0 = scmp.ge.s32.totalorder %s1260_s14, 1  ;;  %s1260_s14 = sphi %s1286_s14, %s13_s14   ;;  %s1256_s13 = sphi %s1284_s13, %s1533_s13   ;;  %s1252_s12 = sphi %s1282_s12, %s1532_s12  }
   0x3   : > { %p34_p1 = scmp.ge.s32.totalorder %s32_s15, 4  ;;  %p188_p2 = scmp.lt.s32.totalorder %s1260_s14, 5 }
   0x5   : > { %s1535_s15 = smov (%p34_p1, %s32_s15), 0  ;;  %p189_p3 = pnand %p853_p0, %p188_p2 }
   0x6   : > { %p233_p4 = scmp.lt.s32.totalorder (!%p189_p3), %s1252_s12, 3 }
   0x7   : > { %192 = sbr.rel (%p189_p3) target bundleno = 94 (0x5e), region = 32 }
   0xc   : > { %s1537_s12 = smov (!%p233_p4, %s1252_s12), 3  ;;  %v1313_v0 = vld [vmem:[%s1529_s1] ss:$0 sm:$0xff] }
   0xd   : > { %s860_s16 = sshll.u32 %s1537_s12, 8  ;;  %v1321_v6 = vld [vmem:[%s1530_s2] ss:$0 sm:$0xff] }
   0xe   : > { %s1308_s19 = scalar_lea.vmem %s1528_s0, %s860_s16  ;;  %s1347_s26 = scalar_lea.vmem %s1531_s3, %s860_s16 }
   0xf   : > { %v863_v1 = vld [vmem:[%s1308_s19] sm:$0xff]   ;;  %v1150_v2 = vld [vmem:[%s1308_s19 + $0x8] sm:$0xff]   ;;  %v1151_v3 = vld [vmem:[%s1308_s19 + $0x10] sm:$0xff]  }
  0x10   : > { %v864_v4 = vunpack.c.l.bf16 %v863_v1  ;;  %v865_v5 = vunpack.c.h.bf16 %v863_v1  ;;  %v868_v7 = vunpack.c.l.bf16 %v1150_v2  ;;  %v869_v8 = vunpack.c.h.bf16 %v1150_v2  ;;  %v1152_v9 = vld [vmem:[%s1308_s19 + $0x18] sm:$0xff]   ;;  %v1153_v30 = vld [vmem:[%s1308_s19 + $0x20] sm:$0xff]   ;;  %v1154_v35 = vld [vmem:[%s1308_s19 + $0x28] sm:$0xff]  }
  0x11   : > { %v872_v10 = vunpack.c.l.bf16 %v1151_v3  ;;  %v873_v11 = vunpack.c.h.bf16 %v1151_v3  ;;  %v876_v12 = vunpack.c.l.bf16 %v1152_v9  ;;  %v877_v13 = vunpack.c.h.bf16 %v1152_v9  ;;  %v1155_v40 = vld [vmem:[%s1308_s19 + $0x30] sm:$0xff]   ;;  %v1156_v45 = vld [vmem:[%s1308_s19 + $0x38] sm:$0xff]   ;;  %v1157_v3 = vld [vmem:[%s1308_s19 + $0x40] sm:$0xff]  }
  0x12   : > { %v396_v14 = vmul.f32 %v1313_v0, %v864_v4  ;;  %v397_v15 = vmul.f32 %v1313_v0, %v865_v5  ;;  %v398_v16 = vmul.f32 %v1313_v0, %v868_v7  ;;  %v399_v17 = vmul.f32 %v1313_v0, %v869_v8 }
  0x13   : > { %v400_v18 = vmul.f32 %v1313_v0, %v872_v10  ;;  %v401_v19 = vmul.f32 %v1313_v0, %v873_v11  ;;  %v402_v20 = vmul.f32 %v1313_v0, %v876_v12  ;;  %v403_v21 = vmul.f32 %v1313_v0, %v877_v13  ;;  %v1158_v13 = vld [vmem:[%s1308_s19 + $0x48] sm:$0xff]  }
  0x14   : > { %v464_v22 = vadd.f32 %v1321_v6, %v396_v14  ;;  %v465_v23 = vadd.f32 %v1321_v6, %v397_v15  ;;  %v466_v24 = vadd.f32 %v1321_v6, %v398_v16  ;;  %v467_v25 = vadd.f32 %v1321_v6, %v399_v17 }
  0x15   : > { %v468_v26 = vadd.f32 %v1321_v6, %v400_v18  ;;  %v469_v27 = vadd.f32 %v1321_v6, %v401_v19  ;;  %v470_v28 = vadd.f32 %v1321_v6, %v402_v20  ;;  %v471_v29 = vadd.f32 %v1321_v6, %v403_v21  ;;  %v1159_v18 = vld [vmem:[%s1308_s19 + $0x50] sm:$0xff]  }
  0x16   : > { %v528_v31 = vmax.f32 %v464_v22, 0.0  ;;  %v529_v32 = vmax.f32 %v465_v23, 0.0  ;;  %v530_v33 = vmax.f32 %v466_v24, 0.0  ;;  %v531_v34 = vmax.f32 %v467_v25, 0.0  ;;  %v1160_v23 = vld [vmem:[%s1308_s19 + $0x58] sm:$0xff]  }
  0x17   : > { %v532_v36 = vmax.f32 %v468_v26, 0.0  ;;  %v533_v37 = vmax.f32 %v469_v27, 0.0  ;;  %v534_v38 = vmax.f32 %v470_v28, 0.0  ;;  %v535_v39 = vmax.f32 %v471_v29, 0.0 }
  0x18   : > { %v993_v41 = vpack.c.bf16 %v529_v32, %v528_v31  ;;  %v998_v42 = vpack.c.bf16 %v531_v34, %v530_v33  ;;  %v880_v43 = vunpack.c.l.bf16 %v1153_v30  ;;  %v881_v44 = vunpack.c.h.bf16 %v1153_v30 }
  0x19   : > { %v1003_v46 = vpack.c.bf16 %v533_v37, %v532_v36  ;;  %v1008_v47 = vpack.c.bf16 %v535_v39, %v534_v38  ;;  %v884_v48 = vunpack.c.l.bf16 %v1154_v35  ;;  %v885_v49 = vunpack.c.h.bf16 %v1154_v35 }
  0x1a   : > { %994 = vst [vmem:[%s1347_s26] sm:$0xff] %v993_v41   ;;  %v404_v50 = vmul.f32 %v1313_v0, %v880_v43  ;;  %v405_v51 = vmul.f32 %v1313_v0, %v881_v44  ;;  %v888_v52 = vunpack.c.l.bf16 %v1155_v40  ;;  %v889_v53 = vunpack.c.h.bf16 %v1155_v40  ;;  %v1161_v40 = vld [vmem:[%s1308_s19 + $0x60] sm:$0xff]  }
  0x1b   : > { %1181 = vst [vmem:[%s1347_s26 + $0x8] sm:$0xff] %v998_v42   ;;  %v406_v54 = vmul.f32 %v1313_v0, %v884_v48  ;;  %v407_v55 = vmul.f32 %v1313_v0, %v885_v49  ;;  %v892_v56 = vunpack.c.l.bf16 %v1156_v45  ;;  %v893_v57 = vunpack.c.h.bf16 %v1156_v45 }
  0x1c   : > { %1182 = vst [vmem:[%s1347_s26 + $0x10] sm:$0xff] %v1003_v46   ;;  %v472_v58 = vadd.f32 %v1321_v6, %v404_v50  ;;  %v473_v59 = vadd.f32 %v1321_v6, %v405_v51  ;;  %v408_v60 = vmul.f32 %v1313_v0, %v888_v52  ;;  %v409_v61 = vmul.f32 %v1313_v0, %v889_v53  ;;  %v1162_v53 = vld [vmem:[%s1308_s19 + $0x68] sm:$0xff]  }
  0x1d   : > { %1183 = vst [vmem:[%s1347_s26 + $0x18] sm:$0xff] %v1008_v47   ;;  %v474_v62 = vadd.f32 %v1321_v6, %v406_v54  ;;  %v475_v63 = vadd.f32 %v1321_v6, %v407_v55  ;;  %v410_v1 = vmul.f32 %v1313_v0, %v892_v56  ;;  %v411_v2 = vmul.f32 %v1313_v0, %v893_v57 }
  0x1e   : > { %v536_v4 = vmax.f32 %v472_v58, 0.0  ;;  %v537_v5 = vmax.f32 %v473_v59, 0.0  ;;  %v476_v7 = vadd.f32 %v1321_v6, %v408_v60  ;;  %v477_v8 = vadd.f32 %v1321_v6, %v409_v61  ;;  %v1163_v58 = vld [vmem:[%s1308_s19 + $0x70] sm:$0xff]  }
  0x1f   : > { %v538_v9 = vmax.f32 %v474_v62, 0.0  ;;  %v539_v10 = vmax.f32 %v475_v63, 0.0  ;;  %v478_v11 = vadd.f32 %v1321_v6, %v410_v1  ;;  %v479_v12 = vadd.f32 %v1321_v6, %v411_v2  ;;  %v1164_v63 = vld [vmem:[%s1308_s19 + $0x78] sm:$0xff]  }
  0x20   : > { %v1013_v14 = vpack.c.bf16 %v537_v5, %v536_v4  ;;  %v540_v15 = vmax.f32 %v476_v7, 0.0  ;;  %v541_v16 = vmax.f32 %v477_v8, 0.0  ;;  %v896_v17 = vunpack.c.l.bf16 %v1157_v3 }
  0x21   : > { %v1018_v19 = vpack.c.bf16 %v539_v10, %v538_v9  ;;  %v542_v20 = vmax.f32 %v478_v11, 0.0  ;;  %v543_v21 = vmax.f32 %v479_v12, 0.0  ;;  %v897_v22 = vunpack.c.h.bf16 %v1157_v3 }
  0x22   : > { %1184 = vst [vmem:[%s1347_s26 + $0x20] sm:$0xff] %v1013_v14   ;;  %v1023_v24 = vpack.c.bf16 %v541_v16, %v540_v15  ;;  %v412_v25 = vmul.f32 %v1313_v0, %v896_v17  ;;  %v900_v26 = vunpack.c.l.bf16 %v1158_v13  ;;  %v901_v27 = vunpack.c.h.bf16 %v1158_v13  ;;  %v1165_v14 = vld [vmem:[%s1308_s19 + $0x80] sm:$0xff]  }
  0x23   : > { %1185 = vst [vmem:[%s1347_s26 + $0x28] sm:$0xff] %v1018_v19   ;;  %v1028_v28 = vpack.c.bf16 %v543_v21, %v542_v20  ;;  %v413_v29 = vmul.f32 %v1313_v0, %v897_v22  ;;  %v904_v30 = vunpack.c.l.bf16 %v1159_v18  ;;  %v905_v31 = vunpack.c.h.bf16 %v1159_v18 }
  0x24   : > { %1186 = vst [vmem:[%s1347_s26 + $0x30] sm:$0xff] %v1023_v24   ;;  %v480_v32 = vadd.f32 %v1321_v6, %v412_v25  ;;  %v414_v33 = vmul.f32 %v1313_v0, %v900_v26  ;;  %v415_v34 = vmul.f32 %v1313_v0, %v901_v27  ;;  %v908_v35 = vunpack.c.l.bf16 %v1160_v23 }
  0x25   : > { %1187 = vst [vmem:[%s1347_s26 + $0x38] sm:$0xff] %v1028_v28   ;;  %v481_v36 = vadd.f32 %v1321_v6, %v413_v29  ;;  %v416_v37 = vmul.f32 %v1313_v0, %v904_v30  ;;  %v417_v38 = vmul.f32 %v1313_v0, %v905_v31  ;;  %v909_v39 = vunpack.c.h.bf16 %v1160_v23  ;;  %v1166_v31 = vld [vmem:[%s1308_s19 + $0x88] sm:$0xff]  }
  0x26   : > { %v544_v41 = vmax.f32 %v480_v32, 0.0  ;;  %v482_v42 = vadd.f32 %v1321_v6, %v414_v33  ;;  %v483_v43 = vadd.f32 %v1321_v6, %v415_v34  ;;  %v418_v44 = vmul.f32 %v1313_v0, %v908_v35 }
  0x27   : > { %v545_v45 = vmax.f32 %v481_v36, 0.0  ;;  %v484_v46 = vadd.f32 %v1321_v6, %v416_v37  ;;  %v485_v47 = vadd.f32 %v1321_v6, %v417_v38  ;;  %v419_v48 = vmul.f32 %v1313_v0, %v909_v39  ;;  %v1167_v36 = vld [vmem:[%s1308_s19 + $0x90] sm:$0xff]  }
  0x28   : > { %v546_v49 = vmax.f32 %v482_v42, 0.0  ;;  %v547_v50 = vmax.f32 %v483_v43, 0.0  ;;  %v486_v51 = vadd.f32 %v1321_v6, %v418_v44  ;;  %v912_v52 = vunpack.c.l.bf16 %v1161_v40 }
  0x29   : > { %v1033_v54 = vpack.c.bf16 %v545_v45, %v544_v41  ;;  %v548_v55 = vmax.f32 %v484_v46, 0.0  ;;  %v549_v56 = vmax.f32 %v485_v47, 0.0  ;;  %v487_v57 = vadd.f32 %v1321_v6, %v419_v48  ;;  %v1168_v41 = vld [vmem:[%s1308_s19 + $0x98] sm:$0xff]  }
  0x2a   : > { %v1038_v59 = vpack.c.bf16 %v547_v50, %v546_v49  ;;  %v550_v60 = vmax.f32 %v486_v51, 0.0  ;;  %v913_v61 = vunpack.c.h.bf16 %v1161_v40  ;;  %v420_v62 = vmul.f32 %v1313_v0, %v912_v52 }
  0x2b   : > { %1188 = vst [vmem:[%s1347_s26 + $0x40] sm:$0xff] %v1033_v54   ;;  %v1043_v1 = vpack.c.bf16 %v549_v56, %v548_v55  ;;  %v551_v2 = vmax.f32 %v487_v57, 0.0  ;;  %v916_v3 = vunpack.c.l.bf16 %v1162_v53  ;;  %v917_v4 = vunpack.c.h.bf16 %v1162_v53  ;;  %v1169_v54 = vld [vmem:[%s1308_s19 + $0xa0] sm:$0xff]  }
  0x2c   : > { %1189 = vst [vmem:[%s1347_s26 + $0x48] sm:$0xff] %v1038_v59   ;;  %v421_v5 = vmul.f32 %v1313_v0, %v913_v61  ;;  %v488_v7 = vadd.f32 %v1321_v6, %v420_v62  ;;  %v920_v8 = vunpack.c.l.bf16 %v1163_v58  ;;  %v921_v9 = vunpack.c.h.bf16 %v1163_v58 }
  0x2d   : > { %1190 = vst [vmem:[%s1347_s26 + $0x50] sm:$0xff] %v1043_v1   ;;  %v1048_v10 = vpack.c.bf16 %v551_v2, %v550_v60  ;;  %v422_v11 = vmul.f32 %v1313_v0, %v916_v3  ;;  %v423_v12 = vmul.f32 %v1313_v0, %v917_v4  ;;  %v924_v13 = vunpack.c.l.bf16 %v1164_v63  ;;  %v1170_v4 = vld [vmem:[%s1308_s19 + $0xa8] sm:$0xff]  }
  0x2e   : > { %v489_v15 = vadd.f32 %v1321_v6, %v421_v5  ;;  %v552_v16 = vmax.f32 %v488_v7, 0.0  ;;  %v424_v17 = vmul.f32 %v1313_v0, %v920_v8  ;;  %v425_v18 = vmul.f32 %v1313_v0, %v921_v9 }
  0x2f   : > { %1191 = vst [vmem:[%s1347_s26 + $0x58] sm:$0xff] %v1048_v10   ;;  %v490_v19 = vadd.f32 %v1321_v6, %v422_v11  ;;  %v491_v20 = vadd.f32 %v1321_v6, %v423_v12  ;;  %v925_v21 = vunpack.c.h.bf16 %v1164_v63  ;;  %v426_v22 = vmul.f32 %v1313_v0, %v924_v13 }
  0x30   : > { %v553_v23 = vmax.f32 %v489_v15, 0.0  ;;  %v492_v24 = vadd.f32 %v1321_v6, %v424_v17  ;;  %v493_v25 = vadd.f32 %v1321_v6, %v425_v18  ;;  %v928_v26 = vunpack.c.l.bf16 %v1165_v14 }
  0x31   : > { %v554_v27 = vmax.f32 %v490_v19, 0.0  ;;  %v555_v28 = vmax.f32 %v491_v20, 0.0  ;;  %v427_v29 = vmul.f32 %v1313_v0, %v925_v21  ;;  %v494_v30 = vadd.f32 %v1321_v6, %v426_v22  ;;  %v1172_v19 = vld [vmem:[%s1308_s19 + $0xb8] sm:$0xff]  }
  0x32   : > { %v1053_v32 = vpack.c.bf16 %v553_v23, %v552_v16  ;;  %v556_v33 = vmax.f32 %v492_v24, 0.0  ;;  %v557_v34 = vmax.f32 %v493_v25, 0.0  ;;  %v929_v35 = vunpack.c.h.bf16 %v1165_v14  ;;  %v1171_v14 = vld [vmem:[%s1308_s19 + $0xb0] sm:$0xff]  }
  0x33   : > { %v1058_v37 = vpack.c.bf16 %v555_v28, %v554_v27  ;;  %v495_v38 = vadd.f32 %v1321_v6, %v427_v29  ;;  %v558_v39 = vmax.f32 %v494_v30, 0.0  ;;  %v428_v40 = vmul.f32 %v1313_v0, %v928_v26 }
  0x34   : > { %1192 = vst [vmem:[%s1347_s26 + $0x60] sm:$0xff] %v1053_v32   ;;  %v1063_v42 = vpack.c.bf16 %v557_v34, %v556_v33  ;;  %v429_v43 = vmul.f32 %v1313_v0, %v929_v35  ;;  %v932_v44 = vunpack.c.l.bf16 %v1166_v31  ;;  %v933_v45 = vunpack.c.h.bf16 %v1166_v31  ;;  %v1173_v32 = vld [vmem:[%s1308_s19 + $0xc0] sm:$0xff]  }
  0x35   : > { %1193 = vst [vmem:[%s1347_s26 + $0x68] sm:$0xff] %v1058_v37   ;;  %v559_v46 = vmax.f32 %v495_v38, 0.0  ;;  %v496_v47 = vadd.f32 %v1321_v6, %v428_v40  ;;  %v936_v48 = vunpack.c.l.bf16 %v1167_v36  ;;  %v937_v49 = vunpack.c.h.bf16 %v1167_v36 }
  0x36   : > { %1194 = vst [vmem:[%s1347_s26 + $0x70] sm:$0xff] %v1063_v42   ;;  %v497_v50 = vadd.f32 %v1321_v6, %v429_v43  ;;  %v430_v51 = vmul.f32 %v1313_v0, %v932_v44  ;;  %v431_v52 = vmul.f32 %v1313_v0, %v933_v45  ;;  %v940_v53 = vunpack.c.l.bf16 %v1168_v41  ;;  %v1174_v45 = vld [vmem:[%s1308_s19 + $0xc8] sm:$0xff]  }
  0x37   : > { %v1068_v55 = vpack.c.bf16 %v559_v46, %v558_v39  ;;  %v560_v56 = vmax.f32 %v496_v47, 0.0  ;;  %v432_v57 = vmul.f32 %v1313_v0, %v936_v48  ;;  %v433_v58 = vmul.f32 %v1313_v0, %v937_v49 }
  0x38   : > { %v561_v59 = vmax.f32 %v497_v50, 0.0  ;;  %v498_v60 = vadd.f32 %v1321_v6, %v430_v51  ;;  %v499_v61 = vadd.f32 %v1321_v6, %v431_v52  ;;  %v941_v62 = vunpack.c.h.bf16 %v1168_v41 }
  0x39   : > { %1195 = vst [vmem:[%s1347_s26 + $0x78] sm:$0xff] %v1068_v55   ;;  %v500_v63 = vadd.f32 %v1321_v6, %v432_v57  ;;  %v501_v1 = vadd.f32 %v1321_v6, %v433_v58  ;;  %v434_v2 = vmul.f32 %v1313_v0, %v940_v53  ;;  %v944_v3 = vunpack.c.l.bf16 %v1169_v54 }
  0x3a   : > { %v1073_v5 = vpack.c.bf16 %v561_v59, %v560_v56  ;;  %v562_v7 = vmax.f32 %v498_v60, 0.0  ;;  %v563_v8 = vmax.f32 %v499_v61, 0.0  ;;  %v435_v9 = vmul.f32 %v1313_v0, %v941_v62 }
  0x3b   : > { %v564_v10 = vmax.f32 %v500_v63, 0.0  ;;  %v565_v11 = vmax.f32 %v501_v1, 0.0  ;;  %v502_v12 = vadd.f32 %v1321_v6, %v434_v2  ;;  %v945_v13 = vunpack.c.h.bf16 %v1169_v54  ;;  %v1175_v54 = vld [vmem:[%s1308_s19 + $0xd0] sm:$0xff]   ;;  %v1176_v63 = vld [vmem:[%s1308_s19 + $0xd8] sm:$0xff]  }
  0x3c   : > { %1196 = vst [vmem:[%s1347_s26 + $0x80] sm:$0xff] %v1073_v5   ;;  %v1078_v15 = vpack.c.bf16 %v563_v8, %v562_v7  ;;  %v503_v16 = vadd.f32 %v1321_v6, %v435_v9  ;;  %v436_v17 = vmul.f32 %v1313_v0, %v944_v3  ;;  %v948_v18 = vunpack.c.l.bf16 %v1170_v4 }
  0x3d   : > { %v1083_v20 = vpack.c.bf16 %v565_v11, %v564_v10  ;;  %v566_v21 = vmax.f32 %v502_v12, 0.0  ;;  %v437_v22 = vmul.f32 %v1313_v0, %v945_v13  ;;  %v949_v23 = vunpack.c.h.bf16 %v1170_v4  ;;  %v1177_v10 = vld [vmem:[%s1308_s19 + $0xe0] sm:$0xff]  }
  0x3e   : > { %1197 = vst [vmem:[%s1347_s26 + $0x88] sm:$0xff] %v1078_v15   ;;  %v567_v24 = vmax.f32 %v503_v16, 0.0  ;;  %v504_v25 = vadd.f32 %v1321_v6, %v436_v17  ;;  %v438_v26 = vmul.f32 %v1313_v0, %v948_v18  ;;  %v952_v27 = vunpack.c.l.bf16 %v1171_v14 }
  0x3f   : > { %1198 = vst [vmem:[%s1347_s26 + $0x90] sm:$0xff] %v1083_v20   ;;  %v505_v28 = vadd.f32 %v1321_v6, %v437_v22  ;;  %v439_v29 = vmul.f32 %v1313_v0, %v949_v23  ;;  %v953_v30 = vunpack.c.h.bf16 %v1171_v14  ;;  %v956_v31 = vunpack.c.l.bf16 %v1172_v19  ;;  %v1178_v23 = vld [vmem:[%s1308_s19 + $0xe8] sm:$0xff]  }
  0x40   : > { %v1088_v33 = vpack.c.bf16 %v567_v24, %v566_v21  ;;  %v568_v34 = vmax.f32 %v504_v25, 0.0  ;;  %v506_v35 = vadd.f32 %v1321_v6, %v438_v26  ;;  %v440_v36 = vmul.f32 %v1313_v0, %v952_v27 }
  0x41   : > { %v569_v37 = vmax.f32 %v505_v28, 0.0  ;;  %v507_v38 = vadd.f32 %v1321_v6, %v439_v29  ;;  %v441_v39 = vmul.f32 %v1313_v0, %v953_v30  ;;  %v957_v40 = vunpack.c.h.bf16 %v1172_v19 }
  0x42   : > { %1199 = vst [vmem:[%s1347_s26 + $0x98] sm:$0xff] %v1088_v33   ;;  %v570_v41 = vmax.f32 %v506_v35, 0.0  ;;  %v508_v42 = vadd.f32 %v1321_v6, %v440_v36  ;;  %v442_v43 = vmul.f32 %v1313_v0, %v956_v31  ;;  %v960_v44 = vunpack.c.l.bf16 %v1173_v32 }
  0x43   : > { %v1093_v46 = vpack.c.bf16 %v569_v37, %v568_v34  ;;  %v571_v47 = vmax.f32 %v507_v38, 0.0  ;;  %v509_v48 = vadd.f32 %v1321_v6, %v441_v39  ;;  %v443_v49 = vmul.f32 %v1313_v0, %v957_v40 }
  0x44   : > { %v572_v50 = vmax.f32 %v508_v42, 0.0  ;;  %v510_v51 = vadd.f32 %v1321_v6, %v442_v43  ;;  %v961_v52 = vunpack.c.h.bf16 %v1173_v32  ;;  %v444_v53 = vmul.f32 %v1313_v0, %v960_v44  ;;  %v1179_v32 = vld [vmem:[%s1308_s19 + $0xf0] sm:$0xff]  }
  0x45   : > { %1200 = vst [vmem:[%s1347_s26 + $0xa0] sm:$0xff] %v1093_v46   ;;  %v1098_v55 = vpack.c.bf16 %v571_v47, %v570_v41  ;;  %v573_v56 = vmax.f32 %v509_v48, 0.0  ;;  %v511_v57 = vadd.f32 %v1321_v6, %v443_v49  ;;  %v964_v58 = vunpack.c.l.bf16 %v1174_v45  ;;  %v1180_v41 = vld [vmem:[%s1308_s19 + $0xf8] sm:$0xff]  }
  0x46   : > { %v574_v59 = vmax.f32 %v510_v51, 0.0  ;;  %v445_v60 = vmul.f32 %v1313_v0, %v961_v52  ;;  %v512_v61 = vadd.f32 %v1321_v6, %v444_v53  ;;  %v965_v62 = vunpack.c.h.bf16 %v1174_v45 }
  0x47   : > { %1201 = vst [vmem:[%s1347_s26 + $0xa8] sm:$0xff] %v1098_v55   ;;  %v1103_v1 = vpack.c.bf16 %v573_v56, %v572_v50  ;;  %v575_v2 = vmax.f32 %v511_v57, 0.0  ;;  %v446_v3 = vmul.f32 %v1313_v0, %v964_v58  ;;  %v968_v4 = vunpack.c.l.bf16 %v1175_v54 }
  0x48   : > { %v513_v5 = vadd.f32 %v1321_v6, %v445_v60  ;;  %v576_v7 = vmax.f32 %v512_v61, 0.0  ;;  %v447_v8 = vmul.f32 %v1313_v0, %v965_v62  ;;  %v969_v9 = vunpack.c.h.bf16 %v1175_v54 }
  0x49   : > { %1202 = vst [vmem:[%s1347_s26 + $0xb0] sm:$0xff] %v1103_v1   ;;  %v1108_v11 = vpack.c.bf16 %v575_v2, %v574_v59  ;;  %v514_v12 = vadd.f32 %v1321_v6, %v446_v3  ;;  %v448_v13 = vmul.f32 %v1313_v0, %v968_v4  ;;  %v972_v14 = vunpack.c.l.bf16 %v1176_v63 }
  0x4a   : > { %v577_v15 = vmax.f32 %v513_v5, 0.0  ;;  %v515_v16 = vadd.f32 %v1321_v6, %v447_v8  ;;  %v449_v17 = vmul.f32 %v1313_v0, %v969_v9  ;;  %v973_v18 = vunpack.c.h.bf16 %v1176_v63 }
  0x4b   : > { %1203 = vst [vmem:[%s1347_s26 + $0xb8] sm:$0xff] %v1108_v11   ;;  %v578_v19 = vmax.f32 %v514_v12, 0.0  ;;  %v516_v20 = vadd.f32 %v1321_v6, %v448_v13  ;;  %v450_v21 = vmul.f32 %v1313_v0, %v972_v14  ;;  %v976_v22 = vunpack.c.l.bf16 %v1177_v10 }
  0x4c   : > { %v1113_v24 = vpack.c.bf16 %v577_v15, %v576_v7  ;;  %v579_v25 = vmax.f32 %v515_v16, 0.0  ;;  %v517_v26 = vadd.f32 %v1321_v6, %v449_v17  ;;  %v451_v27 = vmul.f32 %v1313_v0, %v973_v18 }
  0x4d   : > { %v580_v28 = vmax.f32 %v516_v20, 0.0  ;;  %v518_v29 = vadd.f32 %v1321_v6, %v450_v21  ;;  %v977_v30 = vunpack.c.h.bf16 %v1177_v10  ;;  %v452_v31 = vmul.f32 %v1313_v0, %v976_v22 }
  0x4e   : > { %1204 = vst [vmem:[%s1347_s26 + $0xc0] sm:$0xff] %v1113_v24   ;;  %v1118_v33 = vpack.c.bf16 %v579_v25, %v578_v19  ;;  %v581_v34 = vmax.f32 %v517_v26, 0.0  ;;  %v519_v35 = vadd.f32 %v1321_v6, %v451_v27  ;;  %v980_v36 = vunpack.c.l.bf16 %v1178_v23 }
  0x4f   : > { %v582_v37 = vmax.f32 %v518_v29, 0.0  ;;  %v453_v38 = vmul.f32 %v1313_v0, %v977_v30  ;;  %v520_v39 = vadd.f32 %v1321_v6, %v452_v31  ;;  %v981_v40 = vunpack.c.h.bf16 %v1178_v23 }
  0x50   : > { %1205 = vst [vmem:[%s1347_s26 + $0xc8] sm:$0xff] %v1118_v33   ;;  %v1123_v42 = vpack.c.bf16 %v581_v34, %v580_v28  ;;  %v583_v43 = vmax.f32 %v519_v35, 0.0  ;;  %v454_v44 = vmul.f32 %v1313_v0, %v980_v36  ;;  %v984_v45 = vunpack.c.l.bf16 %v1179_v32 }
  0x51   : > { %v521_v46 = vadd.f32 %v1321_v6, %v453_v38  ;;  %v584_v47 = vmax.f32 %v520_v39, 0.0  ;;  %v455_v48 = vmul.f32 %v1313_v0, %v981_v40  ;;  %v985_v49 = vunpack.c.h.bf16 %v1179_v32 }
  0x52   : > { %1206 = vst [vmem:[%s1347_s26 + $0xd0] sm:$0xff] %v1123_v42   ;;  %v1128_v50 = vpack.c.bf16 %v583_v43, %v582_v37  ;;  %v522_v51 = vadd.f32 %v1321_v6, %v454_v44  ;;  %v456_v52 = vmul.f32 %v1313_v0, %v984_v45  ;;  %v988_v53 = vunpack.c.l.bf16 %v1180_v41 }
  0x53   : > { %v585_v54 = vmax.f32 %v521_v46, 0.0  ;;  %v523_v55 = vadd.f32 %v1321_v6, %v455_v48  ;;  %v457_v56 = vmul.f32 %v1313_v0, %v985_v49  ;;  %v989_v57 = vunpack.c.h.bf16 %v1180_v41 }
  0x54   : > { %1207 = vst [vmem:[%s1347_s26 + $0xd8] sm:$0xff] %v1128_v50   ;;  %v586_v58 = vmax.f32 %v522_v51, 0.0  ;;  %v524_v59 = vadd.f32 %v1321_v6, %v456_v52  ;;  %v458_v60 = vmul.f32 %v1313_v0, %v988_v53 }
  0x55   : > { %v1133_v61 = vpack.c.bf16 %v585_v54, %v584_v47  ;;  %v587_v62 = vmax.f32 %v523_v55, 0.0  ;;  %v525_v63 = vadd.f32 %v1321_v6, %v457_v56  ;;  %v459_v1 = vmul.f32 %v1313_v0, %v989_v57 }
  0x56   : > { %v588_v2 = vmax.f32 %v524_v59, 0.0  ;;  %v526_v3 = vadd.f32 %v1321_v6, %v458_v60 }
  0x57   : > { %1208 = vst [vmem:[%s1347_s26 + $0xe0] sm:$0xff] %v1133_v61   ;;  %v1138_v4 = vpack.c.bf16 %v587_v62, %v586_v58  ;;  %v589_v5 = vmax.f32 %v525_v63, 0.0  ;;  %v527_v7 = vadd.f32 %v1321_v6, %v459_v1 }
  0x58   : > { %v590_v8 = vmax.f32 %v526_v3, 0.0 }
  0x59   : > { %1209 = vst [vmem:[%s1347_s26 + $0xe8] sm:$0xff] %v1138_v4   ;;  %v1143_v9 = vpack.c.bf16 %v589_v5, %v588_v2  ;;  %v591_v10 = vmax.f32 %v527_v7, 0.0 }
  0x5b   : > { %1210 = vst [vmem:[%s1347_s26 + $0xf0] sm:$0xff] %v1143_v9   ;;  %v1148_v11 = vpack.c.bf16 %v591_v10, %v590_v8 }
  0x5d   : > { %1211 = vst [vmem:[%s1347_s26 + $0xf8] sm:$0xff] %v1148_v11  }
  0x5e PF: > { %s13_s14 = sadd.s32 1, %s1260_s14   ;;  %s1532_s12 = smov %s1256_s13 }
  0x5f   : > { %p10_p5 = scmp.ge.s32.totalorder %s13_s14, 6   ;;  %s1533_s13 = smov %s1535_s15 }
  0x61   :  { %12 = sbr.rel (!%p10_p5) target bundleno = 2 (0x2), region = 68 }

// kernel: netG_forward.15
= control target key start
LH: loop header
LB: loop body
LE: loop exit
PB: predicated region body
PF: predicated region fallthrough
CT: control target
= control target key end

     0   :  { %s3567_s12 = smov 0   ;;  %s3569_s13 = smov 0   ;;  %s3953_s0 = inlined_call_operand.vmem [shape: bf16[4,512,512], index: 0, kind: input, shape index: {}]   ;;  %s3954_s1 = inlined_call_operand.vmem [shape: bf16[4,512,128], index: 1, kind: input, shape index: {}]   ;;  %s3955_s2 = inlined_call_operand.vmem [shape: bf16[4,512,128], index: 2, kind: output, shape index: {0}]   ;;  %s3956_s3 = inlined_call_operand.vmem [shape: f32[4,1,2,128], index: 3, kind: output, shape index: {1}]  }
   0x1   :  { %s3571_s14 = smov 0  }
   0x2 LB: > { %s33_s15 = sadd.s32 1, %s3541_s13  ;;  %p2495_p0 = scmp.ge.s32.totalorder %s3545_s14, 1  ;;  %s3545_s14 = sphi %s3571_s14, %s14_s14   ;;  %s3541_s13 = sphi %s3569_s13, %s3958_s13   ;;  %s3537_s12 = sphi %s3567_s12, %s3957_s12  }
   0x3   : > { %p35_p1 = scmp.ge.s32.totalorder %s33_s15, 4  ;;  %p190_p2 = scmp.lt.s32.totalorder %s3545_s14, 5 }
   0x5   : > { %s3960_s15 = smov (%p35_p1, %s33_s15), 0  ;;  %p191_p3 = pnand %p2495_p0, %p190_p2 }
   0x6   : > { %p245_p4 = scmp.lt.s32.totalorder (!%p191_p3), %s3537_s12, 3 }
   0x7   : > { %194 = sbr.rel (%p191_p3) target bundleno = 707 (0x2c3), region = 28 }
   0xc   : > { %s3962_s12 = smov (!%p245_p4, %s3537_s12), 3  ;;  %vm2316_vm0 = vcmask 1040384  }
   0xd   : > { %s3146_s16 = sshll.u32 %s3962_s12, 8  ;;  %s3145_s20 = sshll.u32 %s3962_s12, 10 }
   0xe   : > { %s3593_s19 = scalar_lea.vmem %s3954_s1, %s3146_s16  ;;  %s3623_s23 = scalar_lea.vmem %s3953_s0, %s3145_s20 }
   0xf   : > { %v3283_v0 = vld [vmem:[%s3593_s19 + $0x38] sm:$0xff]  ;;  %v3282_v4 = vld [vmem:[%s3593_s19 + $0x30] sm:$0xff]  ;;  %v3281_v8 = vld [vmem:[%s3593_s19 + $0x28] sm:$0xff]  ;;  %s3718_s26 = scalar_lea.vmem %s3955_s2, %s3146_s16  ;;  %s2502_s27 = sshll.u32 %s3962_s12, 1 }
  0x10   : > { %v3291_v1 = vld [vmem:[%s3593_s19 + $0x78] sm:$0xff]  ;;  %1310 = vmatpush.bf16.msra.mxu0 %v3283_v0  ;;  %v3290_v5 = vld [vmem:[%s3593_s19 + $0x70] sm:$0xff]  ;;  %v3289_v9 = vld [vmem:[%s3593_s19 + $0x68] sm:$0xff]  ;;  %s285_s30 = scalar_lea.vmem %s3956_s3, %s2502_s27 }
  0x11   : > { %v3299_v2 = vld [vmem:[%s3593_s19 + $0xb8] sm:$0xff]  ;;  %1479 = vmatpush.bf16.msra.mxu1 %v3291_v1  ;;  %v3298_v6 = vld [vmem:[%s3593_s19 + $0xb0] sm:$0xff]  ;;  %v3297_v10 = vld [vmem:[%s3593_s19 + $0xa8] sm:$0xff] }
  0x12   : > { %v3307_v3 = vld [vmem:[%s3593_s19 + $0xf8] sm:$0xff]  ;;  %1648 = vmatpush.bf16.msra.mxu2 %v3299_v2  ;;  %v3306_v7 = vld [vmem:[%s3593_s19 + $0xf0] sm:$0xff]  ;;  %v3305_v11 = vld [vmem:[%s3593_s19 + $0xe8] sm:$0xff] }
  0x13   : > { %1817 = vmatpush.bf16.msra.mxu3 %v3307_v3  ;;  %v3280_v12 = vld [vmem:[%s3593_s19 + $0x20] sm:$0xff]  ;;  %v3279_v16 = vld [vmem:[%s3593_s19 + $0x18] sm:$0xff]  ;;  %v3278_v20 = vld [vmem:[%s3593_s19 + $0x10] sm:$0xff] }
  0x14   : > { %1311 = vmatpush.bf16.msra.mxu0 %v3282_v4  ;;  %v3288_v13 = vld [vmem:[%s3593_s19 + $0x60] sm:$0xff]  ;;  %v3287_v17 = vld [vmem:[%s3593_s19 + $0x58] sm:$0xff]  ;;  %v3286_v21 = vld [vmem:[%s3593_s19 + $0x50] sm:$0xff] }
  0x15   : > { %1480 = vmatpush.bf16.msra.mxu1 %v3290_v5  ;;  %v3296_v14 = vld [vmem:[%s3593_s19 + $0xa0] sm:$0xff]  ;;  %v3295_v18 = vld [vmem:[%s3593_s19 + $0x98] sm:$0xff]  ;;  %v3294_v22 = vld [vmem:[%s3593_s19 + $0x90] sm:$0xff] }
  0x16   : > { %1649 = vmatpush.bf16.msra.mxu2 %v3298_v6  ;;  %v3304_v15 = vld [vmem:[%s3593_s19 + $0xe0] sm:$0xff]  ;;  %v3303_v19 = vld [vmem:[%s3593_s19 + $0xd8] sm:$0xff]  ;;  %v3302_v23 = vld [vmem:[%s3593_s19 + $0xd0] sm:$0xff] }
  0x17   : > { %1818 = vmatpush.bf16.msra.mxu3 %v3306_v7  ;;  %v3277_v24 = vld [vmem:[%s3593_s19 + $0x8] sm:$0xff]  ;;  %v3276_v28 = vld [vmem:[%s3593_s19] sm:$0xff]  ;;  %v3150_v33 = vld [vmem:[%s3623_s23 + $0xc] sm:$0xf0] }
  0x18   : > { %1312 = vmatpush.bf16.msra.mxu0 %v3281_v8  ;;  %v3285_v25 = vld [vmem:[%s3593_s19 + $0x48] sm:$0xff]  ;;  %v3284_v29 = vld [vmem:[%s3593_s19 + $0x40] sm:$0xff]  ;;  %v2507_v35 = vld [vmem:[%s3623_s23 + $0x10] sm:$0xf0] }
  0x19   : > { %1481 = vmatpush.bf16.msra.mxu1 %v3289_v9  ;;  %v3293_v26 = vld [vmem:[%s3593_s19 + $0x88] sm:$0xff]  ;;  %v3292_v30 = vld [vmem:[%s3593_s19 + $0x80] sm:$0xff]  ;;  %v3151_v37 = vld [vmem:[%s3623_s23 + $0x14] sm:$0xf0] }
  0x1a   : > { %1650 = vmatpush.bf16.msra.mxu2 %v3297_v10  ;;  %v3301_v27 = vld [vmem:[%s3593_s19 + $0xc8] sm:$0xff]  ;;  %v3300_v31 = vld [vmem:[%s3593_s19 + $0xc0] sm:$0xff]  ;;  %v2515_v39 = vld [vmem:[%s3623_s23 + $0x18] sm:$0xf0] }
  0x1b   : > { %1819 = vmatpush.bf16.msra.mxu3 %v3305_v11  ;;  %v2505_v32 = vld [vmem:[%s3623_s23] sm:$0xf]  ;;  %v3148_v34 = vld [vmem:[%s3623_s23 + $0x4] sm:$0xf]  ;;  %v2513_v36 = vld [vmem:[%s3623_s23 + $0x8] sm:$0xf] }
  0x1c   : > { %1313 = vmatpush.bf16.msra.mxu0 %v3280_v12  ;;  %v3149_v38 = vld [vmem:[%s3623_s23 + $0xc] sm:$0xf]  ;;  %v2506_v40 = vor.u32 %v3150_v33, %v2505_v32  ;;  %v2510_v41 = vor.u32 %v3148_v34, %v2507_v35  ;;  %v2514_v42 = vor.u32 %v3151_v37, %v2513_v36  ;;  %v2521_v44 = vld [vmem:[%s3623_s23 + $0x20] sm:$0xf]  ;;  %v3154_v45 = vld [vmem:[%s3623_s23 + $0x2c] sm:$0xf0] }
  0x1d   : > { %1482 = vmatpush.bf16.msra.mxu1 %v3288_v13  ;;  %v2518_v43 = vor.u32 %v3149_v38, %v2515_v39  ;;  %v3152_v46 = vld [vmem:[%s3623_s23 + $0x24] sm:$0xf]  ;;  %v2523_v47 = vld [vmem:[%s3623_s23 + $0x30] sm:$0xf0]  ;;  %v2529_v48 = vld [vmem:[%s3623_s23 + $0x28] sm:$0xf]  ;;  %v2522_v52 = vor.u32 %v3154_v45, %v2521_v44 }
  0x1e   : > { %1651 = vmatpush.bf16.msra.mxu2 %v3296_v14  ;;  %v3155_v49 = vld [vmem:[%s3623_s23 + $0x34] sm:$0xf0]  ;;  %v3153_v50 = vld [vmem:[%s3623_s23 + $0x2c] sm:$0xf]  ;;  %v2531_v51 = vld [vmem:[%s3623_s23 + $0x38] sm:$0xf0]  ;;  %v2526_v53 = vor.u32 %v3152_v46, %v2523_v47 }
  0x1f   : > { %1820 = vmatpush.bf16.msra.mxu3 %v3304_v15  ;;  %v2530_v54 = vor.u32 %v3155_v49, %v2529_v48  ;;  %v2534_v55 = vor.u32 %v3153_v50, %v2531_v51  ;;  %v2537_v56 = vld [vmem:[%s3623_s23 + $0x40] sm:$0xf]  ;;  %v3158_v57 = vld [vmem:[%s3623_s23 + $0x4c] sm:$0xf0]  ;;  %v3156_v58 = vld [vmem:[%s3623_s23 + $0x44] sm:$0xf] }
  0x20   : > { %1314 = vmatpush.bf16.msra.mxu0 %v3279_v16  ;;  %v2539_v59 = vld [vmem:[%s3623_s23 + $0x50] sm:$0xf0]  ;;  %v2545_v60 = vld [vmem:[%s3623_s23 + $0x48] sm:$0xf]  ;;  %v3159_v61 = vld [vmem:[%s3623_s23 + $0x54] sm:$0xf0]  ;;  %v2538_v0 = vor.u32 %v3158_v57, %v2537_v56 }
  0x21   : > { %1483 = vmatpush.bf16.msra.mxu1 %v3287_v17  ;;  %v3157_v62 = vld [vmem:[%s3623_s23 + $0x4c] sm:$0xf]  ;;  %v2547_v63 = vld [vmem:[%s3623_s23 + $0x58] sm:$0xf0]  ;;  %v2542_v1 = vor.u32 %v3156_v58, %v2539_v59  ;;  %v2546_v2 = vor.u32 %v3159_v61, %v2545_v60  ;;  %v2553_v4 = vld [vmem:[%s3623_s23 + $0x60] sm:$0xf] }
  0x22   : > { %1652 = vmatpush.bf16.msra.mxu2 %v3295_v18  ;;  %v2550_v3 = vor.u32 %v3157_v62, %v2547_v63  ;;  %v3162_v5 = vld [vmem:[%s3623_s23 + $0x6c] sm:$0xf0]  ;;  %v3160_v6 = vld [vmem:[%s3623_s23 + $0x64] sm:$0xf]  ;;  %v2555_v7 = vld [vmem:[%s3623_s23 + $0x70] sm:$0xf0] }
  0x23   : > { %1821 = vmatpush.bf16.msra.mxu3 %v3303_v19  ;;  %v2561_v8 = vld [vmem:[%s3623_s23 + $0x68] sm:$0xf]  ;;  %v3163_v9 = vld [vmem:[%s3623_s23 + $0x74] sm:$0xf0]  ;;  %v3161_v10 = vld [vmem:[%s3623_s23 + $0x6c] sm:$0xf]  ;;  %v2554_v12 = vor.u32 %v3162_v5, %v2553_v4  ;;  %v2558_v13 = vor.u32 %v3160_v6, %v2555_v7 }
  0x24   : > { %1315 = vmatpush.bf16.msra.mxu0 %v3278_v20  ;;  %v2563_v11 = vld [vmem:[%s3623_s23 + $0x78] sm:$0xf0]  ;;  %v2562_v14 = vor.u32 %v3163_v9, %v2561_v8  ;;  %v2569_v16 = vld [vmem:[%s3623_s23 + $0x80] sm:$0xf]  ;;  %v3166_v17 = vld [vmem:[%s3623_s23 + $0x8c] sm:$0xf0] }
  0x25   : > { %1484 = vmatpush.bf16.msra.mxu1 %v3286_v21  ;;  %v2566_v15 = vor.u32 %v3161_v10, %v2563_v11  ;;  %v3164_v18 = vld [vmem:[%s3623_s23 + $0x84] sm:$0xf]  ;;  %v2571_v19 = vld [vmem:[%s3623_s23 + $0x90] sm:$0xf0]  ;;  %v2577_v20 = vld [vmem:[%s3623_s23 + $0x88] sm:$0xf] }
  0x26   : > { %1653 = vmatpush.bf16.msra.mxu2 %v3294_v22  ;;  %v3167_v21 = vld [vmem:[%s3623_s23 + $0x94] sm:$0xf0]  ;;  %v3165_v22 = vld [vmem:[%s3623_s23 + $0x8c] sm:$0xf]  ;;  %v2593_v32 = vld [vmem:[%s3623_s23 + $0xa8] sm:$0xf] }
  0x27   : > { %1822 = vmatpush.bf16.msra.mxu3 %v3302_v23  ;;  %v2579_v23 = vld [vmem:[%s3623_s23 + $0x98] sm:$0xf0]  ;;  %v3171_v33 = vld [vmem:[%s3623_s23 + $0xb4] sm:$0xf0]  ;;  %v3169_v34 = vld [vmem:[%s3623_s23 + $0xac] sm:$0xf] }
  0x28   : > { %1316 = vmatpush.bf16.msra.mxu0 %v3277_v24  ;;  %v2570_v24 = vor.u32 %v3166_v17, %v2569_v16  ;;  %v2595_v35 = vld [vmem:[%s3623_s23 + $0xb8] sm:$0xf0]  ;;  %v2594_v38 = vor.u32 %v3171_v33, %v2593_v32  ;;  %v2609_v44 = vld [vmem:[%s3623_s23 + $0xc8] sm:$0xf]  ;;  %v3175_v45 = vld [vmem:[%s3623_s23 + $0xd4] sm:$0xf0] }
  0x29   : > { %1485 = vmatpush.bf16.msra.mxu1 %v3285_v25  ;;  %v2574_v25 = vor.u32 %v3164_v18, %v2571_v19  ;;  %v2598_v39 = vor.u32 %v3169_v34, %v2595_v35  ;;  %v3173_v46 = vld [vmem:[%s3623_s23 + $0xcc] sm:$0xf]  ;;  %v2611_v47 = vld [vmem:[%s3623_s23 + $0xd8] sm:$0xf0]  ;;  %v2610_v50 = vor.u32 %v3175_v45, %v2609_v44  ;;  %v2625_v56 = vld [vmem:[%s3623_s23 + $0xe8] sm:$0xf] }
  0x2a   : > { %1654 = vmatpush.bf16.msra.mxu2 %v3293_v26  ;;  %v2578_v26 = vor.u32 %v3167_v21, %v2577_v20  ;;  %v2614_v51 = vor.u32 %v3173_v46, %v2611_v47  ;;  %v3179_v57 = vld [vmem:[%s3623_s23 + $0xf4] sm:$0xf0]  ;;  %v3177_v58 = vld [vmem:[%s3623_s23 + $0xec] sm:$0xf]  ;;  %v2627_v59 = vld [vmem:[%s3623_s23 + $0xf8] sm:$0xf0] }
  0x2b   : > { %1823 = vmatpush.bf16.msra.mxu3 %v3301_v27  ;;  %v2582_v27 = vor.u32 %v3165_v22, %v2579_v23  ;;  %v2626_v62 = vor.u32 %v3179_v57, %v2625_v56  ;;  %v2630_v63 = vor.u32 %v3177_v58, %v2627_v59  ;;  %v2641_v4 = vld [vmem:[%s3623_s23 + $0x108] sm:$0xf]  ;;  %v3183_v5 = vld [vmem:[%s3623_s23 + $0x114] sm:$0xf0]  ;;  %v3181_v6 = vld [vmem:[%s3623_s23 + $0x10c] sm:$0xf] }
  0x2c   : > { %1317 = vmatpush.bf16.msra.mxu0 %v3276_v28  ;;  %v2585_v28 = vld [vmem:[%s3623_s23 + $0xa0] sm:$0xf]  ;;  %v2643_v7 = vld [vmem:[%s3623_s23 + $0x118] sm:$0xf0]  ;;  %v3186_v21 = vld [vmem:[%s3623_s23 + $0x12c] sm:$0xf0] }
  0x2d   : > { %1486 = vmatpush.bf16.msra.mxu1 %v3284_v29  ;;  %v3170_v29 = vld [vmem:[%s3623_s23 + $0xac] sm:$0xf0]  ;;  %v2649_v20 = vld [vmem:[%s3623_s23 + $0x120] sm:$0xf]  ;;  %v3184_v22 = vld [vmem:[%s3623_s23 + $0x124] sm:$0xf] }
  0x2e   : > { %1655 = vmatpush.bf16.msra.mxu2 %v3292_v30  ;;  %v3168_v30 = vld [vmem:[%s3623_s23 + $0xa4] sm:$0xf]  ;;  %v2586_v36 = vor.u32 %v3170_v29, %v2585_v28  ;;  %v2651_v23 = vld [vmem:[%s3623_s23 + $0x130] sm:$0xf0]  ;;  %v2650_v32 = vor.u32 %v3186_v21, %v2649_v20  ;;  %v2673_v58 = vld [vmem:[%s3623_s23 + $0x148] sm:$0xf] }
  0x2f   : > { %1824 = vmatpush.bf16.msra.mxu3 %v3300_v31  ;;  %1318 = vmatmul.bf16.vlgmr.msra.gmra.mxu0 %v2506_v40  ;;  %v2587_v31 = vld [vmem:[%s3623_s23 + $0xb0] sm:$0xf0]  ;;  %v2601_v40 = vld [vmem:[%s3623_s23 + $0xc0] sm:$0xf]  ;;  %v2654_v33 = vor.u32 %v3184_v22, %v2651_v23  ;;  %v3188_v56 = vld [vmem:[%s3623_s23 + $0x144] sm:$0xf] }
  0x30   : > { %1487 = vmatmul.bf16.vlgmr.msra.gmra.mxu1 %v2510_v41  ;;  %v2590_v37 = vor.u32 %v3168_v30, %v2587_v31  ;;  %v3174_v41 = vld [vmem:[%s3623_s23 + $0xcc] sm:$0xf0]  ;;  %v2667_v57 = vld [vmem:[%s3623_s23 + $0x150] sm:$0xf0]  ;;  %v3191_v59 = vld [vmem:[%s3623_s23 + $0x154] sm:$0xf0] }
  0x31   : > { %1656 = vmatmul.bf16.vlgmr.msra.gmra.mxu2 %v2514_v42  ;;  %v3172_v42 = vld [vmem:[%s3623_s23 + $0xc4] sm:$0xf]  ;;  %v2602_v48 = vor.u32 %v3174_v41, %v2601_v40  ;;  %v2681_v21 = vld [vmem:[%s3623_s23 + $0x160] sm:$0xf]  ;;  %v3194_v22 = vld [vmem:[%s3623_s23 + $0x16c] sm:$0xf0] }
  0x32   : > { %1825 = vmatmul.bf16.vlgmr.msra.gmra.mxu3 %v2518_v43  ;;  %v2603_v43 = vld [vmem:[%s3623_s23 + $0xd0] sm:$0xf0] }
  0x33   : > { %v2606_v49 = vor.u32 %v3172_v42, %v2603_v43 }
  0x3f   : > { %1323 = vmatmul.bf16.gmra.mxu0 %v2522_v52  ;;  %v2617_v52 = vld [vmem:[%s3623_s23 + $0xe0] sm:$0xf] }
  0x40   : > { %1492 = vmatmul.bf16.gmra.mxu1 %v2526_v53  ;;  %v3178_v53 = vld [vmem:[%s3623_s23 + $0xec] sm:$0xf0] }
  0x41   : > { %1661 = vmatmul.bf16.gmra.mxu2 %v2530_v54  ;;  %v3176_v54 = vld [vmem:[%s3623_s23 + $0xe4] sm:$0xf]  ;;  %v2618_v60 = vor.u32 %v3178_v53, %v2617_v52  ;;  %v2665_v52 = vld [vmem:[%s3623_s23 + $0x140] sm:$0xf]  ;;  %v3190_v53 = vld [vmem:[%s3623_s23 + $0x14c] sm:$0xf0] }
  0x42   : > { %1830 = vmatmul.bf16.gmra.mxu3 %v2534_v55  ;;  %v2619_v55 = vld [vmem:[%s3623_s23 + $0xf0] sm:$0xf0] }
  0x43   : > { %v2622_v61 = vor.u32 %v3176_v54, %v2619_v55 }
  0x4f   : > { %1328 = vmatmul.bf16.gmra.mxu0 %v2538_v0  ;;  %v2633_v0 = vld [vmem:[%s3623_s23 + $0x100] sm:$0xf] }
  0x50   : > { %1497 = vmatmul.bf16.gmra.mxu1 %v2542_v1  ;;  %v3182_v1 = vld [vmem:[%s3623_s23 + $0x10c] sm:$0xf0] }
  0x51   : > { %1666 = vmatmul.bf16.gmra.mxu2 %v2546_v2  ;;  %v3180_v2 = vld [vmem:[%s3623_s23 + $0x104] sm:$0xf]  ;;  %v2634_v8 = vor.u32 %v3182_v1, %v2633_v0 }
  0x52   : > { %1835 = vmatmul.bf16.gmra.mxu3 %v2550_v3  ;;  %v2635_v3 = vld [vmem:[%s3623_s23 + $0x110] sm:$0xf0] }
  0x53   : > { %v2638_v9 = vor.u32 %v3180_v2, %v2635_v3  ;;  %v2666_v2 = vor.u32 %v3190_v53, %v2665_v52  ;;  %v2670_v3 = vor.u32 %v3188_v56, %v2667_v57 }
  0x5f   : > { %1333 = vmatmul.bf16.gmra.mxu0 %v2554_v12  ;;  %v2642_v12 = vor.u32 %v3183_v5, %v2641_v4 }
  0x60   : > { %1502 = vmatmul.bf16.gmra.mxu1 %v2558_v13  ;;  %v2646_v13 = vor.u32 %v3181_v6, %v2643_v7  ;;  %v2674_v7 = vor.u32 %v3191_v59, %v2673_v58  ;;  %v3196_v58 = vld [vmem:[%s3623_s23 + $0x184] sm:$0xf]  ;;  %v2699_v59 = vld [vmem:[%s3623_s23 + $0x190] sm:$0xf0] }
  0x61   : > { %1671 = vmatmul.bf16.gmra.mxu2 %v2562_v14 }
  0x62   : > { %1840 = vmatmul.bf16.gmra.mxu3 %v2566_v15 }
  0x6f   : > { %1338 = vmatmul.bf16.gmra.mxu0 %v2570_v24  ;;  %v2657_v24 = vld [vmem:[%s3623_s23 + $0x128] sm:$0xf] }
  0x70   : > { %1507 = vmatmul.bf16.gmra.mxu1 %v2574_v25  ;;  %v3187_v25 = vld [vmem:[%s3623_s23 + $0x134] sm:$0xf0] }
  0x71   : > { %1676 = vmatmul.bf16.gmra.mxu2 %v2578_v26  ;;  %v3185_v26 = vld [vmem:[%s3623_s23 + $0x12c] sm:$0xf] }
  0x72   : > { %1845 = vmatmul.bf16.gmra.mxu3 %v2582_v27  ;;  %v2659_v27 = vld [vmem:[%s3623_s23 + $0x138] sm:$0xf0] }
  0x7f   : > { %1343 = vmatmul.bf16.gmra.mxu0 %v2586_v36 }
  0x80   : > { %1512 = vmatmul.bf16.gmra.mxu1 %v2590_v37  ;;  %v2658_v37 = vor.u32 %v3187_v25, %v2657_v24  ;;  %v3192_v25 = vld [vmem:[%s3623_s23 + $0x164] sm:$0xf] }
  0x81   : > { %1681 = vmatmul.bf16.gmra.mxu2 %v2594_v38  ;;  %v2662_v38 = vor.u32 %v3185_v26, %v2659_v27  ;;  %v2683_v26 = vld [vmem:[%s3623_s23 + $0x170] sm:$0xf0]  ;;  %v2689_v27 = vld [vmem:[%s3623_s23 + $0x168] sm:$0xf] }
  0x82   : > { %1850 = vmatmul.bf16.gmra.mxu3 %v2598_v39 }
  0x8f   : > { %1348 = vmatmul.bf16.gmra.mxu0 %v2602_v48 }
  0x90   : > { %1517 = vmatmul.bf16.gmra.mxu1 %v2606_v49 }
  0x91   : > { %1686 = vmatmul.bf16.gmra.mxu2 %v2610_v50 }
  0x92   : > { %1855 = vmatmul.bf16.gmra.mxu3 %v2614_v51 }
  0x9f   : > { %1353 = vmatmul.bf16.gmra.mxu0 %v2618_v60  ;;  %v3189_v60 = vld [vmem:[%s3623_s23 + $0x14c] sm:$0xf] }
  0xa0   : > { %1522 = vmatmul.bf16.gmra.mxu1 %v2622_v61  ;;  %v2675_v61 = vld [vmem:[%s3623_s23 + $0x158] sm:$0xf0] }
  0xa1   : > { %1691 = vmatmul.bf16.gmra.mxu2 %v2626_v62 }
  0xa2   : > { %1860 = vmatmul.bf16.gmra.mxu3 %v2630_v63 }
  0xac   : > { %v1319_v10 = vpop.f32.mrf.mxu0 }
  0xad   : > { %v1488_v11 = vpop.f32.mrf.mxu1 }
  0xae   : > { %v1489_v14 = vadd.f32 %v1488_v11, %v1319_v10 }
  0xaf   : > { %1358 = vmatmul.bf16.gmra.mxu0 %v2634_v8  ;;  %v2678_v8 = vor.u32 %v3189_v60, %v2675_v61  ;;  %v2705_v60 = vld [vmem:[%s3623_s23 + $0x188] sm:$0xf]  ;;  %v3199_v61 = vld [vmem:[%s3623_s23 + $0x194] sm:$0xf0] }
  0xb0   : > { %1527 = vmatmul.bf16.gmra.mxu1 %v2638_v9 }
  0xb1   : > { %1696 = vmatmul.bf16.gmra.mxu2 %v2642_v12 }
  0xb2   : > { %1865 = vmatmul.bf16.gmra.mxu3 %v2646_v13 }
  0xb4   : > { %v1657_v15 = vpop.f32.mrf.mxu2  ;;  %v1321_v17 = vpop.f32.mrf.mxu0 }
  0xb5   : > { %v1826_v16 = vpop.f32.mrf.mxu3  ;;  %v1490_v18 = vpop.f32.mrf.mxu1  ;;  %v1658_v19 = vadd.f32 %v1657_v15, %v1489_v14 }
  0xb6   : > { %v1491_v28 = vadd.f32 %v1490_v18, %v1321_v17 }
  0xb7   : > { %v1827_v29 = vadd.f32 %v1826_v16, %v1658_v19 }
  0xb9   : > { %v2183_v40 = vmul.f32 %v1827_v29, %v1827_v29 }
  0xbc   : > { %v1659_v30 = vpop.f32.mrf.mxu2  ;;  %v1324_v35 = vpop.f32.mrf.mxu0 }
  0xbd   : > { %v1828_v31 = vpop.f32.mrf.mxu3  ;;  %v1660_v34 = vadd.f32 %v1659_v30, %v1491_v28  ;;  %v1493_v36 = vpop.f32.mrf.mxu1  ;;  %v3195_v28 = vld [vmem:[%s3623_s23 + $0x174] sm:$0xf0]  ;;  %v2691_v30 = vld [vmem:[%s3623_s23 + $0x178] sm:$0xf0] }
  0xbe   : > { %v1494_v41 = vadd.f32 %v1493_v36, %v1324_v35  ;;  %v2682_v35 = vor.u32 %v3194_v22, %v2681_v21  ;;  %v2686_v36 = vor.u32 %v3192_v25, %v2683_v26 }
  0xbf   : > { %v1829_v39 = vadd.f32 %v1828_v31, %v1660_v34  ;;  %1363 = vmatmul.bf16.gmra.mxu0 %v2650_v32 }
  0xc0   : > { %1532 = vmatmul.bf16.gmra.mxu1 %v2654_v33 }
  0xc1   : > { %v3311_v42 = vpack.c.bf16 %v1829_v39, %v1827_v29  ;;  %v2114_v43 = vadd.f32 %v1829_v39, %v1827_v29  ;;  %v2184_v44 = vmul.f32 %v1829_v39, %v1829_v39  ;;  %1701 = vmatmul.bf16.gmra.mxu2 %v2658_v37  ;;  %v3193_v29 = vld [vmem:[%s3623_s23 + $0x16c] sm:$0xf] }
  0xc2   : > { %1870 = vmatmul.bf16.gmra.mxu3 %v2662_v38 }
  0xc3   : > { %3312 = vst [vmem:[%s3718_s26] sm:$0xff] %v3311_v42   ;;  %v2247_v45 = vadd.f32 %v2184_v44, %v2183_v40  ;;  %v2690_v40 = vor.u32 %v3195_v28, %v2689_v27  ;;  %v3200_v27 = vld [vmem:[%s3623_s23 + $0x1a4] sm:$0xf]  ;;  %v2715_v28 = vld [vmem:[%s3623_s23 + $0x1b0] sm:$0xf0] }
  0xc4   : > { %v1662_v46 = vpop.f32.mrf.mxu2  ;;  %v1326_v49 = vpop.f32.mrf.mxu0 }
  0xc5   : > { %v1831_v47 = vpop.f32.mrf.mxu3  ;;  %v1663_v48 = vadd.f32 %v1662_v46, %v1494_v41  ;;  %v1495_v50 = vpop.f32.mrf.mxu1  ;;  %v2694_v41 = vor.u32 %v3193_v29, %v2691_v30  ;;  %v2721_v29 = vld [vmem:[%s3623_s23 + $0x1a8] sm:$0xf]  ;;  %v3203_v30 = vld [vmem:[%s3623_s23 + $0x1b4] sm:$0xf0] }
  0xc6   : > { %v1496_v63 = vadd.f32 %v1495_v50, %v1326_v49 }
  0xc7   : > { %v1832_v51 = vadd.f32 %v1831_v47, %v1663_v48 }
  0xc9   : > { %v2115_v54 = vadd.f32 %v2114_v43, %v1832_v51  ;;  %v2185_v55 = vmul.f32 %v1832_v51, %v1832_v51 }
  0xcb   : > { %v2248_v62 = vadd.f32 %v2247_v45, %v2185_v55  ;;  %v3198_v55 = vld [vmem:[%s3623_s23 + $0x18c] sm:$0xf0] }
  0xcc   : > { %v1664_v0 = vpop.f32.mrf.mxu2  ;;  %v1329_v5 = vpop.f32.mrf.mxu0 }
  0xcd   : > { %v1833_v1 = vpop.f32.mrf.mxu3  ;;  %v1665_v4 = vadd.f32 %v1664_v0, %v1496_v63  ;;  %v1498_v6 = vpop.f32.mrf.mxu1  ;;  %v2707_v63 = vld [vmem:[%s3623_s23 + $0x198] sm:$0xf0] }
  0xce   : > { %v1499_v10 = vadd.f32 %v1498_v6, %v1329_v5  ;;  %v2702_v5 = vor.u32 %v3196_v58, %v2699_v59 }
  0xcf   : > { %v1834_v9 = vadd.f32 %v1833_v1, %v1665_v4  ;;  %1368 = vmatmul.bf16.gmra.mxu0 %v2666_v2 }
  0xd0   : > { %1537 = vmatmul.bf16.gmra.mxu1 %v2670_v3 }
  0xd1   : > { %v3316_v11 = vpack.c.bf16 %v1834_v9, %v1832_v51  ;;  %v2116_v12 = vadd.f32 %v2115_v54, %v1834_v9  ;;  %v2186_v13 = vmul.f32 %v1834_v9, %v1834_v9  ;;  %1706 = vmatmul.bf16.gmra.mxu2 %v2674_v7  ;;  %v2697_v54 = vld [vmem:[%s3623_s23 + $0x180] sm:$0xf]  ;;  %v2706_v9 = vor.u32 %v3199_v61, %v2705_v60  ;;  %v3204_v60 = vld [vmem:[%s3623_s23 + $0x1c4] sm:$0xf]  ;;  %v2731_v61 = vld [vmem:[%s3623_s23 + $0x1d0] sm:$0xf0] }
  0xd2   : > { %1875 = vmatmul.bf16.gmra.mxu3 %v2678_v8  ;;  %v2698_v4 = vor.u32 %v3198_v55, %v2697_v54 }
  0xd3   : > { %3468 = vst [vmem:[%s3718_s26 + $0x8] sm:$0xff] %v3316_v11   ;;  %v2249_v14 = vadd.f32 %v2248_v62, %v2186_v13  ;;  %v3197_v62 = vld [vmem:[%s3623_s23 + $0x18c] sm:$0xf] }
  0xd4   : > { %v1667_v15 = vpop.f32.mrf.mxu2  ;;  %v1331_v18 = vpop.f32.mrf.mxu0 }
  0xd5   : > { %v1836_v16 = vpop.f32.mrf.mxu3  ;;  %v1668_v17 = vadd.f32 %v1667_v15, %v1499_v10  ;;  %v1500_v19 = vpop.f32.mrf.mxu1  ;;  %v2710_v10 = vor.u32 %v3197_v62, %v2707_v63  ;;  %v2737_v62 = vld [vmem:[%s3623_s23 + $0x1c8] sm:$0xf]  ;;  %v3207_v63 = vld [vmem:[%s3623_s23 + $0x1d4] sm:$0xf0] }
  0xd6   : > { %v1501_v32 = vadd.f32 %v1500_v19, %v1331_v18 }
  0xd7   : > { %v1837_v20 = vadd.f32 %v1836_v16, %v1668_v17 }
  0xd9   : > { %v2117_v23 = vadd.f32 %v2116_v12, %v1837_v20  ;;  %v2187_v24 = vmul.f32 %v1837_v20, %v1837_v20 }
  0xdb   : > { %v2250_v31 = vadd.f32 %v2249_v14, %v2187_v24  ;;  %v3202_v24 = vld [vmem:[%s3623_s23 + $0x1ac] sm:$0xf0] }
  0xdc   : > { %v1669_v33 = vpop.f32.mrf.mxu2  ;;  %v1334_v38 = vpop.f32.mrf.mxu0 }
  0xdd   : > { %v1838_v34 = vpop.f32.mrf.mxu3  ;;  %v1670_v37 = vadd.f32 %v1669_v33, %v1501_v32  ;;  %v1503_v39 = vpop.f32.mrf.mxu1  ;;  %v2723_v32 = vld [vmem:[%s3623_s23 + $0x1b8] sm:$0xf0] }
  0xde   : > { %v1504_v43 = vadd.f32 %v1503_v39, %v1334_v38  ;;  %v2718_v38 = vor.u32 %v3200_v27, %v2715_v28 }
  0xdf   : > { %v1839_v42 = vadd.f32 %v1838_v34, %v1670_v37  ;;  %1373 = vmatmul.bf16.gmra.mxu0 %v2682_v35 }
  0xe0   : > { %1542 = vmatmul.bf16.gmra.mxu1 %v2686_v36 }
  0xe1   : > { %v3321_v44 = vpack.c.bf16 %v1839_v42, %v1837_v20  ;;  %v2118_v45 = vadd.f32 %v2117_v23, %v1839_v42  ;;  %v2188_v46 = vmul.f32 %v1839_v42, %v1839_v42  ;;  %1711 = vmatmul.bf16.gmra.mxu2 %v2690_v40  ;;  %v2713_v23 = vld [vmem:[%s3623_s23 + $0x1a0] sm:$0xf]  ;;  %v2722_v42 = vor.u32 %v3203_v30, %v2721_v29  ;;  %v3208_v29 = vld [vmem:[%s3623_s23 + $0x1e4] sm:$0xf]  ;;  %v2747_v30 = vld [vmem:[%s3623_s23 + $0x1f0] sm:$0xf0] }
  0xe2   : > { %1880 = vmatmul.bf16.gmra.mxu3 %v2694_v41  ;;  %v2714_v37 = vor.u32 %v3202_v24, %v2713_v23 }
  0xe3   : > { %3469 = vst [vmem:[%s3718_s26 + $0x10] sm:$0xff] %v3321_v44   ;;  %v2251_v47 = vadd.f32 %v2250_v31, %v2188_v46  ;;  %v3201_v31 = vld [vmem:[%s3623_s23 + $0x1ac] sm:$0xf] }
  0xe4   : > { %v1672_v48 = vpop.f32.mrf.mxu2  ;;  %v1336_v51 = vpop.f32.mrf.mxu0 }
  0xe5   : > { %v1841_v49 = vpop.f32.mrf.mxu3  ;;  %v1673_v50 = vadd.f32 %v1672_v48, %v1504_v43  ;;  %v1505_v52 = vpop.f32.mrf.mxu1  ;;  %v2726_v43 = vor.u32 %v3201_v31, %v2723_v32  ;;  %v2753_v31 = vld [vmem:[%s3623_s23 + $0x1e8] sm:$0xf]  ;;  %v3211_v32 = vld [vmem:[%s3623_s23 + $0x1f4] sm:$0xf0] }
  0xe6   : > { %v1506_v1 = vadd.f32 %v1505_v52, %v1336_v51 }
  0xe7   : > { %v1842_v53 = vadd.f32 %v1841_v49, %v1673_v50 }
  0xe9   : > { %v2119_v56 = vadd.f32 %v2118_v45, %v1842_v53  ;;  %v2189_v57 = vmul.f32 %v1842_v53, %v1842_v53 }
  0xeb   : > { %v2252_v0 = vadd.f32 %v2251_v47, %v2189_v57  ;;  %v3206_v57 = vld [vmem:[%s3623_s23 + $0x1cc] sm:$0xf0] }
  0xec   : > { %v1674_v2 = vpop.f32.mrf.mxu2  ;;  %v1339_v7 = vpop.f32.mrf.mxu0 }
  0xed   : > { %v1843_v3 = vpop.f32.mrf.mxu3  ;;  %v1675_v6 = vadd.f32 %v1674_v2, %v1506_v1  ;;  %v1508_v8 = vpop.f32.mrf.mxu1  ;;  %v2739_v1 = vld [vmem:[%s3623_s23 + $0x1d8] sm:$0xf0] }
  0xee   : > { %v1509_v12 = vadd.f32 %v1508_v8, %v1339_v7  ;;  %v2734_v7 = vor.u32 %v3204_v60, %v2731_v61 }
  0xef   : > { %v1844_v11 = vadd.f32 %v1843_v3, %v1675_v6  ;;  %1378 = vmatmul.bf16.gmra.mxu0 %v2698_v4 }
  0xf0   : > { %1547 = vmatmul.bf16.gmra.mxu1 %v2702_v5 }
  0xf1   : > { %v3326_v13 = vpack.c.bf16 %v1844_v11, %v1842_v53  ;;  %v2120_v14 = vadd.f32 %v2119_v56, %v1844_v11  ;;  %v2190_v15 = vmul.f32 %v1844_v11, %v1844_v11  ;;  %1716 = vmatmul.bf16.gmra.mxu2 %v2706_v9  ;;  %v2729_v56 = vld [vmem:[%s3623_s23 + $0x1c0] sm:$0xf]  ;;  %v2738_v11 = vor.u32 %v3207_v63, %v2737_v62  ;;  %v3212_v62 = vld [vmem:[%s3623_s23 + $0x204] sm:$0xf]  ;;  %v2763_v63 = vld [vmem:[%s3623_s23 + $0x210] sm:$0xf0] }
  0xf2   : > { %1885 = vmatmul.bf16.gmra.mxu3 %v2710_v10  ;;  %v2730_v6 = vor.u32 %v3206_v57, %v2729_v56 }
  0xf3   : > { %3470 = vst [vmem:[%s3718_s26 + $0x18] sm:$0xff] %v3326_v13   ;;  %v2253_v16 = vadd.f32 %v2252_v0, %v2190_v15  ;;  %v3205_v0 = vld [vmem:[%s3623_s23 + $0x1cc] sm:$0xf] }
  0xf4   : > { %v1677_v17 = vpop.f32.mrf.mxu2  ;;  %v1341_v20 = vpop.f32.mrf.mxu0 }
  0xf5   : > { %v1846_v18 = vpop.f32.mrf.mxu3  ;;  %v1678_v19 = vadd.f32 %v1677_v17, %v1509_v12  ;;  %v1510_v21 = vpop.f32.mrf.mxu1  ;;  %v2742_v12 = vor.u32 %v3205_v0, %v2739_v1  ;;  %v2769_v0 = vld [vmem:[%s3623_s23 + $0x208] sm:$0xf]  ;;  %v3215_v1 = vld [vmem:[%s3623_s23 + $0x214] sm:$0xf0] }
  0xf6   : > { %v1511_v34 = vadd.f32 %v1510_v21, %v1341_v20 }
  0xf7   : > { %v1847_v22 = vadd.f32 %v1846_v18, %v1678_v19 }
  0xf9   : > { %v2121_v25 = vadd.f32 %v2120_v14, %v1847_v22  ;;  %v2191_v26 = vmul.f32 %v1847_v22, %v1847_v22 }
  0xfb   : > { %v2254_v33 = vadd.f32 %v2253_v16, %v2191_v26  ;;  %v3210_v26 = vld [vmem:[%s3623_s23 + $0x1ec] sm:$0xf0] }
  0xfc   : > { %v1679_v35 = vpop.f32.mrf.mxu2  ;;  %v1344_v40 = vpop.f32.mrf.mxu0 }
  0xfd   : > { %v1848_v36 = vpop.f32.mrf.mxu3  ;;  %v1680_v39 = vadd.f32 %v1679_v35, %v1511_v34  ;;  %v1513_v41 = vpop.f32.mrf.mxu1  ;;  %v2755_v34 = vld [vmem:[%s3623_s23 + $0x1f8] sm:$0xf0] }
  0xfe   : > { %v1514_v45 = vadd.f32 %v1513_v41, %v1344_v40  ;;  %v2750_v40 = vor.u32 %v3208_v29, %v2747_v30 }
  0xff   : > { %v1849_v44 = vadd.f32 %v1848_v36, %v1680_v39  ;;  %1383 = vmatmul.bf16.gmra.mxu0 %v2714_v37 }
 0x100   : > { %1552 = vmatmul.bf16.gmra.mxu1 %v2718_v38 }
 0x101   : > { %v3331_v46 = vpack.c.bf16 %v1849_v44, %v1847_v22  ;;  %v2122_v47 = vadd.f32 %v2121_v25, %v1849_v44  ;;  %v2192_v48 = vmul.f32 %v1849_v44, %v1849_v44  ;;  %1721 = vmatmul.bf16.gmra.mxu2 %v2722_v42  ;;  %v2745_v25 = vld [vmem:[%s3623_s23 + $0x1e0] sm:$0xf]  ;;  %v2754_v44 = vor.u32 %v3211_v32, %v2753_v31  ;;  %v3216_v31 = vld [vmem:[%s3623_s23 + $0x224] sm:$0xf]  ;;  %v2779_v32 = vld [vmem:[%s3623_s23 + $0x230] sm:$0xf0] }
 0x102   : > { %1890 = vmatmul.bf16.gmra.mxu3 %v2726_v43  ;;  %v2746_v39 = vor.u32 %v3210_v26, %v2745_v25 }
 0x103   : > { %3471 = vst [vmem:[%s3718_s26 + $0x20] sm:$0xff] %v3331_v46   ;;  %v2255_v49 = vadd.f32 %v2254_v33, %v2192_v48  ;;  %v3209_v33 = vld [vmem:[%s3623_s23 + $0x1ec] sm:$0xf] }
 0x104   : > { %v1682_v50 = vpop.f32.mrf.mxu2  ;;  %v1346_v53 = vpop.f32.mrf.mxu0 }
 0x105   : > { %v1851_v51 = vpop.f32.mrf.mxu3  ;;  %v1683_v52 = vadd.f32 %v1682_v50, %v1514_v45  ;;  %v1515_v54 = vpop.f32.mrf.mxu1  ;;  %v2758_v45 = vor.u32 %v3209_v33, %v2755_v34  ;;  %v2785_v33 = vld [vmem:[%s3623_s23 + $0x228] sm:$0xf]  ;;  %v3219_v34 = vld [vmem:[%s3623_s23 + $0x234] sm:$0xf0] }
 0x106   : > { %v1516_v3 = vadd.f32 %v1515_v54, %v1346_v53 }
 0x107   : > { %v1852_v55 = vadd.f32 %v1851_v51, %v1683_v52 }
 0x109   : > { %v2123_v58 = vadd.f32 %v2122_v47, %v1852_v55  ;;  %v2193_v59 = vmul.f32 %v1852_v55, %v1852_v55 }
 0x10b   : > { %v2256_v2 = vadd.f32 %v2255_v49, %v2193_v59  ;;  %v3214_v59 = vld [vmem:[%s3623_s23 + $0x20c] sm:$0xf0] }
 0x10c   : > { %v1684_v4 = vpop.f32.mrf.mxu2  ;;  %v1349_v9 = vpop.f32.mrf.mxu0 }
 0x10d   : > { %v1853_v5 = vpop.f32.mrf.mxu3  ;;  %v1685_v8 = vadd.f32 %v1684_v4, %v1516_v3  ;;  %v1518_v10 = vpop.f32.mrf.mxu1  ;;  %v2771_v3 = vld [vmem:[%s3623_s23 + $0x218] sm:$0xf0] }
 0x10e   : > { %v1519_v14 = vadd.f32 %v1518_v10, %v1349_v9  ;;  %v2766_v9 = vor.u32 %v3212_v62, %v2763_v63 }
 0x10f   : > { %v1854_v13 = vadd.f32 %v1853_v5, %v1685_v8  ;;  %1388 = vmatmul.bf16.gmra.mxu0 %v2730_v6 }
 0x110   : > { %1557 = vmatmul.bf16.gmra.mxu1 %v2734_v7 }
 0x111   : > { %v3336_v15 = vpack.c.bf16 %v1854_v13, %v1852_v55  ;;  %v2124_v16 = vadd.f32 %v2123_v58, %v1854_v13  ;;  %v2194_v17 = vmul.f32 %v1854_v13, %v1854_v13  ;;  %1726 = vmatmul.bf16.gmra.mxu2 %v2738_v11  ;;  %v2761_v58 = vld [vmem:[%s3623_s23 + $0x200] sm:$0xf]  ;;  %v2770_v13 = vor.u32 %v3215_v1, %v2769_v0  ;;  %v3220_v0 = vld [vmem:[%s3623_s23 + $0x244] sm:$0xf]  ;;  %v2795_v1 = vld [vmem:[%s3623_s23 + $0x250] sm:$0xf0] }
 0x112   : > { %1895 = vmatmul.bf16.gmra.mxu3 %v2742_v12  ;;  %v2762_v8 = vor.u32 %v3214_v59, %v2761_v58 }
 0x113   : > { %3472 = vst [vmem:[%s3718_s26 + $0x28] sm:$0xff] %v3336_v15   ;;  %v2257_v18 = vadd.f32 %v2256_v2, %v2194_v17  ;;  %v3213_v2 = vld [vmem:[%s3623_s23 + $0x20c] sm:$0xf] }
 0x114   : > { %v1687_v19 = vpop.f32.mrf.mxu2  ;;  %v1351_v22 = vpop.f32.mrf.mxu0 }
 0x115   : > { %v1856_v20 = vpop.f32.mrf.mxu3  ;;  %v1688_v21 = vadd.f32 %v1687_v19, %v1519_v14  ;;  %v1520_v23 = vpop.f32.mrf.mxu1  ;;  %v2774_v14 = vor.u32 %v3213_v2, %v2771_v3  ;;  %v2801_v2 = vld [vmem:[%s3623_s23 + $0x248] sm:$0xf]  ;;  %v3223_v3 = vld [vmem:[%s3623_s23 + $0x254] sm:$0xf0] }
 0x116   : > { %v1521_v36 = vadd.f32 %v1520_v23, %v1351_v22 }
 0x117   : > { %v1857_v24 = vadd.f32 %v1856_v20, %v1688_v21 }
 0x119   : > { %v2125_v27 = vadd.f32 %v2124_v16, %v1857_v24  ;;  %v2195_v28 = vmul.f32 %v1857_v24, %v1857_v24 }
 0x11b   : > { %v2258_v35 = vadd.f32 %v2257_v18, %v2195_v28  ;;  %v3218_v28 = vld [vmem:[%s3623_s23 + $0x22c] sm:$0xf0] }
 0x11c   : > { %v1689_v37 = vpop.f32.mrf.mxu2  ;;  %v1354_v42 = vpop.f32.mrf.mxu0 }
 0x11d   : > { %v1858_v38 = vpop.f32.mrf.mxu3  ;;  %v1690_v41 = vadd.f32 %v1689_v37, %v1521_v36  ;;  %v1523_v43 = vpop.f32.mrf.mxu1  ;;  %v2787_v36 = vld [vmem:[%s3623_s23 + $0x238] sm:$0xf0] }
 0x11e   : > { %v1524_v47 = vadd.f32 %v1523_v43, %v1354_v42  ;;  %v2782_v42 = vor.u32 %v3216_v31, %v2779_v32 }
 0x11f   : > { %v1859_v46 = vadd.f32 %v1858_v38, %v1690_v41  ;;  %1393 = vmatmul.bf16.gmra.mxu0 %v2746_v39 }
 0x120   : > { %1562 = vmatmul.bf16.gmra.mxu1 %v2750_v40 }
 0x121   : > { %v3341_v48 = vpack.c.bf16 %v1859_v46, %v1857_v24  ;;  %v2126_v49 = vadd.f32 %v2125_v27, %v1859_v46  ;;  %v2196_v50 = vmul.f32 %v1859_v46, %v1859_v46  ;;  %1731 = vmatmul.bf16.gmra.mxu2 %v2754_v44  ;;  %v2777_v27 = vld [vmem:[%s3623_s23 + $0x220] sm:$0xf]  ;;  %v2786_v46 = vor.u32 %v3219_v34, %v2785_v33  ;;  %v3224_v33 = vld [vmem:[%s3623_s23 + $0x264] sm:$0xf]  ;;  %v2811_v34 = vld [vmem:[%s3623_s23 + $0x270] sm:$0xf0] }
 0x122   : > { %1900 = vmatmul.bf16.gmra.mxu3 %v2758_v45  ;;  %v2778_v41 = vor.u32 %v3218_v28, %v2777_v27 }
 0x123   : > { %3473 = vst [vmem:[%s3718_s26 + $0x30] sm:$0xff] %v3341_v48   ;;  %v2259_v51 = vadd.f32 %v2258_v35, %v2196_v50  ;;  %v3217_v35 = vld [vmem:[%s3623_s23 + $0x22c] sm:$0xf] }
 0x124   : > { %v1692_v52 = vpop.f32.mrf.mxu2  ;;  %v1356_v55 = vpop.f32.mrf.mxu0 }
 0x125   : > { %v1861_v53 = vpop.f32.mrf.mxu3  ;;  %v1693_v54 = vadd.f32 %v1692_v52, %v1524_v47  ;;  %v1525_v56 = vpop.f32.mrf.mxu1  ;;  %v2790_v47 = vor.u32 %v3217_v35, %v2787_v36  ;;  %v2817_v35 = vld [vmem:[%s3623_s23 + $0x268] sm:$0xf]  ;;  %v3227_v36 = vld [vmem:[%s3623_s23 + $0x274] sm:$0xf0] }
 0x126   : > { %v1526_v5 = vadd.f32 %v1525_v56, %v1356_v55 }
 0x127   : > { %v1862_v57 = vadd.f32 %v1861_v53, %v1693_v54 }
 0x129   : > { %v2127_v60 = vadd.f32 %v2126_v49, %v1862_v57  ;;  %v2197_v61 = vmul.f32 %v1862_v57, %v1862_v57 }
 0x12b   : > { %v2260_v4 = vadd.f32 %v2259_v51, %v2197_v61  ;;  %v3222_v61 = vld [vmem:[%s3623_s23 + $0x24c] sm:$0xf0] }
 0x12c   : > { %v1694_v6 = vpop.f32.mrf.mxu2  ;;  %v1359_v11 = vpop.f32.mrf.mxu0 }
 0x12d   : > { %v1863_v7 = vpop.f32.mrf.mxu3  ;;  %v1695_v10 = vadd.f32 %v1694_v6, %v1526_v5  ;;  %v1528_v12 = vpop.f32.mrf.mxu1  ;;  %v2803_v5 = vld [vmem:[%s3623_s23 + $0x258] sm:$0xf0] }
 0x12e   : > { %v1529_v16 = vadd.f32 %v1528_v12, %v1359_v11  ;;  %v2798_v11 = vor.u32 %v3220_v0, %v2795_v1 }
 0x12f   : > { %v1864_v15 = vadd.f32 %v1863_v7, %v1695_v10  ;;  %1398 = vmatmul.bf16.gmra.mxu0 %v2762_v8 }
 0x130   : > { %1567 = vmatmul.bf16.gmra.mxu1 %v2766_v9 }
 0x131   : > { %v3346_v17 = vpack.c.bf16 %v1864_v15, %v1862_v57  ;;  %v2128_v18 = vadd.f32 %v2127_v60, %v1864_v15  ;;  %v2198_v19 = vmul.f32 %v1864_v15, %v1864_v15  ;;  %1736 = vmatmul.bf16.gmra.mxu2 %v2770_v13  ;;  %v2793_v60 = vld [vmem:[%s3623_s23 + $0x240] sm:$0xf]  ;;  %v2802_v15 = vor.u32 %v3223_v3, %v2801_v2  ;;  %v3228_v2 = vld [vmem:[%s3623_s23 + $0x284] sm:$0xf]  ;;  %v2827_v3 = vld [vmem:[%s3623_s23 + $0x290] sm:$0xf0] }
 0x132   : > { %1905 = vmatmul.bf16.gmra.mxu3 %v2774_v14  ;;  %v2794_v10 = vor.u32 %v3222_v61, %v2793_v60 }
 0x133   : > { %3474 = vst [vmem:[%s3718_s26 + $0x38] sm:$0xff] %v3346_v17   ;;  %v2261_v20 = vadd.f32 %v2260_v4, %v2198_v19  ;;  %v3221_v4 = vld [vmem:[%s3623_s23 + $0x24c] sm:$0xf] }
 0x134   : > { %v1697_v21 = vpop.f32.mrf.mxu2  ;;  %v1361_v24 = vpop.f32.mrf.mxu0 }
 0x135   : > { %v1866_v22 = vpop.f32.mrf.mxu3  ;;  %v1698_v23 = vadd.f32 %v1697_v21, %v1529_v16  ;;  %v1530_v25 = vpop.f32.mrf.mxu1  ;;  %v2806_v16 = vor.u32 %v3221_v4, %v2803_v5  ;;  %v2833_v4 = vld [vmem:[%s3623_s23 + $0x288] sm:$0xf]  ;;  %v3231_v5 = vld [vmem:[%s3623_s23 + $0x294] sm:$0xf0] }
 0x136   : > { %v1531_v38 = vadd.f32 %v1530_v25, %v1361_v24 }
 0x137   : > { %v1867_v26 = vadd.f32 %v1866_v22, %v1698_v23 }
 0x139   : > { %v2129_v29 = vadd.f32 %v2128_v18, %v1867_v26  ;;  %v2199_v30 = vmul.f32 %v1867_v26, %v1867_v26 }
 0x13b   : > { %v2262_v37 = vadd.f32 %v2261_v20, %v2199_v30  ;;  %v3226_v30 = vld [vmem:[%s3623_s23 + $0x26c] sm:$0xf0] }
 0x13c   : > { %v1699_v39 = vpop.f32.mrf.mxu2  ;;  %v1364_v44 = vpop.f32.mrf.mxu0 }
 0x13d   : > { %v1868_v40 = vpop.f32.mrf.mxu3  ;;  %v1700_v43 = vadd.f32 %v1699_v39, %v1531_v38  ;;  %v1533_v45 = vpop.f32.mrf.mxu1  ;;  %v2819_v38 = vld [vmem:[%s3623_s23 + $0x278] sm:$0xf0] }
 0x13e   : > { %v1534_v49 = vadd.f32 %v1533_v45, %v1364_v44  ;;  %v2814_v44 = vor.u32 %v3224_v33, %v2811_v34 }
 0x13f   : > { %v1869_v48 = vadd.f32 %v1868_v40, %v1700_v43  ;;  %1403 = vmatmul.bf16.gmra.mxu0 %v2778_v41 }
 0x140   : > { %1572 = vmatmul.bf16.gmra.mxu1 %v2782_v42 }
 0x141   : > { %v3351_v50 = vpack.c.bf16 %v1869_v48, %v1867_v26  ;;  %v2130_v51 = vadd.f32 %v2129_v29, %v1869_v48  ;;  %v2200_v52 = vmul.f32 %v1869_v48, %v1869_v48  ;;  %1741 = vmatmul.bf16.gmra.mxu2 %v2786_v46  ;;  %v2809_v29 = vld [vmem:[%s3623_s23 + $0x260] sm:$0xf]  ;;  %v2818_v48 = vor.u32 %v3227_v36, %v2817_v35  ;;  %v3232_v35 = vld [vmem:[%s3623_s23 + $0x2a4] sm:$0xf]  ;;  %v2843_v36 = vld [vmem:[%s3623_s23 + $0x2b0] sm:$0xf0] }
 0x142   : > { %1910 = vmatmul.bf16.gmra.mxu3 %v2790_v47  ;;  %v2810_v43 = vor.u32 %v3226_v30, %v2809_v29 }
 0x143   : > { %3475 = vst [vmem:[%s3718_s26 + $0x40] sm:$0xff] %v3351_v50   ;;  %v2263_v53 = vadd.f32 %v2262_v37, %v2200_v52  ;;  %v3225_v37 = vld [vmem:[%s3623_s23 + $0x26c] sm:$0xf] }
 0x144   : > { %v1702_v54 = vpop.f32.mrf.mxu2  ;;  %v1366_v57 = vpop.f32.mrf.mxu0 }
 0x145   : > { %v1871_v55 = vpop.f32.mrf.mxu3  ;;  %v1703_v56 = vadd.f32 %v1702_v54, %v1534_v49  ;;  %v1535_v58 = vpop.f32.mrf.mxu1  ;;  %v2822_v49 = vor.u32 %v3225_v37, %v2819_v38  ;;  %v2849_v37 = vld [vmem:[%s3623_s23 + $0x2a8] sm:$0xf]  ;;  %v3235_v38 = vld [vmem:[%s3623_s23 + $0x2b4] sm:$0xf0] }
 0x146   : > { %v1536_v7 = vadd.f32 %v1535_v58, %v1366_v57 }
 0x147   : > { %v1872_v59 = vadd.f32 %v1871_v55, %v1703_v56 }
 0x149   : > { %v2131_v62 = vadd.f32 %v2130_v51, %v1872_v59  ;;  %v2201_v63 = vmul.f32 %v1872_v59, %v1872_v59 }
 0x14b   : > { %v2264_v6 = vadd.f32 %v2263_v53, %v2201_v63  ;;  %v3230_v63 = vld [vmem:[%s3623_s23 + $0x28c] sm:$0xf0] }
 0x14c   : > { %v1704_v8 = vpop.f32.mrf.mxu2  ;;  %v1369_v13 = vpop.f32.mrf.mxu0 }
 0x14d   : > { %v1873_v9 = vpop.f32.mrf.mxu3  ;;  %v1705_v12 = vadd.f32 %v1704_v8, %v1536_v7  ;;  %v1538_v14 = vpop.f32.mrf.mxu1  ;;  %v2835_v7 = vld [vmem:[%s3623_s23 + $0x298] sm:$0xf0] }
 0x14e   : > { %v1539_v18 = vadd.f32 %v1538_v14, %v1369_v13  ;;  %v2830_v13 = vor.u32 %v3228_v2, %v2827_v3 }
 0x14f   : > { %v1874_v17 = vadd.f32 %v1873_v9, %v1705_v12  ;;  %1408 = vmatmul.bf16.gmra.mxu0 %v2794_v10 }
 0x150   : > { %1577 = vmatmul.bf16.gmra.mxu1 %v2798_v11 }
 0x151   : > { %v3356_v19 = vpack.c.bf16 %v1874_v17, %v1872_v59  ;;  %v2132_v20 = vadd.f32 %v2131_v62, %v1874_v17  ;;  %v2202_v21 = vmul.f32 %v1874_v17, %v1874_v17  ;;  %1746 = vmatmul.bf16.gmra.mxu2 %v2802_v15  ;;  %v2825_v62 = vld [vmem:[%s3623_s23 + $0x280] sm:$0xf]  ;;  %v2834_v17 = vor.u32 %v3231_v5, %v2833_v4  ;;  %v3236_v4 = vld [vmem:[%s3623_s23 + $0x2c4] sm:$0xf]  ;;  %v2859_v5 = vld [vmem:[%s3623_s23 + $0x2d0] sm:$0xf0] }
 0x152   : > { %1915 = vmatmul.bf16.gmra.mxu3 %v2806_v16  ;;  %v2826_v12 = vor.u32 %v3230_v63, %v2825_v62 }
 0x153   : > { %3476 = vst [vmem:[%s3718_s26 + $0x48] sm:$0xff] %v3356_v19   ;;  %v2265_v22 = vadd.f32 %v2264_v6, %v2202_v21  ;;  %v3229_v6 = vld [vmem:[%s3623_s23 + $0x28c] sm:$0xf] }
 0x154   : > { %v1707_v23 = vpop.f32.mrf.mxu2  ;;  %v1371_v26 = vpop.f32.mrf.mxu0 }
 0x155   : > { %v1876_v24 = vpop.f32.mrf.mxu3  ;;  %v1708_v25 = vadd.f32 %v1707_v23, %v1539_v18  ;;  %v1540_v27 = vpop.f32.mrf.mxu1  ;;  %v2838_v18 = vor.u32 %v3229_v6, %v2835_v7  ;;  %v2865_v6 = vld [vmem:[%s3623_s23 + $0x2c8] sm:$0xf]  ;;  %v3239_v7 = vld [vmem:[%s3623_s23 + $0x2d4] sm:$0xf0] }
 0x156   : > { %v1541_v40 = vadd.f32 %v1540_v27, %v1371_v26 }
 0x157   : > { %v1877_v28 = vadd.f32 %v1876_v24, %v1708_v25 }
 0x159   : > { %v2133_v31 = vadd.f32 %v2132_v20, %v1877_v28  ;;  %v2203_v32 = vmul.f32 %v1877_v28, %v1877_v28 }
 0x15b   : > { %v2266_v39 = vadd.f32 %v2265_v22, %v2203_v32  ;;  %v3234_v32 = vld [vmem:[%s3623_s23 + $0x2ac] sm:$0xf0] }
 0x15c   : > { %v1709_v41 = vpop.f32.mrf.mxu2  ;;  %v1374_v46 = vpop.f32.mrf.mxu0 }
 0x15d   : > { %v1878_v42 = vpop.f32.mrf.mxu3  ;;  %v1710_v45 = vadd.f32 %v1709_v41, %v1541_v40  ;;  %v1543_v47 = vpop.f32.mrf.mxu1  ;;  %v2851_v40 = vld [vmem:[%s3623_s23 + $0x2b8] sm:$0xf0] }
 0x15e   : > { %v1544_v51 = vadd.f32 %v1543_v47, %v1374_v46  ;;  %v2846_v46 = vor.u32 %v3232_v35, %v2843_v36 }
 0x15f   : > { %v1879_v50 = vadd.f32 %v1878_v42, %v1710_v45  ;;  %1413 = vmatmul.bf16.gmra.mxu0 %v2810_v43 }
 0x160   : > { %1582 = vmatmul.bf16.gmra.mxu1 %v2814_v44 }
 0x161   : > { %v3361_v52 = vpack.c.bf16 %v1879_v50, %v1877_v28  ;;  %v2134_v53 = vadd.f32 %v2133_v31, %v1879_v50  ;;  %v2204_v54 = vmul.f32 %v1879_v50, %v1879_v50  ;;  %1751 = vmatmul.bf16.gmra.mxu2 %v2818_v48  ;;  %v2841_v31 = vld [vmem:[%s3623_s23 + $0x2a0] sm:$0xf]  ;;  %v2850_v50 = vor.u32 %v3235_v38, %v2849_v37  ;;  %v3240_v37 = vld [vmem:[%s3623_s23 + $0x2e4] sm:$0xf]  ;;  %v2875_v38 = vld [vmem:[%s3623_s23 + $0x2f0] sm:$0xf0] }
 0x162   : > { %1920 = vmatmul.bf16.gmra.mxu3 %v2822_v49  ;;  %v2842_v45 = vor.u32 %v3234_v32, %v2841_v31 }
 0x163   : > { %3477 = vst [vmem:[%s3718_s26 + $0x50] sm:$0xff] %v3361_v52   ;;  %v2267_v55 = vadd.f32 %v2266_v39, %v2204_v54  ;;  %v3233_v39 = vld [vmem:[%s3623_s23 + $0x2ac] sm:$0xf] }
 0x164   : > { %v1712_v56 = vpop.f32.mrf.mxu2  ;;  %v1376_v59 = vpop.f32.mrf.mxu0 }
 0x165   : > { %v1881_v57 = vpop.f32.mrf.mxu3  ;;  %v1713_v58 = vadd.f32 %v1712_v56, %v1544_v51  ;;  %v1545_v60 = vpop.f32.mrf.mxu1  ;;  %v2854_v51 = vor.u32 %v3233_v39, %v2851_v40  ;;  %v2881_v39 = vld [vmem:[%s3623_s23 + $0x2e8] sm:$0xf]  ;;  %v3243_v40 = vld [vmem:[%s3623_s23 + $0x2f4] sm:$0xf0] }
 0x166   : > { %v1546_v9 = vadd.f32 %v1545_v60, %v1376_v59 }
 0x167   : > { %v1882_v61 = vadd.f32 %v1881_v57, %v1713_v58 }
 0x169   : > { %v2135_v0 = vadd.f32 %v2134_v53, %v1882_v61  ;;  %v2205_v1 = vmul.f32 %v1882_v61, %v1882_v61 }
 0x16b   : > { %v2268_v8 = vadd.f32 %v2267_v55, %v2205_v1  ;;  %v3238_v1 = vld [vmem:[%s3623_s23 + $0x2cc] sm:$0xf0] }
 0x16c   : > { %v1714_v10 = vpop.f32.mrf.mxu2  ;;  %v1379_v15 = vpop.f32.mrf.mxu0 }
 0x16d   : > { %v1883_v11 = vpop.f32.mrf.mxu3  ;;  %v1715_v14 = vadd.f32 %v1714_v10, %v1546_v9  ;;  %v1548_v16 = vpop.f32.mrf.mxu1  ;;  %v2867_v9 = vld [vmem:[%s3623_s23 + $0x2d8] sm:$0xf0] }
 0x16e   : > { %v1549_v20 = vadd.f32 %v1548_v16, %v1379_v15  ;;  %v2862_v15 = vor.u32 %v3236_v4, %v2859_v5 }
 0x16f   : > { %v1884_v19 = vadd.f32 %v1883_v11, %v1715_v14  ;;  %1418 = vmatmul.bf16.gmra.mxu0 %v2826_v12 }
 0x170   : > { %1587 = vmatmul.bf16.gmra.mxu1 %v2830_v13 }
 0x171   : > { %v3366_v21 = vpack.c.bf16 %v1884_v19, %v1882_v61  ;;  %v2136_v22 = vadd.f32 %v2135_v0, %v1884_v19  ;;  %v2206_v23 = vmul.f32 %v1884_v19, %v1884_v19  ;;  %1756 = vmatmul.bf16.gmra.mxu2 %v2834_v17  ;;  %v2857_v0 = vld [vmem:[%s3623_s23 + $0x2c0] sm:$0xf]  ;;  %v2866_v19 = vor.u32 %v3239_v7, %v2865_v6  ;;  %v3244_v6 = vld [vmem:[%s3623_s23 + $0x304] sm:$0xf]  ;;  %v2891_v7 = vld [vmem:[%s3623_s23 + $0x310] sm:$0xf0] }
 0x172   : > { %1925 = vmatmul.bf16.gmra.mxu3 %v2838_v18  ;;  %v2858_v14 = vor.u32 %v3238_v1, %v2857_v0 }
 0x173   : > { %3478 = vst [vmem:[%s3718_s26 + $0x58] sm:$0xff] %v3366_v21   ;;  %v2269_v24 = vadd.f32 %v2268_v8, %v2206_v23  ;;  %v3237_v8 = vld [vmem:[%s3623_s23 + $0x2cc] sm:$0xf] }
 0x174   : > { %v1717_v25 = vpop.f32.mrf.mxu2  ;;  %v1381_v28 = vpop.f32.mrf.mxu0 }
 0x175   : > { %v1886_v26 = vpop.f32.mrf.mxu3  ;;  %v1718_v27 = vadd.f32 %v1717_v25, %v1549_v20  ;;  %v1550_v29 = vpop.f32.mrf.mxu1  ;;  %v2870_v20 = vor.u32 %v3237_v8, %v2867_v9  ;;  %v2897_v8 = vld [vmem:[%s3623_s23 + $0x308] sm:$0xf]  ;;  %v3247_v9 = vld [vmem:[%s3623_s23 + $0x314] sm:$0xf0] }
 0x176   : > { %v1551_v42 = vadd.f32 %v1550_v29, %v1381_v28 }
 0x177   : > { %v1887_v30 = vadd.f32 %v1886_v26, %v1718_v27 }
 0x179   : > { %v2137_v33 = vadd.f32 %v2136_v22, %v1887_v30  ;;  %v2207_v34 = vmul.f32 %v1887_v30, %v1887_v30 }
 0x17b   : > { %v2270_v41 = vadd.f32 %v2269_v24, %v2207_v34  ;;  %v3242_v34 = vld [vmem:[%s3623_s23 + $0x2ec] sm:$0xf0] }
 0x17c   : > { %v1719_v43 = vpop.f32.mrf.mxu2  ;;  %v1384_v48 = vpop.f32.mrf.mxu0 }
 0x17d   : > { %v1888_v44 = vpop.f32.mrf.mxu3  ;;  %v1720_v47 = vadd.f32 %v1719_v43, %v1551_v42  ;;  %v1553_v49 = vpop.f32.mrf.mxu1  ;;  %v2883_v42 = vld [vmem:[%s3623_s23 + $0x2f8] sm:$0xf0] }
 0x17e   : > { %v1554_v53 = vadd.f32 %v1553_v49, %v1384_v48  ;;  %v2878_v48 = vor.u32 %v3240_v37, %v2875_v38 }
 0x17f   : > { %v1889_v52 = vadd.f32 %v1888_v44, %v1720_v47  ;;  %1423 = vmatmul.bf16.gmra.mxu0 %v2842_v45 }
 0x180   : > { %1592 = vmatmul.bf16.gmra.mxu1 %v2846_v46 }
 0x181   : > { %v3371_v54 = vpack.c.bf16 %v1889_v52, %v1887_v30  ;;  %v2138_v55 = vadd.f32 %v2137_v33, %v1889_v52  ;;  %v2208_v56 = vmul.f32 %v1889_v52, %v1889_v52  ;;  %1761 = vmatmul.bf16.gmra.mxu2 %v2850_v50  ;;  %v2873_v33 = vld [vmem:[%s3623_s23 + $0x2e0] sm:$0xf]  ;;  %v2882_v52 = vor.u32 %v3243_v40, %v2881_v39  ;;  %v3248_v39 = vld [vmem:[%s3623_s23 + $0x324] sm:$0xf]  ;;  %v2907_v40 = vld [vmem:[%s3623_s23 + $0x330] sm:$0xf0] }
 0x182   : > { %1930 = vmatmul.bf16.gmra.mxu3 %v2854_v51  ;;  %v2874_v47 = vor.u32 %v3242_v34, %v2873_v33 }
 0x183   : > { %3479 = vst [vmem:[%s3718_s26 + $0x60] sm:$0xff] %v3371_v54   ;;  %v2271_v57 = vadd.f32 %v2270_v41, %v2208_v56  ;;  %v3241_v41 = vld [vmem:[%s3623_s23 + $0x2ec] sm:$0xf] }
 0x184   : > { %v1722_v58 = vpop.f32.mrf.mxu2  ;;  %v1386_v61 = vpop.f32.mrf.mxu0 }
 0x185   : > { %v1891_v59 = vpop.f32.mrf.mxu3  ;;  %v1723_v60 = vadd.f32 %v1722_v58, %v1554_v53  ;;  %v1555_v62 = vpop.f32.mrf.mxu1  ;;  %v2886_v53 = vor.u32 %v3241_v41, %v2883_v42  ;;  %v2913_v41 = vld [vmem:[%s3623_s23 + $0x328] sm:$0xf]  ;;  %v3251_v42 = vld [vmem:[%s3623_s23 + $0x334] sm:$0xf0] }
 0x186   : > { %v1556_v11 = vadd.f32 %v1555_v62, %v1386_v61 }
 0x187   : > { %v1892_v63 = vadd.f32 %v1891_v59, %v1723_v60 }
 0x189   : > { %v2139_v2 = vadd.f32 %v2138_v55, %v1892_v63  ;;  %v2209_v3 = vmul.f32 %v1892_v63, %v1892_v63 }
 0x18b   : > { %v2272_v10 = vadd.f32 %v2271_v57, %v2209_v3  ;;  %v3246_v3 = vld [vmem:[%s3623_s23 + $0x30c] sm:$0xf0] }
 0x18c   : > { %v1724_v12 = vpop.f32.mrf.mxu2  ;;  %v1389_v17 = vpop.f32.mrf.mxu0 }
 0x18d   : > { %v1893_v13 = vpop.f32.mrf.mxu3  ;;  %v1725_v16 = vadd.f32 %v1724_v12, %v1556_v11  ;;  %v1558_v18 = vpop.f32.mrf.mxu1  ;;  %v2899_v11 = vld [vmem:[%s3623_s23 + $0x318] sm:$0xf0] }
 0x18e   : > { %v1559_v22 = vadd.f32 %v1558_v18, %v1389_v17  ;;  %v2894_v17 = vor.u32 %v3244_v6, %v2891_v7 }
 0x18f   : > { %v1894_v21 = vadd.f32 %v1893_v13, %v1725_v16  ;;  %1428 = vmatmul.bf16.gmra.mxu0 %v2858_v14 }
 0x190   : > { %1597 = vmatmul.bf16.gmra.mxu1 %v2862_v15 }
 0x191   : > { %v3376_v23 = vpack.c.bf16 %v1894_v21, %v1892_v63  ;;  %v2140_v24 = vadd.f32 %v2139_v2, %v1894_v21  ;;  %v2210_v25 = vmul.f32 %v1894_v21, %v1894_v21  ;;  %1766 = vmatmul.bf16.gmra.mxu2 %v2866_v19  ;;  %v2889_v2 = vld [vmem:[%s3623_s23 + $0x300] sm:$0xf]  ;;  %v2898_v21 = vor.u32 %v3247_v9, %v2897_v8  ;;  %v3252_v8 = vld [vmem:[%s3623_s23 + $0x344] sm:$0xf]  ;;  %v2923_v9 = vld [vmem:[%s3623_s23 + $0x350] sm:$0xf0] }
 0x192   : > { %1935 = vmatmul.bf16.gmra.mxu3 %v2870_v20  ;;  %v2890_v16 = vor.u32 %v3246_v3, %v2889_v2 }
 0x193   : > { %3480 = vst [vmem:[%s3718_s26 + $0x68] sm:$0xff] %v3376_v23   ;;  %v2273_v26 = vadd.f32 %v2272_v10, %v2210_v25  ;;  %v3245_v10 = vld [vmem:[%s3623_s23 + $0x30c] sm:$0xf] }
 0x194   : > { %v1727_v27 = vpop.f32.mrf.mxu2  ;;  %v1391_v30 = vpop.f32.mrf.mxu0 }
 0x195   : > { %v1896_v28 = vpop.f32.mrf.mxu3  ;;  %v1728_v29 = vadd.f32 %v1727_v27, %v1559_v22  ;;  %v1560_v31 = vpop.f32.mrf.mxu1  ;;  %v2902_v22 = vor.u32 %v3245_v10, %v2899_v11  ;;  %v2929_v10 = vld [vmem:[%s3623_s23 + $0x348] sm:$0xf]  ;;  %v3255_v11 = vld [vmem:[%s3623_s23 + $0x354] sm:$0xf0] }
 0x196   : > { %v1561_v44 = vadd.f32 %v1560_v31, %v1391_v30 }
 0x197   : > { %v1897_v32 = vadd.f32 %v1896_v28, %v1728_v29 }
 0x199   : > { %v2141_v35 = vadd.f32 %v2140_v24, %v1897_v32  ;;  %v2211_v36 = vmul.f32 %v1897_v32, %v1897_v32 }
 0x19b   : > { %v2274_v43 = vadd.f32 %v2273_v26, %v2211_v36  ;;  %v3250_v36 = vld [vmem:[%s3623_s23 + $0x32c] sm:$0xf0] }
 0x19c   : > { %v1729_v45 = vpop.f32.mrf.mxu2  ;;  %v1394_v50 = vpop.f32.mrf.mxu0 }
 0x19d   : > { %v1898_v46 = vpop.f32.mrf.mxu3  ;;  %v1730_v49 = vadd.f32 %v1729_v45, %v1561_v44  ;;  %v1563_v51 = vpop.f32.mrf.mxu1  ;;  %v2915_v44 = vld [vmem:[%s3623_s23 + $0x338] sm:$0xf0] }
 0x19e   : > { %v1564_v55 = vadd.f32 %v1563_v51, %v1394_v50  ;;  %v2910_v50 = vor.u32 %v3248_v39, %v2907_v40 }
 0x19f   : > { %v1899_v54 = vadd.f32 %v1898_v46, %v1730_v49  ;;  %1433 = vmatmul.bf16.gmra.mxu0 %v2874_v47 }
 0x1a0   : > { %1602 = vmatmul.bf16.gmra.mxu1 %v2878_v48 }
 0x1a1   : > { %v3381_v56 = vpack.c.bf16 %v1899_v54, %v1897_v32  ;;  %v2142_v57 = vadd.f32 %v2141_v35, %v1899_v54  ;;  %v2212_v58 = vmul.f32 %v1899_v54, %v1899_v54  ;;  %1771 = vmatmul.bf16.gmra.mxu2 %v2882_v52  ;;  %v2905_v35 = vld [vmem:[%s3623_s23 + $0x320] sm:$0xf]  ;;  %v2914_v54 = vor.u32 %v3251_v42, %v2913_v41  ;;  %v3256_v41 = vld [vmem:[%s3623_s23 + $0x364] sm:$0xf]  ;;  %v2939_v42 = vld [vmem:[%s3623_s23 + $0x370] sm:$0xf0] }
 0x1a2   : > { %1940 = vmatmul.bf16.gmra.mxu3 %v2886_v53  ;;  %v2906_v49 = vor.u32 %v3250_v36, %v2905_v35 }
 0x1a3   : > { %3481 = vst [vmem:[%s3718_s26 + $0x70] sm:$0xff] %v3381_v56   ;;  %v2275_v59 = vadd.f32 %v2274_v43, %v2212_v58  ;;  %v3249_v43 = vld [vmem:[%s3623_s23 + $0x32c] sm:$0xf] }
 0x1a4   : > { %v1732_v60 = vpop.f32.mrf.mxu2  ;;  %v1396_v63 = vpop.f32.mrf.mxu0 }
 0x1a5   : > { %v1901_v61 = vpop.f32.mrf.mxu3  ;;  %v1733_v62 = vadd.f32 %v1732_v60, %v1564_v55  ;;  %v1565_v0 = vpop.f32.mrf.mxu1  ;;  %v2918_v55 = vor.u32 %v3249_v43, %v2915_v44  ;;  %v2945_v43 = vld [vmem:[%s3623_s23 + $0x368] sm:$0xf]  ;;  %v3259_v44 = vld [vmem:[%s3623_s23 + $0x374] sm:$0xf0] }
 0x1a6   : > { %v1566_v13 = vadd.f32 %v1565_v0, %v1396_v63 }
 0x1a7   : > { %v1902_v1 = vadd.f32 %v1901_v61, %v1733_v62 }
 0x1a9   : > { %v2143_v4 = vadd.f32 %v2142_v57, %v1902_v1  ;;  %v2213_v5 = vmul.f32 %v1902_v1, %v1902_v1 }
 0x1ab   : > { %v2276_v12 = vadd.f32 %v2275_v59, %v2213_v5  ;;  %v3254_v5 = vld [vmem:[%s3623_s23 + $0x34c] sm:$0xf0] }
 0x1ac   : > { %v1734_v14 = vpop.f32.mrf.mxu2  ;;  %v1399_v19 = vpop.f32.mrf.mxu0 }
 0x1ad   : > { %v1903_v15 = vpop.f32.mrf.mxu3  ;;  %v1735_v18 = vadd.f32 %v1734_v14, %v1566_v13  ;;  %v1568_v20 = vpop.f32.mrf.mxu1  ;;  %v2931_v13 = vld [vmem:[%s3623_s23 + $0x358] sm:$0xf0] }
 0x1ae   : > { %v1569_v24 = vadd.f32 %v1568_v20, %v1399_v19  ;;  %v2926_v19 = vor.u32 %v3252_v8, %v2923_v9 }
 0x1af   : > { %v1904_v23 = vadd.f32 %v1903_v15, %v1735_v18  ;;  %1438 = vmatmul.bf16.gmra.mxu0 %v2890_v16 }
 0x1b0   : > { %1607 = vmatmul.bf16.gmra.mxu1 %v2894_v17 }
 0x1b1   : > { %v3386_v25 = vpack.c.bf16 %v1904_v23, %v1902_v1  ;;  %v2144_v26 = vadd.f32 %v2143_v4, %v1904_v23  ;;  %v2214_v27 = vmul.f32 %v1904_v23, %v1904_v23  ;;  %1776 = vmatmul.bf16.gmra.mxu2 %v2898_v21  ;;  %v2921_v4 = vld [vmem:[%s3623_s23 + $0x340] sm:$0xf]  ;;  %v2930_v23 = vor.u32 %v3255_v11, %v2929_v10  ;;  %v3260_v10 = vld [vmem:[%s3623_s23 + $0x384] sm:$0xf]  ;;  %v2955_v11 = vld [vmem:[%s3623_s23 + $0x390] sm:$0xf0] }
 0x1b2   : > { %1945 = vmatmul.bf16.gmra.mxu3 %v2902_v22  ;;  %v2922_v18 = vor.u32 %v3254_v5, %v2921_v4 }
 0x1b3   : > { %3482 = vst [vmem:[%s3718_s26 + $0x78] sm:$0xff] %v3386_v25   ;;  %v2277_v28 = vadd.f32 %v2276_v12, %v2214_v27  ;;  %v3253_v12 = vld [vmem:[%s3623_s23 + $0x34c] sm:$0xf] }
 0x1b4   : > { %v1737_v29 = vpop.f32.mrf.mxu2  ;;  %v1401_v32 = vpop.f32.mrf.mxu0 }
 0x1b5   : > { %v1906_v30 = vpop.f32.mrf.mxu3  ;;  %v1738_v31 = vadd.f32 %v1737_v29, %v1569_v24  ;;  %v1570_v33 = vpop.f32.mrf.mxu1  ;;  %v2934_v24 = vor.u32 %v3253_v12, %v2931_v13  ;;  %v2961_v12 = vld [vmem:[%s3623_s23 + $0x388] sm:$0xf]  ;;  %v3263_v13 = vld [vmem:[%s3623_s23 + $0x394] sm:$0xf0] }
 0x1b6   : > { %v1571_v46 = vadd.f32 %v1570_v33, %v1401_v32 }
 0x1b7   : > { %v1907_v34 = vadd.f32 %v1906_v30, %v1738_v31 }
 0x1b9   : > { %v2145_v37 = vadd.f32 %v2144_v26, %v1907_v34  ;;  %v2215_v38 = vmul.f32 %v1907_v34, %v1907_v34 }
 0x1bb   : > { %v2278_v45 = vadd.f32 %v2277_v28, %v2215_v38  ;;  %v3258_v38 = vld [vmem:[%s3623_s23 + $0x36c] sm:$0xf0] }
 0x1bc   : > { %v1739_v47 = vpop.f32.mrf.mxu2  ;;  %v1404_v52 = vpop.f32.mrf.mxu0 }
 0x1bd   : > { %v1908_v48 = vpop.f32.mrf.mxu3  ;;  %v1740_v51 = vadd.f32 %v1739_v47, %v1571_v46  ;;  %v1573_v53 = vpop.f32.mrf.mxu1  ;;  %v2947_v46 = vld [vmem:[%s3623_s23 + $0x378] sm:$0xf0] }
 0x1be   : > { %v1574_v57 = vadd.f32 %v1573_v53, %v1404_v52  ;;  %v2942_v52 = vor.u32 %v3256_v41, %v2939_v42 }
 0x1bf   : > { %v1909_v56 = vadd.f32 %v1908_v48, %v1740_v51  ;;  %1443 = vmatmul.bf16.gmra.mxu0 %v2906_v49 }
 0x1c0   : > { %1612 = vmatmul.bf16.gmra.mxu1 %v2910_v50 }
 0x1c1   : > { %v3391_v58 = vpack.c.bf16 %v1909_v56, %v1907_v34  ;;  %v2146_v59 = vadd.f32 %v2145_v37, %v1909_v56  ;;  %v2216_v60 = vmul.f32 %v1909_v56, %v1909_v56  ;;  %1781 = vmatmul.bf16.gmra.mxu2 %v2914_v54  ;;  %v2937_v37 = vld [vmem:[%s3623_s23 + $0x360] sm:$0xf]  ;;  %v2946_v56 = vor.u32 %v3259_v44, %v2945_v43  ;;  %v3264_v43 = vld [vmem:[%s3623_s23 + $0x3a4] sm:$0xf]  ;;  %v2971_v44 = vld [vmem:[%s3623_s23 + $0x3b0] sm:$0xf0] }
 0x1c2   : > { %1950 = vmatmul.bf16.gmra.mxu3 %v2918_v55  ;;  %v2938_v51 = vor.u32 %v3258_v38, %v2937_v37 }
 0x1c3   : > { %3483 = vst [vmem:[%s3718_s26 + $0x80] sm:$0xff] %v3391_v58   ;;  %v2279_v61 = vadd.f32 %v2278_v45, %v2216_v60  ;;  %v3257_v45 = vld [vmem:[%s3623_s23 + $0x36c] sm:$0xf] }
 0x1c4   : > { %v1742_v62 = vpop.f32.mrf.mxu2  ;;  %v1406_v1 = vpop.f32.mrf.mxu0 }
 0x1c5   : > { %v1911_v63 = vpop.f32.mrf.mxu3  ;;  %v1743_v0 = vadd.f32 %v1742_v62, %v1574_v57  ;;  %v1575_v2 = vpop.f32.mrf.mxu1  ;;  %v2950_v57 = vor.u32 %v3257_v45, %v2947_v46  ;;  %v2977_v45 = vld [vmem:[%s3623_s23 + $0x3a8] sm:$0xf]  ;;  %v3267_v46 = vld [vmem:[%s3623_s23 + $0x3b4] sm:$0xf0] }
 0x1c6   : > { %v1576_v15 = vadd.f32 %v1575_v2, %v1406_v1 }
 0x1c7   : > { %v1912_v3 = vadd.f32 %v1911_v63, %v1743_v0 }
 0x1c9   : > { %v2147_v6 = vadd.f32 %v2146_v59, %v1912_v3  ;;  %v2217_v7 = vmul.f32 %v1912_v3, %v1912_v3 }
 0x1cb   : > { %v2280_v14 = vadd.f32 %v2279_v61, %v2217_v7  ;;  %v3262_v7 = vld [vmem:[%s3623_s23 + $0x38c] sm:$0xf0] }
 0x1cc   : > { %v1744_v16 = vpop.f32.mrf.mxu2  ;;  %v1409_v21 = vpop.f32.mrf.mxu0 }
 0x1cd   : > { %v1913_v17 = vpop.f32.mrf.mxu3  ;;  %v1745_v20 = vadd.f32 %v1744_v16, %v1576_v15  ;;  %v1578_v22 = vpop.f32.mrf.mxu1  ;;  %v2963_v15 = vld [vmem:[%s3623_s23 + $0x398] sm:$0xf0] }
 0x1ce   : > { %v1579_v26 = vadd.f32 %v1578_v22, %v1409_v21  ;;  %v2958_v21 = vor.u32 %v3260_v10, %v2955_v11 }
 0x1cf   : > { %v1914_v25 = vadd.f32 %v1913_v17, %v1745_v20  ;;  %1448 = vmatmul.bf16.gmra.mxu0 %v2922_v18 }
 0x1d0   : > { %1617 = vmatmul.bf16.gmra.mxu1 %v2926_v19 }
 0x1d1   : > { %v3396_v27 = vpack.c.bf16 %v1914_v25, %v1912_v3  ;;  %v2148_v28 = vadd.f32 %v2147_v6, %v1914_v25  ;;  %v2218_v29 = vmul.f32 %v1914_v25, %v1914_v25  ;;  %1786 = vmatmul.bf16.gmra.mxu2 %v2930_v23  ;;  %v2953_v6 = vld [vmem:[%s3623_s23 + $0x380] sm:$0xf]  ;;  %v2962_v25 = vor.u32 %v3263_v13, %v2961_v12  ;;  %v3268_v12 = vld [vmem:[%s3623_s23 + $0x3c4] sm:$0xf]  ;;  %v2987_v13 = vld [vmem:[%s3623_s23 + $0x3d0] sm:$0xf0] }
 0x1d2   : > { %1955 = vmatmul.bf16.gmra.mxu3 %v2934_v24  ;;  %v2954_v20 = vor.u32 %v3262_v7, %v2953_v6 }
 0x1d3   : > { %3484 = vst [vmem:[%s3718_s26 + $0x88] sm:$0xff] %v3396_v27   ;;  %v2281_v30 = vadd.f32 %v2280_v14, %v2218_v29  ;;  %v3261_v14 = vld [vmem:[%s3623_s23 + $0x38c] sm:$0xf] }
 0x1d4   : > { %v1747_v31 = vpop.f32.mrf.mxu2  ;;  %v1411_v34 = vpop.f32.mrf.mxu0 }
 0x1d5   : > { %v1916_v32 = vpop.f32.mrf.mxu3  ;;  %v1748_v33 = vadd.f32 %v1747_v31, %v1579_v26  ;;  %v1580_v35 = vpop.f32.mrf.mxu1  ;;  %v2966_v26 = vor.u32 %v3261_v14, %v2963_v15  ;;  %v2993_v14 = vld [vmem:[%s3623_s23 + $0x3c8] sm:$0xf]  ;;  %v3271_v15 = vld [vmem:[%s3623_s23 + $0x3d4] sm:$0xf0] }
 0x1d6   : > { %v1581_v48 = vadd.f32 %v1580_v35, %v1411_v34 }
 0x1d7   : > { %v1917_v36 = vadd.f32 %v1916_v32, %v1748_v33 }
 0x1d9   : > { %v2149_v39 = vadd.f32 %v2148_v28, %v1917_v36  ;;  %v2219_v40 = vmul.f32 %v1917_v36, %v1917_v36 }
 0x1db   : > { %v2282_v47 = vadd.f32 %v2281_v30, %v2219_v40  ;;  %v3266_v40 = vld [vmem:[%s3623_s23 + $0x3ac] sm:$0xf0] }
 0x1dc   : > { %v1749_v49 = vpop.f32.mrf.mxu2  ;;  %v1414_v54 = vpop.f32.mrf.mxu0 }
 0x1dd   : > { %v1918_v50 = vpop.f32.mrf.mxu3  ;;  %v1750_v53 = vadd.f32 %v1749_v49, %v1581_v48  ;;  %v1583_v55 = vpop.f32.mrf.mxu1  ;;  %v2979_v48 = vld [vmem:[%s3623_s23 + $0x3b8] sm:$0xf0] }
 0x1de   : > { %v1584_v59 = vadd.f32 %v1583_v55, %v1414_v54  ;;  %v2974_v54 = vor.u32 %v3264_v43, %v2971_v44 }
 0x1df   : > { %v1919_v58 = vadd.f32 %v1918_v50, %v1750_v53  ;;  %1453 = vmatmul.bf16.gmra.mxu0 %v2938_v51 }
 0x1e0   : > { %1622 = vmatmul.bf16.gmra.mxu1 %v2942_v52 }
 0x1e1   : > { %v3401_v60 = vpack.c.bf16 %v1919_v58, %v1917_v36  ;;  %v2150_v61 = vadd.f32 %v2149_v39, %v1919_v58  ;;  %v2220_v62 = vmul.f32 %v1919_v58, %v1919_v58  ;;  %1791 = vmatmul.bf16.gmra.mxu2 %v2946_v56  ;;  %v2969_v39 = vld [vmem:[%s3623_s23 + $0x3a0] sm:$0xf]  ;;  %v2978_v58 = vor.u32 %v3267_v46, %v2977_v45  ;;  %v3272_v45 = vld [vmem:[%s3623_s23 + $0x3e4] sm:$0xf]  ;;  %v3003_v46 = vld [vmem:[%s3623_s23 + $0x3f0] sm:$0xf0] }
 0x1e2   : > { %1960 = vmatmul.bf16.gmra.mxu3 %v2950_v57  ;;  %v2970_v53 = vor.u32 %v3266_v40, %v2969_v39 }
 0x1e3   : > { %3485 = vst [vmem:[%s3718_s26 + $0x90] sm:$0xff] %v3401_v60   ;;  %v2283_v63 = vadd.f32 %v2282_v47, %v2220_v62  ;;  %v3265_v47 = vld [vmem:[%s3623_s23 + $0x3ac] sm:$0xf] }
 0x1e4   : > { %v1752_v0 = vpop.f32.mrf.mxu2  ;;  %v1416_v3 = vpop.f32.mrf.mxu0 }
 0x1e5   : > { %v1921_v1 = vpop.f32.mrf.mxu3  ;;  %v1753_v2 = vadd.f32 %v1752_v0, %v1584_v59  ;;  %v1585_v4 = vpop.f32.mrf.mxu1  ;;  %v2982_v59 = vor.u32 %v3265_v47, %v2979_v48  ;;  %v3009_v47 = vld [vmem:[%s3623_s23 + $0x3e8] sm:$0xf]  ;;  %v3275_v48 = vld [vmem:[%s3623_s23 + $0x3f4] sm:$0xf0] }
 0x1e6   : > { %v1586_v17 = vadd.f32 %v1585_v4, %v1416_v3 }
 0x1e7   : > { %v1922_v5 = vadd.f32 %v1921_v1, %v1753_v2 }
 0x1e9   : > { %v2151_v8 = vadd.f32 %v2150_v61, %v1922_v5  ;;  %v2221_v9 = vmul.f32 %v1922_v5, %v1922_v5 }
 0x1eb   : > { %v2284_v16 = vadd.f32 %v2283_v63, %v2221_v9  ;;  %v3270_v9 = vld [vmem:[%s3623_s23 + $0x3cc] sm:$0xf0] }
 0x1ec   : > { %v1754_v18 = vpop.f32.mrf.mxu2  ;;  %v1419_v23 = vpop.f32.mrf.mxu0 }
 0x1ed   : > { %v1923_v19 = vpop.f32.mrf.mxu3  ;;  %v1755_v22 = vadd.f32 %v1754_v18, %v1586_v17  ;;  %v1588_v24 = vpop.f32.mrf.mxu1  ;;  %v2995_v17 = vld [vmem:[%s3623_s23 + $0x3d8] sm:$0xf0] }
 0x1ee   : > { %v1589_v28 = vadd.f32 %v1588_v24, %v1419_v23  ;;  %v2990_v23 = vor.u32 %v3268_v12, %v2987_v13 }
 0x1ef   : > { %v1924_v27 = vadd.f32 %v1923_v19, %v1755_v22  ;;  %1458 = vmatmul.bf16.gmra.mxu0 %v2954_v20 }
 0x1f0   : > { %1627 = vmatmul.bf16.gmra.mxu1 %v2958_v21 }
 0x1f1   : > { %v3406_v29 = vpack.c.bf16 %v1924_v27, %v1922_v5  ;;  %v2152_v30 = vadd.f32 %v2151_v8, %v1924_v27  ;;  %v2222_v31 = vmul.f32 %v1924_v27, %v1924_v27  ;;  %1796 = vmatmul.bf16.gmra.mxu2 %v2962_v25  ;;  %v2985_v8 = vld [vmem:[%s3623_s23 + $0x3c0] sm:$0xf]  ;;  %v2994_v27 = vor.u32 %v3271_v15, %v2993_v14 }
 0x1f2   : > { %1965 = vmatmul.bf16.gmra.mxu3 %v2966_v26  ;;  %v2986_v22 = vor.u32 %v3270_v9, %v2985_v8 }
 0x1f3   : > { %3486 = vst [vmem:[%s3718_s26 + $0x98] sm:$0xff] %v3406_v29   ;;  %v2285_v32 = vadd.f32 %v2284_v16, %v2222_v31  ;;  %v3269_v16 = vld [vmem:[%s3623_s23 + $0x3cc] sm:$0xf] }
 0x1f4   : > { %v1757_v33 = vpop.f32.mrf.mxu2  ;;  %v1421_v36 = vpop.f32.mrf.mxu0 }
 0x1f5   : > { %v1926_v34 = vpop.f32.mrf.mxu3  ;;  %v1758_v35 = vadd.f32 %v1757_v33, %v1589_v28  ;;  %v1590_v37 = vpop.f32.mrf.mxu1  ;;  %v2998_v28 = vor.u32 %v3269_v16, %v2995_v17 }
 0x1f6   : > { %v1591_v50 = vadd.f32 %v1590_v37, %v1421_v36 }
 0x1f7   : > { %v1927_v38 = vadd.f32 %v1926_v34, %v1758_v35 }
 0x1f9   : > { %v2153_v41 = vadd.f32 %v2152_v30, %v1927_v38  ;;  %v2223_v42 = vmul.f32 %v1927_v38, %v1927_v38 }
 0x1fb   : > { %v2286_v49 = vadd.f32 %v2285_v32, %v2223_v42  ;;  %v3274_v42 = vld [vmem:[%s3623_s23 + $0x3ec] sm:$0xf0] }
 0x1fc   : > { %v1759_v51 = vpop.f32.mrf.mxu2  ;;  %v1424_v56 = vpop.f32.mrf.mxu0 }
 0x1fd   : > { %v1928_v52 = vpop.f32.mrf.mxu3  ;;  %v1760_v55 = vadd.f32 %v1759_v51, %v1591_v50  ;;  %v1593_v57 = vpop.f32.mrf.mxu1  ;;  %v3011_v50 = vld [vmem:[%s3623_s23 + $0x3f8] sm:$0xf0] }
 0x1fe   : > { %v1594_v61 = vadd.f32 %v1593_v57, %v1424_v56  ;;  %v3006_v56 = vor.u32 %v3272_v45, %v3003_v46 }
 0x1ff   : > { %v1929_v60 = vadd.f32 %v1928_v52, %v1760_v55  ;;  %1463 = vmatmul.bf16.gmra.mxu0 %v2970_v53 }
 0x200   : > { %1632 = vmatmul.bf16.gmra.mxu1 %v2974_v54 }
 0x201   : > { %v3411_v62 = vpack.c.bf16 %v1929_v60, %v1927_v38  ;;  %v2154_v63 = vadd.f32 %v2153_v41, %v1929_v60  ;;  %v2224_v0 = vmul.f32 %v1929_v60, %v1929_v60  ;;  %1801 = vmatmul.bf16.gmra.mxu2 %v2978_v58  ;;  %v3001_v41 = vld [vmem:[%s3623_s23 + $0x3e0] sm:$0xf]  ;;  %v3010_v60 = vor.u32 %v3275_v48, %v3009_v47 }
 0x202   : > { %1970 = vmatmul.bf16.gmra.mxu3 %v2982_v59  ;;  %v3002_v55 = vor.u32 %v3274_v42, %v3001_v41 }
 0x203   : > { %3487 = vst [vmem:[%s3718_s26 + $0xa0] sm:$0xff] %v3411_v62   ;;  %v2287_v1 = vadd.f32 %v2286_v49, %v2224_v0  ;;  %v3273_v49 = vld [vmem:[%s3623_s23 + $0x3ec] sm:$0xf] }
 0x204   : > { %v1762_v2 = vpop.f32.mrf.mxu2  ;;  %v1426_v5 = vpop.f32.mrf.mxu0 }
 0x205   : > { %v1931_v3 = vpop.f32.mrf.mxu3  ;;  %v1763_v4 = vadd.f32 %v1762_v2, %v1594_v61  ;;  %v1595_v6 = vpop.f32.mrf.mxu1  ;;  %v3014_v61 = vor.u32 %v3273_v49, %v3011_v50 }
 0x206   : > { %v1596_v19 = vadd.f32 %v1595_v6, %v1426_v5 }
 0x207   : > { %v1932_v7 = vadd.f32 %v1931_v3, %v1763_v4 }
 0x209   : > { %v2155_v10 = vadd.f32 %v2154_v63, %v1932_v7  ;;  %v2225_v11 = vmul.f32 %v1932_v7, %v1932_v7 }
 0x20b   : > { %v2288_v18 = vadd.f32 %v2287_v1, %v2225_v11 }
 0x20c   : > { %v1764_v20 = vpop.f32.mrf.mxu2  ;;  %v1429_v25 = vpop.f32.mrf.mxu0 }
 0x20d   : > { %v1933_v21 = vpop.f32.mrf.mxu3  ;;  %v1765_v24 = vadd.f32 %v1764_v20, %v1596_v19  ;;  %v1598_v26 = vpop.f32.mrf.mxu1 }
 0x20e   : > { %v1599_v30 = vadd.f32 %v1598_v26, %v1429_v25 }
 0x20f   : > { %v1934_v29 = vadd.f32 %v1933_v21, %v1765_v24  ;;  %1468 = vmatmul.bf16.gmra.mxu0 %v2986_v22 }
 0x210   : > { %1637 = vmatmul.bf16.gmra.mxu1 %v2990_v23 }
 0x211   : > { %v3416_v31 = vpack.c.bf16 %v1934_v29, %v1932_v7  ;;  %v2156_v32 = vadd.f32 %v2155_v10, %v1934_v29  ;;  %v2226_v33 = vmul.f32 %v1934_v29, %v1934_v29  ;;  %1806 = vmatmul.bf16.gmra.mxu2 %v2994_v27 }
 0x212   : > { %1975 = vmatmul.bf16.gmra.mxu3 %v2998_v28 }
 0x213   : > { %3488 = vst [vmem:[%s3718_s26 + $0xa8] sm:$0xff] %v3416_v31   ;;  %v2289_v34 = vadd.f32 %v2288_v18, %v2226_v33 }
 0x214   : > { %v1767_v35 = vpop.f32.mrf.mxu2  ;;  %v1431_v38 = vpop.f32.mrf.mxu0 }
 0x215   : > { %v1936_v36 = vpop.f32.mrf.mxu3  ;;  %v1768_v37 = vadd.f32 %v1767_v35, %v1599_v30  ;;  %v1600_v39 = vpop.f32.mrf.mxu1 }
 0x216   : > { %v1601_v52 = vadd.f32 %v1600_v39, %v1431_v38 }
 0x217   : > { %v1937_v40 = vadd.f32 %v1936_v36, %v1768_v37 }
 0x219   : > { %v2157_v43 = vadd.f32 %v2156_v32, %v1937_v40  ;;  %v2227_v44 = vmul.f32 %v1937_v40, %v1937_v40 }
 0x21b   : > { %v2290_v51 = vadd.f32 %v2289_v34, %v2227_v44 }
 0x21c   : > { %v1769_v53 = vpop.f32.mrf.mxu2  ;;  %v1434_v58 = vpop.f32.mrf.mxu0 }
 0x21d   : > { %v1938_v54 = vpop.f32.mrf.mxu3  ;;  %v1770_v57 = vadd.f32 %v1769_v53, %v1601_v52  ;;  %v1603_v59 = vpop.f32.mrf.mxu1 }
 0x21e   : > { %v1604_v63 = vadd.f32 %v1603_v59, %v1434_v58 }
 0x21f   : > { %v1939_v62 = vadd.f32 %v1938_v54, %v1770_v57  ;;  %1473 = vmatmul.bf16.gmra.mxu0 %v3002_v55 }
 0x220   : > { %1642 = vmatmul.bf16.gmra.mxu1 %v3006_v56 }
 0x221   : > { %v3421_v0 = vpack.c.bf16 %v1939_v62, %v1937_v40  ;;  %v2158_v1 = vadd.f32 %v2157_v43, %v1939_v62  ;;  %v2228_v2 = vmul.f32 %v1939_v62, %v1939_v62  ;;  %1811 = vmatmul.bf16.gmra.mxu2 %v3010_v60 }
 0x222   : > { %1980 = vmatmul.bf16.gmra.mxu3 %v3014_v61 }
 0x223   : > { %3489 = vst [vmem:[%s3718_s26 + $0xb0] sm:$0xff] %v3421_v0   ;;  %v2291_v3 = vadd.f32 %v2290_v51, %v2228_v2 }
 0x224   : > { %v1772_v4 = vpop.f32.mrf.mxu2  ;;  %v1436_v7 = vpop.f32.mrf.mxu0 }
 0x225   : > { %v1941_v5 = vpop.f32.mrf.mxu3  ;;  %v1773_v6 = vadd.f32 %v1772_v4, %v1604_v63  ;;  %v1605_v8 = vpop.f32.mrf.mxu1 }
 0x226   : > { %v1606_v13 = vadd.f32 %v1605_v8, %v1436_v7 }
 0x227   : > { %v1942_v9 = vadd.f32 %v1941_v5, %v1773_v6 }
 0x229   : > { %v2159_v10 = vadd.f32 %v2158_v1, %v1942_v9  ;;  %v2229_v11 = vmul.f32 %v1942_v9, %v1942_v9 }
 0x22b   : > { %v2292_v12 = vadd.f32 %v2291_v3, %v2229_v11 }
 0x22c   : > { %v1774_v14 = vpop.f32.mrf.mxu2  ;;  %v1439_v17 = vpop.f32.mrf.mxu0 }
 0x22d   : > { %v1943_v15 = vpop.f32.mrf.mxu3  ;;  %v1775_v16 = vadd.f32 %v1774_v14, %v1606_v13  ;;  %v1608_v18 = vpop.f32.mrf.mxu1 }
 0x22e   : > { %v1609_v23 = vadd.f32 %v1608_v18, %v1439_v17 }
 0x22f   : > { %v1944_v19 = vadd.f32 %v1943_v15, %v1775_v16 }
 0x231   : > { %v3426_v20 = vpack.c.bf16 %v1944_v19, %v1942_v9  ;;  %v2160_v21 = vadd.f32 %v2159_v10, %v1944_v19  ;;  %v2230_v22 = vmul.f32 %v1944_v19, %v1944_v19 }
 0x233   : > { %3490 = vst [vmem:[%s3718_s26 + $0xb8] sm:$0xff] %v3426_v20   ;;  %v2293_v24 = vadd.f32 %v2292_v12, %v2230_v22 }
 0x234   : > { %v1777_v25 = vpop.f32.mrf.mxu2  ;;  %v1441_v28 = vpop.f32.mrf.mxu0 }
 0x235   : > { %v1946_v26 = vpop.f32.mrf.mxu3  ;;  %v1778_v27 = vadd.f32 %v1777_v25, %v1609_v23  ;;  %v1610_v29 = vpop.f32.mrf.mxu1 }
 0x236   : > { %v1611_v34 = vadd.f32 %v1610_v29, %v1441_v28 }
 0x237   : > { %v1947_v30 = vadd.f32 %v1946_v26, %v1778_v27 }
 0x239   : > { %v2161_v31 = vadd.f32 %v2160_v21, %v1947_v30  ;;  %v2231_v32 = vmul.f32 %v1947_v30, %v1947_v30 }
 0x23b   : > { %v2294_v33 = vadd.f32 %v2293_v24, %v2231_v32 }
 0x23c   : > { %v1779_v35 = vpop.f32.mrf.mxu2  ;;  %v1444_v38 = vpop.f32.mrf.mxu0 }
 0x23d   : > { %v1948_v36 = vpop.f32.mrf.mxu3  ;;  %v1780_v37 = vadd.f32 %v1779_v35, %v1611_v34  ;;  %v1613_v39 = vpop.f32.mrf.mxu1 }
 0x23e   : > { %v1614_v44 = vadd.f32 %v1613_v39, %v1444_v38 }
 0x23f   : > { %v1949_v40 = vadd.f32 %v1948_v36, %v1780_v37 }
 0x241   : > { %v3431_v41 = vpack.c.bf16 %v1949_v40, %v1947_v30  ;;  %v2162_v42 = vadd.f32 %v2161_v31, %v1949_v40  ;;  %v2232_v43 = vmul.f32 %v1949_v40, %v1949_v40 }
 0x243   : > { %3491 = vst [vmem:[%s3718_s26 + $0xc0] sm:$0xff] %v3431_v41   ;;  %v2295_v45 = vadd.f32 %v2294_v33, %v2232_v43 }
 0x244   : > { %v1782_v46 = vpop.f32.mrf.mxu2  ;;  %v1446_v49 = vpop.f32.mrf.mxu0 }
 0x245   : > { %v1951_v47 = vpop.f32.mrf.mxu3  ;;  %v1783_v48 = vadd.f32 %v1782_v46, %v1614_v44  ;;  %v1615_v50 = vpop.f32.mrf.mxu1 }
 0x246   : > { %v1616_v55 = vadd.f32 %v1615_v50, %v1446_v49 }
 0x247   : > { %v1952_v51 = vadd.f32 %v1951_v47, %v1783_v48 }
 0x249   : > { %v2163_v52 = vadd.f32 %v2162_v42, %v1952_v51  ;;  %v2233_v53 = vmul.f32 %v1952_v51, %v1952_v51 }
 0x24b   : > { %v2296_v54 = vadd.f32 %v2295_v45, %v2233_v53 }
 0x24c   : > { %v1784_v56 = vpop.f32.mrf.mxu2  ;;  %v1449_v59 = vpop.f32.mrf.mxu0 }
 0x24d   : > { %v1953_v57 = vpop.f32.mrf.mxu3  ;;  %v1785_v58 = vadd.f32 %v1784_v56, %v1616_v55  ;;  %v1618_v60 = vpop.f32.mrf.mxu1 }
 0x24e   : > { %v1619_v6 = vadd.f32 %v1618_v60, %v1449_v59 }
 0x24f   : > { %v1954_v61 = vadd.f32 %v1953_v57, %v1785_v58 }
 0x251   : > { %v3436_v62 = vpack.c.bf16 %v1954_v61, %v1952_v51  ;;  %v3921_v63 = vadd.f32 %v2163_v52, %v1954_v61  ;;  %v2234_v0 = vmul.f32 %v1954_v61, %v1954_v61 }
 0x253   : > { %3492 = vst [vmem:[%s3718_s26 + $0xc8] sm:$0xff] %v3436_v62   ;;  %v3924_v1 = vadd.f32 %v2296_v54, %v2234_v0 }
 0x254   : > { %v1787_v2 = vpop.f32.mrf.mxu2  ;;  %v1451_v4 = vpop.f32.mrf.mxu0 }
 0x255   : > { %v1956_v3 = vpop.f32.mrf.mxu3  ;;  %v1620_v5 = vpop.f32.mrf.mxu1  ;;  %v1788_v7 = vadd.f32 %v1787_v2, %v1619_v6 }
 0x256   : > { %v1621_v8 = vadd.f32 %v1620_v5, %v1451_v4 }
 0x257   : > { %v1957_v14 = vadd.f32 %v1956_v3, %v1788_v7 }
 0x259   : > { %v2235_v5 = vmul.f32 %v1957_v14, %v1957_v14  ;;  %v2165_v7 = vadd.f32 %v3921_v63, %v1957_v14 }
 0x25c   : > { %v1789_v9 = vpop.f32.mrf.mxu2  ;;  %v1454_v12 = vpop.f32.mrf.mxu0 }
 0x25d   : > { %v1958_v10 = vpop.f32.mrf.mxu3  ;;  %v1790_v11 = vadd.f32 %v1789_v9, %v1621_v8  ;;  %v1623_v13 = vpop.f32.mrf.mxu1 }
 0x25e   : > { %v1624_v21 = vadd.f32 %v1623_v13, %v1454_v12 }
 0x25f   : > { %v3926_v15 = vadd.f32 %v1958_v10, %v1790_v11  ;;  %v2298_v10 = vadd.f32 %v3924_v1, %v2235_v5 }
 0x261   : > { %v3441_v16 = vpack.c.bf16 %v3926_v15, %v1957_v14  ;;  %v2236_v6 = vmul.f32 %v3926_v15, %v3926_v15 }
 0x263   : > { %3493 = vst [vmem:[%s3718_s26 + $0xd0] sm:$0xff] %v3441_v16   ;;  %v2166_v16 = vadd.f32 %v2165_v7, %v3926_v15 }
 0x264   : > { %v1792_v17 = vpop.f32.mrf.mxu2  ;;  %v1456_v19 = vpop.f32.mrf.mxu0 }
 0x265   : > { %v1961_v18 = vpop.f32.mrf.mxu3  ;;  %v1625_v20 = vpop.f32.mrf.mxu1  ;;  %v1793_v22 = vadd.f32 %v1792_v17, %v1624_v21 }
 0x266   : > { %v1626_v23 = vadd.f32 %v1625_v20, %v1456_v19 }
 0x267   : > { %v1962_v29 = vadd.f32 %v1961_v18, %v1793_v22  ;;  %v2299_v18 = vadd.f32 %v2298_v10, %v2236_v6 }
 0x269   : > { %v2237_v11 = vmul.f32 %v1962_v29, %v1962_v29  ;;  %v2167_v21 = vadd.f32 %v2166_v16, %v1962_v29 }
 0x26c   : > { %v1794_v24 = vpop.f32.mrf.mxu2  ;;  %v1459_v27 = vpop.f32.mrf.mxu0 }
 0x26d   : > { %v1963_v25 = vpop.f32.mrf.mxu3  ;;  %v1795_v26 = vadd.f32 %v1794_v24, %v1626_v23  ;;  %v1628_v28 = vpop.f32.mrf.mxu1 }
 0x26e   : > { %v1629_v36 = vadd.f32 %v1628_v28, %v1459_v27 }
 0x26f   : > { %v1964_v30 = vadd.f32 %v1963_v25, %v1795_v26  ;;  %v2300_v25 = vadd.f32 %v2299_v18, %v2237_v11 }
 0x271   : > { %v3446_v31 = vpack.c.bf16 %v1964_v30, %v1962_v29  ;;  %v2238_v22 = vmul.f32 %v1964_v30, %v1964_v30  ;;  %v2168_v63 = vadd.f32 %v2167_v21, %v1964_v30 }
 0x273   : > { %3494 = vst [vmem:[%s3718_s26 + $0xd8] sm:$0xff] %v3446_v31   ;;  %v2301_v1 = vadd.f32 %v2300_v25, %v2238_v22 }
 0x274   : > { %v1797_v32 = vpop.f32.mrf.mxu2  ;;  %v1461_v34 = vpop.f32.mrf.mxu0 }
 0x275   : > { %v1966_v33 = vpop.f32.mrf.mxu3  ;;  %v1630_v35 = vpop.f32.mrf.mxu1  ;;  %v1798_v37 = vadd.f32 %v1797_v32, %v1629_v36 }
 0x276   : > { %v1631_v38 = vadd.f32 %v1630_v35, %v1461_v34 }
 0x277   : > { %v1967_v44 = vadd.f32 %v1966_v33, %v1798_v37 }
 0x279   : > { %v2239_v14 = vmul.f32 %v1967_v44, %v1967_v44  ;;  %v2169_v28 = vadd.f32 %v2168_v63, %v1967_v44 }
 0x27b   : > { %v2302_v33 = vadd.f32 %v2301_v1, %v2239_v14 }
 0x27c   : > { %v1799_v39 = vpop.f32.mrf.mxu2  ;;  %v1464_v42 = vpop.f32.mrf.mxu0 }
 0x27d   : > { %v1968_v40 = vpop.f32.mrf.mxu3  ;;  %v1800_v41 = vadd.f32 %v1799_v39, %v1631_v38  ;;  %v1633_v43 = vpop.f32.mrf.mxu1 }
 0x27e   : > { %v1634_v51 = vadd.f32 %v1633_v43, %v1464_v42 }
 0x27f   : > { %v1969_v45 = vadd.f32 %v1968_v40, %v1800_v41 }
 0x281   : > { %v3451_v46 = vpack.c.bf16 %v1969_v45, %v1967_v44  ;;  %v2240_v31 = vmul.f32 %v1969_v45, %v1969_v45  ;;  %v2170_v34 = vadd.f32 %v2169_v28, %v1969_v45 }
 0x283   : > { %3495 = vst [vmem:[%s3718_s26 + $0xe0] sm:$0xff] %v3451_v46   ;;  %v2303_v37 = vadd.f32 %v2302_v33, %v2240_v31 }
 0x284   : > { %v1802_v47 = vpop.f32.mrf.mxu2  ;;  %v1466_v49 = vpop.f32.mrf.mxu0 }
 0x285   : > { %v1971_v48 = vpop.f32.mrf.mxu3  ;;  %v1635_v50 = vpop.f32.mrf.mxu1  ;;  %v1803_v52 = vadd.f32 %v1802_v47, %v1634_v51 }
 0x286   : > { %v1636_v53 = vadd.f32 %v1635_v50, %v1466_v49 }
 0x287   : > { %v1972_v59 = vadd.f32 %v1971_v48, %v1803_v52 }
 0x289   : > { %v2241_v35 = vmul.f32 %v1972_v59, %v1972_v59  ;;  %v2171_v29 = vadd.f32 %v2170_v34, %v1972_v59 }
 0x28b   : > { %v2304_v41 = vadd.f32 %v2303_v37, %v2241_v35 }
 0x28c   : > { %v1804_v54 = vpop.f32.mrf.mxu2  ;;  %v1469_v57 = vpop.f32.mrf.mxu0 }
 0x28d   : > { %v1973_v55 = vpop.f32.mrf.mxu3  ;;  %v1805_v56 = vadd.f32 %v1804_v54, %v1636_v53  ;;  %v1638_v58 = vpop.f32.mrf.mxu1 }
 0x28e   : > { %v1639_v4 = vadd.f32 %v1638_v58, %v1469_v57 }
 0x28f   : > { %v1974_v60 = vadd.f32 %v1973_v55, %v1805_v56 }
 0x291   : > { %v3456_v61 = vpack.c.bf16 %v1974_v60, %v1972_v59  ;;  %v2242_v38 = vmul.f32 %v1974_v60, %v1974_v60  ;;  %v2172_v30 = vadd.f32 %v2171_v29, %v1974_v60 }
 0x293   : > { %3496 = vst [vmem:[%s3718_s26 + $0xe8] sm:$0xff] %v3456_v61   ;;  %v2305_v46 = vadd.f32 %v2304_v41, %v2242_v38 }
 0x294   : > { %v1807_v62 = vpop.f32.mrf.mxu2  ;;  %v1471_v2 = vpop.f32.mrf.mxu0 }
 0x295   : > { %v1976_v0 = vpop.f32.mrf.mxu3  ;;  %v1640_v3 = vpop.f32.mrf.mxu1  ;;  %v1808_v8 = vadd.f32 %v1807_v62, %v1639_v4 }
 0x296   : > { %v1641_v9 = vadd.f32 %v1640_v3, %v1471_v2 }
 0x297   : > { %v1977_v23 = vadd.f32 %v1976_v0, %v1808_v8 }
 0x299   : > { %v2243_v42 = vmul.f32 %v1977_v23, %v1977_v23  ;;  %v2173_v47 = vadd.f32 %v2172_v30, %v1977_v23 }
 0x29b   : > { %v2306_v50 = vadd.f32 %v2305_v46, %v2243_v42 }
 0x29c   : > { %v1809_v12 = vpop.f32.mrf.mxu2  ;;  %v1474_v19 = vpop.f32.mrf.mxu0 }
 0x29d   : > { %v1978_v13 = vpop.f32.mrf.mxu3  ;;  %v1810_v17 = vadd.f32 %v1809_v12, %v1641_v9  ;;  %v1643_v20 = vpop.f32.mrf.mxu1 }
 0x29e   : > { %v1644_v27 = vadd.f32 %v1643_v20, %v1474_v19 }
 0x29f   : > { %v1979_v24 = vadd.f32 %v1978_v13, %v1810_v17 }
 0x2a1   : > { %v3461_v26 = vpack.c.bf16 %v1979_v24, %v1977_v23  ;;  %v2244_v44 = vmul.f32 %v1979_v24, %v1979_v24  ;;  %v2174_v51 = vadd.f32 %v2173_v47, %v1979_v24 }
 0x2a3   : > { %3497 = vst [vmem:[%s3718_s26 + $0xf0] sm:$0xff] %v3461_v26   ;;  %v2307_v54 = vadd.f32 %v2306_v50, %v2244_v44 }
 0x2a4   : > { %v1812_v32 = vpop.f32.mrf.mxu2  ;;  %v1476_v39 = vpop.f32.mrf.mxu0 }
 0x2a5   : > { %v1981_v15 = vpop.f32.mrf.mxu3  ;;  %v1813_v36 = vadd.f32 %v1812_v32, %v1644_v27  ;;  %v1645_v40 = vpop.f32.mrf.mxu1 }
 0x2a6   : > { %v1646_v48 = vadd.f32 %v1645_v40, %v1476_v39 }
 0x2a7   : > { %v1982_v43 = vadd.f32 %v1981_v15, %v1813_v36 }
 0x2a9   : > { %v2245_v45 = vmul.f32 %v1982_v43, %v1982_v43  ;;  %v2175_v55 = vadd.f32 %v2174_v51, %v1982_v43 }
 0x2ab   : > { %v2308_v57 = vadd.f32 %v2307_v54, %v2245_v45 }
 0x2ac   : > { %v1814_v49 = vpop.f32.mrf.mxu2 }
 0x2ad   : > { %v1815_v52 = vadd.f32 %v1814_v49, %v1646_v48  ;;  %v1983_v53 = vpop.f32.mrf.mxu3 }
 0x2af   : > { %v1984_v56 = vadd.f32 %v1983_v53, %v1815_v52 }
 0x2b1   : > { %v3466_v58 = vpack.c.bf16 %v1984_v56, %v1982_v43  ;;  %v2176_v59 = vadd.f32 %v2175_v55, %v1984_v56  ;;  %v2246_v60 = vmul.f32 %v1984_v56, %v1984_v56 }
 0x2b3   : > { %3498 = vst [vmem:[%s3718_s26 + $0xf8] sm:$0xff] %v3466_v58   ;;  %v2177_v61 = vrot.slane %v2176_v59, 4  ;;  %v2309_v62 = vadd.f32 %v2308_v57, %v2246_v60 }
 0x2b5   : > { %v2178_v0 = vadd.f32 %v2177_v61, %v2176_v59  ;;  %v2310_v2 = vrot.slane %v2309_v62, 4 }
 0x2b7   : > { %v2179_v3 = vrot.slane %v2178_v0, 2  ;;  %v2311_v4 = vadd.f32 %v2310_v2, %v2309_v62 }
 0x2b9   : > { %v2180_v5 = vadd.f32 %v2179_v3, %v2178_v0  ;;  %v2312_v6 = vrot.slane %v2311_v4, 2 }
 0x2bb   : > { %v2181_v7 = vrot.slane %v2180_v5, 1  ;;  %v2313_v8 = vadd.f32 %v2312_v6, %v2311_v4 }
 0x2bd   : > { %v2314_v9 = vrot.slane %v2313_v8, 1  ;;  %v2182_v10 = vadd.f32 %v2181_v7, %v2180_v5 }
 0x2bf   : > { %v2315_v11 = vadd.f32 %v2314_v9, %v2313_v8 }
 0x2c1   : > { %v2317_v12 = vsel %vm2316_vm0, %v2182_v10, %v2315_v11 }
 0x2c2   : > { %2318 = vst [vmem:[%s285_s30] sm:$0x3] %v2317_v12 }
 0x2c3 PF: > { %s14_s14 = sadd.s32 1, %s3545_s14   ;;  %s3957_s12 = smov %s3541_s13 }
 0x2c4   : > { %p11_p5 = scmp.ge.s32.totalorder %s14_s14, 6   ;;  %s3958_s13 = smov %s3960_s15 }
 0x2c6   :  { %13 = sbr.rel (!%p11_p5) target bundleno = 2 (0x2), region = 73 }

// kernel: netG_forward.17
= control target key start
LH: loop header
LB: loop body
LE: loop exit
PB: predicated region body
PF: predicated region fallthrough
CT: control target
= control target key end

     0   :  { %s6467_s12 = smov 0   ;;  %s6469_s13 = smov 0   ;;  %s7830_s0 = inlined_call_operand.vmem [shape: bf16[1,2048,1152], index: 0, kind: input, shape index: {}]   ;;  %s7831_s1 = inlined_call_operand.vmem [shape: bf16[1,1152,128], index: 1, kind: input, shape index: {}]   ;;  %s7832_s2 = inlined_call_operand.vmem [shape: f32[1,128], index: 2, kind: input, shape index: {}]   ;;  %s7833_s3 = inlined_call_operand.vmem [shape: f32[1,2048,128], index: 3, kind: output, shape index: {}]  }
   0x1   :  { %s6471_s14 = smov 0  }
   0x2 LB: > { %s28_s15 = sadd.s32 1, %s6441_s13  ;;  %p4436_p0 = scmp.ge.s32.totalorder %s6445_s14, 1  ;;  %s6445_s14 = sphi %s6471_s14, %s13_s14   ;;  %s6441_s13 = sphi %s6469_s13, %s7923_s13   ;;  %s6437_s12 = sphi %s6467_s12, %s7922_s12  }
   0x3   : > { %p30_p1 = scmp.ge.s32.totalorder %s28_s15, 4  ;;  %p191_p2 = scmp.lt.s32.totalorder %s6445_s14, 5 }
   0x5   : > { %s7925_s15 = smov (%p30_p1, %s28_s15), 0  ;;  %p192_p3 = pnand %p4436_p0, %p191_p2 }
   0x7   : > { %195 = sbr.rel (%p192_p3) target bundleno = 1334 (0x536), region = 32 }
   0xc   : > { %v6178_v0 = vld [vmem:[%s7831_s1 + $0x38] sm:$0xff]  ;;  %v6177_v1 = vld [vmem:[%s7831_s1 + $0x30] sm:$0xff]  ;;  %v6176_v2 = vld [vmem:[%s7831_s1 + $0x28] sm:$0xff]  ;;  %s4437_s22 = sshll.u32 %s6437_s12, 6 }
   0xd   : > { %6243 = vmatpush.bf16.msra.mxu1 %v6178_v0  ;;  %6244 = vmatpush.bf16.msra.mxu2 %v6178_v0  ;;  %v6175_v3 = vld [vmem:[%s7831_s1 + $0x20] sm:$0xff]  ;;  %p241_p4 = scmp.lt.s32.totalorder %s4437_s22, 255  ;;  %v6174_v4 = vld [vmem:[%s7831_s1 + $0x18] sm:$0xff]  ;;  %v6173_v5 = vld [vmem:[%s7831_s1 + $0x10] sm:$0xff] }
   0xe   : > { %6245 = vmatpush.bf16.msra.mxu3 %v6178_v0  ;;  %2645 = vmatpush.bf16.msra.mxu0 %v6178_v0  ;;  %v6172_v6 = vld [vmem:[%s7831_s1 + $0x8] sm:$0xff]  ;;  %v6171_v7 = vld [vmem:[%s7831_s1] sm:$0xff]  ;;  %v6194_v16 = vld [vmem:[%s7831_s1 + $0xb8] sm:$0xff] }
   0xf   : > { %s7927_s22 = smov (!%p241_p4, %s4437_s22), 255  ;;  %v6202_v17 = vld [vmem:[%s7831_s1 + $0xf8] sm:$0xff]  ;;  %v6193_v24 = vld [vmem:[%s7831_s1 + $0xb0] sm:$0xff]  ;;  %v6192_v28 = vld [vmem:[%s7831_s1 + $0xa8] sm:$0xff] }
  0x10   : > { %s6267_s29 = smul.u32 36, %s7927_s22  ;;  %v6186_v22 = vld [vmem:[%s7831_s1 + $0x78] sm:$0xff]  ;;  %v6201_v25 = vld [vmem:[%s7831_s1 + $0xf0] sm:$0xff]  ;;  %v6200_v29 = vld [vmem:[%s7831_s1 + $0xe8] sm:$0xff]  ;;  %s4440_s12 = sshll.u32 %s7927_s22, 3 }
  0x11   : > { %6246 = vmatpush.bf16.msra.mxu1 %v6177_v1  ;;  %6247 = vmatpush.bf16.msra.mxu2 %v6177_v1  ;;  %v6210_v23 = vld [vmem:[%s7831_s1 + $0x138] sm:$0xff]  ;;  %v6185_v26 = vld [vmem:[%s7831_s1 + $0x70] sm:$0xff]  ;;  %v6184_v30 = vld [vmem:[%s7831_s1 + $0x68] sm:$0xff]  ;;  %s7517_s18 = scalar_lea.vmem %s7833_s3, %s4440_s12 }
  0x12   : > { %6248 = vmatpush.bf16.msra.mxu3 %v6177_v1  ;;  %2646 = vmatpush.bf16.msra.mxu0 %v6177_v1  ;;  %s6515_s7 = scalar_lea.vmem %s7830_s0, %s6267_s29  ;;  %v6209_v27 = vld [vmem:[%s7831_s1 + $0x130] sm:$0xff]  ;;  %v6208_v31 = vld [vmem:[%s7831_s1 + $0x128] sm:$0xff]  ;;  %v6191_v44 = vld [vmem:[%s7831_s1 + $0xa0] sm:$0xff] }
  0x13   : > { %v4731_v8 = vld [vmem:[%s6515_s7 + $0x240] sm:$0xf]  ;;  %v5959_v9 = vld [vmem:[%s6515_s7 + $0x260] sm:$0xf0]  ;;  %v4767_v32 = vld [vmem:[%s6515_s7 + $0x288] sm:$0xf] }
  0x14   : > { %v5019_v10 = vld [vmem:[%s6515_s7 + $0x480] sm:$0xf]  ;;  %v6031_v11 = vld [vmem:[%s6515_s7 + $0x4a0] sm:$0xf0]  ;;  %v4732_v18 = vor.u32 %v5959_v9, %v4731_v8  ;;  %v5968_v33 = vld [vmem:[%s6515_s7 + $0x2a8] sm:$0xf0] }
  0x15   : > { %6249 = vmatpush.bf16.msra.mxu1 %v6176_v2  ;;  %6250 = vmatpush.bf16.msra.mxu2 %v6176_v2  ;;  %v5307_v12 = vld [vmem:[%s6515_s7 + $0x6c0] sm:$0xf]  ;;  %v6103_v13 = vld [vmem:[%s6515_s7 + $0x6e0] sm:$0xf0]  ;;  %v5020_v19 = vor.u32 %v6031_v11, %v5019_v10  ;;  %v5055_v34 = vld [vmem:[%s6515_s7 + $0x4c8] sm:$0xf]  ;;  %v4768_v40 = vor.u32 %v5968_v33, %v4767_v32 }
  0x16   : > { %6251 = vmatpush.bf16.msra.mxu3 %v6176_v2  ;;  %2647 = vmatpush.bf16.msra.mxu0 %v6176_v2  ;;  %v4443_v14 = vld [vmem:[%s6515_s7] sm:$0xf]  ;;  %v5887_v15 = vld [vmem:[%s6515_s7 + $0x20] sm:$0xf0]  ;;  %v5308_v20 = vor.u32 %v6103_v13, %v5307_v12  ;;  %v6040_v35 = vld [vmem:[%s6515_s7 + $0x4e8] sm:$0xf0] }
  0x17   : > { %v4444_v21 = vor.u32 %v5887_v15, %v4443_v14  ;;  %v5343_v36 = vld [vmem:[%s6515_s7 + $0x708] sm:$0xf]  ;;  %v6112_v37 = vld [vmem:[%s6515_s7 + $0x728] sm:$0xf0]  ;;  %v5056_v41 = vor.u32 %v6040_v35, %v5055_v34  ;;  %v6199_v45 = vld [vmem:[%s7831_s1 + $0xe0] sm:$0xff] }
  0x18   : > { %v4479_v38 = vld [vmem:[%s6515_s7 + $0x48] sm:$0xf]  ;;  %v5896_v39 = vld [vmem:[%s6515_s7 + $0x68] sm:$0xf0]  ;;  %v5344_v42 = vor.u32 %v6112_v37, %v5343_v36  ;;  %v6183_v46 = vld [vmem:[%s7831_s1 + $0x60] sm:$0xff] }
  0x19   : > { %6252 = vmatpush.bf16.msra.mxu1 %v6175_v3  ;;  %6253 = vmatpush.bf16.msra.mxu2 %v6175_v3  ;;  %v4480_v43 = vor.u32 %v5896_v39, %v4479_v38  ;;  %v6207_v47 = vld [vmem:[%s7831_s1 + $0x120] sm:$0xff]  ;;  %v4803_v48 = vld [vmem:[%s6515_s7 + $0x2d0] sm:$0xf]  ;;  %v5977_v49 = vld [vmem:[%s6515_s7 + $0x2f0] sm:$0xf0] }
  0x1a   : > { %6254 = vmatpush.bf16.msra.mxu3 %v6175_v3  ;;  %2648 = vmatpush.bf16.msra.mxu0 %v6175_v3  ;;  %v5091_v50 = vld [vmem:[%s6515_s7 + $0x510] sm:$0xf]  ;;  %v6049_v51 = vld [vmem:[%s6515_s7 + $0x530] sm:$0xf0]  ;;  %v4804_v56 = vor.u32 %v5977_v49, %v4803_v48  ;;  %v6190_v60 = vld [vmem:[%s7831_s1 + $0x98] sm:$0xff] }
  0x1b   : > { %v5379_v52 = vld [vmem:[%s6515_s7 + $0x750] sm:$0xf]  ;;  %v6121_v53 = vld [vmem:[%s6515_s7 + $0x770] sm:$0xf0]  ;;  %v5092_v57 = vor.u32 %v6049_v51, %v5091_v50  ;;  %v6198_v61 = vld [vmem:[%s7831_s1 + $0xd8] sm:$0xff] }
  0x1c   : > { %v4515_v54 = vld [vmem:[%s6515_s7 + $0x90] sm:$0xf]  ;;  %v5905_v55 = vld [vmem:[%s6515_s7 + $0xb0] sm:$0xf0]  ;;  %v5380_v58 = vor.u32 %v6121_v53, %v5379_v52  ;;  %v6182_v62 = vld [vmem:[%s7831_s1 + $0x58] sm:$0xff] }
  0x1d   : > { %6255 = vmatpush.bf16.msra.mxu1 %v6174_v4  ;;  %6256 = vmatpush.bf16.msra.mxu2 %v6174_v4  ;;  %v4516_v59 = vor.u32 %v5905_v55, %v4515_v54  ;;  %v6206_v63 = vld [vmem:[%s7831_s1 + $0x118] sm:$0xff]  ;;  %v6189_v12 = vld [vmem:[%s7831_s1 + $0x90] sm:$0xff]  ;;  %v4911_v32 = vld [vmem:[%s6515_s7 + $0x3a8] sm:$0xf] }
  0x1e   : > { %6257 = vmatpush.bf16.msra.mxu3 %v6174_v4  ;;  %2649 = vmatpush.bf16.msra.mxu0 %v6174_v4  ;;  %v4839_v0 = vld [vmem:[%s6515_s7 + $0x318] sm:$0xf]  ;;  %v5986_v1 = vld [vmem:[%s6515_s7 + $0x338] sm:$0xf0]  ;;  %v6197_v13 = vld [vmem:[%s7831_s1 + $0xd0] sm:$0xff] }
  0x1f   : > { %v5127_v2 = vld [vmem:[%s6515_s7 + $0x558] sm:$0xf]  ;;  %v6058_v3 = vld [vmem:[%s6515_s7 + $0x578] sm:$0xf0]  ;;  %v4840_v8 = vor.u32 %v5986_v1, %v4839_v0  ;;  %v6181_v14 = vld [vmem:[%s7831_s1 + $0x50] sm:$0xff] }
  0x20   : > { %v5415_v4 = vld [vmem:[%s6515_s7 + $0x798] sm:$0xf]  ;;  %v5128_v9 = vor.u32 %v6058_v3, %v5127_v2  ;;  %v6205_v15 = vld [vmem:[%s7831_s1 + $0x110] sm:$0xff]  ;;  %v6004_v33 = vld [vmem:[%s6515_s7 + $0x3c8] sm:$0xf0] }
  0x21   : > { %6258 = vmatpush.bf16.msra.mxu1 %v6173_v5  ;;  %6259 = vmatpush.bf16.msra.mxu2 %v6173_v5  ;;  %v5199_v34 = vld [vmem:[%s6515_s7 + $0x5e8] sm:$0xf]  ;;  %v6076_v35 = vld [vmem:[%s6515_s7 + $0x608] sm:$0xf0]  ;;  %v4947_v48 = vld [vmem:[%s6515_s7 + $0x3f0] sm:$0xf] }
  0x22   : > { %6260 = vmatpush.bf16.msra.mxu3 %v6173_v5  ;;  %2650 = vmatpush.bf16.msra.mxu0 %v6173_v5  ;;  %v6130_v5 = vld [vmem:[%s6515_s7 + $0x7b8] sm:$0xf0]  ;;  %v5487_v36 = vld [vmem:[%s6515_s7 + $0x828] sm:$0xf]  ;;  %v6148_v37 = vld [vmem:[%s6515_s7 + $0x848] sm:$0xf0] }
  0x23   : > { %v5416_v10 = vor.u32 %v6130_v5, %v5415_v4  ;;  %v4623_v38 = vld [vmem:[%s6515_s7 + $0x168] sm:$0xf]  ;;  %v5932_v39 = vld [vmem:[%s6515_s7 + $0x188] sm:$0xf0]  ;;  %v6013_v49 = vld [vmem:[%s6515_s7 + $0x410] sm:$0xf0] }
  0x24   : > { %v5235_v50 = vld [vmem:[%s6515_s7 + $0x630] sm:$0xf]  ;;  %v6085_v51 = vld [vmem:[%s6515_s7 + $0x650] sm:$0xf0]  ;;  %v4983_v0 = vld [vmem:[%s6515_s7 + $0x438] sm:$0xf] }
  0x25   : > { %6261 = vmatpush.bf16.msra.mxu1 %v6172_v6  ;;  %6262 = vmatpush.bf16.msra.mxu2 %v6172_v6  ;;  %v5523_v52 = vld [vmem:[%s6515_s7 + $0x870] sm:$0xf]  ;;  %v6157_v53 = vld [vmem:[%s6515_s7 + $0x890] sm:$0xf0]  ;;  %v6022_v1 = vld [vmem:[%s6515_s7 + $0x458] sm:$0xf0] }
  0x26   : > { %6263 = vmatpush.bf16.msra.mxu3 %v6172_v6  ;;  %2651 = vmatpush.bf16.msra.mxu0 %v6172_v6  ;;  %v4551_v6 = vld [vmem:[%s6515_s7 + $0xd8] sm:$0xf]  ;;  %v4659_v54 = vld [vmem:[%s6515_s7 + $0x1b0] sm:$0xf]  ;;  %v5941_v55 = vld [vmem:[%s6515_s7 + $0x1d0] sm:$0xf0] }
  0x27   : > { %v5271_v2 = vld [vmem:[%s6515_s7 + $0x678] sm:$0xf]  ;;  %v6094_v3 = vld [vmem:[%s6515_s7 + $0x698] sm:$0xf0] }
  0x28   : > { %v5559_v4 = vld [vmem:[%s6515_s7 + $0x8b8] sm:$0xf]  ;;  %v6166_v5 = vld [vmem:[%s6515_s7 + $0x8d8] sm:$0xf0] }
  0x29   : > { %6264 = vmatpush.bf16.msra.mxu1 %v6171_v7  ;;  %6265 = vmatpush.bf16.msra.mxu2 %v6171_v7 }
  0x2a   : > { %6266 = vmatpush.bf16.msra.mxu3 %v6171_v7  ;;  %2652 = vmatpush.bf16.msra.mxu0 %v6171_v7  ;;  %v5914_v7 = vld [vmem:[%s6515_s7 + $0xf8] sm:$0xf0] }
  0x2b   : > { %v4552_v11 = vor.u32 %v5914_v7, %v4551_v6  ;;  %v4695_v6 = vld [vmem:[%s6515_s7 + $0x1f8] sm:$0xf]  ;;  %v5950_v7 = vld [vmem:[%s6515_s7 + $0x218] sm:$0xf0] }
  0x2c   : > { %2693 = vmatmul.bf16.vlgmr.msra.gmra.mxu1 %v4732_v18  ;;  %2733 = vmatmul.bf16.vlgmr.msra.gmra.mxu2 %v5020_v19  ;;  %v5163_v18 = vld [vmem:[%s6515_s7 + $0x5a0] sm:$0xf]  ;;  %v6067_v19 = vld [vmem:[%s6515_s7 + $0x5c0] sm:$0xf0] }
  0x2d   : > { %2983 = vmatpush.bf16.msrb.mxu2 %v6194_v16  ;;  %2773 = vmatmul.bf16.vlgmr.msra.gmra.mxu3 %v5308_v20  ;;  %v4875_v16 = vld [vmem:[%s6515_s7 + $0x360] sm:$0xf] }
  0x2e   : > { %3152 = vmatpush.bf16.msrb.mxu3 %v6202_v17  ;;  %2653 = vmatmul.bf16.vlgmr.msra.gmra.mxu0 %v4444_v21  ;;  %v5995_v17 = vld [vmem:[%s6515_s7 + $0x380] sm:$0xf0]  ;;  %v5451_v20 = vld [vmem:[%s6515_s7 + $0x7e0] sm:$0xf] }
  0x2f   : > { %2814 = vmatpush.bf16.msrb.mxu1 %v6186_v22  ;;  %3321 = vmatpush.bf16.msrb.mxu0 %v6210_v23  ;;  %v6139_v21 = vld [vmem:[%s6515_s7 + $0x800] sm:$0xf0]  ;;  %v4587_v22 = vld [vmem:[%s6515_s7 + $0x120] sm:$0xf] }
  0x30   : > { %v5923_v23 = vld [vmem:[%s6515_s7 + $0x140] sm:$0xf0] }
  0x31   : > { %2984 = vmatpush.bf16.msrb.mxu2 %v6193_v24  ;;  %v4876_v24 = vor.u32 %v5995_v17, %v4875_v16  ;;  %v5884_v16 = vld [vmem:[%s6515_s7 + $0xc] sm:$0xf]  ;;  %v4453_v17 = vld [vmem:[%s6515_s7 + $0x2c] sm:$0xf0] }
  0x32   : > { %3153 = vmatpush.bf16.msrb.mxu3 %v6201_v25  ;;  %v5164_v25 = vor.u32 %v6067_v19, %v5163_v18  ;;  %v4459_v18 = vld [vmem:[%s6515_s7 + $0x10] sm:$0xf]  ;;  %v5889_v19 = vld [vmem:[%s6515_s7 + $0x30] sm:$0xf0] }
  0x33   : > { %2815 = vmatpush.bf16.msrb.mxu1 %v6185_v26  ;;  %3322 = vmatpush.bf16.msrb.mxu0 %v6209_v27  ;;  %v5452_v26 = vor.u32 %v6139_v21, %v5451_v20  ;;  %v4588_v27 = vor.u32 %v5923_v23, %v4587_v22  ;;  %v4456_v23 = vor.u32 %v5884_v16, %v4453_v17  ;;  %v4567_v16 = vld [vmem:[%s6515_s7 + $0xe8] sm:$0xf]  ;;  %v5916_v17 = vld [vmem:[%s6515_s7 + $0x108] sm:$0xf0] }
  0x35   : > { %2985 = vmatpush.bf16.msrb.mxu2 %v6192_v28  ;;  %v6188_v28 = vld [vmem:[%s7831_s1 + $0x88] sm:$0xff] }
  0x36   : > { %3154 = vmatpush.bf16.msrb.mxu3 %v6200_v29  ;;  %v6196_v29 = vld [vmem:[%s7831_s1 + $0xc8] sm:$0xff] }
  0x37   : > { %2816 = vmatpush.bf16.msrb.mxu1 %v6184_v30  ;;  %3323 = vmatpush.bf16.msrb.mxu0 %v6208_v31  ;;  %v6180_v30 = vld [vmem:[%s7831_s1 + $0x48] sm:$0xff] }
  0x38   : > { %v6204_v31 = vld [vmem:[%s7831_s1 + $0x108] sm:$0xff] }
  0x39   : > { %2986 = vmatpush.bf16.msrb.mxu2 %v6191_v44  ;;  %v6187_v44 = vld [vmem:[%s7831_s1 + $0x80] sm:$0xff] }
  0x3a   : > { %3155 = vmatpush.bf16.msrb.mxu3 %v6199_v45  ;;  %v6195_v45 = vld [vmem:[%s7831_s1 + $0xc0] sm:$0xff] }
  0x3b   : > { %2817 = vmatpush.bf16.msrb.mxu1 %v6183_v46  ;;  %3324 = vmatpush.bf16.msrb.mxu0 %v6207_v47  ;;  %v6179_v46 = vld [vmem:[%s7831_s1 + $0x40] sm:$0xff] }
  0x3c   : > { %2698 = vmatmul.bf16.gmra.mxu1 %v4768_v40  ;;  %2738 = vmatmul.bf16.gmra.mxu2 %v5056_v41  ;;  %v4912_v40 = vor.u32 %v6004_v33, %v4911_v32  ;;  %v5200_v41 = vor.u32 %v6076_v35, %v5199_v34  ;;  %v6203_v47 = vld [vmem:[%s7831_s1 + $0x100] sm:$0xff]  ;;  %v4487_v32 = vld [vmem:[%s6515_s7 + $0x50] sm:$0xf]  ;;  %v5897_v33 = vld [vmem:[%s6515_s7 + $0x70] sm:$0xf0] }
  0x3d   : > { %2778 = vmatmul.bf16.gmra.mxu3 %v5344_v42  ;;  %2987 = vmatpush.bf16.msrb.mxu2 %v6190_v60  ;;  %v5488_v42 = vor.u32 %v6148_v37, %v5487_v36  ;;  %v6226_v60 = vld [vmem:[%s7831_s1 + $0x1b8] sm:$0xff]  ;;  %v5893_v34 = vld [vmem:[%s6515_s7 + $0x54] sm:$0xf] }
  0x3e   : > { %2658 = vmatmul.bf16.gmra.mxu0 %v4480_v43  ;;  %3156 = vmatpush.bf16.msrb.mxu3 %v6198_v61  ;;  %v4624_v43 = vor.u32 %v5932_v39, %v4623_v38  ;;  %v6234_v61 = vld [vmem:[%s7831_s1 + $0x1f8] sm:$0xff] }
  0x3f   : > { %2818 = vmatpush.bf16.msrb.mxu1 %v6182_v62  ;;  %3325 = vmatpush.bf16.msrb.mxu0 %v6206_v63  ;;  %v6218_v62 = vld [vmem:[%s7831_s1 + $0x178] sm:$0xff] }
  0x40   : > { %v6242_v63 = vld [vmem:[%s7831_s1 + $0x238] sm:$0xff] }
  0x41   : > { %2988 = vmatpush.bf16.msrb.mxu2 %v6189_v12  ;;  %v5883_v12 = vld [vmem:[%s6515_s7 + $0x4] sm:$0xf]  ;;  %v4489_v35 = vld [vmem:[%s6515_s7 + $0x74] sm:$0xf0]  ;;  %v5898_v37 = vld [vmem:[%s6515_s7 + $0x78] sm:$0xf0] }
  0x42   : > { %3157 = vmatpush.bf16.msrb.mxu3 %v6197_v13  ;;  %v4445_v13 = vld [vmem:[%s6515_s7 + $0x24] sm:$0xf0]  ;;  %v4495_v36 = vld [vmem:[%s6515_s7 + $0x58] sm:$0xf] }
  0x43   : > { %2819 = vmatpush.bf16.msrb.mxu1 %v6181_v14  ;;  %3326 = vmatpush.bf16.msrb.mxu0 %v6205_v15  ;;  %v4451_v14 = vld [vmem:[%s6515_s7 + $0x8] sm:$0xf]  ;;  %v5888_v15 = vld [vmem:[%s6515_s7 + $0x28] sm:$0xf0]  ;;  %v4448_v20 = vor.u32 %v5883_v12, %v4445_v13  ;;  %v4559_v12 = vld [vmem:[%s6515_s7 + $0xe0] sm:$0xf] }
  0x44   : > { %v4452_v21 = vor.u32 %v5888_v15, %v4451_v14  ;;  %v5915_v13 = vld [vmem:[%s6515_s7 + $0x100] sm:$0xf0]  ;;  %v4561_v15 = vld [vmem:[%s6515_s7 + $0x104] sm:$0xf0] }
  0x45   : > { %2989 = vmatpush.bf16.msrb.mxu2 %v6188_v28  ;;  %v5911_v14 = vld [vmem:[%s6515_s7 + $0xe4] sm:$0xf] }
  0x46   : > { %3158 = vmatpush.bf16.msrb.mxu3 %v6196_v29 }
  0x47   : > { %2820 = vmatpush.bf16.msrb.mxu1 %v6180_v30  ;;  %3327 = vmatpush.bf16.msrb.mxu0 %v6204_v31  ;;  %v5892_v30 = vld [vmem:[%s6515_s7 + $0x4c] sm:$0xf]  ;;  %v4481_v31 = vld [vmem:[%s6515_s7 + $0x6c] sm:$0xf0] }
  0x49   : > { %2990 = vmatpush.bf16.msrb.mxu2 %v6187_v44  ;;  %v4496_v44 = vor.u32 %v5898_v37, %v4495_v36  ;;  %v5919_v36 = vld [vmem:[%s6515_s7 + $0x124] sm:$0xf]  ;;  %v4589_v37 = vld [vmem:[%s6515_s7 + $0x144] sm:$0xf0] }
  0x4a   : > { %3159 = vmatpush.bf16.msrb.mxu3 %v6195_v45 }
  0x4b   : > { %2821 = vmatpush.bf16.msrb.mxu1 %v6179_v46  ;;  %3328 = vmatpush.bf16.msrb.mxu0 %v6203_v47 }
  0x4c   : > { %2703 = vmatmul.bf16.gmra.mxu1 %v4804_v56  ;;  %2743 = vmatmul.bf16.gmra.mxu2 %v5092_v57  ;;  %v4948_v56 = vor.u32 %v6013_v49, %v4947_v48  ;;  %v5236_v57 = vor.u32 %v6085_v51, %v5235_v50  ;;  %v5901_v50 = vld [vmem:[%s6515_s7 + $0x94] sm:$0xf]  ;;  %v4517_v51 = vld [vmem:[%s6515_s7 + $0xb4] sm:$0xf0] }
  0x4d   : > { %2783 = vmatmul.bf16.gmra.mxu3 %v5380_v58  ;;  %v5524_v58 = vor.u32 %v6157_v53, %v5523_v52  ;;  %3659 = vmatpush.bf16.msra.mxu2 %v6226_v60  ;;  %v4523_v52 = vld [vmem:[%s6515_s7 + $0x98] sm:$0xf]  ;;  %v5906_v53 = vld [vmem:[%s6515_s7 + $0xb8] sm:$0xf0]  ;;  %v4520_v60 = vor.u32 %v5901_v50, %v4517_v51  ;;  %v4603_v50 = vld [vmem:[%s6515_s7 + $0x130] sm:$0xf] }
  0x4e   : > { %2663 = vmatmul.bf16.gmra.mxu0 %v4516_v59  ;;  %v4660_v59 = vor.u32 %v5941_v55, %v4659_v54  ;;  %3828 = vmatpush.bf16.msra.mxu3 %v6234_v61  ;;  %v5902_v54 = vld [vmem:[%s6515_s7 + $0x9c] sm:$0xf]  ;;  %v4525_v55 = vld [vmem:[%s6515_s7 + $0xbc] sm:$0xf0]  ;;  %v4524_v61 = vor.u32 %v5906_v53, %v4523_v52  ;;  %v5925_v51 = vld [vmem:[%s6515_s7 + $0x150] sm:$0xf0] }
  0x4f   : > { %3490 = vmatpush.bf16.msra.mxu1 %v6218_v62  ;;  %3997 = vmatpush.bf16.msra.mxu0 %v6242_v63  ;;  %v4528_v63 = vor.u32 %v5902_v54, %v4525_v55  ;;  %v4592_v54 = vor.u32 %v5919_v36, %v4589_v37 }
  0x5c   : > { %2708 = vmatmul.bf16.gmra.mxu1 %v4840_v8  ;;  %2748 = vmatmul.bf16.gmra.mxu2 %v5128_v9  ;;  %v4984_v8 = vor.u32 %v6022_v1, %v4983_v0  ;;  %v5272_v9 = vor.u32 %v6094_v3, %v5271_v2  ;;  %v6225_v2 = vld [vmem:[%s7831_s1 + $0x1b0] sm:$0xff] }
  0x5d   : > { %2788 = vmatmul.bf16.gmra.mxu3 %v5416_v10  ;;  %v5560_v10 = vor.u32 %v6166_v5, %v5559_v4  ;;  %v6233_v3 = vld [vmem:[%s7831_s1 + $0x1f0] sm:$0xff]  ;;  %3660 = vmatpush.bf16.msra.mxu2 %v6225_v2 }
  0x5e   : > { %2668 = vmatmul.bf16.gmra.mxu0 %v4552_v11  ;;  %v4696_v11 = vor.u32 %v5950_v7, %v4695_v6  ;;  %3829 = vmatpush.bf16.msra.mxu3 %v6233_v3  ;;  %v6217_v7 = vld [vmem:[%s7831_s1 + $0x170] sm:$0xff] }
  0x5f   : > { %3491 = vmatpush.bf16.msra.mxu1 %v6217_v7  ;;  %v5928_v7 = vld [vmem:[%s6515_s7 + $0x16c] sm:$0xf] }
  0x6c   : > { %2713 = vmatmul.bf16.gmra.mxu1 %v4876_v24  ;;  %2753 = vmatmul.bf16.gmra.mxu2 %v5164_v25  ;;  %v4460_v24 = vor.u32 %v5889_v19, %v4459_v18 }
  0x6d   : > { %2793 = vmatmul.bf16.gmra.mxu3 %v5452_v26 }
  0x6e   : > { %2673 = vmatmul.bf16.gmra.mxu0 %v4588_v27 }
  0x7c   : > { %2718 = vmatmul.bf16.gmra.mxu1 %v4912_v40  ;;  %2758 = vmatmul.bf16.gmra.mxu2 %v5200_v41  ;;  %v4484_v40 = vor.u32 %v5892_v30, %v4481_v31  ;;  %v4488_v41 = vor.u32 %v5897_v33, %v4487_v32  ;;  %v4568_v30 = vor.u32 %v5916_v17, %v4567_v16 }
  0x7d   : > { %2798 = vmatmul.bf16.gmra.mxu3 %v5488_v42 }
  0x7e   : > { %2678 = vmatmul.bf16.gmra.mxu0 %v4624_v43  ;;  %v4492_v43 = vor.u32 %v5893_v34, %v4489_v35 }
  0x8c   : > { %2723 = vmatmul.bf16.gmra.mxu1 %v4948_v56  ;;  %2763 = vmatmul.bf16.gmra.mxu2 %v5236_v57  ;;  %v4531_v56 = vld [vmem:[%s6515_s7 + $0xa0] sm:$0xf]  ;;  %v5907_v57 = vld [vmem:[%s6515_s7 + $0xc0] sm:$0xf0] }
  0x8d   : > { %2803 = vmatmul.bf16.gmra.mxu3 %v5524_v58  ;;  %v4532_v0 = vor.u32 %v5907_v57, %v4531_v56 }
  0x8e   : > { %2683 = vmatmul.bf16.gmra.mxu0 %v4660_v59 }
  0x9c   : > { %2728 = vmatmul.bf16.gmra.mxu1 %v4984_v8  ;;  %2768 = vmatmul.bf16.gmra.mxu2 %v5272_v9  ;;  %v6241_v9 = vld [vmem:[%s7831_s1 + $0x230] sm:$0xff] }
  0x9d   : > { %2808 = vmatmul.bf16.gmra.mxu3 %v5560_v10  ;;  %v5910_v10 = vld [vmem:[%s6515_s7 + $0xdc] sm:$0xf]  ;;  %3998 = vmatpush.bf16.msra.mxu0 %v6241_v9  ;;  %v4625_v9 = vld [vmem:[%s6515_s7 + $0x18c] sm:$0xf0] }
  0x9e   : > { %2688 = vmatmul.bf16.gmra.mxu0 %v4696_v11  ;;  %v4553_v11 = vld [vmem:[%s6515_s7 + $0xfc] sm:$0xf0] }
  0xa9   : > { %v6700_v22 = vpop.f32.mrf.mxu1 }
  0xab   : > { %v6702_v25 = vpop.f32.mrf.mxu0 }
  0xac   : > { %2822 = vmatmul.bf16.vlgmr.msrb.gmra.mxu1 %v4448_v20  ;;  %2991 = vmatmul.bf16.vlgmr.msrb.gmra.mxu2 %v4452_v21  ;;  %v4556_v20 = vor.u32 %v5910_v10, %v4553_v11  ;;  %v4560_v21 = vor.u32 %v5915_v13, %v4559_v12  ;;  %v4631_v10 = vld [vmem:[%s6515_s7 + $0x170] sm:$0xf]  ;;  %v5933_v11 = vld [vmem:[%s6515_s7 + $0x190] sm:$0xf0]  ;;  %v4633_v13 = vld [vmem:[%s6515_s7 + $0x194] sm:$0xf0] }
  0xad   : > { %3160 = vmatmul.bf16.vlgmr.msrb.gmra.mxu3 %v4456_v23  ;;  %v5929_v12 = vld [vmem:[%s6515_s7 + $0x174] sm:$0xf] }
  0xae   : > { %3329 = vmatmul.bf16.vlgmr.msrb.gmra.mxu0 %v4460_v24  ;;  %v4564_v24 = vor.u32 %v5911_v14, %v4561_v15  ;;  %v4639_v14 = vld [vmem:[%s6515_s7 + $0x178] sm:$0xf]  ;;  %v5934_v15 = vld [vmem:[%s6515_s7 + $0x198] sm:$0xf0] }
  0xaf   : > { %v6704_v26 = vpop.f32.mrf.mxu2  ;;  %v4640_v36 = vor.u32 %v5934_v15, %v4639_v14 }
  0xb0   : > { %v6706_v27 = vpop.f32.mrf.mxu3 }
  0xb1   : > { %7834 = vst [vmem:[#allocation2_spill] sm:$0xff] %v6706_v27  ;;  %v6708_v28 = vpop.f32.mrf.mxu1 }
  0xb3   : > { %v6710_v29 = vpop.f32.mrf.mxu0 }
  0xb7   : > { %v6720_v38 = vpop.f32.mrf.mxu2 }
  0xb8   : > { %v6722_v39 = vpop.f32.mrf.mxu3 }
  0xb9   : > { %7835 = vst [vmem:[#allocation3_spill] sm:$0xff] %v6722_v39  ;;  %v6724_v42 = vpop.f32.mrf.mxu1 }
  0xbb   : > { %v6726_v45 = vpop.f32.mrf.mxu0 }
  0xbc   : > { %2827 = vmatmul.bf16.gmra.mxu1 %v4484_v40  ;;  %2996 = vmatmul.bf16.gmra.mxu2 %v4488_v41  ;;  %v4595_v40 = vld [vmem:[%s6515_s7 + $0x128] sm:$0xf]  ;;  %v5924_v41 = vld [vmem:[%s6515_s7 + $0x148] sm:$0xf0] }
  0xbd   : > { %3165 = vmatmul.bf16.gmra.mxu3 %v4492_v43  ;;  %v5920_v43 = vld [vmem:[%s6515_s7 + $0x12c] sm:$0xf]  ;;  %v4596_v55 = vor.u32 %v5924_v41, %v4595_v40 }
  0xbe   : > { %3334 = vmatmul.bf16.gmra.mxu0 %v4496_v44  ;;  %v4597_v44 = vld [vmem:[%s6515_s7 + $0x14c] sm:$0xf0] }
  0xbf   : > { %v6728_v46 = vpop.f32.mrf.mxu2  ;;  %v4600_v57 = vor.u32 %v5920_v43, %v4597_v44 }
  0xc0   : > { %v6730_v47 = vpop.f32.mrf.mxu3 }
  0xc1   : > { %7836 = vst [vmem:[#allocation4_spill] sm:$0xff] %v6730_v47  ;;  %v6732_v48 = vpop.f32.mrf.mxu1 }
  0xc3   : > { %v6734_v49 = vpop.f32.mrf.mxu0 }
  0xc7   : > { %v6744_v58 = vpop.f32.mrf.mxu2 }
  0xc8   : > { %v6746_v59 = vpop.f32.mrf.mxu3 }
  0xc9   : > { %7837 = vst [vmem:[#allocation5_spill] sm:$0xff] %v6746_v59  ;;  %v6748_v62 = vpop.f32.mrf.mxu1 }
  0xcb   : > { %v6750_v1 = vpop.f32.mrf.mxu0 }
  0xcc   : > { %2832 = vmatmul.bf16.gmra.mxu1 %v4520_v60  ;;  %3001 = vmatmul.bf16.gmra.mxu2 %v4524_v61  ;;  %v4604_v60 = vor.u32 %v5925_v51, %v4603_v50  ;;  %v5937_v50 = vld [vmem:[%s6515_s7 + $0x1b4] sm:$0xf]  ;;  %v4661_v51 = vld [vmem:[%s6515_s7 + $0x1d4] sm:$0xf0] }
  0xcd   : > { %3170 = vmatmul.bf16.gmra.mxu3 %v4528_v63 }
  0xce   : > { %3339 = vmatmul.bf16.gmra.mxu0 %v4532_v0 }
  0xcf   : > { %v6758_v4 = vpop.f32.mrf.mxu2 }
  0xd0   : > { %v6760_v5 = vpop.f32.mrf.mxu3 }
  0xd1   : > { %7838 = vst [vmem:[#allocation6_spill] sm:$0xff] %v6760_v5  ;;  %v6762_v6 = vpop.f32.mrf.mxu1 }
  0xd3   : > { %v6767_v8 = vpop.f32.mrf.mxu0 }
  0xd7   : > { %v6780_v18 = vpop.f32.mrf.mxu2 }
  0xd8   : > { %v6782_v19 = vpop.f32.mrf.mxu3 }
  0xd9   : > { %7839 = vst [vmem:[#allocation7_spill] sm:$0xff] %v6782_v19  ;;  %v6784_v23 = vpop.f32.mrf.mxu1 }
  0xdb   : > { %v6786_v31 = vpop.f32.mrf.mxu0 }
  0xdc   : > { %2837 = vmatmul.bf16.gmra.mxu1 %v4556_v20  ;;  %3006 = vmatmul.bf16.gmra.mxu2 %v4560_v21  ;;  %v4628_v20 = vor.u32 %v5928_v7, %v4625_v9  ;;  %v4632_v21 = vor.u32 %v5933_v11, %v4631_v10  ;;  %v4675_v7 = vld [vmem:[%s6515_s7 + $0x1c0] sm:$0xf]  ;;  %v5943_v9 = vld [vmem:[%s6515_s7 + $0x1e0] sm:$0xf0] }
  0xdd   : > { %3175 = vmatmul.bf16.gmra.mxu3 %v4564_v24 }
  0xde   : > { %3344 = vmatmul.bf16.gmra.mxu0 %v4568_v30  ;;  %v4636_v30 = vor.u32 %v5929_v12, %v4633_v13  ;;  %v4664_v12 = vor.u32 %v5937_v50, %v4661_v51 }
  0xdf   : > { %v6788_v32 = vpop.f32.mrf.mxu2 }
  0xe0   : > { %v6790_v33 = vpop.f32.mrf.mxu3 }
  0xe1   : > { %7840 = vst [vmem:[#allocation8_spill] sm:$0xff] %v6790_v33  ;;  %v6792_v34 = vpop.f32.mrf.mxu1 }
  0xe3   : > { %v6794_v35 = vpop.f32.mrf.mxu0 }
  0xe7   : > { %v6804_v52 = vpop.f32.mrf.mxu2 }
  0xe8   : > { %v6806_v53 = vpop.f32.mrf.mxu3 }
  0xe9   : > { %7841 = vst [vmem:[#allocation9_spill] sm:$0xff] %v6806_v53  ;;  %v6808_v56 = vpop.f32.mrf.mxu1 }
  0xeb   : > { %v6810_v61 = vpop.f32.mrf.mxu0 }
  0xec   : > { %2842 = vmatmul.bf16.gmra.mxu1 %v4592_v54  ;;  %3011 = vmatmul.bf16.gmra.mxu2 %v4596_v55  ;;  %v4667_v54 = vld [vmem:[%s6515_s7 + $0x1b8] sm:$0xf]  ;;  %v5942_v55 = vld [vmem:[%s6515_s7 + $0x1d8] sm:$0xf0] }
  0xed   : > { %3180 = vmatmul.bf16.gmra.mxu3 %v4600_v57  ;;  %v5938_v57 = vld [vmem:[%s6515_s7 + $0x1bc] sm:$0xf]  ;;  %v4668_v13 = vor.u32 %v5942_v55, %v4667_v54 }
  0xee   : > { %3349 = vmatmul.bf16.gmra.mxu0 %v4604_v60  ;;  %v4669_v60 = vld [vmem:[%s6515_s7 + $0x1dc] sm:$0xf0] }
  0xef   : > { %v6812_v63 = vpop.f32.mrf.mxu2  ;;  %v4672_v15 = vor.u32 %v5938_v57, %v4669_v60  ;;  %v6216_v57 = vld [vmem:[%s7831_s1 + $0x168] sm:$0xff] }
  0xf0   : > { %v6814_v0 = vpop.f32.mrf.mxu3  ;;  %v6240_v60 = vld [vmem:[%s7831_s1 + $0x228] sm:$0xff]  ;;  %3492 = vmatpush.bf16.msra.mxu1 %v6216_v57 }
  0xf1   : > { %7842 = vst [vmem:[#allocation10_spill] sm:$0xff] %v6814_v0  ;;  %v6816_v2 = vpop.f32.mrf.mxu1  ;;  %3999 = vmatpush.bf16.msra.mxu0 %v6240_v60 }
  0xf3   : > { %v6818_v3 = vpop.f32.mrf.mxu0 }
  0xf7   : > { %v6828_v16 = vpop.f32.mrf.mxu2 }
  0xf8   : > { %v6830_v17 = vpop.f32.mrf.mxu3 }
  0xf9   : > { %7843 = vst [vmem:[#allocation11_spill] sm:$0xff] %v6830_v17  ;;  %v6832_v24 = vpop.f32.mrf.mxu1 }
  0xfb   : > { %v6834_v37 = vpop.f32.mrf.mxu0 }
  0xfc   : > { %2847 = vmatmul.bf16.gmra.mxu1 %v4628_v20  ;;  %3016 = vmatmul.bf16.gmra.mxu2 %v4632_v21  ;;  %v4676_v20 = vor.u32 %v5943_v9, %v4675_v7  ;;  %v5946_v7 = vld [vmem:[%s6515_s7 + $0x1fc] sm:$0xf]  ;;  %v4697_v9 = vld [vmem:[%s6515_s7 + $0x21c] sm:$0xf0] }
  0xfd   : > { %3185 = vmatmul.bf16.gmra.mxu3 %v4636_v30  ;;  %v6224_v30 = vld [vmem:[%s7831_s1 + $0x1a8] sm:$0xff] }
  0xfe   : > { %3354 = vmatmul.bf16.gmra.mxu0 %v4640_v36  ;;  %v6232_v36 = vld [vmem:[%s7831_s1 + $0x1e8] sm:$0xff]  ;;  %3661 = vmatpush.bf16.msra.mxu2 %v6224_v30 }
  0xff   : > { %v6836_v40 = vpop.f32.mrf.mxu2  ;;  %3830 = vmatpush.bf16.msra.mxu3 %v6232_v36  ;;  %v4711_v30 = vld [vmem:[%s6515_s7 + $0x208] sm:$0xf]  ;;  %v5952_v36 = vld [vmem:[%s6515_s7 + $0x228] sm:$0xf0] }
 0x100   : > { %7844 = vst [vmem:[#allocation12_spill] sm:$0xff] %v6836_v40  ;;  %v6838_v41 = vpop.f32.mrf.mxu3  ;;  %v4712_v60 = vor.u32 %v5952_v36, %v4711_v30  ;;  %v5960_v30 = vld [vmem:[%s6515_s7 + $0x268] sm:$0xf0]  ;;  %v4741_v36 = vld [vmem:[%s6515_s7 + $0x26c] sm:$0xf0] }
 0x101   : > { %7845 = vst [vmem:[#allocation13_spill] sm:$0xff] %v6838_v41  ;;  %v6840_v43 = vpop.f32.mrf.mxu1  ;;  %v4700_v41 = vor.u32 %v5946_v7, %v4697_v9 }
 0x103   : > { %v6842_v44 = vpop.f32.mrf.mxu0 }
 0x107   : > { %v6852_v10 = vpop.f32.mrf.mxu2 }
 0x108   : > { %7846 = vst [vmem:[#allocation14_spill] sm:$0xff] %v6852_v10  ;;  %v6854_v11 = vpop.f32.mrf.mxu3 }
 0x109   : > { %7847 = vst [vmem:[#allocation15_spill] sm:$0xff] %v6854_v11  ;;  %v6856_v14 = vpop.f32.mrf.mxu1 }
 0x10b   : > { %v6858_v21 = vpop.f32.mrf.mxu0 }
 0x10c   : > { %2852 = vmatmul.bf16.gmra.mxu1 %v4664_v12  ;;  %3021 = vmatmul.bf16.gmra.mxu2 %v4668_v13  ;;  %v4703_v12 = vld [vmem:[%s6515_s7 + $0x200] sm:$0xf]  ;;  %v5951_v13 = vld [vmem:[%s6515_s7 + $0x220] sm:$0xf0] }
 0x10d   : > { %3190 = vmatmul.bf16.gmra.mxu3 %v4672_v15  ;;  %v5947_v15 = vld [vmem:[%s6515_s7 + $0x204] sm:$0xf]  ;;  %v4704_v17 = vor.u32 %v5951_v13, %v4703_v12  ;;  %v6907_v13 = vld [vmem:[%s7832_s2] ss:$0 sm:$0xff] }
 0x10e   : > { %3359 = vmatmul.bf16.gmra.mxu0 %v4676_v20  ;;  %v4705_v20 = vld [vmem:[%s6515_s7 + $0x224] sm:$0xf0] }
 0x10f   : > { %v6866_v50 = vpop.f32.mrf.mxu2  ;;  %v4708_v57 = vor.u32 %v5947_v15, %v4705_v20  ;;  %v5955_v15 = vld [vmem:[%s6515_s7 + $0x244] sm:$0xf]  ;;  %v4733_v20 = vld [vmem:[%s6515_s7 + $0x264] sm:$0xf0] }
 0x110   : > { %7848 = vst [vmem:[#allocation16_spill] sm:$0xff] %v6866_v50  ;;  %v6868_v51 = vpop.f32.mrf.mxu3  ;;  %v4736_v5 = vor.u32 %v5955_v15, %v4733_v20  ;;  %v2657_v15 = vadd.f32 %v6907_v13, %v6710_v29  ;;  %v2660_v29 = vadd.f32 %v6907_v13, %v6726_v45 }
 0x111   : > { %7849 = vst [vmem:[#allocation17_spill] sm:$0xff] %v6868_v51  ;;  %v6870_v54 = vpop.f32.mrf.mxu1 }
 0x113   : > { %v6872_v55 = vpop.f32.mrf.mxu0 }
 0x117   : > { %v6888_v51 = vpop.f32.mrf.mxu2 }
 0x118   : > { %7850 = vst [vmem:[#allocation18_spill] sm:$0xff] %v6888_v51  ;;  %v6890_v11 = vpop.f32.mrf.mxu3 }
 0x119   : > { %7851 = vst [vmem:[#allocation19_spill] sm:$0xff] %v6890_v11  ;;  %v6892_v0 = vpop.f32.mrf.mxu1 }
 0x11b   : > { %v6894_v53 = vpop.f32.mrf.mxu0 }
 0x11c   : > { %2857 = vmatmul.bf16.gmra.mxu1 %v4700_v41  ;;  %3026 = vmatmul.bf16.gmra.mxu2 %v4704_v17  ;;  %v4739_v41 = vld [vmem:[%s6515_s7 + $0x248] sm:$0xf]  ;;  %v5956_v17 = vld [vmem:[%s6515_s7 + $0x24c] sm:$0xf] }
 0x11d   : > { %3195 = vmatmul.bf16.gmra.mxu3 %v4708_v57  ;;  %v4747_v57 = vld [vmem:[%s6515_s7 + $0x250] sm:$0xf]  ;;  %v4740_v59 = vor.u32 %v5960_v30, %v4739_v41  ;;  %v4744_v39 = vor.u32 %v5956_v17, %v4741_v36  ;;  %v5964_v36 = vld [vmem:[%s6515_s7 + $0x28c] sm:$0xf] }
 0x11e   : > { %3364 = vmatmul.bf16.gmra.mxu0 %v4712_v60  ;;  %v5961_v60 = vld [vmem:[%s6515_s7 + $0x270] sm:$0xf0] }
 0x11f   : > { %v6896_v11 = vpop.f32.mrf.mxu2  ;;  %v4748_v27 = vor.u32 %v5961_v60, %v4747_v57  ;;  %v5965_v60 = vld [vmem:[%s6515_s7 + $0x294] sm:$0xf] }
 0x120   : > { %7852 = vst [vmem:[#allocation20_spill] sm:$0xff] %v6896_v11  ;;  %v6898_v7 = vpop.f32.mrf.mxu3 }
 0x121   : > { %7853 = vst [vmem:[#allocation21_spill] sm:$0xff] %v6898_v7  ;;  %v6900_v9 = vpop.f32.mrf.mxu1  ;;  %v2655_v7 = vadd.f32 %v6907_v13, %v6702_v25 }
 0x123   : > { %v6902_v12 = vpop.f32.mrf.mxu0 }
 0x127   : > { %v6917_v33 = vpop.f32.mrf.mxu2 }
 0x128   : > { %7854 = vst [vmem:[#allocation22_spill] sm:$0xff] %v6917_v33  ;;  %v6921_v19 = vpop.f32.mrf.mxu3  ;;  %v5970_v33 = vld [vmem:[%s6515_s7 + $0x2b8] sm:$0xf0] }
 0x129   : > { %7855 = vst [vmem:[#allocation23_spill] sm:$0xff] %v6921_v19  ;;  %v2823_v47 = vpop.f32.mrf.mxu1  ;;  %v4783_v19 = vld [vmem:[%s6515_s7 + $0x298] sm:$0xf] }
 0x12a   : > { %v2824_v11 = vadd.f32 %v2823_v47, %v2655_v7 }
 0x12b   : > { %v3330_v51 = vpop.f32.mrf.mxu0 }
 0x12c   : > { %2862 = vmatmul.bf16.gmra.mxu1 %v4736_v5  ;;  %3031 = vmatmul.bf16.gmra.mxu2 %v4740_v59  ;;  %v4769_v5 = vld [vmem:[%s6515_s7 + $0x2ac] sm:$0xf0] }
 0x12d   : > { %3200 = vmatmul.bf16.gmra.mxu3 %v4744_v39  ;;  %v4775_v59 = vld [vmem:[%s6515_s7 + $0x290] sm:$0xf]  ;;  %v5969_v39 = vld [vmem:[%s6515_s7 + $0x2b0] sm:$0xf0]  ;;  %v4772_v10 = vor.u32 %v5964_v36, %v4769_v5 }
 0x12e   : > { %3369 = vmatmul.bf16.gmra.mxu0 %v4748_v27  ;;  %v4777_v27 = vld [vmem:[%s6515_s7 + $0x2b4] sm:$0xf0] }
 0x12f   : > { %v2992_v25 = vpop.f32.mrf.mxu2 }
 0x130   : > { %v2993_v20 = vadd.f32 %v2992_v25, %v2824_v11  ;;  %v3161_v41 = vpop.f32.mrf.mxu3 }
 0x131   : > { %v2825_v30 = vpop.f32.mrf.mxu1 }
 0x132   : > { %v3162_v17 = vadd.f32 %v3161_v41, %v2993_v20  ;;  %v2826_v47 = vadd.f32 %v2825_v30, %v2657_v15  ;;  %v4776_v20 = vor.u32 %v5969_v39, %v4775_v59  ;;  %v4780_v41 = vor.u32 %v5965_v60, %v4777_v27  ;;  %v5973_v59 = vld [vmem:[%s6515_s7 + $0x2d4] sm:$0xf]  ;;  %v4805_v39 = vld [vmem:[%s6515_s7 + $0x2f4] sm:$0xf0]  ;;  %v5978_v60 = vld [vmem:[%s6515_s7 + $0x2f8] sm:$0xf0] }
 0x133   : > { %v3332_v7 = vpop.f32.mrf.mxu0  ;;  %v4784_v30 = vor.u32 %v5970_v33, %v4783_v19  ;;  %v2662_v19 = vadd.f32 %v6907_v13, %v6734_v49  ;;  %v5974_v27 = vld [vmem:[%s6515_s7 + $0x2dc] sm:$0xf]  ;;  %v2665_v49 = vadd.f32 %v6907_v13, %v6750_v1  ;;  %v6223_v1 = vld [vmem:[%s7831_s1 + $0x1a0] sm:$0xff] }
 0x134   : > { %v6927_v57 = vadd.f32 %v3330_v51, %v3162_v17  ;;  %3662 = vmatpush.bf16.msra.mxu2 %v6223_v1 }
 0x136   : > { %7856 = vst [vmem:[#allocation24_spill] sm:$0xff] %v6927_v57 }
 0x137   : > { %v2994_v50 = vpop.f32.mrf.mxu2 }
 0x138   : > { %v2995_v11 = vadd.f32 %v2994_v50, %v2826_v47  ;;  %v3163_v25 = vpop.f32.mrf.mxu3 }
 0x139   : > { %v2828_v15 = vpop.f32.mrf.mxu1 }
 0x13a   : > { %v3164_v40 = vadd.f32 %v3163_v25, %v2995_v11  ;;  %v2829_v51 = vadd.f32 %v2828_v15, %v2660_v29  ;;  %v4813_v29 = vld [vmem:[%s6515_s7 + $0x2fc] sm:$0xf0]  ;;  %v5979_v25 = vld [vmem:[%s6515_s7 + $0x300] sm:$0xf0] }
 0x13b   : > { %v3335_v17 = vpop.f32.mrf.mxu0  ;;  %v4819_v11 = vld [vmem:[%s6515_s7 + $0x2e0] sm:$0xf] }
 0x13c   : > { %2867 = vmatmul.bf16.gmra.mxu1 %v4772_v10  ;;  %3036 = vmatmul.bf16.gmra.mxu2 %v4776_v20  ;;  %v6937_v57 = vadd.f32 %v3332_v7, %v3164_v40  ;;  %v4811_v7 = vld [vmem:[%s6515_s7 + $0x2d8] sm:$0xf] }
 0x13d   : > { %3205 = vmatmul.bf16.gmra.mxu3 %v4780_v41 }
 0x13e   : > { %3374 = vmatmul.bf16.gmra.mxu0 %v4784_v30  ;;  %v4808_v30 = vor.u32 %v5973_v59, %v4805_v39 }
 0x13f   : > { %v2997_v45 = vpop.f32.mrf.mxu2 }
 0x140   : > { %v2998_v33 = vadd.f32 %v2997_v45, %v2829_v51  ;;  %v3166_v50 = vpop.f32.mrf.mxu3  ;;  %v4812_v51 = vor.u32 %v5978_v60, %v4811_v7 }
 0x141   : > { %v2830_v47 = vpop.f32.mrf.mxu1 }
 0x142   : > { %v3167_v36 = vadd.f32 %v3166_v50, %v2998_v33  ;;  %v2831_v10 = vadd.f32 %v2830_v47, %v2662_v19  ;;  %v4816_v19 = vor.u32 %v5974_v27, %v4813_v29  ;;  %v4820_v33 = vor.u32 %v5979_v25, %v4819_v11  ;;  %v6215_v25 = vld [vmem:[%s7831_s1 + $0x160] sm:$0xff] }
 0x143   : > { %v3337_v5 = vpop.f32.mrf.mxu0  ;;  %3493 = vmatpush.bf16.msra.mxu1 %v6215_v25 }
 0x144   : > { %v6943_v40 = vadd.f32 %v3335_v17, %v3167_v36 }
 0x147   : > { %v2999_v20 = vpop.f32.mrf.mxu2 }
 0x148   : > { %v3000_v15 = vadd.f32 %v2999_v20, %v2831_v10  ;;  %v3168_v41 = vpop.f32.mrf.mxu3  ;;  %v6231_v10 = vld [vmem:[%s7831_s1 + $0x1e0] sm:$0xff] }
 0x149   : > { %v2833_v45 = vpop.f32.mrf.mxu1  ;;  %3831 = vmatpush.bf16.msra.mxu3 %v6231_v10  ;;  %v6239_v20 = vld [vmem:[%s7831_s1 + $0x220] sm:$0xff] }
 0x14a   : > { %v3169_v50 = vadd.f32 %v3168_v41, %v3000_v15  ;;  %v2834_v17 = vadd.f32 %v2833_v45, %v2665_v49  ;;  %v5982_v49 = vld [vmem:[%s6515_s7 + $0x31c] sm:$0xf]  ;;  %4000 = vmatpush.bf16.msra.mxu0 %v6239_v20  ;;  %v4847_v41 = vld [vmem:[%s6515_s7 + $0x320] sm:$0xf]  ;;  %v4849_v45 = vld [vmem:[%s6515_s7 + $0x344] sm:$0xf0] }
 0x14b   : > { %v3340_v47 = vpop.f32.mrf.mxu0 }
 0x14c   : > { %2872 = vmatmul.bf16.gmra.mxu1 %v4808_v30  ;;  %3041 = vmatmul.bf16.gmra.mxu2 %v4812_v51  ;;  %v6953_v36 = vadd.f32 %v3337_v5, %v3169_v50  ;;  %v2667_v5 = vadd.f32 %v6907_v13, %v6767_v8  ;;  %v4841_v8 = vld [vmem:[%s6515_s7 + $0x33c] sm:$0xf0]  ;;  %v5987_v30 = vld [vmem:[%s6515_s7 + $0x340] sm:$0xf0] }
 0x14d   : > { %3210 = vmatmul.bf16.gmra.mxu3 %v4816_v19  ;;  %v5983_v51 = vld [vmem:[%s6515_s7 + $0x324] sm:$0xf]  ;;  %v4855_v19 = vld [vmem:[%s6515_s7 + $0x328] sm:$0xf] }
 0x14e   : > { %3379 = vmatmul.bf16.gmra.mxu0 %v4820_v33  ;;  %v5988_v33 = vld [vmem:[%s6515_s7 + $0x348] sm:$0xf0] }
 0x14f   : > { %v3002_v59 = vpop.f32.mrf.mxu2 }
 0x150   : > { %v3003_v39 = vadd.f32 %v3002_v59, %v2834_v17  ;;  %v3171_v7 = vpop.f32.mrf.mxu3  ;;  %v2670_v17 = vadd.f32 %v6907_v13, %v6786_v31  ;;  %v4844_v59 = vor.u32 %v5982_v49, %v4841_v8 }
 0x151   : > { %v2835_v60 = vpop.f32.mrf.mxu1 }
 0x152   : > { %v3172_v27 = vadd.f32 %v3171_v7, %v3003_v39  ;;  %v2836_v29 = vadd.f32 %v2835_v60, %v2667_v5  ;;  %v4848_v5 = vor.u32 %v5987_v30, %v4847_v41  ;;  %v4852_v7 = vor.u32 %v5983_v51, %v4849_v45 }
 0x153   : > { %v3342_v11 = vpop.f32.mrf.mxu0  ;;  %v4856_v60 = vor.u32 %v5988_v33, %v4855_v19  ;;  %v5991_v19 = vld [vmem:[%s6515_s7 + $0x364] sm:$0xf]  ;;  %v4877_v33 = vld [vmem:[%s6515_s7 + $0x384] sm:$0xf0] }
 0x154   : > { %v6971_v15 = vadd.f32 %v3340_v47, %v3172_v27 }
 0x157   : > { %v3004_v50 = vpop.f32.mrf.mxu2 }
 0x158   : > { %v3005_v1 = vadd.f32 %v3004_v50, %v2836_v29  ;;  %v3173_v10 = vpop.f32.mrf.mxu3  ;;  %v2672_v29 = vadd.f32 %v6907_v13, %v6794_v35  ;;  %v4883_v50 = vld [vmem:[%s6515_s7 + $0x368] sm:$0xf]  ;;  %v2675_v35 = vadd.f32 %v6907_v13, %v6810_v61 }
 0x159   : > { %v2838_v39 = vpop.f32.mrf.mxu1 }
 0x15a   : > { %v3174_v25 = vadd.f32 %v3173_v10, %v3005_v1  ;;  %v2839_v47 = vadd.f32 %v2838_v39, %v2670_v17  ;;  %v5996_v17 = vld [vmem:[%s6515_s7 + $0x388] sm:$0xf0]  ;;  %v4885_v10 = vld [vmem:[%s6515_s7 + $0x38c] sm:$0xf0] }
 0x15b   : > { %v3345_v27 = vpop.f32.mrf.mxu0  ;;  %v5992_v1 = vld [vmem:[%s6515_s7 + $0x36c] sm:$0xf] }
 0x15c   : > { %2877 = vmatmul.bf16.gmra.mxu1 %v4844_v59  ;;  %3046 = vmatmul.bf16.gmra.mxu2 %v4848_v5  ;;  %v6981_v20 = vadd.f32 %v3342_v11, %v3174_v25  ;;  %v4891_v59 = vld [vmem:[%s6515_s7 + $0x370] sm:$0xf]  ;;  %v5997_v5 = vld [vmem:[%s6515_s7 + $0x390] sm:$0xf0]  ;;  %v4880_v25 = vor.u32 %v5991_v19, %v4877_v33 }
 0x15d   : > { %3215 = vmatmul.bf16.gmra.mxu3 %v4852_v7 }
 0x15e   : > { %3384 = vmatmul.bf16.gmra.mxu0 %v4856_v60 }
 0x15f   : > { %v3007_v31 = vpop.f32.mrf.mxu2 }
 0x160   : > { %v3008_v49 = vadd.f32 %v3007_v31, %v2839_v47  ;;  %v3176_v8 = vpop.f32.mrf.mxu3  ;;  %v4884_v47 = vor.u32 %v5996_v17, %v4883_v50 }
 0x161   : > { %v2840_v41 = vpop.f32.mrf.mxu1 }
 0x162   : > { %v3177_v30 = vadd.f32 %v3176_v8, %v3008_v49  ;;  %v2841_v51 = vadd.f32 %v2840_v41, %v2672_v29  ;;  %v4888_v29 = vor.u32 %v5992_v1, %v4885_v10  ;;  %v4892_v49 = vor.u32 %v5997_v5, %v4891_v59  ;;  %v6000_v59 = vld [vmem:[%s6515_s7 + $0x3ac] sm:$0xf]  ;;  %v4913_v5 = vld [vmem:[%s6515_s7 + $0x3cc] sm:$0xf0] }
 0x163   : > { %v3347_v45 = vpop.f32.mrf.mxu0 }
 0x164   : > { %v6987_v11 = vadd.f32 %v3345_v27, %v3177_v30 }
 0x167   : > { %v3009_v39 = vpop.f32.mrf.mxu2 }
 0x168   : > { %v3010_v7 = vadd.f32 %v3009_v39, %v2841_v51  ;;  %v3178_v60 = vpop.f32.mrf.mxu3  ;;  %v2677_v51 = vadd.f32 %v6907_v13, %v6818_v3  ;;  %v4919_v39 = vld [vmem:[%s6515_s7 + $0x3b0] sm:$0xf]  ;;  %v2680_v3 = vadd.f32 %v6907_v13, %v6834_v37 }
 0x169   : > { %v2843_v31 = vpop.f32.mrf.mxu1 }
 0x16a   : > { %v3179_v8 = vadd.f32 %v3178_v60, %v3010_v7  ;;  %v2844_v27 = vadd.f32 %v2843_v31, %v2675_v35  ;;  %v6005_v35 = vld [vmem:[%s6515_s7 + $0x3d0] sm:$0xf0]  ;;  %v4921_v60 = vld [vmem:[%s6515_s7 + $0x3d4] sm:$0xf0] }
 0x16b   : > { %v3350_v41 = vpop.f32.mrf.mxu0  ;;  %v6001_v7 = vld [vmem:[%s6515_s7 + $0x3b4] sm:$0xf] }
 0x16c   : > { %2882 = vmatmul.bf16.gmra.mxu1 %v4880_v25  ;;  %3051 = vmatmul.bf16.gmra.mxu2 %v4884_v47  ;;  %v6997_v30 = vadd.f32 %v3347_v45, %v3179_v8  ;;  %v4927_v25 = vld [vmem:[%s6515_s7 + $0x3b8] sm:$0xf]  ;;  %v6006_v47 = vld [vmem:[%s6515_s7 + $0x3d8] sm:$0xf0]  ;;  %v4916_v8 = vor.u32 %v6000_v59, %v4913_v5 }
 0x16d   : > { %3220 = vmatmul.bf16.gmra.mxu3 %v4888_v29 }
 0x16e   : > { %3389 = vmatmul.bf16.gmra.mxu0 %v4892_v49 }
 0x16f   : > { %v3012_v61 = vpop.f32.mrf.mxu2 }
 0x170   : > { %v3013_v19 = vadd.f32 %v3012_v61, %v2844_v27  ;;  %v3181_v33 = vpop.f32.mrf.mxu3  ;;  %v4920_v27 = vor.u32 %v6005_v35, %v4919_v39 }
 0x171   : > { %v2845_v50 = vpop.f32.mrf.mxu1 }
 0x172   : > { %v3182_v17 = vadd.f32 %v3181_v33, %v3013_v19  ;;  %v2846_v1 = vadd.f32 %v2845_v50, %v2677_v51  ;;  %v4924_v51 = vor.u32 %v6001_v7, %v4921_v60  ;;  %v4928_v19 = vor.u32 %v6006_v47, %v4927_v25  ;;  %v6009_v25 = vld [vmem:[%s6515_s7 + $0x3f4] sm:$0xf]  ;;  %v4949_v47 = vld [vmem:[%s6515_s7 + $0x414] sm:$0xf0] }
 0x173   : > { %v3352_v10 = vpop.f32.mrf.mxu0 }
 0x174   : > { %v7003_v45 = vadd.f32 %v3350_v41, %v3182_v17 }
 0x177   : > { %v3014_v31 = vpop.f32.mrf.mxu2 }
 0x178   : > { %v3015_v29 = vadd.f32 %v3014_v31, %v2846_v1  ;;  %v3183_v49 = vpop.f32.mrf.mxu3  ;;  %v2682_v1 = vadd.f32 %v6907_v13, %v6842_v44  ;;  %v4955_v31 = vld [vmem:[%s6515_s7 + $0x3f8] sm:$0xf]  ;;  %v2685_v44 = vadd.f32 %v6907_v13, %v6858_v21 }
 0x179   : > { %v2848_v61 = vpop.f32.mrf.mxu1  ;;  %v6222_v21 = vld [vmem:[%s7831_s1 + $0x198] sm:$0xff] }
 0x17a   : > { %v3184_v33 = vadd.f32 %v3183_v49, %v3015_v29  ;;  %v2849_v41 = vadd.f32 %v2848_v61, %v2680_v3  ;;  %v6014_v3 = vld [vmem:[%s6515_s7 + $0x418] sm:$0xf0]  ;;  %v4957_v49 = vld [vmem:[%s6515_s7 + $0x41c] sm:$0xf0]  ;;  %3663 = vmatpush.bf16.msra.mxu2 %v6222_v21 }
 0x17b   : > { %v3355_v50 = vpop.f32.mrf.mxu0  ;;  %v6010_v29 = vld [vmem:[%s6515_s7 + $0x3fc] sm:$0xf] }
 0x17c   : > { %2887 = vmatmul.bf16.gmra.mxu1 %v4916_v8  ;;  %3056 = vmatmul.bf16.gmra.mxu2 %v4920_v27  ;;  %v7013_v17 = vadd.f32 %v3352_v10, %v3184_v33  ;;  %v4963_v8 = vld [vmem:[%s6515_s7 + $0x400] sm:$0xf]  ;;  %v6015_v27 = vld [vmem:[%s6515_s7 + $0x420] sm:$0xf0]  ;;  %v4952_v33 = vor.u32 %v6009_v25, %v4949_v47 }
 0x17d   : > { %3225 = vmatmul.bf16.gmra.mxu3 %v4924_v51 }
 0x17e   : > { %3394 = vmatmul.bf16.gmra.mxu0 %v4928_v19 }
 0x17f   : > { %v3017_v37 = vpop.f32.mrf.mxu2 }
 0x180   : > { %v3018_v59 = vadd.f32 %v3017_v37, %v2849_v41  ;;  %v3186_v5 = vpop.f32.mrf.mxu3  ;;  %v4956_v41 = vor.u32 %v6014_v3, %v4955_v31 }
 0x181   : > { %v2850_v39 = vpop.f32.mrf.mxu1 }
 0x182   : > { %v3187_v35 = vadd.f32 %v3186_v5, %v3018_v59  ;;  %v2851_v7 = vadd.f32 %v2850_v39, %v2682_v1  ;;  %v4960_v1 = vor.u32 %v6010_v29, %v4957_v49  ;;  %v4964_v59 = vor.u32 %v6015_v27, %v4963_v8  ;;  %v6214_v27 = vld [vmem:[%s7831_s1 + $0x158] sm:$0xff] }
 0x183   : > { %v3357_v60 = vpop.f32.mrf.mxu0  ;;  %3494 = vmatpush.bf16.msra.mxu1 %v6214_v27 }
 0x184   : > { %v7019_v10 = vadd.f32 %v3355_v50, %v3187_v35 }
 0x187   : > { %v3019_v61 = vpop.f32.mrf.mxu2 }
 0x188   : > { %v3020_v51 = vadd.f32 %v3019_v61, %v2851_v7  ;;  %v3188_v19 = vpop.f32.mrf.mxu3  ;;  %v6230_v7 = vld [vmem:[%s7831_s1 + $0x1d8] sm:$0xff] }
 0x189   : > { %v2853_v37 = vpop.f32.mrf.mxu1  ;;  %3832 = vmatpush.bf16.msra.mxu3 %v6230_v7  ;;  %v6238_v61 = vld [vmem:[%s7831_s1 + $0x218] sm:$0xff] }
 0x18a   : > { %v3189_v5 = vadd.f32 %v3188_v19, %v3020_v51  ;;  %v2854_v50 = vadd.f32 %v2853_v37, %v2685_v44  ;;  %v6018_v44 = vld [vmem:[%s6515_s7 + $0x43c] sm:$0xf]  ;;  %4001 = vmatpush.bf16.msra.mxu0 %v6238_v61  ;;  %v4991_v19 = vld [vmem:[%s6515_s7 + $0x440] sm:$0xf]  ;;  %v4993_v37 = vld [vmem:[%s6515_s7 + $0x464] sm:$0xf0] }
 0x18b   : > { %v3360_v39 = vpop.f32.mrf.mxu0 }
 0x18c   : > { %2892 = vmatmul.bf16.gmra.mxu1 %v4952_v33  ;;  %3061 = vmatmul.bf16.gmra.mxu2 %v4956_v41  ;;  %v7029_v35 = vadd.f32 %v3357_v60, %v3189_v5  ;;  %v2687_v60 = vadd.f32 %v6907_v13, %v6872_v55  ;;  %v4985_v55 = vld [vmem:[%s6515_s7 + $0x45c] sm:$0xf0]  ;;  %v6023_v33 = vld [vmem:[%s6515_s7 + $0x460] sm:$0xf0] }
 0x18d   : > { %3230 = vmatmul.bf16.gmra.mxu3 %v4960_v1  ;;  %v6019_v41 = vld [vmem:[%s6515_s7 + $0x444] sm:$0xf]  ;;  %v4999_v1 = vld [vmem:[%s6515_s7 + $0x448] sm:$0xf] }
 0x18e   : > { %3399 = vmatmul.bf16.gmra.mxu0 %v4964_v59  ;;  %v6024_v59 = vld [vmem:[%s6515_s7 + $0x468] sm:$0xf0] }
 0x18f   : > { %v3022_v25 = vpop.f32.mrf.mxu2 }
 0x190   : > { %v3023_v47 = vadd.f32 %v3022_v25, %v2854_v50  ;;  %v3191_v31 = vpop.f32.mrf.mxu3  ;;  %v2690_v50 = vadd.f32 %v6907_v13, %v6894_v53  ;;  %v4988_v25 = vor.u32 %v6018_v44, %v4985_v55 }
 0x191   : > { %v2855_v3 = vpop.f32.mrf.mxu1 }
 0x192   : > { %v3192_v29 = vadd.f32 %v3191_v31, %v3023_v47  ;;  %v2856_v49 = vadd.f32 %v2855_v3, %v2687_v60  ;;  %v4992_v60 = vor.u32 %v6023_v33, %v4991_v19  ;;  %v4996_v31 = vor.u32 %v6019_v41, %v4993_v37 }
 0x193   : > { %v3362_v8 = vpop.f32.mrf.mxu0  ;;  %v5000_v3 = vor.u32 %v6024_v59, %v4999_v1  ;;  %v6027_v1 = vld [vmem:[%s6515_s7 + $0x484] sm:$0xf]  ;;  %v5021_v59 = vld [vmem:[%s6515_s7 + $0x4a4] sm:$0xf0] }
 0x194   : > { %v7047_v51 = vadd.f32 %v3360_v39, %v3192_v29 }
 0x197   : > { %v3024_v5 = vpop.f32.mrf.mxu2 }
 0x198   : > { %v3025_v21 = vadd.f32 %v3024_v5, %v2856_v49  ;;  %v3193_v7 = vpop.f32.mrf.mxu3  ;;  %v2692_v49 = vadd.f32 %v6907_v13, %v6902_v12  ;;  %v5027_v5 = vld [vmem:[%s6515_s7 + $0x488] sm:$0xf]  ;;  %v2695_v12 = vadd.f32 %v6907_v13, %v6700_v22 }
 0x199   : > { %v2858_v47 = vpop.f32.mrf.mxu1 }
 0x19a   : > { %v3194_v27 = vadd.f32 %v3193_v7, %v3025_v21  ;;  %v2859_v39 = vadd.f32 %v2858_v47, %v2690_v50  ;;  %v6032_v50 = vld [vmem:[%s6515_s7 + $0x4a8] sm:$0xf0]  ;;  %v5029_v7 = vld [vmem:[%s6515_s7 + $0x4ac] sm:$0xf0] }
 0x19b   : > { %v3365_v29 = vpop.f32.mrf.mxu0  ;;  %v6028_v21 = vld [vmem:[%s6515_s7 + $0x48c] sm:$0xf] }
 0x19c   : > { %2897 = vmatmul.bf16.gmra.mxu1 %v4988_v25  ;;  %3066 = vmatmul.bf16.gmra.mxu2 %v4992_v60  ;;  %v7057_v61 = vadd.f32 %v3362_v8, %v3194_v27  ;;  %v5035_v25 = vld [vmem:[%s6515_s7 + $0x490] sm:$0xf]  ;;  %v6033_v60 = vld [vmem:[%s6515_s7 + $0x4b0] sm:$0xf0]  ;;  %v5024_v27 = vor.u32 %v6027_v1, %v5021_v59 }
 0x19d   : > { %3235 = vmatmul.bf16.gmra.mxu3 %v4996_v31 }
 0x19e   : > { %3404 = vmatmul.bf16.gmra.mxu0 %v5000_v3 }
 0x19f   : > { %v3027_v53 = vpop.f32.mrf.mxu2 }
 0x1a0   : > { %v3028_v44 = vadd.f32 %v3027_v53, %v2859_v39  ;;  %v3196_v55 = vpop.f32.mrf.mxu3  ;;  %v5028_v39 = vor.u32 %v6032_v50, %v5027_v5 }
 0x1a1   : > { %v2860_v19 = vpop.f32.mrf.mxu1 }
 0x1a2   : > { %v3197_v33 = vadd.f32 %v3196_v55, %v3028_v44  ;;  %v2861_v41 = vadd.f32 %v2860_v19, %v2692_v49  ;;  %v5032_v49 = vor.u32 %v6028_v21, %v5029_v7  ;;  %v5036_v44 = vor.u32 %v6033_v60, %v5035_v25  ;;  %v6036_v25 = vld [vmem:[%s6515_s7 + $0x4cc] sm:$0xf]  ;;  %v5057_v60 = vld [vmem:[%s6515_s7 + $0x4ec] sm:$0xf0] }
 0x1a3   : > { %v3367_v37 = vpop.f32.mrf.mxu0 }
 0x1a4   : > { %v7063_v8 = vadd.f32 %v3365_v29, %v3197_v33 }
 0x1a7   : > { %v3029_v47 = vpop.f32.mrf.mxu2 }
 0x1a8   : > { %v3030_v31 = vadd.f32 %v3029_v47, %v2861_v41  ;;  %v3198_v3 = vpop.f32.mrf.mxu3  ;;  %v2697_v41 = vadd.f32 %v6907_v13, %v6708_v28  ;;  %v5063_v47 = vld [vmem:[%s6515_s7 + $0x4d0] sm:$0xf]  ;;  %v2700_v28 = vadd.f32 %v6907_v13, %v6724_v42 }
 0x1a9   : > { %v2863_v53 = vpop.f32.mrf.mxu1 }
 0x1aa   : > { %v3199_v55 = vadd.f32 %v3198_v3, %v3030_v31  ;;  %v2864_v29 = vadd.f32 %v2863_v53, %v2695_v12  ;;  %v6041_v12 = vld [vmem:[%s6515_s7 + $0x4f0] sm:$0xf0]  ;;  %v5065_v3 = vld [vmem:[%s6515_s7 + $0x4f4] sm:$0xf0] }
 0x1ab   : > { %v3370_v19 = vpop.f32.mrf.mxu0  ;;  %v6037_v31 = vld [vmem:[%s6515_s7 + $0x4d4] sm:$0xf] }
 0x1ac   : > { %2902 = vmatmul.bf16.gmra.mxu1 %v5024_v27  ;;  %3071 = vmatmul.bf16.gmra.mxu2 %v5028_v39  ;;  %v7073_v33 = vadd.f32 %v3367_v37, %v3199_v55  ;;  %v5071_v27 = vld [vmem:[%s6515_s7 + $0x4d8] sm:$0xf]  ;;  %v6042_v39 = vld [vmem:[%s6515_s7 + $0x4f8] sm:$0xf0]  ;;  %v5060_v55 = vor.u32 %v6036_v25, %v5057_v60 }
 0x1ad   : > { %3240 = vmatmul.bf16.gmra.mxu3 %v5032_v49 }
 0x1ae   : > { %3409 = vmatmul.bf16.gmra.mxu0 %v5036_v44 }
 0x1af   : > { %v3032_v22 = vpop.f32.mrf.mxu2 }
 0x1b0   : > { %v3033_v1 = vadd.f32 %v3032_v22, %v2864_v29  ;;  %v3201_v59 = vpop.f32.mrf.mxu3  ;;  %v5064_v29 = vor.u32 %v6041_v12, %v5063_v47 }
 0x1b1   : > { %v2865_v5 = vpop.f32.mrf.mxu1 }
 0x1b2   : > { %v3202_v50 = vadd.f32 %v3201_v59, %v3033_v1  ;;  %v2866_v21 = vadd.f32 %v2865_v5, %v2697_v41  ;;  %v5068_v41 = vor.u32 %v6037_v31, %v5065_v3  ;;  %v5072_v1 = vor.u32 %v6042_v39, %v5071_v27  ;;  %v6045_v27 = vld [vmem:[%s6515_s7 + $0x514] sm:$0xf]  ;;  %v5093_v39 = vld [vmem:[%s6515_s7 + $0x534] sm:$0xf0] }
 0x1b3   : > { %v3372_v7 = vpop.f32.mrf.mxu0 }
 0x1b4   : > { %v7079_v37 = vadd.f32 %v3370_v19, %v3202_v50 }
 0x1b7   : > { %v3034_v53 = vpop.f32.mrf.mxu2 }
 0x1b8   : > { %v3035_v49 = vadd.f32 %v3034_v53, %v2866_v21  ;;  %v3203_v44 = vpop.f32.mrf.mxu3  ;;  %v2702_v21 = vadd.f32 %v6907_v13, %v6732_v48  ;;  %v5099_v53 = vld [vmem:[%s6515_s7 + $0x518] sm:$0xf]  ;;  %v2705_v48 = vadd.f32 %v6907_v13, %v6748_v62  ;;  %v6221_v62 = vld [vmem:[%s7831_s1 + $0x190] sm:$0xff] }
 0x1b9   : > { %v2868_v22 = vpop.f32.mrf.mxu1  ;;  %3664 = vmatpush.bf16.msra.mxu2 %v6221_v62 }
 0x1ba   : > { %v3204_v59 = vadd.f32 %v3203_v44, %v3035_v49  ;;  %v2869_v19 = vadd.f32 %v2868_v22, %v2700_v28  ;;  %v6050_v28 = vld [vmem:[%s6515_s7 + $0x538] sm:$0xf0]  ;;  %v5101_v44 = vld [vmem:[%s6515_s7 + $0x53c] sm:$0xf0] }
 0x1bb   : > { %v3375_v5 = vpop.f32.mrf.mxu0  ;;  %v6046_v49 = vld [vmem:[%s6515_s7 + $0x51c] sm:$0xf] }
 0x1bc   : > { %2907 = vmatmul.bf16.gmra.mxu1 %v5060_v55  ;;  %3076 = vmatmul.bf16.gmra.mxu2 %v5064_v29  ;;  %v7089_v50 = vadd.f32 %v3372_v7, %v3204_v59  ;;  %v5107_v55 = vld [vmem:[%s6515_s7 + $0x520] sm:$0xf]  ;;  %v6051_v29 = vld [vmem:[%s6515_s7 + $0x540] sm:$0xf0]  ;;  %v5096_v59 = vor.u32 %v6045_v27, %v5093_v39 }
 0x1bd   : > { %3245 = vmatmul.bf16.gmra.mxu3 %v5068_v41 }
 0x1be   : > { %3414 = vmatmul.bf16.gmra.mxu0 %v5072_v1 }
 0x1bf   : > { %v3037_v42 = vpop.f32.mrf.mxu2 }
 0x1c0   : > { %v3038_v25 = vadd.f32 %v3037_v42, %v2869_v19  ;;  %v3206_v60 = vpop.f32.mrf.mxu3  ;;  %v5100_v19 = vor.u32 %v6050_v28, %v5099_v53 }
 0x1c1   : > { %v2870_v47 = vpop.f32.mrf.mxu1 }
 0x1c2   : > { %v3207_v12 = vadd.f32 %v3206_v60, %v3038_v25  ;;  %v2871_v31 = vadd.f32 %v2870_v47, %v2702_v21  ;;  %v5104_v21 = vor.u32 %v6046_v49, %v5101_v44  ;;  %v5108_v25 = vor.u32 %v6051_v29, %v5107_v55  ;;  %v6213_v29 = vld [vmem:[%s7831_s1 + $0x150] sm:$0xff] }
 0x1c3   : > { %v3377_v3 = vpop.f32.mrf.mxu0  ;;  %3495 = vmatpush.bf16.msra.mxu1 %v6213_v29 }
 0x1c4   : > { %v7095_v7 = vadd.f32 %v3375_v5, %v3207_v12 }
 0x1c7   : > { %v3039_v22 = vpop.f32.mrf.mxu2 }
 0x1c8   : > { %v3040_v41 = vadd.f32 %v3039_v22, %v2871_v31  ;;  %v3208_v1 = vpop.f32.mrf.mxu3  ;;  %v6229_v31 = vld [vmem:[%s7831_s1 + $0x1d0] sm:$0xff] }
 0x1c9   : > { %v2873_v42 = vpop.f32.mrf.mxu1  ;;  %3833 = vmatpush.bf16.msra.mxu3 %v6229_v31  ;;  %v6237_v22 = vld [vmem:[%s7831_s1 + $0x210] sm:$0xff] }
 0x1ca   : > { %v3209_v60 = vadd.f32 %v3208_v1, %v3040_v41  ;;  %v2874_v5 = vadd.f32 %v2873_v42, %v2705_v48  ;;  %v6054_v48 = vld [vmem:[%s6515_s7 + $0x55c] sm:$0xf]  ;;  %4002 = vmatpush.bf16.msra.mxu0 %v6237_v22  ;;  %v5135_v1 = vld [vmem:[%s6515_s7 + $0x560] sm:$0xf]  ;;  %v5137_v42 = vld [vmem:[%s6515_s7 + $0x584] sm:$0xf0] }
 0x1cb   : > { %v3380_v47 = vpop.f32.mrf.mxu0 }
 0x1cc   : > { %2912 = vmatmul.bf16.gmra.mxu1 %v5096_v59  ;;  %3081 = vmatmul.bf16.gmra.mxu2 %v5100_v19  ;;  %v7105_v12 = vadd.f32 %v3377_v3, %v3209_v60  ;;  %v2707_v3 = vadd.f32 %v6907_v13, %v6762_v6  ;;  %v5129_v6 = vld [vmem:[%s6515_s7 + $0x57c] sm:$0xf0]  ;;  %v6059_v59 = vld [vmem:[%s6515_s7 + $0x580] sm:$0xf0] }
 0x1cd   : > { %3250 = vmatmul.bf16.gmra.mxu3 %v5104_v21  ;;  %v6055_v19 = vld [vmem:[%s6515_s7 + $0x564] sm:$0xf]  ;;  %v5143_v21 = vld [vmem:[%s6515_s7 + $0x568] sm:$0xf] }
 0x1ce   : > { %3419 = vmatmul.bf16.gmra.mxu0 %v5108_v25  ;;  %v6060_v25 = vld [vmem:[%s6515_s7 + $0x588] sm:$0xf0] }
 0x1cf   : > { %v3042_v27 = vpop.f32.mrf.mxu2 }
 0x1d0   : > { %v3043_v39 = vadd.f32 %v3042_v27, %v2874_v5  ;;  %v3211_v53 = vpop.f32.mrf.mxu3  ;;  %v2710_v5 = vadd.f32 %v6907_v13, %v6784_v23  ;;  %v5132_v27 = vor.u32 %v6054_v48, %v5129_v6 }
 0x1d1   : > { %v2875_v28 = vpop.f32.mrf.mxu1 }
 0x1d2   : > { %v3212_v49 = vadd.f32 %v3211_v53, %v3043_v39  ;;  %v2876_v44 = vadd.f32 %v2875_v28, %v2707_v3  ;;  %v5136_v3 = vor.u32 %v6059_v59, %v5135_v1  ;;  %v5140_v53 = vor.u32 %v6055_v19, %v5137_v42 }
 0x1d3   : > { %v3382_v55 = vpop.f32.mrf.mxu0  ;;  %v5144_v28 = vor.u32 %v6060_v25, %v5143_v21  ;;  %v6063_v21 = vld [vmem:[%s6515_s7 + $0x5a4] sm:$0xf]  ;;  %v5165_v25 = vld [vmem:[%s6515_s7 + $0x5c4] sm:$0xf0] }
 0x1d4   : > { %v7123_v41 = vadd.f32 %v3380_v47, %v3212_v49 }
 0x1d7   : > { %v3044_v60 = vpop.f32.mrf.mxu2 }
 0x1d8   : > { %v3045_v62 = vadd.f32 %v3044_v60, %v2876_v44  ;;  %v3213_v31 = vpop.f32.mrf.mxu3  ;;  %v2712_v44 = vadd.f32 %v6907_v13, %v6792_v34  ;;  %v5171_v60 = vld [vmem:[%s6515_s7 + $0x5a8] sm:$0xf]  ;;  %v2715_v34 = vadd.f32 %v6907_v13, %v6808_v56 }
 0x1d9   : > { %v2878_v39 = vpop.f32.mrf.mxu1 }
 0x1da   : > { %v3214_v29 = vadd.f32 %v3213_v31, %v3045_v62  ;;  %v2879_v47 = vadd.f32 %v2878_v39, %v2710_v5  ;;  %v6068_v5 = vld [vmem:[%s6515_s7 + $0x5c8] sm:$0xf0]  ;;  %v5173_v31 = vld [vmem:[%s6515_s7 + $0x5cc] sm:$0xf0] }
 0x1db   : > { %v3385_v49 = vpop.f32.mrf.mxu0  ;;  %v6064_v62 = vld [vmem:[%s6515_s7 + $0x5ac] sm:$0xf] }
 0x1dc   : > { %2917 = vmatmul.bf16.gmra.mxu1 %v5132_v27  ;;  %3086 = vmatmul.bf16.gmra.mxu2 %v5136_v3  ;;  %v7133_v22 = vadd.f32 %v3382_v55, %v3214_v29  ;;  %v5179_v27 = vld [vmem:[%s6515_s7 + $0x5b0] sm:$0xf]  ;;  %v6069_v3 = vld [vmem:[%s6515_s7 + $0x5d0] sm:$0xf0]  ;;  %v5168_v29 = vor.u32 %v6063_v21, %v5165_v25 }
 0x1dd   : > { %3255 = vmatmul.bf16.gmra.mxu3 %v5140_v53 }
 0x1de   : > { %3424 = vmatmul.bf16.gmra.mxu0 %v5144_v28 }
 0x1df   : > { %v3047_v23 = vpop.f32.mrf.mxu2 }
 0x1e0   : > { %v3048_v48 = vadd.f32 %v3047_v23, %v2879_v47  ;;  %v3216_v6 = vpop.f32.mrf.mxu3  ;;  %v5172_v47 = vor.u32 %v6068_v5, %v5171_v60 }
 0x1e1   : > { %v2880_v1 = vpop.f32.mrf.mxu1 }
 0x1e2   : > { %v3217_v59 = vadd.f32 %v3216_v6, %v3048_v48  ;;  %v2881_v19 = vadd.f32 %v2880_v1, %v2712_v44  ;;  %v5176_v44 = vor.u32 %v6064_v62, %v5173_v31  ;;  %v5180_v48 = vor.u32 %v6069_v3, %v5179_v27  ;;  %v6072_v27 = vld [vmem:[%s6515_s7 + $0x5ec] sm:$0xf]  ;;  %v5201_v3 = vld [vmem:[%s6515_s7 + $0x60c] sm:$0xf0] }
 0x1e3   : > { %v3387_v42 = vpop.f32.mrf.mxu0 }
 0x1e4   : > { %v7139_v55 = vadd.f32 %v3385_v49, %v3217_v59 }
 0x1e7   : > { %v3049_v39 = vpop.f32.mrf.mxu2 }
 0x1e8   : > { %v3050_v53 = vadd.f32 %v3049_v39, %v2881_v19  ;;  %v3218_v28 = vpop.f32.mrf.mxu3  ;;  %v2717_v19 = vadd.f32 %v6907_v13, %v6816_v2  ;;  %v5207_v39 = vld [vmem:[%s6515_s7 + $0x5f0] sm:$0xf]  ;;  %v2720_v2 = vadd.f32 %v6907_v13, %v6832_v24 }
 0x1e9   : > { %v2883_v23 = vpop.f32.mrf.mxu1 }
 0x1ea   : > { %v3219_v6 = vadd.f32 %v3218_v28, %v3050_v53  ;;  %v2884_v49 = vadd.f32 %v2883_v23, %v2715_v34  ;;  %v6077_v34 = vld [vmem:[%s6515_s7 + $0x610] sm:$0xf0]  ;;  %v5209_v28 = vld [vmem:[%s6515_s7 + $0x614] sm:$0xf0] }
 0x1eb   : > { %v3390_v1 = vpop.f32.mrf.mxu0  ;;  %v6073_v53 = vld [vmem:[%s6515_s7 + $0x5f4] sm:$0xf] }
 0x1ec   : > { %2922 = vmatmul.bf16.gmra.mxu1 %v5168_v29  ;;  %3091 = vmatmul.bf16.gmra.mxu2 %v5172_v47  ;;  %v7149_v59 = vadd.f32 %v3387_v42, %v3219_v6  ;;  %v5215_v29 = vld [vmem:[%s6515_s7 + $0x5f8] sm:$0xf]  ;;  %v6078_v47 = vld [vmem:[%s6515_s7 + $0x618] sm:$0xf0]  ;;  %v5204_v6 = vor.u32 %v6072_v27, %v5201_v3 }
 0x1ed   : > { %3260 = vmatmul.bf16.gmra.mxu3 %v5176_v44 }
 0x1ee   : > { %3429 = vmatmul.bf16.gmra.mxu0 %v5180_v48 }
 0x1ef   : > { %v3052_v56 = vpop.f32.mrf.mxu2 }
 0x1f0   : > { %v3053_v21 = vadd.f32 %v3052_v56, %v2884_v49  ;;  %v3221_v25 = vpop.f32.mrf.mxu3  ;;  %v5208_v49 = vor.u32 %v6077_v34, %v5207_v39 }
 0x1f1   : > { %v2885_v60 = vpop.f32.mrf.mxu1 }
 0x1f2   : > { %v3222_v5 = vadd.f32 %v3221_v25, %v3053_v21  ;;  %v2886_v62 = vadd.f32 %v2885_v60, %v2717_v19  ;;  %v5212_v19 = vor.u32 %v6073_v53, %v5209_v28  ;;  %v5216_v21 = vor.u32 %v6078_v47, %v5215_v29  ;;  %v6081_v29 = vld [vmem:[%s6515_s7 + $0x634] sm:$0xf]  ;;  %v5237_v47 = vld [vmem:[%s6515_s7 + $0x654] sm:$0xf0] }
 0x1f3   : > { %v3392_v31 = vpop.f32.mrf.mxu0 }
 0x1f4   : > { %v7155_v42 = vadd.f32 %v3390_v1, %v3222_v5 }
 0x1f7   : > { %v3054_v23 = vpop.f32.mrf.mxu2 }
 0x1f8   : > { %v3055_v44 = vadd.f32 %v3054_v23, %v2886_v62  ;;  %v3223_v48 = vpop.f32.mrf.mxu3  ;;  %v2722_v62 = vadd.f32 %v6907_v13, %v6840_v43  ;;  %v5243_v23 = vld [vmem:[%s6515_s7 + $0x638] sm:$0xf]  ;;  %v2725_v43 = vadd.f32 %v6907_v13, %v6856_v14  ;;  %v6220_v14 = vld [vmem:[%s7831_s1 + $0x188] sm:$0xff] }
 0x1f9   : > { %v2888_v56 = vpop.f32.mrf.mxu1  ;;  %v6228_v13 = vld [vmem:[%s7831_s1 + $0x1c8] sm:$0xff]  ;;  %3665 = vmatpush.bf16.msra.mxu2 %v6220_v14 }
 0x1fa   : > { %v3224_v25 = vadd.f32 %v3223_v48, %v3055_v44  ;;  %v2889_v1 = vadd.f32 %v2888_v56, %v2720_v2  ;;  %v6086_v2 = vld [vmem:[%s6515_s7 + $0x658] sm:$0xf0]  ;;  %v5245_v48 = vld [vmem:[%s6515_s7 + $0x65c] sm:$0xf0]  ;;  %3834 = vmatpush.bf16.msra.mxu3 %v6228_v13 }
 0x1fb   : > { %v3395_v60 = vpop.f32.mrf.mxu0  ;;  %v6082_v44 = vld [vmem:[%s6515_s7 + $0x63c] sm:$0xf] }
 0x1fc   : > { %2927 = vmatmul.bf16.gmra.mxu1 %v5204_v6  ;;  %3096 = vmatmul.bf16.gmra.mxu2 %v5208_v49  ;;  %v7165_v5 = vadd.f32 %v3392_v31, %v3224_v25  ;;  %v5251_v6 = vld [vmem:[%s6515_s7 + $0x640] sm:$0xf]  ;;  %v6087_v49 = vld [vmem:[%s6515_s7 + $0x660] sm:$0xf0]  ;;  %v5240_v25 = vor.u32 %v6081_v29, %v5237_v47 }
 0x1fd   : > { %3265 = vmatmul.bf16.gmra.mxu3 %v5212_v19 }
 0x1fe   : > { %3434 = vmatmul.bf16.gmra.mxu0 %v5216_v21 }
 0x1ff   : > { %v3057_v24 = vpop.f32.mrf.mxu2 }
 0x200   : > { %v3058_v27 = vadd.f32 %v3057_v24, %v2889_v1  ;;  %v3226_v3 = vpop.f32.mrf.mxu3  ;;  %v5244_v1 = vor.u32 %v6086_v2, %v5243_v23 }
 0x201   : > { %v2890_v39 = vpop.f32.mrf.mxu1 }
 0x202   : > { %v3227_v34 = vadd.f32 %v3226_v3, %v3058_v27  ;;  %v2891_v53 = vadd.f32 %v2890_v39, %v2722_v62  ;;  %v5248_v62 = vor.u32 %v6082_v44, %v5245_v48  ;;  %v5252_v27 = vor.u32 %v6087_v49, %v5251_v6  ;;  %v6212_v49 = vld [vmem:[%s7831_s1 + $0x148] sm:$0xff] }
 0x203   : > { %v3397_v28 = vpop.f32.mrf.mxu0  ;;  %3496 = vmatpush.bf16.msra.mxu1 %v6212_v49 }
 0x204   : > { %v7171_v31 = vadd.f32 %v3395_v60, %v3227_v34 }
 0x207   : > { %v3059_v56 = vpop.f32.mrf.mxu2 }
 0x208   : > { %v3060_v19 = vadd.f32 %v3059_v56, %v2891_v53  ;;  %v3228_v21 = vpop.f32.mrf.mxu3  ;;  %v6236_v56 = vld [vmem:[%s7831_s1 + $0x208] sm:$0xff] }
 0x209   : > { %v2893_v24 = vpop.f32.mrf.mxu1  ;;  %4003 = vmatpush.bf16.msra.mxu0 %v6236_v56 }
 0x20a   : > { %v3229_v3 = vadd.f32 %v3228_v21, %v3060_v19  ;;  %v2894_v60 = vadd.f32 %v2893_v24, %v2725_v43  ;;  %v6090_v43 = vld [vmem:[%s6515_s7 + $0x67c] sm:$0xf]  ;;  %v5279_v21 = vld [vmem:[%s6515_s7 + $0x680] sm:$0xf]  ;;  %v5281_v24 = vld [vmem:[%s6515_s7 + $0x6a4] sm:$0xf0] }
 0x20b   : > { %v3400_v39 = vpop.f32.mrf.mxu0 }
 0x20c   : > { %2932 = vmatmul.bf16.gmra.mxu1 %v5240_v25  ;;  %3101 = vmatmul.bf16.gmra.mxu2 %v5244_v1  ;;  %v7181_v34 = vadd.f32 %v3397_v28, %v3229_v3  ;;  %v7192_v28 = vld [vmem:[%s7832_s2] ss:$0 sm:$0xff]  ;;  %v6095_v25 = vld [vmem:[%s6515_s7 + $0x6a0] sm:$0xf0] }
 0x20d   : > { %3270 = vmatmul.bf16.gmra.mxu3 %v5248_v62  ;;  %v2727_v29 = vadd.f32 %v7192_v28, %v6870_v54  ;;  %v5273_v54 = vld [vmem:[%s6515_s7 + $0x69c] sm:$0xf0]  ;;  %v6091_v1 = vld [vmem:[%s6515_s7 + $0x684] sm:$0xf]  ;;  %v5287_v62 = vld [vmem:[%s6515_s7 + $0x688] sm:$0xf] }
 0x20e   : > { %3439 = vmatmul.bf16.gmra.mxu0 %v5252_v27  ;;  %v6096_v27 = vld [vmem:[%s6515_s7 + $0x6a8] sm:$0xf0] }
 0x20f   : > { %v3062_v53 = vpop.f32.mrf.mxu2 }
 0x210   : > { %v3063_v47 = vadd.f32 %v3062_v53, %v2894_v60  ;;  %v3231_v23 = vpop.f32.mrf.mxu3  ;;  %v2730_v60 = vadd.f32 %v7192_v28, %v6892_v0  ;;  %v5276_v53 = vor.u32 %v6090_v43, %v5273_v54 }
 0x211   : > { %v2895_v2 = vpop.f32.mrf.mxu1 }
 0x212   : > { %v3232_v44 = vadd.f32 %v3231_v23, %v3063_v47  ;;  %v2896_v48 = vadd.f32 %v2895_v2, %v2727_v29  ;;  %v5280_v29 = vor.u32 %v6095_v25, %v5279_v21  ;;  %v5284_v23 = vor.u32 %v6091_v1, %v5281_v24 }
 0x213   : > { %v3402_v6 = vpop.f32.mrf.mxu0  ;;  %v5288_v2 = vor.u32 %v6096_v27, %v5287_v62  ;;  %v6099_v62 = vld [vmem:[%s6515_s7 + $0x6c4] sm:$0xf]  ;;  %v5309_v27 = vld [vmem:[%s6515_s7 + $0x6e4] sm:$0xf0] }
 0x214   : > { %v7204_v19 = vadd.f32 %v3400_v39, %v3232_v44 }
 0x217   : > { %v3064_v3 = vpop.f32.mrf.mxu2 }
 0x218   : > { %v3065_v14 = vadd.f32 %v3064_v3, %v2896_v48  ;;  %v3233_v13 = vpop.f32.mrf.mxu3  ;;  %v2732_v48 = vadd.f32 %v7192_v28, %v6900_v9  ;;  %v5315_v3 = vld [vmem:[%s6515_s7 + $0x6c8] sm:$0xf]  ;;  %v2735_v9 = vadd.f32 %v7192_v28, %v6704_v26 }
 0x219   : > { %v2898_v47 = vpop.f32.mrf.mxu1 }
 0x21a   : > { %v3234_v49 = vadd.f32 %v3233_v13, %v3065_v14  ;;  %v2899_v39 = vadd.f32 %v2898_v47, %v2730_v60  ;;  %v6104_v60 = vld [vmem:[%s6515_s7 + $0x6e8] sm:$0xf0]  ;;  %v5317_v13 = vld [vmem:[%s6515_s7 + $0x6ec] sm:$0xf0] }
 0x21b   : > { %v3405_v44 = vpop.f32.mrf.mxu0  ;;  %v6100_v14 = vld [vmem:[%s6515_s7 + $0x6cc] sm:$0xf] }
 0x21c   : > { %2937 = vmatmul.bf16.gmra.mxu1 %v5276_v53  ;;  %3106 = vmatmul.bf16.gmra.mxu2 %v5280_v29  ;;  %v7214_v56 = vadd.f32 %v3402_v6, %v3234_v49  ;;  %v5323_v53 = vld [vmem:[%s6515_s7 + $0x6d0] sm:$0xf]  ;;  %v6105_v29 = vld [vmem:[%s6515_s7 + $0x6f0] sm:$0xf0]  ;;  %v5312_v49 = vor.u32 %v6099_v62, %v5309_v27 }
 0x21d   : > { %3275 = vmatmul.bf16.gmra.mxu3 %v5284_v23 }
 0x21e   : > { %3444 = vmatmul.bf16.gmra.mxu0 %v5288_v2 }
 0x21f   : > { %v3067_v0 = vpop.f32.mrf.mxu2 }
 0x220   : > { %v3068_v43 = vadd.f32 %v3067_v0, %v2899_v39  ;;  %v3236_v54 = vpop.f32.mrf.mxu3  ;;  %v5316_v39 = vor.u32 %v6104_v60, %v5315_v3 }
 0x221   : > { %v2900_v21 = vpop.f32.mrf.mxu1 }
 0x222   : > { %v3237_v25 = vadd.f32 %v3236_v54, %v3068_v43  ;;  %v2901_v1 = vadd.f32 %v2900_v21, %v2732_v48  ;;  %v5320_v48 = vor.u32 %v6100_v14, %v5317_v13  ;;  %v5324_v43 = vor.u32 %v6105_v29, %v5323_v53  ;;  %v6108_v53 = vld [vmem:[%s6515_s7 + $0x70c] sm:$0xf]  ;;  %v5345_v29 = vld [vmem:[%s6515_s7 + $0x72c] sm:$0xf0] }
 0x223   : > { %v3407_v24 = vpop.f32.mrf.mxu0 }
 0x224   : > { %v7220_v6 = vadd.f32 %v3405_v44, %v3237_v25 }
 0x227   : > { %v3069_v47 = vpop.f32.mrf.mxu2 }
 0x228   : > { %v3070_v23 = vadd.f32 %v3069_v47, %v2901_v1  ;;  %v3238_v2 = vpop.f32.mrf.mxu3  ;;  %v2737_v1 = vadd.f32 %v7192_v28, %v6720_v38  ;;  %v5351_v47 = vld [vmem:[%s6515_s7 + $0x710] sm:$0xf]  ;;  %v2740_v38 = vadd.f32 %v7192_v28, %v6728_v46 }
 0x229   : > { %v2903_v0 = vpop.f32.mrf.mxu1 }
 0x22a   : > { %v3239_v54 = vadd.f32 %v3238_v2, %v3070_v23  ;;  %v2904_v44 = vadd.f32 %v2903_v0, %v2735_v9  ;;  %v6113_v9 = vld [vmem:[%s6515_s7 + $0x730] sm:$0xf0]  ;;  %v5353_v2 = vld [vmem:[%s6515_s7 + $0x734] sm:$0xf0] }
 0x22b   : > { %v3410_v21 = vpop.f32.mrf.mxu0  ;;  %v6109_v23 = vld [vmem:[%s6515_s7 + $0x714] sm:$0xf] }
 0x22c   : > { %2942 = vmatmul.bf16.gmra.mxu1 %v5312_v49  ;;  %3111 = vmatmul.bf16.gmra.mxu2 %v5316_v39  ;;  %v7230_v25 = vadd.f32 %v3407_v24, %v3239_v54  ;;  %v5359_v49 = vld [vmem:[%s6515_s7 + $0x718] sm:$0xf]  ;;  %v6114_v39 = vld [vmem:[%s6515_s7 + $0x738] sm:$0xf0]  ;;  %v5348_v54 = vor.u32 %v6108_v53, %v5345_v29 }
 0x22d   : > { %3280 = vmatmul.bf16.gmra.mxu3 %v5320_v48 }
 0x22e   : > { %3449 = vmatmul.bf16.gmra.mxu0 %v5324_v43 }
 0x22f   : > { %v3072_v26 = vpop.f32.mrf.mxu2 }
 0x230   : > { %v3073_v62 = vadd.f32 %v3072_v26, %v2904_v44  ;;  %v3241_v27 = vpop.f32.mrf.mxu3  ;;  %v5352_v44 = vor.u32 %v6113_v9, %v5351_v47 }
 0x231   : > { %v2905_v3 = vpop.f32.mrf.mxu1 }
 0x232   : > { %v3242_v60 = vadd.f32 %v3241_v27, %v3073_v62  ;;  %v2906_v14 = vadd.f32 %v2905_v3, %v2737_v1  ;;  %v5356_v1 = vor.u32 %v6109_v23, %v5353_v2  ;;  %v5360_v62 = vor.u32 %v6114_v39, %v5359_v49  ;;  %v6117_v49 = vld [vmem:[%s6515_s7 + $0x754] sm:$0xf]  ;;  %v5381_v39 = vld [vmem:[%s6515_s7 + $0x774] sm:$0xf0] }
 0x233   : > { %v3412_v13 = vpop.f32.mrf.mxu0 }
 0x234   : > { %v7236_v24 = vadd.f32 %v3410_v21, %v3242_v60 }
 0x237   : > { %v3074_v0 = vpop.f32.mrf.mxu2 }
 0x238   : > { %v3075_v48 = vadd.f32 %v3074_v0, %v2906_v14  ;;  %v3243_v43 = vpop.f32.mrf.mxu3  ;;  %v2742_v14 = vadd.f32 %v7192_v28, %v6744_v58  ;;  %v5387_v0 = vld [vmem:[%s6515_s7 + $0x758] sm:$0xf]  ;;  %v2745_v58 = vadd.f32 %v7192_v28, %v6758_v4  ;;  %v6219_v4 = vld [vmem:[%s7831_s1 + $0x180] sm:$0xff] }
 0x239   : > { %v2908_v26 = vpop.f32.mrf.mxu1  ;;  %3666 = vmatpush.bf16.msra.mxu2 %v6219_v4 }
 0x23a   : > { %v3244_v27 = vadd.f32 %v3243_v43, %v3075_v48  ;;  %v2909_v21 = vadd.f32 %v2908_v26, %v2740_v38  ;;  %v6122_v38 = vld [vmem:[%s6515_s7 + $0x778] sm:$0xf0]  ;;  %v5389_v43 = vld [vmem:[%s6515_s7 + $0x77c] sm:$0xf0] }
 0x23b   : > { %v3415_v3 = vpop.f32.mrf.mxu0  ;;  %v6118_v48 = vld [vmem:[%s6515_s7 + $0x75c] sm:$0xf] }
 0x23c   : > { %2947 = vmatmul.bf16.gmra.mxu1 %v5348_v54  ;;  %3116 = vmatmul.bf16.gmra.mxu2 %v5352_v44  ;;  %v7246_v60 = vadd.f32 %v3412_v13, %v3244_v27  ;;  %v5395_v54 = vld [vmem:[%s6515_s7 + $0x760] sm:$0xf]  ;;  %v6123_v44 = vld [vmem:[%s6515_s7 + $0x780] sm:$0xf0]  ;;  %v5384_v27 = vor.u32 %v6117_v49, %v5381_v39 }
 0x23d   : > { %3285 = vmatmul.bf16.gmra.mxu3 %v5356_v1 }
 0x23e   : > { %3454 = vmatmul.bf16.gmra.mxu0 %v5360_v62 }
 0x23f   : > { %v3077_v46 = vpop.f32.mrf.mxu2 }
 0x240   : > { %v3078_v53 = vadd.f32 %v3077_v46, %v2909_v21  ;;  %v3246_v29 = vpop.f32.mrf.mxu3  ;;  %v5388_v21 = vor.u32 %v6122_v38, %v5387_v0 }
 0x241   : > { %v2910_v47 = vpop.f32.mrf.mxu1 }
 0x242   : > { %v3247_v9 = vadd.f32 %v3246_v29, %v3078_v53  ;;  %v2911_v23 = vadd.f32 %v2910_v47, %v2742_v14  ;;  %v5392_v14 = vor.u32 %v6118_v48, %v5389_v43  ;;  %v5396_v53 = vor.u32 %v6123_v44, %v5395_v54  ;;  %v6211_v44 = vld [vmem:[%s7831_s1 + $0x140] sm:$0xff] }
 0x243   : > { %v3417_v2 = vpop.f32.mrf.mxu0  ;;  %3497 = vmatpush.bf16.msra.mxu1 %v6211_v44 }
 0x244   : > { %v7252_v13 = vadd.f32 %v3415_v3, %v3247_v9 }
 0x247   : > { %v3079_v26 = vpop.f32.mrf.mxu2 }
 0x248   : > { %v3080_v1 = vadd.f32 %v3079_v26, %v2911_v23  ;;  %v3248_v62 = vpop.f32.mrf.mxu3  ;;  %v6227_v23 = vld [vmem:[%s7831_s1 + $0x1c0] sm:$0xff] }
 0x249   : > { %v2913_v46 = vpop.f32.mrf.mxu1  ;;  %3835 = vmatpush.bf16.msra.mxu3 %v6227_v23  ;;  %v6235_v26 = vld [vmem:[%s7831_s1 + $0x200] sm:$0xff] }
 0x24a   : > { %v3249_v29 = vadd.f32 %v3248_v62, %v3080_v1  ;;  %v2914_v3 = vadd.f32 %v2913_v46, %v2745_v58  ;;  %v6126_v58 = vld [vmem:[%s6515_s7 + $0x79c] sm:$0xf]  ;;  %4004 = vmatpush.bf16.msra.mxu0 %v6235_v26  ;;  %v5423_v62 = vld [vmem:[%s6515_s7 + $0x7a0] sm:$0xf]  ;;  %v5425_v46 = vld [vmem:[%s6515_s7 + $0x7c4] sm:$0xf0] }
 0x24b   : > { %v3420_v47 = vpop.f32.mrf.mxu0 }
 0x24c   : > { %2952 = vmatmul.bf16.gmra.mxu1 %v5384_v27  ;;  %3121 = vmatmul.bf16.gmra.mxu2 %v5388_v21  ;;  %v7262_v9 = vadd.f32 %v3417_v2, %v3249_v29  ;;  %v2747_v2 = vadd.f32 %v7192_v28, %v6780_v18  ;;  %v5417_v18 = vld [vmem:[%s6515_s7 + $0x7bc] sm:$0xf0]  ;;  %v6131_v27 = vld [vmem:[%s6515_s7 + $0x7c0] sm:$0xf0] }
 0x24d   : > { %3290 = vmatmul.bf16.gmra.mxu3 %v5392_v14  ;;  %v6127_v21 = vld [vmem:[%s6515_s7 + $0x7a4] sm:$0xf]  ;;  %v5431_v14 = vld [vmem:[%s6515_s7 + $0x7a8] sm:$0xf] }
 0x24e   : > { %3459 = vmatmul.bf16.gmra.mxu0 %v5396_v53  ;;  %v6132_v53 = vld [vmem:[%s6515_s7 + $0x7c8] sm:$0xf0] }
 0x24f   : > { %v3082_v49 = vpop.f32.mrf.mxu2 }
 0x250   : > { %v3083_v39 = vadd.f32 %v3082_v49, %v2914_v3  ;;  %v3251_v0 = vpop.f32.mrf.mxu3  ;;  %v2750_v3 = vadd.f32 %v7192_v28, %v6788_v32  ;;  %v5420_v49 = vor.u32 %v6126_v58, %v5417_v18 }
 0x251   : > { %v2915_v38 = vpop.f32.mrf.mxu1 }
 0x252   : > { %v3252_v48 = vadd.f32 %v3251_v0, %v3083_v39  ;;  %v2916_v43 = vadd.f32 %v2915_v38, %v2747_v2  ;;  %v5424_v2 = vor.u32 %v6131_v27, %v5423_v62  ;;  %v5428_v0 = vor.u32 %v6127_v21, %v5425_v46 }
 0x253   : > { %v3422_v54 = vpop.f32.mrf.mxu0  ;;  %v5432_v38 = vor.u32 %v6132_v53, %v5431_v14  ;;  %v6135_v14 = vld [vmem:[%s6515_s7 + $0x7e4] sm:$0xf]  ;;  %v5453_v53 = vld [vmem:[%s6515_s7 + $0x804] sm:$0xf0] }
 0x254   : > { %v7280_v1 = vadd.f32 %v3420_v47, %v3252_v48 }
 0x257   : > { %v3084_v29 = vpop.f32.mrf.mxu2 }
 0x258   : > { %v3085_v4 = vadd.f32 %v3084_v29, %v2916_v43  ;;  %v3253_v23 = vpop.f32.mrf.mxu3  ;;  %v2752_v43 = vadd.f32 %v7192_v28, %v6804_v52  ;;  %v5459_v29 = vld [vmem:[%s6515_s7 + $0x7e8] sm:$0xf]  ;;  %v2755_v52 = vadd.f32 %v7192_v28, %v6812_v63 }
 0x259   : > { %v2918_v39 = vpop.f32.mrf.mxu1 }
 0x25a   : > { %v3254_v44 = vadd.f32 %v3253_v23, %v3085_v4  ;;  %v2919_v47 = vadd.f32 %v2918_v39, %v2750_v3  ;;  %v6140_v3 = vld [vmem:[%s6515_s7 + $0x808] sm:$0xf0]  ;;  %v5461_v23 = vld [vmem:[%s6515_s7 + $0x80c] sm:$0xf0] }
 0x25b   : > { %v3425_v48 = vpop.f32.mrf.mxu0  ;;  %v6136_v4 = vld [vmem:[%s6515_s7 + $0x7ec] sm:$0xf] }
 0x25c   : > { %2957 = vmatmul.bf16.gmra.mxu1 %v5420_v49  ;;  %3126 = vmatmul.bf16.gmra.mxu2 %v5424_v2  ;;  %v7290_v26 = vadd.f32 %v3422_v54, %v3254_v44  ;;  %v5467_v49 = vld [vmem:[%s6515_s7 + $0x7f0] sm:$0xf]  ;;  %v6141_v2 = vld [vmem:[%s6515_s7 + $0x810] sm:$0xf0]  ;;  %v5456_v44 = vor.u32 %v6135_v14, %v5453_v53 }
 0x25d   : > { %3295 = vmatmul.bf16.gmra.mxu3 %v5428_v0 }
 0x25e   : > { %3464 = vmatmul.bf16.gmra.mxu0 %v5432_v38 }
 0x25f   : > { %v3087_v32 = vpop.f32.mrf.mxu2 }
 0x260   : > { %v3088_v58 = vadd.f32 %v3087_v32, %v2919_v47  ;;  %v3256_v18 = vpop.f32.mrf.mxu3  ;;  %v5460_v47 = vor.u32 %v6140_v3, %v5459_v29 }
 0x261   : > { %v2920_v62 = vpop.f32.mrf.mxu1 }
 0x262   : > { %v3257_v27 = vadd.f32 %v3256_v18, %v3088_v58  ;;  %v2921_v21 = vadd.f32 %v2920_v62, %v2752_v43  ;;  %v5464_v43 = vor.u32 %v6136_v4, %v5461_v23  ;;  %v5468_v58 = vor.u32 %v6141_v2, %v5467_v49  ;;  %v6144_v49 = vld [vmem:[%s6515_s7 + $0x82c] sm:$0xf]  ;;  %v5489_v2 = vld [vmem:[%s6515_s7 + $0x84c] sm:$0xf0] }
 0x263   : > { %v3427_v46 = vpop.f32.mrf.mxu0 }
 0x264   : > { %v7296_v54 = vadd.f32 %v3425_v48, %v3257_v27 }
 0x267   : > { %v3089_v39 = vpop.f32.mrf.mxu2 }
 0x268   : > { %v3090_v0 = vadd.f32 %v3089_v39, %v2921_v21  ;;  %v3258_v38 = vpop.f32.mrf.mxu3  ;;  %v2757_v21 = vadd.f32 %v7192_v28, %v6828_v16  ;;  %v5495_v39 = vld [vmem:[%s6515_s7 + $0x830] sm:$0xf] }
 0x269   : > { %v2923_v32 = vpop.f32.mrf.mxu1 }
 0x26a   : > { %v3259_v18 = vadd.f32 %v3258_v38, %v3090_v0  ;;  %v2924_v48 = vadd.f32 %v2923_v32, %v2755_v52  ;;  %v6149_v52 = vld [vmem:[%s6515_s7 + $0x850] sm:$0xf0]  ;;  %v5497_v38 = vld [vmem:[%s6515_s7 + $0x854] sm:$0xf0] }
 0x26b   : > { %v3430_v62 = vpop.f32.mrf.mxu0  ;;  %v6145_v0 = vld [vmem:[%s6515_s7 + $0x834] sm:$0xf] }
 0x26c   : > { %2962 = vmatmul.bf16.gmra.mxu1 %v5456_v44  ;;  %3131 = vmatmul.bf16.gmra.mxu2 %v5460_v47  ;;  %v7306_v27 = vadd.f32 %v3427_v46, %v3259_v18  ;;  %v5503_v44 = vld [vmem:[%s6515_s7 + $0x838] sm:$0xf]  ;;  %v6150_v47 = vld [vmem:[%s6515_s7 + $0x858] sm:$0xf0] }
 0x26d   : > { %3300 = vmatmul.bf16.gmra.mxu3 %v5464_v43  ;;  %v7858_v43 = vld [vmem:[#allocation12_spill] sm:$0xff] }
 0x26e   : > { %3469 = vmatmul.bf16.gmra.mxu0 %v5468_v58  ;;  %v2760_v16 = vadd.f32 %v7192_v28, %v7858_v43  ;;  %v5525_v43 = vld [vmem:[%s6515_s7 + $0x894] sm:$0xf0] }
 0x26f   : > { %v3092_v63 = vpop.f32.mrf.mxu2 }
 0x270   : > { %v3093_v14 = vadd.f32 %v3092_v63, %v2924_v48  ;;  %v3261_v53 = vpop.f32.mrf.mxu3  ;;  %v5492_v48 = vor.u32 %v6144_v49, %v5489_v2  ;;  %v5496_v63 = vor.u32 %v6149_v52, %v5495_v39  ;;  %v7860_v49 = vld [vmem:[#allocation14_spill] sm:$0xff] }
 0x271   : > { %v2925_v29 = vpop.f32.mrf.mxu1  ;;  %v2762_v2 = vadd.f32 %v7192_v28, %v7860_v49 }
 0x272   : > { %v3262_v3 = vadd.f32 %v3261_v53, %v3093_v14  ;;  %v2926_v4 = vadd.f32 %v2925_v29, %v2757_v21  ;;  %v5500_v14 = vor.u32 %v6145_v0, %v5497_v38  ;;  %v5504_v53 = vor.u32 %v6150_v47, %v5503_v44 }
 0x273   : > { %v3432_v23 = vpop.f32.mrf.mxu0 }
 0x274   : > { %v7312_v46 = vadd.f32 %v3430_v62, %v3262_v3 }
 0x276   : > { %7857 = vst [vmem:[#allocation25_spill] sm:$0xff] %v7312_v46 }
 0x277   : > { %v3094_v32 = vpop.f32.mrf.mxu2 }
 0x278   : > { %v3095_v58 = vadd.f32 %v3094_v32, %v2926_v4  ;;  %v3263_v18 = vpop.f32.mrf.mxu3  ;;  %v6153_v32 = vld [vmem:[%s6515_s7 + $0x874] sm:$0xf] }
 0x279   : > { %v2928_v21 = vpop.f32.mrf.mxu1  ;;  %v5528_v49 = vor.u32 %v6153_v32, %v5525_v43  ;;  %v7864_v32 = vld [vmem:[#allocation18_spill] sm:$0xff] }
 0x27a   : > { %v3264_v29 = vadd.f32 %v3263_v18, %v3095_v58  ;;  %v2929_v62 = vadd.f32 %v2928_v21, %v2760_v16  ;;  %v5531_v16 = vld [vmem:[%s6515_s7 + $0x878] sm:$0xf]  ;;  %v6158_v58 = vld [vmem:[%s6515_s7 + $0x898] sm:$0xf0]  ;;  %v6159_v21 = vld [vmem:[%s6515_s7 + $0x8a0] sm:$0xf0]  ;;  %v2767_v43 = vadd.f32 %v7192_v28, %v7864_v32 }
 0x27b   : > { %v3435_v3 = vpop.f32.mrf.mxu0  ;;  %v6154_v18 = vld [vmem:[%s6515_s7 + $0x87c] sm:$0xf] }
 0x27c   : > { %2967 = vmatmul.bf16.gmra.mxu1 %v5492_v48  ;;  %3136 = vmatmul.bf16.gmra.mxu2 %v5496_v63  ;;  %v7322_v46 = vadd.f32 %v3432_v23, %v3264_v29  ;;  %v5533_v48 = vld [vmem:[%s6515_s7 + $0x89c] sm:$0xf0] }
 0x27d   : > { %3305 = vmatmul.bf16.gmra.mxu3 %v5500_v14  ;;  %v5539_v63 = vld [vmem:[%s6515_s7 + $0x880] sm:$0xf] }
 0x27e   : > { %7859 = vst [vmem:[#allocation12_spill] sm:$0xff] %v7322_v46  ;;  %3474 = vmatmul.bf16.gmra.mxu0 %v5504_v53  ;;  %v7862_v53 = vld [vmem:[#allocation16_spill] sm:$0xff] }
 0x27f   : > { %v3097_v4 = vpop.f32.mrf.mxu2  ;;  %v2765_v29 = vadd.f32 %v7192_v28, %v7862_v53  ;;  %v5561_v53 = vld [vmem:[%s6515_s7 + $0x8dc] sm:$0xf0] }
 0x280   : > { %v3098_v39 = vadd.f32 %v3097_v4, %v2929_v62  ;;  %v3266_v52 = vpop.f32.mrf.mxu3 }
 0x281   : > { %v2930_v0 = vpop.f32.mrf.mxu1 }
 0x282   : > { %v3267_v38 = vadd.f32 %v3266_v52, %v3098_v39  ;;  %v2931_v44 = vadd.f32 %v2930_v0, %v2762_v2  ;;  %v5532_v39 = vor.u32 %v6158_v58, %v5531_v16  ;;  %v5536_v52 = vor.u32 %v6154_v18, %v5533_v48 }
 0x283   : > { %v3437_v47 = vpop.f32.mrf.mxu0  ;;  %v5540_v0 = vor.u32 %v6159_v21, %v5539_v63 }
 0x284   : > { %v7328_v23 = vadd.f32 %v3435_v3, %v3267_v38 }
 0x286   : > { %7861 = vst [vmem:[#allocation14_spill] sm:$0xff] %v7328_v23 }
 0x287   : > { %v3099_v14 = vpop.f32.mrf.mxu2 }
 0x288   : > { %v3100_v62 = vadd.f32 %v3099_v14, %v2931_v44  ;;  %v3268_v4 = vpop.f32.mrf.mxu3  ;;  %v6162_v14 = vld [vmem:[%s6515_s7 + $0x8bc] sm:$0xf] }
 0x289   : > { %v2933_v2 = vpop.f32.mrf.mxu1  ;;  %v5564_v32 = vor.u32 %v6162_v14, %v5561_v53  ;;  %v7868_v14 = vld [vmem:[#allocation22_spill] sm:$0xff] }
 0x28a   : > { %v3269_v46 = vadd.f32 %v3268_v4, %v3100_v62  ;;  %v2934_v3 = vadd.f32 %v2933_v2, %v2765_v29  ;;  %v6167_v29 = vld [vmem:[%s6515_s7 + $0x8e0] sm:$0xf0]  ;;  %v5569_v4 = vld [vmem:[%s6515_s7 + $0x8e4] sm:$0xf0]  ;;  %v2772_v53 = vadd.f32 %v7192_v28, %v7868_v14 }
 0x28b   : > { %v3440_v38 = vpop.f32.mrf.mxu0  ;;  %v6163_v62 = vld [vmem:[%s6515_s7 + $0x8c4] sm:$0xf] }
 0x28c   : > { %2972 = vmatmul.bf16.gmra.mxu1 %v5528_v49  ;;  %3141 = vmatmul.bf16.gmra.mxu2 %v5532_v39  ;;  %v7338_v23 = vadd.f32 %v3437_v47, %v3269_v46  ;;  %v5567_v47 = vld [vmem:[%s6515_s7 + $0x8c0] sm:$0xf]  ;;  %v5575_v49 = vld [vmem:[%s6515_s7 + $0x8c8] sm:$0xf]  ;;  %v6168_v39 = vld [vmem:[%s6515_s7 + $0x8e8] sm:$0xf0] }
 0x28d   : > { %3310 = vmatmul.bf16.gmra.mxu3 %v5536_v52  ;;  %v7866_v52 = vld [vmem:[#allocation20_spill] sm:$0xff] }
 0x28e   : > { %7863 = vst [vmem:[#allocation16_spill] sm:$0xff] %v7338_v23  ;;  %3479 = vmatmul.bf16.gmra.mxu0 %v5540_v0  ;;  %v2770_v0 = vadd.f32 %v7192_v28, %v7866_v52  ;;  %v4461_v52 = vld [vmem:[%s6515_s7 + $0x34] sm:$0xf0] }
 0x28f   : > { %v3102_v44 = vpop.f32.mrf.mxu2 }
 0x290   : > { %v3103_v16 = vadd.f32 %v3102_v44, %v2934_v3  ;;  %v3271_v58 = vpop.f32.mrf.mxu3 }
 0x291   : > { %v2935_v18 = vpop.f32.mrf.mxu1 }
 0x292   : > { %v3272_v48 = vadd.f32 %v3271_v58, %v3103_v16  ;;  %v2936_v63 = vadd.f32 %v2935_v18, %v2767_v43  ;;  %v5568_v16 = vor.u32 %v6167_v29, %v5567_v47  ;;  %v5572_v58 = vor.u32 %v6163_v62, %v5569_v4 }
 0x293   : > { %v3442_v21 = vpop.f32.mrf.mxu0  ;;  %v5576_v18 = vor.u32 %v6168_v39, %v5575_v49 }
 0x294   : > { %v7344_v46 = vadd.f32 %v3440_v38, %v3272_v48 }
 0x296   : > { %7865 = vst [vmem:[#allocation18_spill] sm:$0xff] %v7344_v46 }
 0x297   : > { %v3104_v2 = vpop.f32.mrf.mxu2 }
 0x298   : > { %v3105_v3 = vadd.f32 %v3104_v2, %v2936_v63  ;;  %v3273_v44 = vpop.f32.mrf.mxu3  ;;  %v5885_v2 = vld [vmem:[%s6515_s7 + $0x14] sm:$0xf] }
 0x299   : > { %v2938_v43 = vpop.f32.mrf.mxu1  ;;  %v4464_v14 = vor.u32 %v5885_v2, %v4461_v52  ;;  %v7872_v2 = vld [vmem:[#allocation3_spill] sm:$0xff] }
 0x29a   : > { %v3274_v23 = vadd.f32 %v3273_v44, %v3105_v3  ;;  %v2939_v38 = vadd.f32 %v2938_v43, %v2770_v0  ;;  %v5890_v0 = vld [vmem:[%s6515_s7 + $0x38] sm:$0xf0]  ;;  %v4469_v44 = vld [vmem:[%s6515_s7 + $0x3c] sm:$0xf0]  ;;  %v2777_v52 = vadd.f32 %v7192_v28, %v7872_v2 }
 0x29b   : > { %v3445_v48 = vpop.f32.mrf.mxu0  ;;  %v5886_v3 = vld [vmem:[%s6515_s7 + $0x1c] sm:$0xf] }
 0x29c   : > { %2977 = vmatmul.bf16.gmra.mxu1 %v5564_v32  ;;  %3146 = vmatmul.bf16.gmra.mxu2 %v5568_v16  ;;  %v7354_v46 = vadd.f32 %v3442_v21, %v3274_v23  ;;  %v4467_v21 = vld [vmem:[%s6515_s7 + $0x18] sm:$0xf]  ;;  %v4475_v32 = vld [vmem:[%s6515_s7 + $0x20] sm:$0xf]  ;;  %v5891_v16 = vld [vmem:[%s6515_s7 + $0x40] sm:$0xf0] }
 0x29d   : > { %3315 = vmatmul.bf16.gmra.mxu3 %v5572_v58  ;;  %v7870_v58 = vld [vmem:[#allocation2_spill] sm:$0xff] }
 0x29e   : > { %7867 = vst [vmem:[#allocation20_spill] sm:$0xff] %v7354_v46  ;;  %3484 = vmatmul.bf16.gmra.mxu0 %v5576_v18  ;;  %v2775_v18 = vadd.f32 %v7192_v28, %v7870_v58  ;;  %v4497_v58 = vld [vmem:[%s6515_s7 + $0x7c] sm:$0xf0] }
 0x29f   : > { %v3107_v63 = vpop.f32.mrf.mxu2 }
 0x2a0   : > { %v3108_v47 = vadd.f32 %v3107_v63, %v2939_v38  ;;  %v3276_v29 = vpop.f32.mrf.mxu3 }
 0x2a1   : > { %v2940_v62 = vpop.f32.mrf.mxu1 }
 0x2a2   : > { %v3277_v4 = vadd.f32 %v3276_v29, %v3108_v47  ;;  %v2941_v49 = vadd.f32 %v2940_v62, %v2772_v53  ;;  %v4468_v47 = vor.u32 %v5890_v0, %v4467_v21  ;;  %v4472_v29 = vor.u32 %v5886_v3, %v4469_v44 }
 0x2a3   : > { %v3447_v39 = vpop.f32.mrf.mxu0  ;;  %v4476_v62 = vor.u32 %v5891_v16, %v4475_v32 }
 0x2a4   : > { %v7360_v23 = vadd.f32 %v3445_v48, %v3277_v4 }
 0x2a6   : > { %7869 = vst [vmem:[#allocation22_spill] sm:$0xff] %v7360_v23 }
 0x2a7   : > { %v3109_v43 = vpop.f32.mrf.mxu2 }
 0x2a8   : > { %v3110_v38 = vadd.f32 %v3109_v43, %v2941_v49  ;;  %v3278_v63 = vpop.f32.mrf.mxu3  ;;  %v5894_v43 = vld [vmem:[%s6515_s7 + $0x5c] sm:$0xf] }
 0x2a9   : > { %v2943_v53 = vpop.f32.mrf.mxu1  ;;  %v4500_v2 = vor.u32 %v5894_v43, %v4497_v58  ;;  %v7876_v43 = vld [vmem:[#allocation5_spill] sm:$0xff] }
 0x2aa   : > { %v3279_v46 = vadd.f32 %v3278_v63, %v3110_v38  ;;  %v2944_v48 = vadd.f32 %v2943_v53, %v2775_v18  ;;  %v5899_v18 = vld [vmem:[%s6515_s7 + $0x80] sm:$0xf0]  ;;  %v4505_v63 = vld [vmem:[%s6515_s7 + $0x84] sm:$0xf0]  ;;  %v2782_v58 = vadd.f32 %v7192_v28, %v7876_v43 }
 0x2ab   : > { %v3450_v4 = vpop.f32.mrf.mxu0  ;;  %v5895_v38 = vld [vmem:[%s6515_s7 + $0x64] sm:$0xf] }
 0x2ac   : > { %3498 = vmatmul.bf16.vlgmr.msra.gmra.mxu1 %v4464_v14  ;;  %3667 = vmatmul.bf16.vlgmr.msra.gmra.mxu2 %v4468_v47  ;;  %v7370_v23 = vadd.f32 %v3447_v39, %v3279_v46  ;;  %v4503_v39 = vld [vmem:[%s6515_s7 + $0x60] sm:$0xf]  ;;  %v4511_v14 = vld [vmem:[%s6515_s7 + $0x68] sm:$0xf]  ;;  %v5900_v47 = vld [vmem:[%s6515_s7 + $0x88] sm:$0xf0] }
 0x2ad   : > { %3836 = vmatmul.bf16.vlgmr.msra.gmra.mxu3 %v4472_v29  ;;  %v7874_v29 = vld [vmem:[#allocation4_spill] sm:$0xff] }
 0x2ae   : > { %7871 = vst [vmem:[#allocation2_spill] sm:$0xff] %v7370_v23  ;;  %4005 = vmatmul.bf16.vlgmr.msra.gmra.mxu0 %v4476_v62  ;;  %v2780_v62 = vadd.f32 %v7192_v28, %v7874_v29  ;;  %v4533_v29 = vld [vmem:[%s6515_s7 + $0xc4] sm:$0xf0] }
 0x2af   : > { %v3112_v49 = vpop.f32.mrf.mxu2 }
 0x2b0   : > { %v3113_v21 = vadd.f32 %v3112_v49, %v2944_v48  ;;  %v3281_v0 = vpop.f32.mrf.mxu3 }
 0x2b1   : > { %v2945_v3 = vpop.f32.mrf.mxu1 }
 0x2b2   : > { %v3282_v44 = vadd.f32 %v3281_v0, %v3113_v21  ;;  %v2946_v32 = vadd.f32 %v2945_v3, %v2777_v52  ;;  %v4504_v21 = vor.u32 %v5899_v18, %v4503_v39  ;;  %v4508_v0 = vor.u32 %v5895_v38, %v4505_v63 }
 0x2b3   : > { %v3452_v16 = vpop.f32.mrf.mxu0  ;;  %v4512_v3 = vor.u32 %v5900_v47, %v4511_v14 }
 0x2b4   : > { %v7376_v46 = vadd.f32 %v3450_v4, %v3282_v44 }
 0x2b6   : > { %7873 = vst [vmem:[#allocation3_spill] sm:$0xff] %v7376_v46 }
 0x2b7   : > { %v3114_v53 = vpop.f32.mrf.mxu2 }
 0x2b8   : > { %v3115_v48 = vadd.f32 %v3114_v53, %v2946_v32  ;;  %v3283_v49 = vpop.f32.mrf.mxu3  ;;  %v5903_v53 = vld [vmem:[%s6515_s7 + $0xa4] sm:$0xf] }
 0x2b9   : > { %v2948_v52 = vpop.f32.mrf.mxu1  ;;  %v4536_v43 = vor.u32 %v5903_v53, %v4533_v29  ;;  %v7880_v53 = vld [vmem:[#allocation7_spill] sm:$0xff] }
 0x2ba   : > { %v3284_v23 = vadd.f32 %v3283_v49, %v3115_v48  ;;  %v2949_v4 = vadd.f32 %v2948_v52, %v2780_v62  ;;  %v5908_v62 = vld [vmem:[%s6515_s7 + $0xc8] sm:$0xf0]  ;;  %v4541_v49 = vld [vmem:[%s6515_s7 + $0xcc] sm:$0xf0]  ;;  %v2787_v29 = vadd.f32 %v7192_v28, %v7880_v53 }
 0x2bb   : > { %v3455_v44 = vpop.f32.mrf.mxu0  ;;  %v5904_v48 = vld [vmem:[%s6515_s7 + $0xac] sm:$0xf] }
 0x2bc   : > { %3503 = vmatmul.bf16.gmra.mxu1 %v4500_v2  ;;  %3672 = vmatmul.bf16.gmra.mxu2 %v4504_v21  ;;  %v7386_v46 = vadd.f32 %v3452_v16, %v3284_v23  ;;  %v4539_v16 = vld [vmem:[%s6515_s7 + $0xa8] sm:$0xf]  ;;  %v4547_v2 = vld [vmem:[%s6515_s7 + $0xb0] sm:$0xf]  ;;  %v5909_v21 = vld [vmem:[%s6515_s7 + $0xd0] sm:$0xf0] }
 0x2bd   : > { %3841 = vmatmul.bf16.gmra.mxu3 %v4508_v0  ;;  %v7878_v0 = vld [vmem:[#allocation6_spill] sm:$0xff] }
 0x2be   : > { %7875 = vst [vmem:[#allocation4_spill] sm:$0xff] %v7386_v46  ;;  %4010 = vmatmul.bf16.gmra.mxu0 %v4512_v3  ;;  %v2785_v3 = vadd.f32 %v7192_v28, %v7878_v0  ;;  %v4569_v0 = vld [vmem:[%s6515_s7 + $0x10c] sm:$0xf0] }
 0x2bf   : > { %v3117_v32 = vpop.f32.mrf.mxu2 }
 0x2c0   : > { %v3118_v39 = vadd.f32 %v3117_v32, %v2949_v4  ;;  %v3286_v18 = vpop.f32.mrf.mxu3 }
 0x2c1   : > { %v2950_v38 = vpop.f32.mrf.mxu1 }
 0x2c2   : > { %v3287_v63 = vadd.f32 %v3286_v18, %v3118_v39  ;;  %v2951_v14 = vadd.f32 %v2950_v38, %v2782_v58  ;;  %v4540_v39 = vor.u32 %v5908_v62, %v4539_v16  ;;  %v4544_v18 = vor.u32 %v5904_v48, %v4541_v49 }
 0x2c3   : > { %v3457_v47 = vpop.f32.mrf.mxu0  ;;  %v4548_v38 = vor.u32 %v5909_v21, %v4547_v2 }
 0x2c4   : > { %v7392_v23 = vadd.f32 %v3455_v44, %v3287_v63 }
 0x2c6   : > { %7877 = vst [vmem:[#allocation5_spill] sm:$0xff] %v7392_v23 }
 0x2c7   : > { %v3119_v52 = vpop.f32.mrf.mxu2 }
 0x2c8   : > { %v3120_v4 = vadd.f32 %v3119_v52, %v2951_v14  ;;  %v3288_v32 = vpop.f32.mrf.mxu3  ;;  %v5912_v52 = vld [vmem:[%s6515_s7 + $0xec] sm:$0xf] }
 0x2c9   : > { %v2953_v58 = vpop.f32.mrf.mxu1  ;;  %v4572_v53 = vor.u32 %v5912_v52, %v4569_v0  ;;  %v7884_v52 = vld [vmem:[#allocation9_spill] sm:$0xff] }
 0x2ca   : > { %v3289_v46 = vadd.f32 %v3288_v32, %v3120_v4  ;;  %v2954_v44 = vadd.f32 %v2953_v58, %v2785_v3  ;;  %v5917_v3 = vld [vmem:[%s6515_s7 + $0x110] sm:$0xf0]  ;;  %v4577_v32 = vld [vmem:[%s6515_s7 + $0x114] sm:$0xf0]  ;;  %v2792_v0 = vadd.f32 %v7192_v28, %v7884_v52 }
 0x2cb   : > { %v3460_v63 = vpop.f32.mrf.mxu0  ;;  %v5913_v4 = vld [vmem:[%s6515_s7 + $0xf4] sm:$0xf] }
 0x2cc   : > { %3508 = vmatmul.bf16.gmra.mxu1 %v4536_v43  ;;  %3677 = vmatmul.bf16.gmra.mxu2 %v4540_v39  ;;  %v7402_v23 = vadd.f32 %v3457_v47, %v3289_v46  ;;  %v4575_v47 = vld [vmem:[%s6515_s7 + $0xf0] sm:$0xf]  ;;  %v4583_v43 = vld [vmem:[%s6515_s7 + $0xf8] sm:$0xf]  ;;  %v5918_v39 = vld [vmem:[%s6515_s7 + $0x118] sm:$0xf0] }
 0x2cd   : > { %3846 = vmatmul.bf16.gmra.mxu3 %v4544_v18  ;;  %v7882_v18 = vld [vmem:[#allocation8_spill] sm:$0xff] }
 0x2ce   : > { %7879 = vst [vmem:[#allocation6_spill] sm:$0xff] %v7402_v23  ;;  %4015 = vmatmul.bf16.gmra.mxu0 %v4548_v38  ;;  %v2790_v38 = vadd.f32 %v7192_v28, %v7882_v18  ;;  %v4605_v18 = vld [vmem:[%s6515_s7 + $0x154] sm:$0xf0] }
 0x2cf   : > { %v3122_v14 = vpop.f32.mrf.mxu2 }
 0x2d0   : > { %v3123_v16 = vadd.f32 %v3122_v14, %v2954_v44  ;;  %v3291_v62 = vpop.f32.mrf.mxu3 }
 0x2d1   : > { %v2955_v48 = vpop.f32.mrf.mxu1 }
 0x2d2   : > { %v3292_v49 = vadd.f32 %v3291_v62, %v3123_v16  ;;  %v2956_v2 = vadd.f32 %v2955_v48, %v2787_v29  ;;  %v4576_v16 = vor.u32 %v5917_v3, %v4575_v47  ;;  %v4580_v62 = vor.u32 %v5913_v4, %v4577_v32 }
 0x2d3   : > { %v3462_v21 = vpop.f32.mrf.mxu0  ;;  %v4584_v48 = vor.u32 %v5918_v39, %v4583_v43 }
 0x2d4   : > { %v7408_v46 = vadd.f32 %v3460_v63, %v3292_v49 }
 0x2d6   : > { %7881 = vst [vmem:[#allocation7_spill] sm:$0xff] %v7408_v46 }
 0x2d7   : > { %v3124_v58 = vpop.f32.mrf.mxu2 }
 0x2d8   : > { %v3125_v44 = vadd.f32 %v3124_v58, %v2956_v2  ;;  %v3293_v14 = vpop.f32.mrf.mxu3  ;;  %v5921_v58 = vld [vmem:[%s6515_s7 + $0x134] sm:$0xf] }
 0x2d9   : > { %v2958_v29 = vpop.f32.mrf.mxu1  ;;  %v4608_v52 = vor.u32 %v5921_v58, %v4605_v18  ;;  %v7888_v58 = vld [vmem:[#allocation11_spill] sm:$0xff] }
 0x2da   : > { %v3294_v23 = vadd.f32 %v3293_v14, %v3125_v44  ;;  %v2959_v63 = vadd.f32 %v2958_v29, %v2790_v38  ;;  %v5926_v38 = vld [vmem:[%s6515_s7 + $0x158] sm:$0xf0]  ;;  %v4613_v14 = vld [vmem:[%s6515_s7 + $0x15c] sm:$0xf0]  ;;  %v2797_v18 = vadd.f32 %v7192_v28, %v7888_v58 }
 0x2db   : > { %v3465_v49 = vpop.f32.mrf.mxu0  ;;  %v5922_v44 = vld [vmem:[%s6515_s7 + $0x13c] sm:$0xf] }
 0x2dc   : > { %3513 = vmatmul.bf16.gmra.mxu1 %v4572_v53  ;;  %3682 = vmatmul.bf16.gmra.mxu2 %v4576_v16  ;;  %v7418_v46 = vadd.f32 %v3462_v21, %v3294_v23  ;;  %v4611_v21 = vld [vmem:[%s6515_s7 + $0x138] sm:$0xf]  ;;  %v4619_v53 = vld [vmem:[%s6515_s7 + $0x140] sm:$0xf]  ;;  %v5927_v16 = vld [vmem:[%s6515_s7 + $0x160] sm:$0xf0] }
 0x2dd   : > { %3851 = vmatmul.bf16.gmra.mxu3 %v4580_v62  ;;  %v7886_v62 = vld [vmem:[#allocation10_spill] sm:$0xff] }
 0x2de   : > { %7883 = vst [vmem:[#allocation8_spill] sm:$0xff] %v7418_v46  ;;  %4020 = vmatmul.bf16.gmra.mxu0 %v4584_v48  ;;  %v2795_v48 = vadd.f32 %v7192_v28, %v7886_v62  ;;  %v4641_v62 = vld [vmem:[%s6515_s7 + $0x19c] sm:$0xf0] }
 0x2df   : > { %v3127_v2 = vpop.f32.mrf.mxu2 }
 0x2e0   : > { %v3128_v47 = vadd.f32 %v3127_v2, %v2959_v63  ;;  %v3296_v3 = vpop.f32.mrf.mxu3 }
 0x2e1   : > { %v2960_v4 = vpop.f32.mrf.mxu1 }
 0x2e2   : > { %v3297_v32 = vadd.f32 %v3296_v3, %v3128_v47  ;;  %v2961_v43 = vadd.f32 %v2960_v4, %v2792_v0  ;;  %v4612_v47 = vor.u32 %v5926_v38, %v4611_v21  ;;  %v4616_v3 = vor.u32 %v5922_v44, %v4613_v14 }
 0x2e3   : > { %v3467_v39 = vpop.f32.mrf.mxu0  ;;  %v4620_v4 = vor.u32 %v5927_v16, %v4619_v53 }
 0x2e4   : > { %v7424_v23 = vadd.f32 %v3465_v49, %v3297_v32 }
 0x2e6   : > { %7885 = vst [vmem:[#allocation9_spill] sm:$0xff] %v7424_v23 }
 0x2e7   : > { %v3129_v29 = vpop.f32.mrf.mxu2 }
 0x2e8   : > { %v3130_v63 = vadd.f32 %v3129_v29, %v2961_v43  ;;  %v3298_v2 = vpop.f32.mrf.mxu3  ;;  %v5930_v29 = vld [vmem:[%s6515_s7 + $0x17c] sm:$0xf] }
 0x2e9   : > { %v2963_v0 = vpop.f32.mrf.mxu1  ;;  %v4644_v58 = vor.u32 %v5930_v29, %v4641_v62  ;;  %v7892_v29 = vld [vmem:[#allocation15_spill] sm:$0xff] }
 0x2ea   : > { %v3299_v46 = vadd.f32 %v3298_v2, %v3130_v63  ;;  %v2964_v49 = vadd.f32 %v2963_v0, %v2795_v48  ;;  %v5935_v48 = vld [vmem:[%s6515_s7 + $0x1a0] sm:$0xf0]  ;;  %v4649_v2 = vld [vmem:[%s6515_s7 + $0x1a4] sm:$0xf0] }
 0x2eb   : > { %v3470_v32 = vpop.f32.mrf.mxu0  ;;  %v5931_v63 = vld [vmem:[%s6515_s7 + $0x184] sm:$0xf] }
 0x2ec   : > { %3518 = vmatmul.bf16.gmra.mxu1 %v4608_v52  ;;  %3687 = vmatmul.bf16.gmra.mxu2 %v4612_v47  ;;  %v7434_v23 = vadd.f32 %v3467_v39, %v3299_v46  ;;  %v4647_v39 = vld [vmem:[%s6515_s7 + $0x180] sm:$0xf]  ;;  %v4655_v52 = vld [vmem:[%s6515_s7 + $0x188] sm:$0xf]  ;;  %v5936_v47 = vld [vmem:[%s6515_s7 + $0x1a8] sm:$0xf0] }
 0x2ed   : > { %3856 = vmatmul.bf16.gmra.mxu3 %v4616_v3  ;;  %v7890_v3 = vld [vmem:[#allocation13_spill] sm:$0xff] }
 0x2ee   : > { %7887 = vst [vmem:[#allocation10_spill] sm:$0xff] %v7434_v23  ;;  %4025 = vmatmul.bf16.gmra.mxu0 %v4620_v4  ;;  %v2800_v4 = vadd.f32 %v7192_v28, %v7890_v3  ;;  %v4683_v3 = vld [vmem:[%s6515_s7 + $0x1c8] sm:$0xf] }
 0x2ef   : > { %v3132_v43 = vpop.f32.mrf.mxu2 }
 0x2f0   : > { %v3133_v21 = vadd.f32 %v3132_v43, %v2964_v49  ;;  %v3301_v38 = vpop.f32.mrf.mxu3 }
 0x2f1   : > { %v2965_v44 = vpop.f32.mrf.mxu1 }
 0x2f2   : > { %v3302_v14 = vadd.f32 %v3301_v38, %v3133_v21  ;;  %v2966_v53 = vadd.f32 %v2965_v44, %v2797_v18  ;;  %v4648_v21 = vor.u32 %v5935_v48, %v4647_v39  ;;  %v4652_v38 = vor.u32 %v5931_v63, %v4649_v2 }
 0x2f3   : > { %v3472_v16 = vpop.f32.mrf.mxu0  ;;  %v4656_v44 = vor.u32 %v5936_v47, %v4655_v52  ;;  %v5939_v52 = vld [vmem:[%s6515_s7 + $0x1c4] sm:$0xf]  ;;  %v4677_v47 = vld [vmem:[%s6515_s7 + $0x1e4] sm:$0xf0] }
 0x2f4   : > { %v7440_v46 = vadd.f32 %v3470_v32, %v3302_v14 }
 0x2f6   : > { %7889 = vst [vmem:[#allocation11_spill] sm:$0xff] %v7440_v46 }
 0x2f7   : > { %v3134_v0 = vpop.f32.mrf.mxu2 }
 0x2f8   : > { %v3135_v49 = vadd.f32 %v3134_v0, %v2966_v53  ;;  %v3303_v43 = vpop.f32.mrf.mxu3  ;;  %v7455_v53 = vld [vmem:[%s7832_s2] ss:$0 sm:$0xff] }
 0x2f9   : > { %v2968_v18 = vpop.f32.mrf.mxu1  ;;  %v2802_v62 = vadd.f32 %v7455_v53, %v7892_v29  ;;  %v4680_v29 = vor.u32 %v5939_v52, %v4677_v47  ;;  %v7896_v52 = vld [vmem:[#allocation19_spill] sm:$0xff] }
 0x2fa   : > { %v3304_v23 = vadd.f32 %v3303_v43, %v3135_v49  ;;  %v2969_v32 = vadd.f32 %v2968_v18, %v2800_v4  ;;  %v5944_v4 = vld [vmem:[%s6515_s7 + $0x1e8] sm:$0xf0]  ;;  %v4685_v43 = vld [vmem:[%s6515_s7 + $0x1ec] sm:$0xf0]  ;;  %v2807_v47 = vadd.f32 %v7455_v53, %v7896_v52 }
 0x2fb   : > { %v3475_v14 = vpop.f32.mrf.mxu0  ;;  %v5940_v49 = vld [vmem:[%s6515_s7 + $0x1cc] sm:$0xf] }
 0x2fc   : > { %3523 = vmatmul.bf16.gmra.mxu1 %v4644_v58  ;;  %3692 = vmatmul.bf16.gmra.mxu2 %v4648_v21  ;;  %v7450_v46 = vadd.f32 %v3472_v16, %v3304_v23  ;;  %v4691_v58 = vld [vmem:[%s6515_s7 + $0x1d0] sm:$0xf]  ;;  %v5945_v21 = vld [vmem:[%s6515_s7 + $0x1f0] sm:$0xf0] }
 0x2fd   : > { %3861 = vmatmul.bf16.gmra.mxu3 %v4652_v38  ;;  %v7894_v38 = vld [vmem:[#allocation17_spill] sm:$0xff] }
 0x2fe   : > { %7891 = vst [vmem:[#allocation13_spill] sm:$0xff] %v7450_v46  ;;  %4030 = vmatmul.bf16.gmra.mxu0 %v4656_v44  ;;  %v2805_v44 = vadd.f32 %v7455_v53, %v7894_v38  ;;  %v4713_v38 = vld [vmem:[%s6515_s7 + $0x22c] sm:$0xf0] }
 0x2ff   : > { %v3137_v28 = vpop.f32.mrf.mxu2 }
 0x300   : > { %v3138_v39 = vadd.f32 %v3137_v28, %v2969_v32  ;;  %v3306_v48 = vpop.f32.mrf.mxu3 }
 0x301   : > { %v2970_v23 = vpop.f32.mrf.mxu1 }
 0x302   : > { %v3307_v16 = vadd.f32 %v3306_v48, %v3138_v39  ;;  %v2971_v63 = vadd.f32 %v2970_v23, %v2802_v62  ;;  %v4684_v39 = vor.u32 %v5944_v4, %v4683_v3  ;;  %v4688_v48 = vor.u32 %v5940_v49, %v4685_v43 }
 0x303   : > { %v3477_v2 = vpop.f32.mrf.mxu0  ;;  %v4692_v23 = vor.u32 %v5945_v21, %v4691_v58 }
 0x304   : > { %v7461_v0 = vadd.f32 %v3475_v14, %v3307_v16 }
 0x306   : > { %7893 = vst [vmem:[#allocation15_spill] sm:$0xff] %v7461_v0 }
 0x307   : > { %v3139_v18 = vpop.f32.mrf.mxu2 }
 0x308   : > { %v3140_v32 = vadd.f32 %v3139_v18, %v2971_v63  ;;  %v3308_v28 = vpop.f32.mrf.mxu3  ;;  %v5948_v18 = vld [vmem:[%s6515_s7 + $0x20c] sm:$0xf] }
 0x309   : > { %v2973_v62 = vpop.f32.mrf.mxu1  ;;  %v4716_v52 = vor.u32 %v5948_v18, %v4713_v38  ;;  %v7899_v18 = vld [vmem:[#allocation23_spill] sm:$0xff] }
 0x30a   : > { %v3309_v46 = vadd.f32 %v3308_v28, %v3140_v32  ;;  %v2974_v14 = vadd.f32 %v2973_v62, %v2805_v44  ;;  %v5953_v44 = vld [vmem:[%s6515_s7 + $0x230] sm:$0xf0]  ;;  %v4721_v28 = vld [vmem:[%s6515_s7 + $0x234] sm:$0xf0]  ;;  %v2812_v38 = vadd.f32 %v7455_v53, %v7899_v18 }
 0x30b   : > { %v3480_v16 = vpop.f32.mrf.mxu0  ;;  %v5949_v32 = vld [vmem:[%s6515_s7 + $0x214] sm:$0xf] }
 0x30c   : > { %3528 = vmatmul.bf16.gmra.mxu1 %v4680_v29  ;;  %3697 = vmatmul.bf16.gmra.mxu2 %v4684_v39  ;;  %v7471_v0 = vadd.f32 %v3477_v2, %v3309_v46  ;;  %v4719_v2 = vld [vmem:[%s6515_s7 + $0x210] sm:$0xf]  ;;  %v4727_v29 = vld [vmem:[%s6515_s7 + $0x218] sm:$0xf]  ;;  %v5954_v39 = vld [vmem:[%s6515_s7 + $0x238] sm:$0xf0] }
 0x30d   : > { %3866 = vmatmul.bf16.gmra.mxu3 %v4688_v48  ;;  %v7898_v48 = vld [vmem:[#allocation21_spill] sm:$0xff] }
 0x30e   : > { %7895 = vst [vmem:[#allocation17_spill] sm:$0xff] %v7471_v0  ;;  %4035 = vmatmul.bf16.gmra.mxu0 %v4692_v23  ;;  %v2810_v23 = vadd.f32 %v7455_v53, %v7898_v48  ;;  %v4749_v48 = vld [vmem:[%s6515_s7 + $0x274] sm:$0xf0] }
 0x30f   : > { %v3142_v63 = vpop.f32.mrf.mxu2 }
 0x310   : > { %v3143_v3 = vadd.f32 %v3142_v63, %v2974_v14  ;;  %v3311_v4 = vpop.f32.mrf.mxu3 }
 0x311   : > { %v2975_v49 = vpop.f32.mrf.mxu1 }
 0x312   : > { %v3312_v43 = vadd.f32 %v3311_v4, %v3143_v3  ;;  %v2976_v58 = vadd.f32 %v2975_v49, %v2807_v47  ;;  %v4720_v3 = vor.u32 %v5953_v44, %v4719_v2  ;;  %v4724_v4 = vor.u32 %v5949_v32, %v4721_v28 }
 0x313   : > { %v3482_v21 = vpop.f32.mrf.mxu0  ;;  %v4728_v49 = vor.u32 %v5954_v39, %v4727_v29 }
 0x314   : > { %v7477_v46 = vadd.f32 %v3480_v16, %v3312_v43 }
 0x316   : > { %7897 = vst [vmem:[#allocation19_spill] sm:$0xff] %v7477_v46 }
 0x317   : > { %v3144_v62 = vpop.f32.mrf.mxu2 }
 0x318   : > { %v3145_v14 = vadd.f32 %v3144_v62, %v2976_v58  ;;  %v3313_v63 = vpop.f32.mrf.mxu3  ;;  %v5957_v62 = vld [vmem:[%s6515_s7 + $0x254] sm:$0xf] }
 0x319   : > { %v2978_v47 = vpop.f32.mrf.mxu1  ;;  %v4752_v53 = vor.u32 %v5957_v62, %v4749_v48 }
 0x31a   : > { %v3314_v0 = vadd.f32 %v3313_v63, %v3145_v14  ;;  %v2979_v16 = vadd.f32 %v2978_v47, %v2810_v23  ;;  %v5962_v23 = vld [vmem:[%s6515_s7 + $0x278] sm:$0xf0]  ;;  %v4757_v63 = vld [vmem:[%s6515_s7 + $0x27c] sm:$0xf0] }
 0x31b   : > { %v3485_v43 = vpop.f32.mrf.mxu0  ;;  %v5958_v14 = vld [vmem:[%s6515_s7 + $0x25c] sm:$0xf] }
 0x31c   : > { %3533 = vmatmul.bf16.gmra.mxu1 %v4716_v52  ;;  %3702 = vmatmul.bf16.gmra.mxu2 %v4720_v3  ;;  %v7487_v46 = vadd.f32 %v3482_v21, %v3314_v0  ;;  %v4755_v21 = vld [vmem:[%s6515_s7 + $0x258] sm:$0xf]  ;;  %v4763_v52 = vld [vmem:[%s6515_s7 + $0x260] sm:$0xf]  ;;  %v5963_v3 = vld [vmem:[%s6515_s7 + $0x280] sm:$0xf0]  ;;  %v4760_v18 = vor.u32 %v5958_v14, %v4757_v63 }
 0x31d   : > { %3871 = vmatmul.bf16.gmra.mxu3 %v4724_v4 }
 0x31e   : > { %4040 = vmatmul.bf16.gmra.mxu0 %v4728_v49 }
 0x31f   : > { %v3147_v58 = vpop.f32.mrf.mxu2 }
 0x320   : > { %v3148_v2 = vadd.f32 %v3147_v58, %v2979_v16  ;;  %v3316_v44 = vpop.f32.mrf.mxu3  ;;  %v4756_v16 = vor.u32 %v5962_v23, %v4755_v21 }
 0x321   : > { %v2980_v32 = vpop.f32.mrf.mxu1 }
 0x322   : > { %v3317_v28 = vadd.f32 %v3316_v44, %v3148_v2  ;;  %v2981_v29 = vadd.f32 %v2980_v32, %v2812_v38  ;;  %v4764_v2 = vor.u32 %v5963_v3, %v4763_v52  ;;  %v7900_v32 = vld [vmem:[#allocation24_spill] sm:$0xff]  ;;  %v5966_v52 = vld [vmem:[%s6515_s7 + $0x29c] sm:$0xf]  ;;  %v4785_v3 = vld [vmem:[%s6515_s7 + $0x2bc] sm:$0xf0] }
 0x323   : > { %v3487_v39 = vpop.f32.mrf.mxu0 }
 0x324   : > { %v7493_v0 = vadd.f32 %v3485_v43, %v3317_v28 }
 0x327   : > { %v3149_v47 = vpop.f32.mrf.mxu2 }
 0x328   : > { %v3150_v4 = vadd.f32 %v3149_v47, %v2981_v29  ;;  %v3318_v49 = vpop.f32.mrf.mxu3  ;;  %v4791_v47 = vld [vmem:[%s6515_s7 + $0x2a0] sm:$0xf] }
 0x329   : > { %v3499_v58 = vpop.f32.mrf.mxu1 }
 0x32a   : > { %v3319_v38 = vadd.f32 %v3318_v49, %v3150_v4  ;;  %v3500_v28 = vadd.f32 %v3499_v58, %v7900_v32  ;;  %v5967_v4 = vld [vmem:[%s6515_s7 + $0x2a4] sm:$0xf]  ;;  %v5972_v58 = vld [vmem:[%s6515_s7 + $0x2c8] sm:$0xf0]  ;;  %v4788_v32 = vor.u32 %v5966_v52, %v4785_v3 }
 0x32b   : > { %v4006_v44 = vpop.f32.mrf.mxu0 }
 0x32c   : > { %3538 = vmatmul.bf16.gmra.mxu1 %v4752_v53  ;;  %3707 = vmatmul.bf16.gmra.mxu2 %v4756_v16  ;;  %v7501_v43 = vadd.f32 %v3487_v39, %v3319_v38  ;;  %v5971_v39 = vld [vmem:[%s6515_s7 + $0x2c0] sm:$0xf0]  ;;  %v4793_v53 = vld [vmem:[%s6515_s7 + $0x2c4] sm:$0xf0] }
 0x32d   : > { %3876 = vmatmul.bf16.gmra.mxu3 %v4760_v18  ;;  %v4799_v16 = vld [vmem:[%s6515_s7 + $0x2a8] sm:$0xf] }
 0x32e   : > { %4045 = vmatmul.bf16.gmra.mxu0 %v4764_v2 }
 0x32f   : > { %v3668_v29 = vpop.f32.mrf.mxu2 }
 0x330   : > { %v3669_v62 = vadd.f32 %v3668_v29, %v3500_v28  ;;  %v3837_v48 = vpop.f32.mrf.mxu3  ;;  %v4792_v28 = vor.u32 %v5971_v39, %v4791_v47 }
 0x331   : > { %v3501_v21 = vpop.f32.mrf.mxu1 }
 0x332   : > { %v3838_v23 = vadd.f32 %v3837_v48, %v3669_v62  ;;  %v3502_v49 = vadd.f32 %v3501_v21, %v6937_v57  ;;  %v4796_v62 = vor.u32 %v5967_v4, %v4793_v53 }
 0x333   : > { %v4008_v14 = vpop.f32.mrf.mxu0 }
 0x334   : > { %v4007_v63 = vadd.f32 %v4006_v44, %v3838_v23  ;;  %v4800_v44 = vor.u32 %v5972_v58, %v4799_v16  ;;  %v5975_v16 = vld [vmem:[%s6515_s7 + $0x2e4] sm:$0xf]  ;;  %v4821_v58 = vld [vmem:[%s6515_s7 + $0x304] sm:$0xf0] }
 0x336   : > { %6293 = vtanh.f32 %v4007_v63 }
 0x337   : > { %v3670_v18 = vpop.f32.mrf.mxu2 }
 0x338   : > { %v3671_v2 = vadd.f32 %v3670_v18, %v3502_v49  ;;  %v3839_v38 = vpop.f32.mrf.mxu3  ;;  %v4827_v18 = vld [vmem:[%s6515_s7 + $0x2e8] sm:$0xf] }
 0x339   : > { %v3504_v29 = vpop.f32.mrf.mxu1 }
 0x33a   : > { %v3840_v48 = vadd.f32 %v3839_v38, %v3671_v2  ;;  %v3505_v63 = vadd.f32 %v3504_v29, %v6943_v40  ;;  %v5980_v2 = vld [vmem:[%s6515_s7 + $0x308] sm:$0xf0]  ;;  %v5981_v29 = vld [vmem:[%s6515_s7 + $0x310] sm:$0xf0] }
 0x33b   : > { %v4011_v57 = vpop.f32.mrf.mxu0  ;;  %v5976_v38 = vld [vmem:[%s6515_s7 + $0x2ec] sm:$0xf] }
 0x33c   : > { %v6294_v21 = vpop.eup %6293  ;;  %v4009_v23 = vadd.f32 %v4008_v14, %v3840_v48  ;;  %3543 = vmatmul.bf16.gmra.mxu1 %v4788_v32  ;;  %3712 = vmatmul.bf16.gmra.mxu2 %v4792_v28  ;;  %v4829_v32 = vld [vmem:[%s6515_s7 + $0x30c] sm:$0xf0] }
 0x33d   : > { %4230 = vst [vmem:[%s7517_s18] sm:$0xff] %v6294_v21  ;;  %3881 = vmatmul.bf16.gmra.mxu3 %v4796_v62  ;;  %v4835_v28 = vld [vmem:[%s6515_s7 + $0x2f0] sm:$0xf]  ;;  %v4824_v21 = vor.u32 %v5975_v16, %v4821_v58 }
 0x33e   : > { %4050 = vmatmul.bf16.gmra.mxu0 %v4800_v44  ;;  %6295 = vtanh.f32 %v4009_v23  ;;  %v4828_v23 = vor.u32 %v5980_v2, %v4827_v18 }
 0x33f   : > { %v3673_v52 = vpop.f32.mrf.mxu2 }
 0x340   : > { %v3674_v3 = vadd.f32 %v3673_v52, %v3505_v63  ;;  %v3842_v47 = vpop.f32.mrf.mxu3  ;;  %v4836_v52 = vor.u32 %v5981_v29, %v4835_v28  ;;  %v4863_v28 = vld [vmem:[%s6515_s7 + $0x330] sm:$0xf]  ;;  %v5989_v29 = vld [vmem:[%s6515_s7 + $0x350] sm:$0xf0] }
 0x341   : > { %v3506_v14 = vpop.f32.mrf.mxu1 }
 0x342   : > { %v3843_v39 = vadd.f32 %v3842_v47, %v3674_v3  ;;  %v3507_v40 = vadd.f32 %v3506_v14, %v6953_v36 }
 0x343   : > { %v4013_v4 = vpop.f32.mrf.mxu0 }
 0x344   : > { %v6296_v49 = vpop.eup %6295  ;;  %v4012_v53 = vadd.f32 %v4011_v57, %v3843_v39  ;;  %v4832_v57 = vor.u32 %v5976_v38, %v4829_v32  ;;  %v4857_v32 = vld [vmem:[%s6515_s7 + $0x34c] sm:$0xf0] }
 0x345   : > { %4231 = vst [vmem:[%s7517_s18 + $0x8] sm:$0xff] %v6296_v49 }
 0x346   : > { %6297 = vtanh.f32 %v4012_v53 }
 0x347   : > { %v3675_v62 = vpop.f32.mrf.mxu2 }
 0x348   : > { %v3676_v44 = vadd.f32 %v3675_v62, %v3507_v40  ;;  %v3844_v48 = vpop.f32.mrf.mxu3  ;;  %v5984_v40 = vld [vmem:[%s6515_s7 + $0x32c] sm:$0xf]  ;;  %v5985_v62 = vld [vmem:[%s6515_s7 + $0x334] sm:$0xf] }
 0x349   : > { %v3509_v63 = vpop.f32.mrf.mxu1 }
 0x34a   : > { %v3845_v3 = vadd.f32 %v3844_v48, %v3676_v44  ;;  %v3510_v36 = vadd.f32 %v3509_v63, %v6971_v15  ;;  %v4865_v44 = vld [vmem:[%s6515_s7 + $0x354] sm:$0xf0] }
 0x34b   : > { %v4016_v47 = vpop.f32.mrf.mxu0  ;;  %v4871_v48 = vld [vmem:[%s6515_s7 + $0x338] sm:$0xf] }
 0x34c   : > { %v6298_v39 = vpop.eup %6297  ;;  %v4014_v49 = vadd.f32 %v4013_v4, %v3845_v3  ;;  %3548 = vmatmul.bf16.gmra.mxu1 %v4824_v21  ;;  %3717 = vmatmul.bf16.gmra.mxu2 %v4828_v23  ;;  %v5990_v21 = vld [vmem:[%s6515_s7 + $0x358] sm:$0xf0]  ;;  %v4864_v3 = vor.u32 %v5989_v29, %v4863_v28  ;;  %v5993_v29 = vld [vmem:[%s6515_s7 + $0x374] sm:$0xf] }
 0x34d   : > { %4232 = vst [vmem:[%s7517_s18 + $0x10] sm:$0xff] %v6298_v39  ;;  %3886 = vmatmul.bf16.gmra.mxu3 %v4832_v57 }
 0x34e   : > { %4055 = vmatmul.bf16.gmra.mxu0 %v4836_v52  ;;  %6299 = vtanh.f32 %v4014_v49  ;;  %v4860_v52 = vor.u32 %v5984_v40, %v4857_v32  ;;  %v4872_v49 = vor.u32 %v5990_v21, %v4871_v48  ;;  %v5994_v48 = vld [vmem:[%s6515_s7 + $0x37c] sm:$0xf]  ;;  %v4901_v21 = vld [vmem:[%s6515_s7 + $0x39c] sm:$0xf0] }
 0x34f   : > { %v3678_v14 = vpop.f32.mrf.mxu2 }
 0x350   : > { %v3679_v53 = vadd.f32 %v3678_v14, %v3510_v36  ;;  %v3847_v16 = vpop.f32.mrf.mxu3 }
 0x351   : > { %v3511_v4 = vpop.f32.mrf.mxu1 }
 0x352   : > { %v3848_v58 = vadd.f32 %v3847_v16, %v3679_v53  ;;  %v3512_v15 = vadd.f32 %v3511_v4, %v6981_v20 }
 0x353   : > { %v4018_v18 = vpop.f32.mrf.mxu0 }
 0x354   : > { %v6300_v2 = vpop.eup %6299  ;;  %v4017_v38 = vadd.f32 %v4016_v47, %v3848_v58  ;;  %v4868_v47 = vor.u32 %v5985_v62, %v4865_v44  ;;  %v4893_v62 = vld [vmem:[%s6515_s7 + $0x394] sm:$0xf0]  ;;  %v5998_v44 = vld [vmem:[%s6515_s7 + $0x398] sm:$0xf0] }
 0x355   : > { %4233 = vst [vmem:[%s7517_s18 + $0x18] sm:$0xff] %v6300_v2 }
 0x356   : > { %6301 = vtanh.f32 %v4017_v38 }
 0x357   : > { %v3680_v23 = vpop.f32.mrf.mxu2 }
 0x358   : > { %v3681_v63 = vadd.f32 %v3680_v23, %v3512_v15  ;;  %v3849_v57 = vpop.f32.mrf.mxu3  ;;  %v4899_v15 = vld [vmem:[%s6515_s7 + $0x378] sm:$0xf]  ;;  %v4907_v23 = vld [vmem:[%s6515_s7 + $0x380] sm:$0xf] }
 0x359   : > { %v3514_v39 = vpop.f32.mrf.mxu1 }
 0x35a   : > { %v3850_v36 = vadd.f32 %v3849_v57, %v3681_v63  ;;  %v3515_v20 = vadd.f32 %v3514_v39, %v6987_v11  ;;  %v5999_v63 = vld [vmem:[%s6515_s7 + $0x3a0] sm:$0xf0]  ;;  %v4896_v39 = vor.u32 %v5993_v29, %v4893_v62  ;;  %v6002_v62 = vld [vmem:[%s6515_s7 + $0x3bc] sm:$0xf] }
 0x35b   : > { %v4021_v14 = vpop.f32.mrf.mxu0 }
 0x35c   : > { %v6302_v53 = vpop.eup %6301  ;;  %v4019_v16 = vadd.f32 %v4018_v18, %v3850_v36  ;;  %3553 = vmatmul.bf16.gmra.mxu1 %v4860_v52  ;;  %3722 = vmatmul.bf16.gmra.mxu2 %v4864_v3  ;;  %v4904_v36 = vor.u32 %v5994_v48, %v4901_v21  ;;  %v6007_v48 = vld [vmem:[%s6515_s7 + $0x3e0] sm:$0xf0]  ;;  %v4937_v21 = vld [vmem:[%s6515_s7 + $0x3e4] sm:$0xf0] }
 0x35d   : > { %4234 = vst [vmem:[%s7517_s18 + $0x20] sm:$0xff] %v6302_v53  ;;  %3891 = vmatmul.bf16.gmra.mxu3 %v4868_v47  ;;  %v4900_v47 = vor.u32 %v5998_v44, %v4899_v15  ;;  %v4929_v15 = vld [vmem:[%s6515_s7 + $0x3dc] sm:$0xf0] }
 0x35e   : > { %4060 = vmatmul.bf16.gmra.mxu0 %v4872_v49  ;;  %6303 = vtanh.f32 %v4019_v16  ;;  %v4935_v44 = vld [vmem:[%s6515_s7 + $0x3c0] sm:$0xf] }
 0x35f   : > { %v3683_v4 = vpop.f32.mrf.mxu2 }
 0x360   : > { %v3684_v58 = vadd.f32 %v3683_v4, %v3515_v20  ;;  %v3852_v2 = vpop.f32.mrf.mxu3 }
 0x361   : > { %v3516_v18 = vpop.f32.mrf.mxu1 }
 0x362   : > { %v3853_v38 = vadd.f32 %v3852_v2, %v3684_v58  ;;  %v3517_v11 = vadd.f32 %v3516_v18, %v6997_v30 }
 0x363   : > { %v4023_v40 = vpop.f32.mrf.mxu0 }
 0x364   : > { %v6304_v32 = vpop.eup %6303  ;;  %v4022_v28 = vadd.f32 %v4021_v14, %v3853_v38  ;;  %v4908_v14 = vor.u32 %v5999_v63, %v4907_v23  ;;  %v4943_v23 = vld [vmem:[%s6515_s7 + $0x3c8] sm:$0xf]  ;;  %v6008_v63 = vld [vmem:[%s6515_s7 + $0x3e8] sm:$0xf0] }
 0x365   : > { %4235 = vst [vmem:[%s7517_s18 + $0x28] sm:$0xff] %v6304_v32 }
 0x366   : > { %6305 = vtanh.f32 %v4022_v28 }
 0x367   : > { %v3685_v57 = vpop.f32.mrf.mxu2 }
 0x368   : > { %v3686_v52 = vadd.f32 %v3685_v57, %v3517_v11  ;;  %v3854_v3 = vpop.f32.mrf.mxu3  ;;  %v6003_v11 = vld [vmem:[%s6515_s7 + $0x3c4] sm:$0xf] }
 0x369   : > { %v3519_v49 = vpop.f32.mrf.mxu1 }
 0x36a   : > { %v3855_v53 = vadd.f32 %v3854_v3, %v3686_v52  ;;  %v3520_v30 = vadd.f32 %v3519_v49, %v7003_v45 }
 0x36b   : > { %v4026_v16 = vpop.f32.mrf.mxu0 }
 0x36c   : > { %v6306_v20 = vpop.eup %6305  ;;  %v4024_v4 = vadd.f32 %v4023_v40, %v3855_v53  ;;  %3558 = vmatmul.bf16.gmra.mxu1 %v4896_v39  ;;  %3727 = vmatmul.bf16.gmra.mxu2 %v4900_v47  ;;  %v4932_v39 = vor.u32 %v6002_v62, %v4929_v15  ;;  %v4936_v47 = vor.u32 %v6007_v48, %v4935_v44  ;;  %v4965_v62 = vld [vmem:[%s6515_s7 + $0x424] sm:$0xf0]  ;;  %v6016_v44 = vld [vmem:[%s6515_s7 + $0x428] sm:$0xf0] }
 0x36d   : > { %4236 = vst [vmem:[%s7517_s18 + $0x30] sm:$0xff] %v6306_v20  ;;  %3896 = vmatmul.bf16.gmra.mxu3 %v4904_v36  ;;  %v4940_v36 = vor.u32 %v6003_v11, %v4937_v21  ;;  %v4971_v15 = vld [vmem:[%s6515_s7 + $0x408] sm:$0xf]  ;;  %v6012_v48 = vld [vmem:[%s6515_s7 + $0x40c] sm:$0xf] }
 0x36e   : > { %4065 = vmatmul.bf16.gmra.mxu0 %v4908_v14  ;;  %6307 = vtanh.f32 %v4024_v4  ;;  %v4944_v14 = vor.u32 %v6008_v63, %v4943_v23  ;;  %v4973_v11 = vld [vmem:[%s6515_s7 + $0x42c] sm:$0xf0]  ;;  %v6017_v21 = vld [vmem:[%s6515_s7 + $0x430] sm:$0xf0] }
 0x36f   : > { %v3688_v58 = vpop.f32.mrf.mxu2 }
 0x370   : > { %v3689_v2 = vadd.f32 %v3688_v58, %v3520_v30  ;;  %v3857_v18 = vpop.f32.mrf.mxu3 }
 0x371   : > { %v3521_v38 = vpop.f32.mrf.mxu1 }
 0x372   : > { %v3858_v40 = vadd.f32 %v3857_v18, %v3689_v2  ;;  %v3522_v45 = vadd.f32 %v3521_v38, %v7013_v17 }
 0x373   : > { %v4028_v32 = vpop.f32.mrf.mxu0 }
 0x374   : > { %v6308_v28 = vpop.eup %6307  ;;  %v4027_v29 = vadd.f32 %v4026_v16, %v3858_v40 }
 0x375   : > { %4237 = vst [vmem:[%s7517_s18 + $0x38] sm:$0xff] %v6308_v28 }
 0x376   : > { %6309 = vtanh.f32 %v4027_v29  ;;  %v6011_v29 = vld [vmem:[%s6515_s7 + $0x404] sm:$0xf] }
 0x377   : > { %v3690_v57 = vpop.f32.mrf.mxu2 }
 0x378   : > { %v3691_v52 = vadd.f32 %v3690_v57, %v3522_v45  ;;  %v3859_v3 = vpop.f32.mrf.mxu3  ;;  %v4979_v45 = vld [vmem:[%s6515_s7 + $0x410] sm:$0xf] }
 0x379   : > { %v3524_v49 = vpop.f32.mrf.mxu1 }
 0x37a   : > { %v3860_v53 = vadd.f32 %v3859_v3, %v3691_v52  ;;  %v3525_v17 = vadd.f32 %v3524_v49, %v7019_v10  ;;  %v4968_v52 = vor.u32 %v6011_v29, %v4965_v62  ;;  %v4972_v3 = vor.u32 %v6016_v44, %v4971_v15  ;;  %v6025_v29 = vld [vmem:[%s6515_s7 + $0x470] sm:$0xf0]  ;;  %v5009_v15 = vld [vmem:[%s6515_s7 + $0x474] sm:$0xf0] }
 0x37b   : > { %v4031_v16 = vpop.f32.mrf.mxu0  ;;  %v4980_v49 = vor.u32 %v6017_v21, %v4979_v45  ;;  %v6021_v62 = vld [vmem:[%s6515_s7 + $0x454] sm:$0xf]  ;;  %v5015_v44 = vld [vmem:[%s6515_s7 + $0x458] sm:$0xf] }
 0x37c   : > { %v6310_v20 = vpop.eup %6309  ;;  %v4029_v4 = vadd.f32 %v4028_v32, %v3860_v53  ;;  %3563 = vmatmul.bf16.gmra.mxu1 %v4932_v39  ;;  %3732 = vmatmul.bf16.gmra.mxu2 %v4936_v47  ;;  %v4976_v47 = vor.u32 %v6012_v48, %v4973_v11  ;;  %v6026_v48 = vld [vmem:[%s6515_s7 + $0x478] sm:$0xf0] }
 0x37d   : > { %4238 = vst [vmem:[%s7517_s18 + $0x40] sm:$0xff] %v6310_v20  ;;  %3901 = vmatmul.bf16.gmra.mxu3 %v4940_v36 }
 0x37e   : > { %4070 = vmatmul.bf16.gmra.mxu0 %v4944_v14  ;;  %6311 = vtanh.f32 %v4029_v4 }
 0x37f   : > { %v3693_v30 = vpop.f32.mrf.mxu2 }
 0x380   : > { %v3694_v58 = vadd.f32 %v3693_v30, %v3525_v17  ;;  %v3862_v2 = vpop.f32.mrf.mxu3 }
 0x381   : > { %v3526_v18 = vpop.f32.mrf.mxu1 }
 0x382   : > { %v3863_v38 = vadd.f32 %v3862_v2, %v3694_v58  ;;  %v3527_v10 = vadd.f32 %v3526_v18, %v7029_v35 }
 0x383   : > { %v4033_v40 = vpop.f32.mrf.mxu0 }
 0x384   : > { %v6312_v32 = vpop.eup %6311  ;;  %v4032_v28 = vadd.f32 %v4031_v16, %v3863_v38 }
 0x385   : > { %4239 = vst [vmem:[%s7517_s18 + $0x48] sm:$0xff] %v6312_v32  ;;  %v5001_v32 = vld [vmem:[%s6515_s7 + $0x46c] sm:$0xf0] }
 0x386   : > { %6313 = vtanh.f32 %v4032_v28  ;;  %v5007_v28 = vld [vmem:[%s6515_s7 + $0x450] sm:$0xf] }
 0x387   : > { %v3695_v23 = vpop.f32.mrf.mxu2 }
 0x388   : > { %v3696_v63 = vadd.f32 %v3695_v23, %v3527_v10  ;;  %v3864_v57 = vpop.f32.mrf.mxu3  ;;  %v5008_v23 = vor.u32 %v6025_v29, %v5007_v28  ;;  %v6035_v28 = vld [vmem:[%s6515_s7 + $0x4c0] sm:$0xf0] }
 0x389   : > { %v3529_v39 = vpop.f32.mrf.mxu1 }
 0x38a   : > { %v3865_v36 = vadd.f32 %v3864_v57, %v3696_v63  ;;  %v3530_v35 = vadd.f32 %v3529_v39, %v7047_v51  ;;  %v5012_v57 = vor.u32 %v6021_v62, %v5009_v15 }
 0x38b   : > { %v4036_v14 = vpop.f32.mrf.mxu0 }
 0x38c   : > { %v6314_v53 = vpop.eup %6313  ;;  %v4034_v16 = vadd.f32 %v4033_v40, %v3865_v36  ;;  %3568 = vmatmul.bf16.gmra.mxu1 %v4968_v52  ;;  %3737 = vmatmul.bf16.gmra.mxu2 %v4972_v3  ;;  %v6020_v40 = vld [vmem:[%s6515_s7 + $0x44c] sm:$0xf]  ;;  %v5016_v52 = vor.u32 %v6026_v48, %v5015_v44 }
 0x38d   : > { %4240 = vst [vmem:[%s7517_s18 + $0x50] sm:$0xff] %v6314_v53  ;;  %3906 = vmatmul.bf16.gmra.mxu3 %v4976_v47  ;;  %v5004_v21 = vor.u32 %v6020_v40, %v5001_v32  ;;  %v5045_v40 = vld [vmem:[%s6515_s7 + $0x4bc] sm:$0xf0] }
 0x38e   : > { %4075 = vmatmul.bf16.gmra.mxu0 %v4980_v49  ;;  %6315 = vtanh.f32 %v4034_v16  ;;  %v5051_v32 = vld [vmem:[%s6515_s7 + $0x4a0] sm:$0xf] }
 0x38f   : > { %v3698_v20 = vpop.f32.mrf.mxu2 }
 0x390   : > { %v3699_v4 = vadd.f32 %v3698_v20, %v3530_v35  ;;  %v3867_v17 = vpop.f32.mrf.mxu3 }
 0x391   : > { %v3531_v30 = vpop.f32.mrf.mxu1 }
 0x392   : > { %v3868_v58 = vadd.f32 %v3867_v17, %v3699_v4  ;;  %v3532_v51 = vadd.f32 %v3531_v30, %v7057_v61  ;;  %v6029_v30 = vld [vmem:[%s6515_s7 + $0x494] sm:$0xf] }
 0x393   : > { %v4038_v2 = vpop.f32.mrf.mxu0 }
 0x394   : > { %v6316_v18 = vpop.eup %6315  ;;  %v4037_v38 = vadd.f32 %v4036_v14, %v3868_v58  ;;  %v5037_v58 = vld [vmem:[%s6515_s7 + $0x4b4] sm:$0xf0] }
 0x395   : > { %4241 = vst [vmem:[%s7517_s18 + $0x58] sm:$0xff] %v6316_v18  ;;  %v6034_v18 = vld [vmem:[%s6515_s7 + $0x4b8] sm:$0xf0]  ;;  %v5040_v15 = vor.u32 %v6029_v30, %v5037_v58  ;;  %v6044_v30 = vld [vmem:[%s6515_s7 + $0x508] sm:$0xf0] }
 0x396   : > { %6317 = vtanh.f32 %v4037_v38  ;;  %v6030_v38 = vld [vmem:[%s6515_s7 + $0x49c] sm:$0xf] }
 0x397   : > { %v3700_v10 = vpop.f32.mrf.mxu2 }
 0x398   : > { %v3701_v11 = vadd.f32 %v3700_v10, %v3532_v51  ;;  %v3869_v45 = vpop.f32.mrf.mxu3  ;;  %v5048_v10 = vor.u32 %v6030_v38, %v5045_v40 }
 0x399   : > { %v3534_v63 = vpop.f32.mrf.mxu1 }
 0x39a   : > { %v3870_v3 = vadd.f32 %v3869_v45, %v3701_v11  ;;  %v3535_v61 = vadd.f32 %v3534_v63, %v7063_v8  ;;  %v5052_v11 = vor.u32 %v6035_v28, %v5051_v32 }
 0x39b   : > { %v4041_v39 = vpop.f32.mrf.mxu0 }
 0x39c   : > { %v6318_v47 = vpop.eup %6317  ;;  %v4039_v49 = vadd.f32 %v4038_v2, %v3870_v3  ;;  %3573 = vmatmul.bf16.gmra.mxu1 %v5004_v21  ;;  %3742 = vmatmul.bf16.gmra.mxu2 %v5008_v23  ;;  %v5043_v2 = vld [vmem:[%s6515_s7 + $0x498] sm:$0xf] }
 0x39d   : > { %4242 = vst [vmem:[%s7517_s18 + $0x60] sm:$0xff] %v6318_v47  ;;  %3911 = vmatmul.bf16.gmra.mxu3 %v5012_v57  ;;  %v5044_v44 = vor.u32 %v6034_v18, %v5043_v2 }
 0x39e   : > { %4080 = vmatmul.bf16.gmra.mxu0 %v5016_v52  ;;  %6319 = vtanh.f32 %v4039_v49 }
 0x39f   : > { %v3703_v36 = vpop.f32.mrf.mxu2 }
 0x3a0   : > { %v3704_v14 = vadd.f32 %v3703_v36, %v3535_v61  ;;  %v3872_v53 = vpop.f32.mrf.mxu3 }
 0x3a1   : > { %v3536_v16 = vpop.f32.mrf.mxu1 }
 0x3a2   : > { %v3873_v35 = vadd.f32 %v3872_v53, %v3704_v14  ;;  %v3537_v8 = vadd.f32 %v3536_v16, %v7073_v33  ;;  %v6038_v14 = vld [vmem:[%s6515_s7 + $0x4dc] sm:$0xf]  ;;  %v5073_v53 = vld [vmem:[%s6515_s7 + $0x4fc] sm:$0xf0] }
 0x3a3   : > { %v4043_v20 = vpop.f32.mrf.mxu0  ;;  %v5079_v16 = vld [vmem:[%s6515_s7 + $0x4e0] sm:$0xf]  ;;  %v5076_v38 = vor.u32 %v6038_v14, %v5073_v53 }
 0x3a4   : > { %v6320_v4 = vpop.eup %6319  ;;  %v4042_v17 = vadd.f32 %v4041_v39, %v3873_v35  ;;  %v6043_v35 = vld [vmem:[%s6515_s7 + $0x500] sm:$0xf0] }
 0x3a5   : > { %4243 = vst [vmem:[%s7517_s18 + $0x68] sm:$0xff] %v6320_v4  ;;  %v5081_v4 = vld [vmem:[%s6515_s7 + $0x504] sm:$0xf0] }
 0x3a6   : > { %6321 = vtanh.f32 %v4042_v17  ;;  %v5087_v17 = vld [vmem:[%s6515_s7 + $0x4e8] sm:$0xf] }
 0x3a7   : > { %v3705_v29 = vpop.f32.mrf.mxu2  ;;  %v5088_v28 = vor.u32 %v6044_v30, %v5087_v17 }
 0x3a8   : > { %v3706_v62 = vadd.f32 %v3705_v29, %v3537_v8  ;;  %v3874_v51 = vpop.f32.mrf.mxu3  ;;  %v5080_v8 = vor.u32 %v6043_v35, %v5079_v16 }
 0x3a9   : > { %v3539_v48 = vpop.f32.mrf.mxu1 }
 0x3aa   : > { %v3875_v45 = vadd.f32 %v3874_v51, %v3706_v62  ;;  %v3540_v33 = vadd.f32 %v3539_v48, %v7079_v37 }
 0x3ab   : > { %v4046_v21 = vpop.f32.mrf.mxu0 }
 0x3ac   : > { %v6322_v23 = vpop.eup %6321  ;;  %v4044_v63 = vadd.f32 %v4043_v20, %v3875_v45  ;;  %3578 = vmatmul.bf16.gmra.mxu1 %v5040_v15  ;;  %3747 = vmatmul.bf16.gmra.mxu2 %v5044_v44  ;;  %v6039_v20 = vld [vmem:[%s6515_s7 + $0x4e4] sm:$0xf] }
 0x3ad   : > { %4244 = vst [vmem:[%s7517_s18 + $0x70] sm:$0xff] %v6322_v23  ;;  %3916 = vmatmul.bf16.gmra.mxu3 %v5048_v10  ;;  %v5084_v32 = vor.u32 %v6039_v20, %v5081_v4 }
 0x3ae   : > { %4085 = vmatmul.bf16.gmra.mxu0 %v5052_v11  ;;  %6323 = vtanh.f32 %v4044_v63 }
 0x3af   : > { %v3708_v57 = vpop.f32.mrf.mxu2 }
 0x3b0   : > { %v3709_v52 = vadd.f32 %v3708_v57, %v3540_v33  ;;  %v3877_v3 = vpop.f32.mrf.mxu3  ;;  %v6047_v33 = vld [vmem:[%s6515_s7 + $0x524] sm:$0xf]  ;;  %v5109_v57 = vld [vmem:[%s6515_s7 + $0x544] sm:$0xf0] }
 0x3b1   : > { %v3541_v39 = vpop.f32.mrf.mxu1  ;;  %v5112_v16 = vor.u32 %v6047_v33, %v5109_v57 }
 0x3b2   : > { %v3878_v47 = vadd.f32 %v3877_v3, %v3709_v52  ;;  %v3542_v37 = vadd.f32 %v3541_v39, %v7089_v50  ;;  %v5115_v52 = vld [vmem:[%s6515_s7 + $0x528] sm:$0xf]  ;;  %v6052_v3 = vld [vmem:[%s6515_s7 + $0x548] sm:$0xf0] }
 0x3b3   : > { %v4048_v49 = vpop.f32.mrf.mxu0  ;;  %v6048_v39 = vld [vmem:[%s6515_s7 + $0x52c] sm:$0xf]  ;;  %v5116_v35 = vor.u32 %v6052_v3, %v5115_v52 }
 0x3b4   : > { %v6324_v61 = vpop.eup %6323  ;;  %v4047_v36 = vadd.f32 %v4046_v21, %v3878_v47  ;;  %v5117_v47 = vld [vmem:[%s6515_s7 + $0x54c] sm:$0xf0] }
 0x3b5   : > { %4245 = vst [vmem:[%s7517_s18 + $0x78] sm:$0xff] %v6324_v61  ;;  %v6053_v61 = vld [vmem:[%s6515_s7 + $0x550] sm:$0xf0] }
 0x3b6   : > { %6325 = vtanh.f32 %v4047_v36 }
 0x3b7   : > { %v3710_v58 = vpop.f32.mrf.mxu2 }
 0x3b8   : > { %v3711_v2 = vadd.f32 %v3710_v58, %v3542_v37  ;;  %v3879_v18 = vpop.f32.mrf.mxu3  ;;  %v5120_v37 = vor.u32 %v6048_v39, %v5117_v47 }
 0x3b9   : > { %v3544_v40 = vpop.f32.mrf.mxu1 }
 0x3ba   : > { %v3880_v29 = vadd.f32 %v3879_v18, %v3711_v2  ;;  %v3545_v50 = vadd.f32 %v3544_v40, %v7095_v7 }
 0x3bb   : > { %v4051_v62 = vpop.f32.mrf.mxu0 }
 0x3bc   : > { %v6326_v51 = vpop.eup %6325  ;;  %v4049_v15 = vadd.f32 %v4048_v49, %v3880_v29  ;;  %3583 = vmatmul.bf16.gmra.mxu1 %v5076_v38  ;;  %3752 = vmatmul.bf16.gmra.mxu2 %v5080_v8  ;;  %v5123_v49 = vld [vmem:[%s6515_s7 + $0x530] sm:$0xf] }
 0x3bd   : > { %4246 = vst [vmem:[%s7517_s18 + $0x80] sm:$0xff] %v6326_v51  ;;  %3921 = vmatmul.bf16.gmra.mxu3 %v5084_v32  ;;  %v5124_v4 = vor.u32 %v6053_v61, %v5123_v49  ;;  %v6056_v51 = vld [vmem:[%s6515_s7 + $0x56c] sm:$0xf] }
 0x3be   : > { %4090 = vmatmul.bf16.gmra.mxu0 %v5088_v28  ;;  %6327 = vtanh.f32 %v4049_v15  ;;  %v5145_v15 = vld [vmem:[%s6515_s7 + $0x58c] sm:$0xf0] }
 0x3bf   : > { %v3713_v44 = vpop.f32.mrf.mxu2  ;;  %v5148_v33 = vor.u32 %v6056_v51, %v5145_v15 }
 0x3c0   : > { %v3714_v48 = vadd.f32 %v3713_v44, %v3545_v50  ;;  %v3882_v10 = vpop.f32.mrf.mxu3  ;;  %v5151_v50 = vld [vmem:[%s6515_s7 + $0x570] sm:$0xf]  ;;  %v6061_v44 = vld [vmem:[%s6515_s7 + $0x590] sm:$0xf0] }
 0x3c1   : > { %v3546_v11 = vpop.f32.mrf.mxu1  ;;  %v5152_v57 = vor.u32 %v6061_v44, %v5151_v50 }
 0x3c2   : > { %v3883_v45 = vadd.f32 %v3882_v10, %v3714_v48  ;;  %v3547_v7 = vadd.f32 %v3546_v11, %v7105_v12  ;;  %v6057_v48 = vld [vmem:[%s6515_s7 + $0x574] sm:$0xf]  ;;  %v5153_v10 = vld [vmem:[%s6515_s7 + $0x594] sm:$0xf0] }
 0x3c3   : > { %v4053_v21 = vpop.f32.mrf.mxu0  ;;  %v5159_v11 = vld [vmem:[%s6515_s7 + $0x578] sm:$0xf]  ;;  %v5156_v3 = vor.u32 %v6057_v48, %v5153_v10 }
 0x3c4   : > { %v6328_v23 = vpop.eup %6327  ;;  %v4052_v63 = vadd.f32 %v4051_v62, %v3883_v45  ;;  %v6062_v45 = vld [vmem:[%s6515_s7 + $0x598] sm:$0xf0] }
 0x3c5   : > { %4247 = vst [vmem:[%s7517_s18 + $0x88] sm:$0xff] %v6328_v23  ;;  %v5160_v39 = vor.u32 %v6062_v45, %v5159_v11 }
 0x3c6   : > { %6329 = vtanh.f32 %v4052_v63 }
 0x3c7   : > { %v3715_v36 = vpop.f32.mrf.mxu2 }
 0x3c8   : > { %v3716_v14 = vadd.f32 %v3715_v36, %v3547_v7  ;;  %v3884_v53 = vpop.f32.mrf.mxu3 }
 0x3c9   : > { %v3549_v20 = vpop.f32.mrf.mxu1 }
 0x3ca   : > { %v3885_v17 = vadd.f32 %v3884_v53, %v3716_v14  ;;  %v3550_v12 = vadd.f32 %v3549_v20, %v7123_v41 }
 0x3cb   : > { %v4056_v30 = vpop.f32.mrf.mxu0 }
 0x3cc   : > { %v6330_v58 = vpop.eup %6329  ;;  %v4054_v2 = vadd.f32 %v4053_v21, %v3885_v17  ;;  %3588 = vmatmul.bf16.gmra.mxu1 %v5112_v16  ;;  %3757 = vmatmul.bf16.gmra.mxu2 %v5116_v35  ;;  %v6065_v17 = vld [vmem:[%s6515_s7 + $0x5b4] sm:$0xf] }
 0x3cd   : > { %4248 = vst [vmem:[%s7517_s18 + $0x90] sm:$0xff] %v6330_v58  ;;  %3926 = vmatmul.bf16.gmra.mxu3 %v5120_v37  ;;  %v5187_v58 = vld [vmem:[%s6515_s7 + $0x5b8] sm:$0xf] }
 0x3ce   : > { %4095 = vmatmul.bf16.gmra.mxu0 %v5124_v4  ;;  %6331 = vtanh.f32 %v4054_v2  ;;  %v6070_v2 = vld [vmem:[%s6515_s7 + $0x5d8] sm:$0xf0] }
 0x3cf   : > { %v3718_v18 = vpop.f32.mrf.mxu2 }
 0x3d0   : > { %v3719_v38 = vadd.f32 %v3718_v18, %v3550_v12  ;;  %v3887_v8 = vpop.f32.mrf.mxu3  ;;  %v6066_v12 = vld [vmem:[%s6515_s7 + $0x5bc] sm:$0xf]  ;;  %v5189_v18 = vld [vmem:[%s6515_s7 + $0x5dc] sm:$0xf0] }
 0x3d1   : > { %v3551_v40 = vpop.f32.mrf.mxu1  ;;  %v5192_v15 = vor.u32 %v6066_v12, %v5189_v18 }
 0x3d2   : > { %v3888_v32 = vadd.f32 %v3887_v8, %v3719_v38  ;;  %v3552_v41 = vadd.f32 %v3551_v40, %v7133_v22  ;;  %v5195_v38 = vld [vmem:[%s6515_s7 + $0x5c0] sm:$0xf]  ;;  %v6071_v8 = vld [vmem:[%s6515_s7 + $0x5e0] sm:$0xf0] }
 0x3d3   : > { %v4058_v28 = vpop.f32.mrf.mxu0  ;;  %v5196_v50 = vor.u32 %v6071_v8, %v5195_v38 }
 0x3d4   : > { %v6332_v29 = vpop.eup %6331  ;;  %v4057_v62 = vadd.f32 %v4056_v30, %v3888_v32  ;;  %v5181_v30 = vld [vmem:[%s6515_s7 + $0x5d4] sm:$0xf0] }
 0x3d5   : > { %4249 = vst [vmem:[%s7517_s18 + $0x98] sm:$0xff] %v6332_v29  ;;  %v5184_v29 = vor.u32 %v6065_v17, %v5181_v30 }
 0x3d6   : > { %6333 = vtanh.f32 %v4057_v62  ;;  %v5188_v62 = vor.u32 %v6070_v2, %v5187_v58 }
 0x3d7   : > { %v3720_v21 = vpop.f32.mrf.mxu2 }
 0x3d8   : > { %v3721_v23 = vadd.f32 %v3720_v21, %v3552_v41  ;;  %v3889_v63 = vpop.f32.mrf.mxu3 }
 0x3d9   : > { %v3554_v52 = vpop.f32.mrf.mxu1 }
 0x3da   : > { %v3890_v7 = vadd.f32 %v3889_v63, %v3721_v23  ;;  %v3555_v22 = vadd.f32 %v3554_v52, %v7139_v55 }
 0x3db   : > { %v4061_v47 = vpop.f32.mrf.mxu0 }
 0x3dc   : > { %v6334_v49 = vpop.eup %6333  ;;  %v4059_v61 = vadd.f32 %v4058_v28, %v3890_v7  ;;  %3593 = vmatmul.bf16.gmra.mxu1 %v5148_v33  ;;  %3762 = vmatmul.bf16.gmra.mxu2 %v5152_v57  ;;  %v5223_v7 = vld [vmem:[%s6515_s7 + $0x600] sm:$0xf] }
 0x3dd   : > { %4250 = vst [vmem:[%s7517_s18 + $0xa0] sm:$0xff] %v6334_v49  ;;  %3931 = vmatmul.bf16.gmra.mxu3 %v5156_v3  ;;  %v6074_v3 = vld [vmem:[%s6515_s7 + $0x5fc] sm:$0xf]  ;;  %v6075_v49 = vld [vmem:[%s6515_s7 + $0x604] sm:$0xf] }
 0x3de   : > { %4100 = vmatmul.bf16.gmra.mxu0 %v5160_v39  ;;  %6335 = vtanh.f32 %v4059_v61  ;;  %v5217_v39 = vld [vmem:[%s6515_s7 + $0x61c] sm:$0xf0]  ;;  %v5225_v61 = vld [vmem:[%s6515_s7 + $0x624] sm:$0xf0] }
 0x3df   : > { %v3723_v36 = vpop.f32.mrf.mxu2 }
 0x3e0   : > { %v3724_v14 = vadd.f32 %v3723_v36, %v3555_v22  ;;  %v3892_v53 = vpop.f32.mrf.mxu3  ;;  %v5231_v22 = vld [vmem:[%s6515_s7 + $0x608] sm:$0xf]  ;;  %v6080_v36 = vld [vmem:[%s6515_s7 + $0x628] sm:$0xf0] }
 0x3e1   : > { %v3556_v16 = vpop.f32.mrf.mxu1  ;;  %v5232_v17 = vor.u32 %v6080_v36, %v5231_v22 }
 0x3e2   : > { %v3893_v35 = vadd.f32 %v3892_v53, %v3724_v14  ;;  %v3557_v55 = vadd.f32 %v3556_v16, %v7149_v59 }
 0x3e3   : > { %v4063_v20 = vpop.f32.mrf.mxu0 }
 0x3e4   : > { %v6336_v37 = vpop.eup %6335  ;;  %v4062_v4 = vadd.f32 %v4061_v47, %v3893_v35  ;;  %v6079_v47 = vld [vmem:[%s6515_s7 + $0x620] sm:$0xf0]  ;;  %v5220_v35 = vor.u32 %v6074_v3, %v5217_v39 }
 0x3e5   : > { %4251 = vst [vmem:[%s7517_s18 + $0xa8] sm:$0xff] %v6336_v37 }
 0x3e6   : > { %6337 = vtanh.f32 %v4062_v4  ;;  %v5228_v4 = vor.u32 %v6075_v49, %v5225_v61 }
 0x3e7   : > { %v3725_v40 = vpop.f32.mrf.mxu2 }
 0x3e8   : > { %v3726_v32 = vadd.f32 %v3725_v40, %v3557_v55  ;;  %v3894_v28 = vpop.f32.mrf.mxu3 }
 0x3e9   : > { %v3559_v51 = vpop.f32.mrf.mxu1 }
 0x3ea   : > { %v3895_v44 = vadd.f32 %v3894_v28, %v3726_v32  ;;  %v3560_v59 = vadd.f32 %v3559_v51, %v7155_v42  ;;  %v5253_v51 = vld [vmem:[%s6515_s7 + $0x664] sm:$0xf0] }
 0x3eb   : > { %v4066_v48 = vpop.f32.mrf.mxu0 }
 0x3ec   : > { %v6338_v41 = vpop.eup %6337  ;;  %v4064_v10 = vadd.f32 %v4063_v20, %v3895_v44  ;;  %3598 = vmatmul.bf16.gmra.mxu1 %v5184_v29  ;;  %3767 = vmatmul.bf16.gmra.mxu2 %v5188_v62  ;;  %v5224_v20 = vor.u32 %v6079_v47, %v5223_v7  ;;  %v6083_v62 = vld [vmem:[%s6515_s7 + $0x644] sm:$0xf]  ;;  %v6084_v44 = vld [vmem:[%s6515_s7 + $0x64c] sm:$0xf] }
 0x3ed   : > { %4252 = vst [vmem:[%s7517_s18 + $0xb0] sm:$0xff] %v6338_v41  ;;  %3936 = vmatmul.bf16.gmra.mxu3 %v5192_v15  ;;  %v5259_v15 = vld [vmem:[%s6515_s7 + $0x648] sm:$0xf]  ;;  %v5267_v41 = vld [vmem:[%s6515_s7 + $0x650] sm:$0xf] }
 0x3ee   : > { %4105 = vmatmul.bf16.gmra.mxu0 %v5196_v50  ;;  %6339 = vtanh.f32 %v4064_v10  ;;  %v6088_v50 = vld [vmem:[%s6515_s7 + $0x668] sm:$0xf0]  ;;  %v6089_v10 = vld [vmem:[%s6515_s7 + $0x670] sm:$0xf0] }
 0x3ef   : > { %v3728_v11 = vpop.f32.mrf.mxu2 }
 0x3f0   : > { %v3729_v45 = vadd.f32 %v3728_v11, %v3560_v59  ;;  %v3897_v21 = vpop.f32.mrf.mxu3 }
 0x3f1   : > { %v3561_v23 = vpop.f32.mrf.mxu1 }
 0x3f2   : > { %v3898_v63 = vadd.f32 %v3897_v21, %v3729_v45  ;;  %v3562_v42 = vadd.f32 %v3561_v23, %v7165_v5  ;;  %v5256_v21 = vor.u32 %v6083_v62, %v5253_v51  ;;  %v5260_v23 = vor.u32 %v6088_v50, %v5259_v15 }
 0x3f3   : > { %v4068_v33 = vpop.f32.mrf.mxu0 }
 0x3f4   : > { %v6340_v57 = vpop.eup %6339  ;;  %v4067_v52 = vadd.f32 %v4066_v48, %v3898_v63  ;;  %v5261_v48 = vld [vmem:[%s6515_s7 + $0x66c] sm:$0xf0] }
 0x3f5   : > { %4253 = vst [vmem:[%s7517_s18 + $0xb8] sm:$0xff] %v6340_v57  ;;  %v5268_v57 = vor.u32 %v6089_v10, %v5267_v41 }
 0x3f6   : > { %6341 = vtanh.f32 %v4067_v52 }
 0x3f7   : > { %v3730_v14 = vpop.f32.mrf.mxu2 }
 0x3f8   : > { %v3731_v53 = vadd.f32 %v3730_v14, %v3562_v42  ;;  %v3899_v16 = vpop.f32.mrf.mxu3 }
 0x3f9   : > { %v3564_v37 = vpop.f32.mrf.mxu1 }
 0x3fa   : > { %v3900_v30 = vadd.f32 %v3899_v16, %v3731_v53  ;;  %v3565_v5 = vadd.f32 %v3564_v37, %v7171_v31  ;;  %v6092_v16 = vld [vmem:[%s6515_s7 + $0x68c] sm:$0xf]  ;;  %v6097_v37 = vld [vmem:[%s6515_s7 + $0x6b0] sm:$0xf0] }
 0x3fb   : > { %v4071_v58 = vpop.f32.mrf.mxu0 }
 0x3fc   : > { %v6342_v2 = vpop.eup %6341  ;;  %v4069_v12 = vadd.f32 %v4068_v33, %v3900_v30  ;;  %3603 = vmatmul.bf16.gmra.mxu1 %v5220_v35  ;;  %3772 = vmatmul.bf16.gmra.mxu2 %v5224_v20  ;;  %v5264_v33 = vor.u32 %v6084_v44, %v5261_v48  ;;  %v5289_v35 = vld [vmem:[%s6515_s7 + $0x6ac] sm:$0xf0]  ;;  %v5303_v30 = vld [vmem:[%s6515_s7 + $0x698] sm:$0xf] }
 0x3fd   : > { %4254 = vst [vmem:[%s7517_s18 + $0xc0] sm:$0xff] %v6342_v2  ;;  %3941 = vmatmul.bf16.gmra.mxu3 %v5228_v4  ;;  %v5295_v20 = vld [vmem:[%s6515_s7 + $0x690] sm:$0xf]  ;;  %v6093_v4 = vld [vmem:[%s6515_s7 + $0x694] sm:$0xf] }
 0x3fe   : > { %4110 = vmatmul.bf16.gmra.mxu0 %v5232_v17  ;;  %6343 = vtanh.f32 %v4069_v12  ;;  %v5297_v17 = vld [vmem:[%s6515_s7 + $0x6b4] sm:$0xf0] }
 0x3ff   : > { %v3733_v55 = vpop.f32.mrf.mxu2 }
 0x400   : > { %v3734_v18 = vadd.f32 %v3733_v55, %v3565_v5  ;;  %v3902_v38 = vpop.f32.mrf.mxu3  ;;  %v5292_v55 = vor.u32 %v6092_v16, %v5289_v35 }
 0x401   : > { %v3566_v8 = vpop.f32.mrf.mxu1 }
 0x402   : > { %v3903_v40 = vadd.f32 %v3902_v38, %v3734_v18  ;;  %v3567_v31 = vadd.f32 %v3566_v8, %v7181_v34  ;;  %v5296_v18 = vor.u32 %v6097_v37, %v5295_v20  ;;  %v5300_v8 = vor.u32 %v6093_v4, %v5297_v17 }
 0x403   : > { %v4073_v32 = vpop.f32.mrf.mxu0 }
 0x404   : > { %v6344_v28 = vpop.eup %6343  ;;  %v4072_v29 = vadd.f32 %v4071_v58, %v3903_v40  ;;  %v6098_v58 = vld [vmem:[%s6515_s7 + $0x6b8] sm:$0xf0] }
 0x405   : > { %4255 = vst [vmem:[%s7517_s18 + $0xc8] sm:$0xff] %v6344_v28  ;;  %v5304_v40 = vor.u32 %v6098_v58, %v5303_v30  ;;  %v6110_v30 = vld [vmem:[%s6515_s7 + $0x71c] sm:$0xf]  ;;  %v5361_v58 = vld [vmem:[%s6515_s7 + $0x73c] sm:$0xf0] }
 0x406   : > { %6345 = vtanh.f32 %v4072_v29 }
 0x407   : > { %v3735_v59 = vpop.f32.mrf.mxu2 }
 0x408   : > { %v3736_v11 = vadd.f32 %v3735_v59, %v3567_v31  ;;  %v3904_v45 = vpop.f32.mrf.mxu3  ;;  %v6101_v59 = vld [vmem:[%s6515_s7 + $0x6d4] sm:$0xf] }
 0x409   : > { %v3569_v63 = vpop.f32.mrf.mxu1 }
 0x40a   : > { %v3905_v52 = vadd.f32 %v3904_v45, %v3736_v11  ;;  %v3570_v34 = vadd.f32 %v3569_v63, %v7204_v19  ;;  %v5325_v11 = vld [vmem:[%s6515_s7 + $0x6f4] sm:$0xf0]  ;;  %v5333_v63 = vld [vmem:[%s6515_s7 + $0x6fc] sm:$0xf0] }
 0x40b   : > { %v4076_v3 = vpop.f32.mrf.mxu0  ;;  %v5331_v45 = vld [vmem:[%s6515_s7 + $0x6d8] sm:$0xf] }
 0x40c   : > { %v6346_v39 = vpop.eup %6345  ;;  %v4074_v7 = vadd.f32 %v4073_v32, %v3905_v52  ;;  %3608 = vmatmul.bf16.gmra.mxu1 %v5256_v21  ;;  %3777 = vmatmul.bf16.gmra.mxu2 %v5260_v23  ;;  %v6106_v21 = vld [vmem:[%s6515_s7 + $0x6f8] sm:$0xf0] }
 0x40d   : > { %4256 = vst [vmem:[%s7517_s18 + $0xd0] sm:$0xff] %v6346_v39  ;;  %3946 = vmatmul.bf16.gmra.mxu3 %v5264_v33  ;;  %v6102_v23 = vld [vmem:[%s6515_s7 + $0x6dc] sm:$0xf]  ;;  %v5339_v33 = vld [vmem:[%s6515_s7 + $0x6e0] sm:$0xf] }
 0x40e   : > { %4115 = vmatmul.bf16.gmra.mxu0 %v5268_v57  ;;  %6347 = vtanh.f32 %v4074_v7  ;;  %v6107_v57 = vld [vmem:[%s6515_s7 + $0x700] sm:$0xf0]  ;;  %v5328_v7 = vor.u32 %v6101_v59, %v5325_v11 }
 0x40f   : > { %v3738_v47 = vpop.f32.mrf.mxu2 }
 0x410   : > { %v3739_v49 = vadd.f32 %v3738_v47, %v3570_v34  ;;  %v3907_v42 = vpop.f32.mrf.mxu3  ;;  %v5332_v34 = vor.u32 %v6106_v21, %v5331_v45 }
 0x411   : > { %v3571_v61 = vpop.f32.mrf.mxu1 }
 0x412   : > { %v3908_v22 = vadd.f32 %v3907_v42, %v3739_v49  ;;  %v3572_v19 = vadd.f32 %v3571_v61, %v7214_v56  ;;  %v5336_v49 = vor.u32 %v6102_v23, %v5333_v63  ;;  %v5340_v42 = vor.u32 %v6107_v57, %v5339_v33  ;;  %v5397_v63 = vld [vmem:[%s6515_s7 + $0x784] sm:$0xf0]  ;;  %v6124_v57 = vld [vmem:[%s6515_s7 + $0x788] sm:$0xf0] }
 0x413   : > { %v4078_v36 = vpop.f32.mrf.mxu0  ;;  %v5403_v33 = vld [vmem:[%s6515_s7 + $0x768] sm:$0xf] }
 0x414   : > { %v6348_v14 = vpop.eup %6347  ;;  %v4077_v53 = vadd.f32 %v4076_v3, %v3908_v22 }
 0x415   : > { %4257 = vst [vmem:[%s7517_s18 + $0xd8] sm:$0xff] %v6348_v14 }
 0x416   : > { %6349 = vtanh.f32 %v4077_v53 }
 0x417   : > { %v3740_v2 = vpop.f32.mrf.mxu2 }
 0x418   : > { %v3741_v12 = vadd.f32 %v3740_v2, %v3572_v19  ;;  %v3909_v5 = vpop.f32.mrf.mxu3  ;;  %v5367_v2 = vld [vmem:[%s6515_s7 + $0x720] sm:$0xf] }
 0x419   : > { %v3574_v38 = vpop.f32.mrf.mxu1 }
 0x41a   : > { %v3910_v32 = vadd.f32 %v3909_v5, %v3741_v12  ;;  %v3575_v56 = vadd.f32 %v3574_v38, %v7220_v6  ;;  %v6115_v12 = vld [vmem:[%s6515_s7 + $0x740] sm:$0xf0]  ;;  %v6116_v38 = vld [vmem:[%s6515_s7 + $0x748] sm:$0xf0] }
 0x41b   : > { %v4081_v28 = vpop.f32.mrf.mxu0  ;;  %v6111_v5 = vld [vmem:[%s6515_s7 + $0x724] sm:$0xf] }
 0x41c   : > { %v6350_v29 = vpop.eup %6349  ;;  %v4079_v62 = vadd.f32 %v4078_v36, %v3910_v32  ;;  %3613 = vmatmul.bf16.gmra.mxu1 %v5292_v55  ;;  %3782 = vmatmul.bf16.gmra.mxu2 %v5296_v18  ;;  %v5369_v55 = vld [vmem:[%s6515_s7 + $0x744] sm:$0xf0] }
 0x41d   : > { %4258 = vst [vmem:[%s7517_s18 + $0xe0] sm:$0xff] %v6350_v29  ;;  %3951 = vmatmul.bf16.gmra.mxu3 %v5300_v8  ;;  %v5375_v18 = vld [vmem:[%s6515_s7 + $0x728] sm:$0xf]  ;;  %v5368_v29 = vor.u32 %v6115_v12, %v5367_v2  ;;  %v6128_v12 = vld [vmem:[%s6515_s7 + $0x7ac] sm:$0xf] }
 0x41e   : > { %4120 = vmatmul.bf16.gmra.mxu0 %v5304_v40  ;;  %6351 = vtanh.f32 %v4079_v62 }
 0x41f   : > { %v3743_v51 = vpop.f32.mrf.mxu2 }
 0x420   : > { %v3744_v15 = vadd.f32 %v3743_v51, %v3575_v56  ;;  %v3912_v50 = vpop.f32.mrf.mxu3  ;;  %v5372_v56 = vor.u32 %v6111_v5, %v5369_v55  ;;  %v5376_v51 = vor.u32 %v6116_v38, %v5375_v18  ;;  %v5433_v5 = vld [vmem:[%s6515_s7 + $0x7cc] sm:$0xf0]  ;;  %v6133_v55 = vld [vmem:[%s6515_s7 + $0x7d0] sm:$0xf0]  ;;  %v5441_v38 = vld [vmem:[%s6515_s7 + $0x7d4] sm:$0xf0] }
 0x421   : > { %v3576_v44 = vpop.f32.mrf.mxu1  ;;  %v6129_v18 = vld [vmem:[%s6515_s7 + $0x7b4] sm:$0xf] }
 0x422   : > { %v3913_v31 = vadd.f32 %v3912_v50, %v3744_v15  ;;  %v3577_v6 = vadd.f32 %v3576_v44, %v7230_v25 }
 0x423   : > { %v4083_v48 = vpop.f32.mrf.mxu0 }
 0x424   : > { %v6352_v41 = vpop.eup %6351  ;;  %v4082_v10 = vadd.f32 %v4081_v28, %v3913_v31  ;;  %v5364_v28 = vor.u32 %v6110_v30, %v5361_v58 }
 0x425   : > { %4259 = vst [vmem:[%s7517_s18 + $0xe8] sm:$0xff] %v6352_v41 }
 0x426   : > { %6353 = vtanh.f32 %v4082_v10 }
 0x427   : > { %v3745_v52 = vpop.f32.mrf.mxu2 }
 0x428   : > { %v3746_v3 = vadd.f32 %v3745_v52, %v3577_v6  ;;  %v3914_v39 = vpop.f32.mrf.mxu3  ;;  %v6119_v6 = vld [vmem:[%s6515_s7 + $0x764] sm:$0xf]  ;;  %v6120_v52 = vld [vmem:[%s6515_s7 + $0x76c] sm:$0xf] }
 0x429   : > { %v3579_v47 = vpop.f32.mrf.mxu1 }
 0x42a   : > { %v3915_v61 = vadd.f32 %v3914_v39, %v3746_v3  ;;  %v3580_v25 = vadd.f32 %v3579_v47, %v7236_v24  ;;  %v5405_v3 = vld [vmem:[%s6515_s7 + $0x78c] sm:$0xf0] }
 0x42b   : > { %v4086_v22 = vpop.f32.mrf.mxu0  ;;  %v5411_v39 = vld [vmem:[%s6515_s7 + $0x770] sm:$0xf] }
 0x42c   : > { %v6354_v36 = vpop.eup %6353  ;;  %v4084_v14 = vadd.f32 %v4083_v48, %v3915_v61  ;;  %3618 = vmatmul.bf16.gmra.mxu1 %v5328_v7  ;;  %3787 = vmatmul.bf16.gmra.mxu2 %v5332_v34  ;;  %v6125_v7 = vld [vmem:[%s6515_s7 + $0x790] sm:$0xf0]  ;;  %v5404_v61 = vor.u32 %v6124_v57, %v5403_v33  ;;  %v5469_v33 = vld [vmem:[%s6515_s7 + $0x814] sm:$0xf0] }
 0x42d   : > { %4260 = vst [vmem:[%s7517_s18 + $0xf0] sm:$0xff] %v6354_v36  ;;  %3956 = vmatmul.bf16.gmra.mxu3 %v5336_v49  ;;  %v5408_v36 = vor.u32 %v6120_v52, %v5405_v3  ;;  %v5475_v57 = vld [vmem:[%s6515_s7 + $0x7f8] sm:$0xf]  ;;  %v6142_v52 = vld [vmem:[%s6515_s7 + $0x818] sm:$0xf0] }
 0x42e   : > { %4125 = vmatmul.bf16.gmra.mxu0 %v5340_v42  ;;  %6355 = vtanh.f32 %v4084_v14  ;;  %v5400_v42 = vor.u32 %v6119_v6, %v5397_v63  ;;  %v5412_v14 = vor.u32 %v6125_v7, %v5411_v39  ;;  %v6137_v63 = vld [vmem:[%s6515_s7 + $0x7f4] sm:$0xf]  ;;  %v5477_v3 = vld [vmem:[%s6515_s7 + $0x81c] sm:$0xf0]  ;;  %v6143_v7 = vld [vmem:[%s6515_s7 + $0x820] sm:$0xf0] }
 0x42f   : > { %v3748_v53 = vpop.f32.mrf.mxu2  ;;  %v5483_v39 = vld [vmem:[%s6515_s7 + $0x800] sm:$0xf] }
 0x430   : > { %v3749_v16 = vadd.f32 %v3748_v53, %v3580_v25  ;;  %v3917_v35 = vpop.f32.mrf.mxu3 }
 0x431   : > { %v3581_v20 = vpop.f32.mrf.mxu1 }
 0x432   : > { %v3918_v37 = vadd.f32 %v3917_v35, %v3749_v16  ;;  %v3582_v24 = vadd.f32 %v3581_v20, %v7246_v60 }
 0x433   : > { %v4088_v4 = vpop.f32.mrf.mxu0 }
 0x434   : > { %v6356_v19 = vpop.eup %6355  ;;  %v4087_v17 = vadd.f32 %v4086_v22, %v3918_v37 }
 0x435   : > { %4261 = vst [vmem:[%s7517_s18 + $0xf8] sm:$0xff] %v6356_v19 }
 0x436   : > { %6357 = vtanh.f32 %v4087_v17 }
 0x437   : > { %v3750_v8 = vpop.f32.mrf.mxu2 }
 0x438   : > { %v3751_v40 = vadd.f32 %v3750_v8, %v3582_v24  ;;  %v3919_v32 = vpop.f32.mrf.mxu3  ;;  %v5439_v24 = vld [vmem:[%s6515_s7 + $0x7b0] sm:$0xf]  ;;  %v5447_v8 = vld [vmem:[%s6515_s7 + $0x7b8] sm:$0xf] }
 0x439   : > { %v3584_v62 = vpop.f32.mrf.mxu1 }
 0x43a   : > { %v3920_v15 = vadd.f32 %v3919_v32, %v3751_v40  ;;  %v3585_v60 = vadd.f32 %v3584_v62, %v7252_v13  ;;  %v6134_v40 = vld [vmem:[%s6515_s7 + $0x7d8] sm:$0xf0]  ;;  %v5436_v62 = vor.u32 %v6128_v12, %v5433_v5  ;;  %v5505_v5 = vld [vmem:[%s6515_s7 + $0x85c] sm:$0xf0] }
 0x43b   : > { %v4091_v50 = vpop.f32.mrf.mxu0  ;;  %v6146_v12 = vld [vmem:[%s6515_s7 + $0x83c] sm:$0xf] }
 0x43c   : > { %v6358_v44 = vpop.eup %6357  ;;  %v4089_v31 = vadd.f32 %v4088_v4, %v3920_v15  ;;  %3623 = vmatmul.bf16.gmra.mxu1 %v5364_v28  ;;  %3792 = vmatmul.bf16.gmra.mxu2 %v5368_v29  ;;  %v5444_v15 = vor.u32 %v6129_v18, %v5441_v38  ;;  %v6147_v18 = vld [vmem:[%s6515_s7 + $0x844] sm:$0xf] }
 0x43d   : > { %4262 = vst [vmem:[%s7517_s18 + $0x100] sm:$0xff] %v6358_v44  ;;  %3961 = vmatmul.bf16.gmra.mxu3 %v5372_v56  ;;  %v5440_v56 = vor.u32 %v6133_v55, %v5439_v24  ;;  %v5511_v24 = vld [vmem:[%s6515_s7 + $0x840] sm:$0xf]  ;;  %v6151_v55 = vld [vmem:[%s6515_s7 + $0x860] sm:$0xf0] }
 0x43e   : > { %4130 = vmatmul.bf16.gmra.mxu0 %v5376_v51  ;;  %6359 = vtanh.f32 %v4089_v31 }
 0x43f   : > { %v3753_v48 = vpop.f32.mrf.mxu2 }
 0x440   : > { %v3754_v41 = vadd.f32 %v3753_v48, %v3585_v60  ;;  %v3922_v10 = vpop.f32.mrf.mxu3 }
 0x441   : > { %v3586_v59 = vpop.f32.mrf.mxu1 }
 0x442   : > { %v3923_v11 = vadd.f32 %v3922_v10, %v3754_v41  ;;  %v3587_v13 = vadd.f32 %v3586_v59, %v7262_v9 }
 0x443   : > { %v4093_v45 = vpop.f32.mrf.mxu0 }
 0x444   : > { %v6360_v21 = vpop.eup %6359  ;;  %v4092_v23 = vadd.f32 %v4091_v50, %v3923_v11  ;;  %v5448_v50 = vor.u32 %v6134_v40, %v5447_v8  ;;  %v5513_v8 = vld [vmem:[%s6515_s7 + $0x864] sm:$0xf0] }
 0x445   : > { %4263 = vst [vmem:[%s7517_s18 + $0x108] sm:$0xff] %v6360_v21  ;;  %v5519_v40 = vld [vmem:[%s6515_s7 + $0x848] sm:$0xf] }
 0x446   : > { %6361 = vtanh.f32 %v4092_v23 }
 0x447   : > { %v3755_v34 = vpop.f32.mrf.mxu2 }
 0x448   : > { %v3756_v47 = vadd.f32 %v3755_v34, %v3587_v13  ;;  %v3924_v49 = vpop.f32.mrf.mxu3  ;;  %v6138_v13 = vld [vmem:[%s6515_s7 + $0x7fc] sm:$0xf] }
 0x449   : > { %v3589_v22 = vpop.f32.mrf.mxu1 }
 0x44a   : > { %v3925_v25 = vadd.f32 %v3924_v49, %v3756_v47  ;;  %v3590_v9 = vadd.f32 %v3589_v22, %v7280_v1 }
 0x44b   : > { %v4096_v53 = vpop.f32.mrf.mxu0 }
 0x44c   : > { %v6362_v16 = vpop.eup %6361  ;;  %v4094_v35 = vadd.f32 %v4093_v45, %v3925_v25  ;;  %3628 = vmatmul.bf16.gmra.mxu1 %v5400_v42  ;;  %3797 = vmatmul.bf16.gmra.mxu2 %v5404_v61  ;;  %v5472_v42 = vor.u32 %v6137_v63, %v5469_v33  ;;  %v5476_v61 = vor.u32 %v6142_v52, %v5475_v57  ;;  %v6155_v57 = vld [vmem:[%s6515_s7 + $0x884] sm:$0xf]  ;;  %v5541_v52 = vld [vmem:[%s6515_s7 + $0x8a4] sm:$0xf0] }
 0x44d   : > { %4264 = vst [vmem:[%s7517_s18 + $0x110] sm:$0xff] %v6362_v16  ;;  %3966 = vmatmul.bf16.gmra.mxu3 %v5408_v36  ;;  %v5480_v36 = vor.u32 %v6138_v13, %v5477_v3  ;;  %v5547_v13 = vld [vmem:[%s6515_s7 + $0x888] sm:$0xf]  ;;  %v6156_v3 = vld [vmem:[%s6515_s7 + $0x88c] sm:$0xf] }
 0x44e   : > { %4135 = vmatmul.bf16.gmra.mxu0 %v5412_v14  ;;  %6363 = vtanh.f32 %v4094_v35  ;;  %v5484_v14 = vor.u32 %v6143_v7, %v5483_v39  ;;  %v7904_v39 = vld [vmem:[#allocation16_spill] sm:$0xff] }
 0x44f   : > { %v3758_v20 = vpop.f32.mrf.mxu2 }
 0x450   : > { %v3759_v37 = vadd.f32 %v3758_v20, %v3590_v9  ;;  %v3927_v4 = vpop.f32.mrf.mxu3 }
 0x451   : > { %v3591_v19 = vpop.f32.mrf.mxu1 }
 0x452   : > { %v3928_v17 = vadd.f32 %v3927_v4, %v3759_v37  ;;  %v3592_v1 = vadd.f32 %v3591_v19, %v7290_v26 }
 0x453   : > { %v4098_v30 = vpop.f32.mrf.mxu0 }
 0x454   : > { %v6364_v58 = vpop.eup %6363  ;;  %v4097_v2 = vadd.f32 %v4096_v53, %v3928_v17 }
 0x455   : > { %4265 = vst [vmem:[%s7517_s18 + $0x118] sm:$0xff] %v6364_v58 }
 0x456   : > { %6365 = vtanh.f32 %v4097_v2 }
 0x457   : > { %v3760_v32 = vpop.f32.mrf.mxu2 }
 0x458   : > { %v3761_v28 = vadd.f32 %v3760_v32, %v3592_v1  ;;  %v3929_v29 = vpop.f32.mrf.mxu3  ;;  %v7902_v1 = vld [vmem:[#allocation12_spill] sm:$0xff]  ;;  %v6152_v32 = vld [vmem:[%s6515_s7 + $0x868] sm:$0xf0] }
 0x459   : > { %v3594_v51 = vpop.f32.mrf.mxu1 }
 0x45a   : > { %v3930_v44 = vadd.f32 %v3929_v29, %v3761_v28  ;;  %v3595_v26 = vadd.f32 %v3594_v51, %v7296_v54  ;;  %v5512_v51 = vor.u32 %v6151_v55, %v5511_v24  ;;  %v6164_v55 = vld [vmem:[%s6515_s7 + $0x8cc] sm:$0xf] }
 0x45b   : > { %v4101_v31 = vpop.f32.mrf.mxu0 }
 0x45c   : > { %v6366_v60 = vpop.eup %6365  ;;  %v4099_v48 = vadd.f32 %v4098_v30, %v3930_v44  ;;  %3633 = vmatmul.bf16.gmra.mxu1 %v5436_v62  ;;  %3802 = vmatmul.bf16.gmra.mxu2 %v5440_v56  ;;  %v5508_v56 = vor.u32 %v6146_v12, %v5505_v5  ;;  %v5520_v44 = vor.u32 %v6152_v32, %v5519_v40  ;;  %v7906_v40 = vld [vmem:[#allocation20_spill] sm:$0xff] }
 0x45d   : > { %4266 = vst [vmem:[%s7517_s18 + $0x120] sm:$0xff] %v6366_v60  ;;  %3971 = vmatmul.bf16.gmra.mxu3 %v5444_v15 }
 0x45e   : > { %4140 = vmatmul.bf16.gmra.mxu0 %v5448_v50  ;;  %6367 = vtanh.f32 %v4099_v48  ;;  %v5516_v50 = vor.u32 %v6147_v18, %v5513_v8  ;;  %v5577_v18 = vld [vmem:[%s6515_s7 + $0x8ec] sm:$0xf0]  ;;  %v6165_v8 = vld [vmem:[%s6515_s7 + $0x8d4] sm:$0xf] }
 0x45f   : > { %v3763_v41 = vpop.f32.mrf.mxu2 }
 0x460   : > { %v3764_v10 = vadd.f32 %v3763_v41, %v3595_v26  ;;  %v3932_v59 = vpop.f32.mrf.mxu3  ;;  %v7903_v41 = vld [vmem:[#allocation14_spill] sm:$0xff] }
 0x461   : > { %v3596_v11 = vpop.f32.mrf.mxu1 }
 0x462   : > { %v3933_v45 = vadd.f32 %v3932_v59, %v3764_v10  ;;  %v3597_v54 = vadd.f32 %v3596_v11, %v7306_v27  ;;  %v7901_v27 = vld [vmem:[#allocation25_spill] sm:$0xff] }
 0x463   : > { %v4103_v21 = vpop.f32.mrf.mxu0 }
 0x464   : > { %v6368_v23 = vpop.eup %6367  ;;  %v4102_v6 = vadd.f32 %v4101_v31, %v3933_v45 }
 0x465   : > { %4267 = vst [vmem:[%s7517_s18 + $0x128] sm:$0xff] %v6368_v23 }
 0x466   : > { %6369 = vtanh.f32 %v4102_v6 }
 0x467   : > { %v3765_v34 = vpop.f32.mrf.mxu2 }
 0x468   : > { %v3766_v47 = vadd.f32 %v3765_v34, %v3597_v54  ;;  %v3934_v49 = vpop.f32.mrf.mxu3  ;;  %v6160_v54 = vld [vmem:[%s6515_s7 + $0x8a8] sm:$0xf0]  ;;  %v5549_v34 = vld [vmem:[%s6515_s7 + $0x8ac] sm:$0xf0] }
 0x469   : > { %v3599_v22 = vpop.f32.mrf.mxu1 }
 0x46a   : > { %v3935_v25 = vadd.f32 %v3934_v49, %v3766_v47  ;;  %v3600_v9 = vadd.f32 %v3599_v22, %v7901_v27  ;;  %v5555_v47 = vld [vmem:[%s6515_s7 + $0x890] sm:$0xf]  ;;  %v6161_v49 = vld [vmem:[%s6515_s7 + $0x8b0] sm:$0xf0] }
 0x46b   : > { %v4106_v53 = vpop.f32.mrf.mxu0 }
 0x46c   : > { %v6370_v16 = vpop.eup %6369  ;;  %v4104_v35 = vadd.f32 %v4103_v21, %v3935_v25  ;;  %3638 = vmatmul.bf16.gmra.mxu1 %v5472_v42  ;;  %3807 = vmatmul.bf16.gmra.mxu2 %v5476_v61 }
 0x46d   : > { %4268 = vst [vmem:[%s7517_s18 + $0x130] sm:$0xff] %v6370_v16  ;;  %3976 = vmatmul.bf16.gmra.mxu3 %v5480_v36  ;;  %v5544_v36 = vor.u32 %v6155_v57, %v5541_v52  ;;  %v5556_v16 = vor.u32 %v6161_v49, %v5555_v47 }
 0x46e   : > { %4145 = vmatmul.bf16.gmra.mxu0 %v5484_v14  ;;  %6371 = vtanh.f32 %v4104_v35  ;;  %v5548_v14 = vor.u32 %v6160_v54, %v5547_v13  ;;  %v7908_v54 = vld [vmem:[#allocation2_spill] sm:$0xff] }
 0x46f   : > { %v3768_v20 = vpop.f32.mrf.mxu2 }
 0x470   : > { %v3769_v37 = vadd.f32 %v3768_v20, %v3600_v9  ;;  %v3937_v4 = vpop.f32.mrf.mxu3 }
 0x471   : > { %v3601_v19 = vpop.f32.mrf.mxu1 }
 0x472   : > { %v3938_v17 = vadd.f32 %v3937_v4, %v3769_v37  ;;  %v3602_v38 = vadd.f32 %v3601_v19, %v7902_v1  ;;  %v7905_v37 = vld [vmem:[#allocation18_spill] sm:$0xff]  ;;  %v5583_v1 = vld [vmem:[%s6515_s7 + $0x8d0] sm:$0xf] }
 0x473   : > { %v4108_v30 = vpop.f32.mrf.mxu0 }
 0x474   : > { %v6372_v58 = vpop.eup %6371  ;;  %v4107_v2 = vadd.f32 %v4106_v53, %v3938_v17  ;;  %v5552_v53 = vor.u32 %v6156_v3, %v5549_v34 }
 0x475   : > { %4269 = vst [vmem:[%s7517_s18 + $0x138] sm:$0xff] %v6372_v58 }
 0x476   : > { %6373 = vtanh.f32 %v4107_v2 }
 0x477   : > { %v3770_v28 = vpop.f32.mrf.mxu2 }
 0x478   : > { %v3771_v29 = vadd.f32 %v3770_v28, %v3602_v38  ;;  %v3939_v62 = vpop.f32.mrf.mxu3  ;;  %v6169_v38 = vld [vmem:[%s6515_s7 + $0x8f0] sm:$0xf0]  ;;  %v5585_v28 = vld [vmem:[%s6515_s7 + $0x8f4] sm:$0xf0] }
 0x479   : > { %v3604_v15 = vpop.f32.mrf.mxu1 }
 0x47a   : > { %v3940_v31 = vadd.f32 %v3939_v62, %v3771_v29  ;;  %v3605_v10 = vadd.f32 %v3604_v15, %v7903_v41  ;;  %v5591_v29 = vld [vmem:[%s6515_s7 + $0x8d8] sm:$0xf]  ;;  %v6170_v62 = vld [vmem:[%s6515_s7 + $0x8f8] sm:$0xf0] }
 0x47b   : > { %v4111_v60 = vpop.f32.mrf.mxu0 }
 0x47c   : > { %v6374_v48 = vpop.eup %6373  ;;  %v4109_v26 = vadd.f32 %v4108_v30, %v3940_v31  ;;  %3643 = vmatmul.bf16.gmra.mxu1 %v5508_v56  ;;  %3812 = vmatmul.bf16.gmra.mxu2 %v5512_v51 }
 0x47d   : > { %4270 = vst [vmem:[%s7517_s18 + $0x140] sm:$0xff] %v6374_v48  ;;  %3981 = vmatmul.bf16.gmra.mxu3 %v5516_v50  ;;  %v5580_v50 = vor.u32 %v6164_v55, %v5577_v18  ;;  %v5592_v48 = vor.u32 %v6170_v62, %v5591_v29  ;;  %v7911_v18 = vld [vmem:[#allocation5_spill] sm:$0xff] }
 0x47e   : > { %4150 = vmatmul.bf16.gmra.mxu0 %v5520_v44  ;;  %6375 = vtanh.f32 %v4109_v26  ;;  %v5584_v44 = vor.u32 %v6169_v38, %v5583_v1 }
 0x47f   : > { %v3773_v59 = vpop.f32.mrf.mxu2 }
 0x480   : > { %v3774_v11 = vadd.f32 %v3773_v59, %v3605_v10  ;;  %v3942_v45 = vpop.f32.mrf.mxu3 }
 0x481   : > { %v3606_v21 = vpop.f32.mrf.mxu1 }
 0x482   : > { %v3943_v23 = vadd.f32 %v3942_v45, %v3774_v11  ;;  %v3607_v7 = vadd.f32 %v3606_v21, %v7904_v39  ;;  %v7907_v11 = vld [vmem:[#allocation22_spill] sm:$0xff] }
 0x483   : > { %v4113_v6 = vpop.f32.mrf.mxu0 }
 0x484   : > { %v6376_v63 = vpop.eup %6375  ;;  %v4112_v33 = vadd.f32 %v4111_v60, %v3943_v23  ;;  %v5588_v60 = vor.u32 %v6165_v8, %v5585_v28 }
 0x485   : > { %4271 = vst [vmem:[%s7517_s18 + $0x148] sm:$0xff] %v6376_v63 }
 0x486   : > { %6377 = vtanh.f32 %v4112_v33 }
 0x487   : > { %v3775_v42 = vpop.f32.mrf.mxu2 }
 0x488   : > { %v3776_v61 = vadd.f32 %v3775_v42, %v3607_v7  ;;  %v3944_v22 = vpop.f32.mrf.mxu3 }
 0x489   : > { %v3609_v25 = vpop.f32.mrf.mxu1 }
 0x48a   : > { %v3945_v35 = vadd.f32 %v3944_v22, %v3776_v61  ;;  %v3610_v4 = vadd.f32 %v3609_v25, %v7905_v37 }
 0x48b   : > { %v4116_v27 = vpop.f32.mrf.mxu0 }
 0x48c   : > { %v6378_v9 = vpop.eup %6377  ;;  %v4114_v20 = vadd.f32 %v4113_v6, %v3945_v35  ;;  %3648 = vmatmul.bf16.gmra.mxu1 %v5544_v36  ;;  %3817 = vmatmul.bf16.gmra.mxu2 %v5548_v14  ;;  %v7909_v36 = vld [vmem:[#allocation3_spill] sm:$0xff] }
 0x48d   : > { %4272 = vst [vmem:[%s7517_s18 + $0x150] sm:$0xff] %v6378_v9  ;;  %3986 = vmatmul.bf16.gmra.mxu3 %v5552_v53 }
 0x48e   : > { %4155 = vmatmul.bf16.gmra.mxu0 %v5556_v16  ;;  %6379 = vtanh.f32 %v4114_v20 }
 0x48f   : > { %v3778_v19 = vpop.f32.mrf.mxu2 }
 0x490   : > { %v3779_v17 = vadd.f32 %v3778_v19, %v3610_v4  ;;  %v3947_v30 = vpop.f32.mrf.mxu3  ;;  %v7910_v4 = vld [vmem:[#allocation4_spill] sm:$0xff] }
 0x491   : > { %v3611_v58 = vpop.f32.mrf.mxu1 }
 0x492   : > { %v3948_v2 = vadd.f32 %v3947_v30, %v3779_v17  ;;  %v3612_v32 = vadd.f32 %v3611_v58, %v7906_v40 }
 0x493   : > { %v4118_v12 = vpop.f32.mrf.mxu0 }
 0x494   : > { %v6380_v5 = vpop.eup %6379  ;;  %v4117_v24 = vadd.f32 %v4116_v27, %v3948_v2 }
 0x495   : > { %4273 = vst [vmem:[%s7517_s18 + $0x158] sm:$0xff] %v6380_v5 }
 0x496   : > { %6381 = vtanh.f32 %v4117_v24 }
 0x497   : > { %v3780_v56 = vpop.f32.mrf.mxu2 }
 0x498   : > { %v3781_v51 = vadd.f32 %v3780_v56, %v3612_v32  ;;  %v3949_v15 = vpop.f32.mrf.mxu3 }
 0x499   : > { %v3614_v31 = vpop.f32.mrf.mxu1 }
 0x49a   : > { %v3950_v26 = vadd.f32 %v3949_v15, %v3781_v51  ;;  %v3615_v45 = vadd.f32 %v3614_v31, %v7907_v11  ;;  %v7912_v51 = vld [vmem:[#allocation6_spill] sm:$0xff] }
 0x49b   : > { %v4121_v41 = vpop.f32.mrf.mxu0 }
 0x49c   : > { %v6382_v10 = vpop.eup %6381  ;;  %v4119_v59 = vadd.f32 %v4118_v12, %v3950_v26  ;;  %3653 = vmatmul.bf16.gmra.mxu1 %v5580_v50  ;;  %3822 = vmatmul.bf16.gmra.mxu2 %v5584_v44 }
 0x49d   : > { %4274 = vst [vmem:[%s7517_s18 + $0x160] sm:$0xff] %v6382_v10  ;;  %3991 = vmatmul.bf16.gmra.mxu3 %v5588_v60 }
 0x49e   : > { %4160 = vmatmul.bf16.gmra.mxu0 %v5592_v48  ;;  %6383 = vtanh.f32 %v4119_v59  ;;  %v7913_v59 = vld [vmem:[#allocation7_spill] sm:$0xff] }
 0x49f   : > { %v3783_v21 = vpop.f32.mrf.mxu2 }
 0x4a0   : > { %v3784_v23 = vadd.f32 %v3783_v21, %v3615_v45  ;;  %v3952_v6 = vpop.f32.mrf.mxu3 }
 0x4a1   : > { %v3616_v63 = vpop.f32.mrf.mxu1 }
 0x4a2   : > { %v3953_v33 = vadd.f32 %v3952_v6, %v3784_v23  ;;  %v3617_v3 = vadd.f32 %v3616_v63, %v7908_v54 }
 0x4a3   : > { %v4123_v57 = vpop.f32.mrf.mxu0 }
 0x4a4   : > { %v6384_v52 = vpop.eup %6383  ;;  %v4122_v13 = vadd.f32 %v4121_v41, %v3953_v33 }
 0x4a5   : > { %4275 = vst [vmem:[%s7517_s18 + $0x168] sm:$0xff] %v6384_v52 }
 0x4a6   : > { %6385 = vtanh.f32 %v4122_v13  ;;  %v7914_v13 = vld [vmem:[#allocation8_spill] sm:$0xff] }
 0x4a7   : > { %v3785_v39 = vpop.f32.mrf.mxu2 }
 0x4a8   : > { %v3786_v7 = vadd.f32 %v3785_v39, %v3617_v3  ;;  %v3954_v34 = vpop.f32.mrf.mxu3 }
 0x4a9   : > { %v3619_v47 = vpop.f32.mrf.mxu1 }
 0x4aa   : > { %v3955_v49 = vadd.f32 %v3954_v34, %v3786_v7  ;;  %v3620_v14 = vadd.f32 %v3619_v47, %v7909_v36 }
 0x4ab   : > { %v4126_v42 = vpop.f32.mrf.mxu0 }
 0x4ac   : > { %v6386_v61 = vpop.eup %6385  ;;  %v4124_v22 = vadd.f32 %v4123_v57, %v3955_v49 }
 0x4ad   : > { %4276 = vst [vmem:[%s7517_s18 + $0x170] sm:$0xff] %v6386_v61 }
 0x4ae   : > { %6387 = vtanh.f32 %v4124_v22  ;;  %v7915_v22 = vld [vmem:[#allocation9_spill] sm:$0xff] }
 0x4af   : > { %v3788_v25 = vpop.f32.mrf.mxu2 }
 0x4b0   : > { %v3789_v53 = vadd.f32 %v3788_v25, %v3620_v14  ;;  %v3957_v16 = vpop.f32.mrf.mxu3 }
 0x4b1   : > { %v3621_v35 = vpop.f32.mrf.mxu1 }
 0x4b2   : > { %v3958_v27 = vadd.f32 %v3957_v16, %v3789_v53  ;;  %v3622_v19 = vadd.f32 %v3621_v35, %v7910_v4 }
 0x4b3   : > { %v4128_v9 = vpop.f32.mrf.mxu0 }
 0x4b4   : > { %v6388_v20 = vpop.eup %6387  ;;  %v4127_v37 = vadd.f32 %v4126_v42, %v3958_v27 }
 0x4b5   : > { %4277 = vst [vmem:[%s7517_s18 + $0x178] sm:$0xff] %v6388_v20 }
 0x4b6   : > { %6389 = vtanh.f32 %v4127_v37  ;;  %v7916_v37 = vld [vmem:[#allocation10_spill] sm:$0xff] }
 0x4b7   : > { %v3790_v17 = vpop.f32.mrf.mxu2 }
 0x4b8   : > { %v3791_v30 = vadd.f32 %v3790_v17, %v3622_v19  ;;  %v3959_v58 = vpop.f32.mrf.mxu3 }
 0x4b9   : > { %v3624_v2 = vpop.f32.mrf.mxu1 }
 0x4ba   : > { %v3960_v12 = vadd.f32 %v3959_v58, %v3791_v30  ;;  %v3625_v1 = vadd.f32 %v3624_v2, %v7911_v18 }
 0x4bb   : > { %v4131_v5 = vpop.f32.mrf.mxu0 }
 0x4bc   : > { %v6390_v24 = vpop.eup %6389  ;;  %v4129_v55 = vadd.f32 %v4128_v9, %v3960_v12 }
 0x4bd   : > { %4278 = vst [vmem:[%s7517_s18 + $0x180] sm:$0xff] %v6390_v24 }
 0x4be   : > { %6391 = vtanh.f32 %v4129_v55  ;;  %v7917_v55 = vld [vmem:[#allocation11_spill] sm:$0xff] }
 0x4bf   : > { %v3793_v38 = vpop.f32.mrf.mxu2 }
 0x4c0   : > { %v3794_v8 = vadd.f32 %v3793_v38, %v3625_v1  ;;  %v3962_v40 = vpop.f32.mrf.mxu3 }
 0x4c1   : > { %v3626_v32 = vpop.f32.mrf.mxu1 }
 0x4c2   : > { %v3963_v28 = vadd.f32 %v3962_v40, %v3794_v8  ;;  %v3627_v15 = vadd.f32 %v3626_v32, %v7912_v51 }
 0x4c3   : > { %v4133_v29 = vpop.f32.mrf.mxu0 }
 0x4c4   : > { %v6392_v62 = vpop.eup %6391  ;;  %v4132_v56 = vadd.f32 %v4131_v5, %v3963_v28 }
 0x4c5   : > { %4279 = vst [vmem:[%s7517_s18 + $0x188] sm:$0xff] %v6392_v62 }
 0x4c6   : > { %6393 = vtanh.f32 %v4132_v56  ;;  %v7918_v56 = vld [vmem:[#allocation13_spill] sm:$0xff] }
 0x4c7   : > { %v3795_v50 = vpop.f32.mrf.mxu2 }
 0x4c8   : > { %v3796_v44 = vadd.f32 %v3795_v50, %v3627_v15  ;;  %v3964_v31 = vpop.f32.mrf.mxu3 }
 0x4c9   : > { %v3629_v60 = vpop.f32.mrf.mxu1 }
 0x4ca   : > { %v3965_v48 = vadd.f32 %v3964_v31, %v3796_v44  ;;  %v3630_v11 = vadd.f32 %v3629_v60, %v7913_v59 }
 0x4cb   : > { %v4136_v26 = vpop.f32.mrf.mxu0 }
 0x4cc   : > { %v6394_v41 = vpop.eup %6393  ;;  %v4134_v10 = vadd.f32 %v4133_v29, %v3965_v48 }
 0x4cd   : > { %4280 = vst [vmem:[%s7517_s18 + $0x190] sm:$0xff] %v6394_v41 }
 0x4ce   : > { %6395 = vtanh.f32 %v4134_v10  ;;  %v7919_v10 = vld [vmem:[#allocation15_spill] sm:$0xff] }
 0x4cf   : > { %v3798_v45 = vpop.f32.mrf.mxu2 }
 0x4d0   : > { %v3799_v21 = vadd.f32 %v3798_v45, %v3630_v11  ;;  %v3967_v23 = vpop.f32.mrf.mxu3 }
 0x4d1   : > { %v3631_v6 = vpop.f32.mrf.mxu1 }
 0x4d2   : > { %v3968_v63 = vadd.f32 %v3967_v23, %v3799_v21  ;;  %v3632_v54 = vadd.f32 %v3631_v6, %v7914_v13 }
 0x4d3   : > { %v4138_v33 = vpop.f32.mrf.mxu0 }
 0x4d4   : > { %v6396_v57 = vpop.eup %6395  ;;  %v4137_v52 = vadd.f32 %v4136_v26, %v3968_v63 }
 0x4d5   : > { %4281 = vst [vmem:[%s7517_s18 + $0x198] sm:$0xff] %v6396_v57 }
 0x4d6   : > { %6397 = vtanh.f32 %v4137_v52  ;;  %v7920_v52 = vld [vmem:[#allocation17_spill] sm:$0xff] }
 0x4d7   : > { %v3800_v3 = vpop.f32.mrf.mxu2 }
 0x4d8   : > { %v3801_v39 = vadd.f32 %v3800_v3, %v3632_v54  ;;  %v3969_v7 = vpop.f32.mrf.mxu3 }
 0x4d9   : > { %v3634_v34 = vpop.f32.mrf.mxu1 }
 0x4da   : > { %v3970_v47 = vadd.f32 %v3969_v7, %v3801_v39  ;;  %v3635_v36 = vadd.f32 %v3634_v34, %v7915_v22 }
 0x4db   : > { %v4141_v49 = vpop.f32.mrf.mxu0 }
 0x4dc   : > { %v6398_v42 = vpop.eup %6397  ;;  %v4139_v61 = vadd.f32 %v4138_v33, %v3970_v47 }
 0x4dd   : > { %4282 = vst [vmem:[%s7517_s18 + $0x1a0] sm:$0xff] %v6398_v42 }
 0x4de   : > { %6399 = vtanh.f32 %v4139_v61  ;;  %v7921_v61 = vld [vmem:[#allocation19_spill] sm:$0xff] }
 0x4df   : > { %v3803_v14 = vpop.f32.mrf.mxu2 }
 0x4e0   : > { %v3804_v25 = vadd.f32 %v3803_v14, %v3635_v36  ;;  %v3972_v53 = vpop.f32.mrf.mxu3 }
 0x4e1   : > { %v3636_v16 = vpop.f32.mrf.mxu1 }
 0x4e2   : > { %v3973_v35 = vadd.f32 %v3972_v53, %v3804_v25  ;;  %v3637_v4 = vadd.f32 %v3636_v16, %v7916_v37 }
 0x4e3   : > { %v4143_v27 = vpop.f32.mrf.mxu0 }
 0x4e4   : > { %v6400_v9 = vpop.eup %6399  ;;  %v4142_v20 = vadd.f32 %v4141_v49, %v3973_v35 }
 0x4e5   : > { %4283 = vst [vmem:[%s7517_s18 + $0x1a8] sm:$0xff] %v6400_v9 }
 0x4e6   : > { %6401 = vtanh.f32 %v4142_v20 }
 0x4e7   : > { %v3805_v19 = vpop.f32.mrf.mxu2 }
 0x4e8   : > { %v3806_v17 = vadd.f32 %v3805_v19, %v3637_v4  ;;  %v3974_v30 = vpop.f32.mrf.mxu3 }
 0x4e9   : > { %v3639_v58 = vpop.f32.mrf.mxu1 }
 0x4ea   : > { %v3975_v2 = vadd.f32 %v3974_v30, %v3806_v17  ;;  %v3640_v18 = vadd.f32 %v3639_v58, %v7917_v55 }
 0x4eb   : > { %v4146_v12 = vpop.f32.mrf.mxu0 }
 0x4ec   : > { %v6402_v5 = vpop.eup %6401  ;;  %v4144_v24 = vadd.f32 %v4143_v27, %v3975_v2 }
 0x4ed   : > { %4284 = vst [vmem:[%s7517_s18 + $0x1b0] sm:$0xff] %v6402_v5 }
 0x4ee   : > { %6403 = vtanh.f32 %v4144_v24 }
 0x4ef   : > { %v3808_v1 = vpop.f32.mrf.mxu2 }
 0x4f0   : > { %v3809_v38 = vadd.f32 %v3808_v1, %v3640_v18  ;;  %v3977_v8 = vpop.f32.mrf.mxu3 }
 0x4f1   : > { %v3641_v40 = vpop.f32.mrf.mxu1 }
 0x4f2   : > { %v3978_v32 = vadd.f32 %v3977_v8, %v3809_v38  ;;  %v3642_v51 = vadd.f32 %v3641_v40, %v7918_v56 }
 0x4f3   : > { %v4148_v28 = vpop.f32.mrf.mxu0 }
 0x4f4   : > { %v6404_v29 = vpop.eup %6403  ;;  %v4147_v62 = vadd.f32 %v4146_v12, %v3978_v32 }
 0x4f5   : > { %4285 = vst [vmem:[%s7517_s18 + $0x1b8] sm:$0xff] %v6404_v29 }
 0x4f6   : > { %6405 = vtanh.f32 %v4147_v62 }
 0x4f7   : > { %v3810_v15 = vpop.f32.mrf.mxu2 }
 0x4f8   : > { %v3811_v50 = vadd.f32 %v3810_v15, %v3642_v51  ;;  %v3979_v44 = vpop.f32.mrf.mxu3 }
 0x4f9   : > { %v3644_v31 = vpop.f32.mrf.mxu1 }
 0x4fa   : > { %v3980_v60 = vadd.f32 %v3979_v44, %v3811_v50  ;;  %v3645_v59 = vadd.f32 %v3644_v31, %v7919_v10 }
 0x4fb   : > { %v4151_v48 = vpop.f32.mrf.mxu0 }
 0x4fc   : > { %v6406_v26 = vpop.eup %6405  ;;  %v4149_v41 = vadd.f32 %v4148_v28, %v3980_v60 }
 0x4fd   : > { %4286 = vst [vmem:[%s7517_s18 + $0x1c0] sm:$0xff] %v6406_v26 }
 0x4fe   : > { %6407 = vtanh.f32 %v4149_v41 }
 0x4ff   : > { %v3813_v11 = vpop.f32.mrf.mxu2 }
 0x500   : > { %v3814_v45 = vadd.f32 %v3813_v11, %v3645_v59  ;;  %v3982_v21 = vpop.f32.mrf.mxu3 }
 0x501   : > { %v3646_v23 = vpop.f32.mrf.mxu1 }
 0x502   : > { %v3983_v6 = vadd.f32 %v3982_v21, %v3814_v45  ;;  %v3647_v13 = vadd.f32 %v3646_v23, %v7920_v52 }
 0x503   : > { %v4153_v63 = vpop.f32.mrf.mxu0 }
 0x504   : > { %v6408_v33 = vpop.eup %6407  ;;  %v4152_v57 = vadd.f32 %v4151_v48, %v3983_v6 }
 0x505   : > { %4287 = vst [vmem:[%s7517_s18 + $0x1c8] sm:$0xff] %v6408_v33 }
 0x506   : > { %6409 = vtanh.f32 %v4152_v57 }
 0x507   : > { %v3815_v54 = vpop.f32.mrf.mxu2 }
 0x508   : > { %v3816_v3 = vadd.f32 %v3815_v54, %v3647_v13  ;;  %v3984_v39 = vpop.f32.mrf.mxu3 }
 0x509   : > { %v3649_v7 = vpop.f32.mrf.mxu1 }
 0x50a   : > { %v3985_v34 = vadd.f32 %v3984_v39, %v3816_v3  ;;  %v3650_v22 = vadd.f32 %v3649_v7, %v7921_v61 }
 0x50b   : > { %v4156_v42 = vpop.f32.mrf.mxu0 }
 0x50c   : > { %v6410_v47 = vpop.eup %6409  ;;  %v4154_v49 = vadd.f32 %v4153_v63, %v3985_v34 }
 0x50d   : > { %4288 = vst [vmem:[%s7517_s18 + $0x1d0] sm:$0xff] %v6410_v47 }
 0x50e   : > { %6411 = vtanh.f32 %v4154_v49 }
 0x50f   : > { %v3818_v36 = vpop.f32.mrf.mxu2 }
 0x510   : > { %v3819_v14 = vadd.f32 %v3818_v36, %v3650_v22  ;;  %v3987_v25 = vpop.f32.mrf.mxu3 }
 0x511   : > { %v3651_v53 = vpop.f32.mrf.mxu1 }
 0x512   : > { %v3988_v16 = vadd.f32 %v3987_v25, %v3819_v14  ;;  %v3652_v9 = vadd.f32 %v3651_v53, %v7487_v46 }
 0x513   : > { %v4158_v20 = vpop.f32.mrf.mxu0 }
 0x514   : > { %v6412_v35 = vpop.eup %6411  ;;  %v4157_v27 = vadd.f32 %v4156_v42, %v3988_v16 }
 0x515   : > { %4289 = vst [vmem:[%s7517_s18 + $0x1d8] sm:$0xff] %v6412_v35 }
 0x516   : > { %6413 = vtanh.f32 %v4157_v27 }
 0x517   : > { %v3820_v37 = vpop.f32.mrf.mxu2 }
 0x518   : > { %v3821_v4 = vadd.f32 %v3820_v37, %v3652_v9  ;;  %v3989_v19 = vpop.f32.mrf.mxu3 }
 0x519   : > { %v3654_v17 = vpop.f32.mrf.mxu1 }
 0x51a   : > { %v3990_v30 = vadd.f32 %v3989_v19, %v3821_v4  ;;  %v3655_v12 = vadd.f32 %v3654_v17, %v7493_v0 }
 0x51b   : > { %v4161_v18 = vpop.f32.mrf.mxu0 }
 0x51c   : > { %v6414_v58 = vpop.eup %6413  ;;  %v4159_v2 = vadd.f32 %v4158_v20, %v3990_v30 }
 0x51d   : > { %4290 = vst [vmem:[%s7517_s18 + $0x1e0] sm:$0xff] %v6414_v58 }
 0x51e   : > { %6415 = vtanh.f32 %v4159_v2 }
 0x51f   : > { %v3823_v5 = vpop.f32.mrf.mxu2 }
 0x520   : > { %v3824_v24 = vadd.f32 %v3823_v5, %v3655_v12  ;;  %v3992_v55 = vpop.f32.mrf.mxu3 }
 0x521   : > { %v3656_v46 = vpop.f32.mrf.mxu1 }
 0x522   : > { %v3993_v1 = vadd.f32 %v3992_v55, %v3824_v24  ;;  %v3657_v40 = vadd.f32 %v3656_v46, %v7501_v43 }
 0x523   : > { %v4163_v56 = vpop.f32.mrf.mxu0 }
 0x524   : > { %v6416_v38 = vpop.eup %6415  ;;  %v4162_v8 = vadd.f32 %v4161_v18, %v3993_v1 }
 0x525   : > { %4291 = vst [vmem:[%s7517_s18 + $0x1e8] sm:$0xff] %v6416_v38 }
 0x526   : > { %6417 = vtanh.f32 %v4162_v8 }
 0x527   : > { %v3825_v32 = vpop.f32.mrf.mxu2 }
 0x528   : > { %v3826_v28 = vadd.f32 %v3825_v32, %v3657_v40  ;;  %v3994_v29 = vpop.f32.mrf.mxu3 }
 0x52a   : > { %v3995_v62 = vadd.f32 %v3994_v29, %v3826_v28 }
 0x52c   : > { %v6418_v0 = vpop.eup %6417  ;;  %v4164_v51 = vadd.f32 %v4163_v56, %v3995_v62 }
 0x52d   : > { %4292 = vst [vmem:[%s7517_s18 + $0x1f0] sm:$0xff] %v6418_v0 }
 0x52e   : > { %6419 = vtanh.f32 %v4164_v51 }
 0x534   : > { %v6420_v15 = vpop.eup %6419 }
 0x535   : > { %4293 = vst [vmem:[%s7517_s18 + $0x1f8] sm:$0xff] %v6420_v15 }
 0x536 PF: > { %s13_s14 = sadd.s32 1, %s6445_s14   ;;  %s7922_s12 = smov %s6441_s13 }
 0x537   : > { %p10_p5 = scmp.ge.s32.totalorder %s13_s14, 6   ;;  %s7923_s13 = smov %s7925_s15 }
 0x539   :  { %12 = sbr.rel (!%p10_p5) target bundleno = 2 (0x2), region = 68 }

</bundles_post_ra>
